<compile_context>
chip_gen: v6e
topology: v6e:2x2x1
jax: 0.10.0
libtpu: 0.0.40
codegen_flags: <defaults>
</compile_context>

<pallas_src>
import jax
import jax.numpy as jnp
from jax.experimental import pallas as pl
from jax.experimental.pallas import tpu as pltpu  # noqa: F401  (TPU backend)

_BN_EPS = 1e-5


# ------------------------------ fused kernel --------------------------------

def _fused_kernel(x_ref, w1_ref, b1_ref, g1_ref, be1_ref,
                  w2_ref, b2_ref, g2_ref, be2_ref, o_ref):
    """conv3x3+bias -> BN(batch stats)+ReLU -> conv3x3+bias -> BN+ReLU.

    Layouts (whole arrays in VMEM, single invocation, no grid):
      x_ref : (N, Cin, H, W)   NCHW (PyTorch layout, no wrapper transpose)
      w*_ref: (Co, 9*Ci)       taps (dy,dx) major, input channel minor
      b/g/be: (C, 1)           per-channel column vectors
      o_ref : (N, Cout, H2*W2) channels on sublanes, flat spatial on lanes
    """
    N, Cin, H, W = x_ref.shape
    H1, W1 = H - 2, W - 2
    H2, W2 = H1 - 2, W1 - 2
    P1, P2 = H1 * W1, H2 * W2

    w1 = w1_ref[...]          # (Cmid, 9*Cin)
    w2 = w2_ref[...]          # (Cout, 9*Cmid)
    b1 = b1_ref[...]          # (Cmid, 1)
    b2 = b2_ref[...]          # (Cout, 1)
    Cmid = w1.shape[0]

    def im2col(a, ho, wo):
        # a: (C, h, w) -> patch matrix (9*C, ho*wo); tap-major, channel-minor.
        c = a.shape[0]
        taps = []
        for dy in range(3):
            for dx in range(3):
                taps.append(a[:, dy:dy + ho, dx:dx + wo].reshape(c, ho * wo))
        return jnp.concatenate(taps, axis=0)

    # ---- stage 1: conv1 + bias (one MXU matmul per image, lane-dense out) --
    y1 = []
    for n in range(N):
        patches = im2col(x_ref[n], H1, W1)                     # (9*Cin, P1)
        y1.append(jnp.dot(w1, patches,
                          preferred_element_type=jnp.float32) + b1)

    # BN1: training-mode batch statistics over (N, spatial), biased variance.
    cnt1 = float(N * P1)
    mean1 = sum(jnp.sum(y, axis=1, keepdims=True) for y in y1) / cnt1
    var1 = sum(jnp.sum((y - mean1) ** 2, axis=1, keepdims=True)
               for y in y1) / cnt1
    scale1 = g1_ref[...] * jax.lax.rsqrt(var1 + _BN_EPS)       # (Cmid, 1)
    shift1 = be1_ref[...] - mean1 * scale1
    a1 = [jnp.maximum(y * scale1 + shift1, 0.0) for y in y1]   # (Cmid, P1)

    # ---- stage 2: conv2 + bias ----------------------------------------------
    y2 = []
    for n in range(N):
        patches = im2col(a1[n].reshape(Cmid, H1, W1), H2, W2)  # (9*Cmid, P2)
        y2.append(jnp.dot(w2, patches,
                          preferred_element_type=jnp.float32) + b2)

    # BN2 + ReLU; stores are (Cout, P2) lane-dense, already channels-first.
    cnt2 = float(N * P2)
    mean2 = sum(jnp.sum(y, axis=1, keepdims=True) for y in y2) / cnt2
    var2 = sum(jnp.sum((y - mean2) ** 2, axis=1, keepdims=True)
               for y in y2) / cnt2
    scale2 = g2_ref[...] * jax.lax.rsqrt(var2 + _BN_EPS)       # (Cout, 1)
    shift2 = be2_ref[...] - mean2 * scale2
    for n in range(N):
        o_ref[n] = jnp.maximum(y2[n] * scale2 + shift2, 0.0)


# --------------------------------- wrapper -----------------------------------

def _flatten_conv_weight(w_oihw):
    # PyTorch (Co, Ci, 3, 3) -> (Co, 9*Ci) with row order (dy*3+dx)*Ci + ci,
    # matching the in-kernel im2col tap ordering.  Trace-time-only reshuffle.
    co = w_oihw.shape[0]
    return jnp.transpose(w_oihw, (0, 2, 3, 1)).reshape(co, -1)


def merge_twice_conv_helper(x_nchw, p):
    """Equivalent of _MergeTwiceConvHelper.forward (training-mode BN)."""
    N, _, H, W = x_nchw.shape
    Cmid = p["w1"].shape[0]
    Cout = p["w2"].shape[0]
    H2, W2 = H - 4, W - 4

    out_flat = pl.pallas_call(
        _fused_kernel,
        out_shape=jax.ShapeDtypeStruct((N, Cout, H2 * W2), jnp.float32),
    )(
        x_nchw,
        _flatten_conv_weight(p["w1"]), p["b1"].reshape(Cmid, 1),
        p["g1"].reshape(Cmid, 1), p["beta1"].reshape(Cmid, 1),
        _flatten_conv_weight(p["w2"]), p["b2"].reshape(Cout, 1),
        p["g2"].reshape(Cout, 1), p["beta2"].reshape(Cout, 1),
    )
    # Output is already channels-first; un-flattening spatial is a free
    # metadata reshape (no NCHW <-> NHWC transposes anywhere).
    return out_flat.reshape(N, Cout, H2, W2)


# ------------------------- pure-JAX reference (check) -------------------------

def _ref_forward(x_nchw, p):
    def conv(x, w_oihw, b):
        y = jax.lax.conv_general_dilated(
            x, w_oihw, window_strides=(1, 1), padding="VALID",
            dimension_numbers=("NCHW", "OIHW", "NCHW"))
        return y + b[None, :, None, None]

    def bnr(x, g, b):
        mean = jnp.mean(x, axis=(0, 2, 3), keepdims=True)
        var = jnp.mean((x - mean) ** 2, axis=(0, 2, 3), keepdims=True)
        y = (x - mean) * jax.lax.rsqrt(var + _BN_EPS)
        y = y * g[None, :, None, None] + b[None, :, None, None]
        return jnp.maximum(y, 0.0)

    y = bnr(conv(x_nchw, p["w1"], p["b1"]), p["g1"], p["beta1"])
    return bnr(conv(y, p["w2"], p["b2"]), p["g2"], p["beta2"])


# ------------------------------------ main ------------------------------------

if __name__ == "__main__":
    # Module config: _MergeTwiceConvHelper(input=4, middle=8, out=8)
    Cin, Cmid, Cout = 4, 8, 8
    N, H, W = 2, 16, 16

    key = jax.random.PRNGKey(0)
    k = jax.random.split(key, 9)
    params = {
        # PyTorch OIHW conv-weight layout.
        "w1": 0.1 * jax.random.normal(k[0], (Cmid, Cin, 3, 3), jnp.float32),
        "b1": 0.1 * jax.random.normal(k[1], (Cmid,), jnp.float32),
        "g1": 1.0 + 0.1 * jax.random.normal(k[2], (Cmid,), jnp.float32),
        "beta1": 0.1 * jax.random.normal(k[3], (Cmid,), jnp.float32),
        "w2": 0.1 * jax.random.normal(k[4], (Cout, Cmid, 3, 3), jnp.float32),
        "b2": 0.1 * jax.random.normal(k[5], (Cout,), jnp.float32),
        "g2": 1.0 + 0.1 * jax.random.normal(k[6], (Cout,), jnp.float32),
        "beta2": 0.1 * jax.random.normal(k[7], (Cout,), jnp.float32),
    }
    x = jax.random.normal(k[8], (N, Cin, H, W), jnp.float32)

    out = jax.block_until_ready(merge_twice_conv_helper(x, params))
    ref = jax.block_until_ready(_ref_forward(x, params))

    assert out.shape == (N, Cout, H - 4, W - 4), out.shape
    assert jnp.allclose(out, ref, atol=1e-4, rtol=1e-4), float(
        jnp.max(jnp.abs(out - ref)))
    print("KERNEL_OK")
</pallas_src>

<mosaic_0001>
module attributes {stable_mosaic.version = 11 : i64} {
  func.func @_fused_kernel(%arg0: memref<2x4x16x16xf32, #tpu.memory_space<vmem>>, %arg1: memref<8x36xf32, #tpu.memory_space<vmem>>, %arg2: memref<8x1xf32, #tpu.memory_space<vmem>>, %arg3: memref<8x1xf32, #tpu.memory_space<vmem>>, %arg4: memref<8x1xf32, #tpu.memory_space<vmem>>, %arg5: memref<8x72xf32, #tpu.memory_space<vmem>>, %arg6: memref<8x1xf32, #tpu.memory_space<vmem>>, %arg7: memref<8x1xf32, #tpu.memory_space<vmem>>, %arg8: memref<8x1xf32, #tpu.memory_space<vmem>>, %arg9: memref<2x8x144xf32, #tpu.memory_space<vmem>>) attributes {dimension_semantics = [], scalar_prefetch = 0 : i64, scratch_operands = 0 : i64, tpu.core_type = #tpu.core_type<tc>} {
    %c0 = arith.constant 0 : index
    %c0_0 = arith.constant 0 : index
    %0 = vector.load %arg1[%c0, %c0_0] : memref<8x36xf32, #tpu.memory_space<vmem>>, vector<8x36xf32>
    %c0_1 = arith.constant 0 : index
    %c0_2 = arith.constant 0 : index
    %1 = vector.load %arg5[%c0_1, %c0_2] : memref<8x72xf32, #tpu.memory_space<vmem>>, vector<8x72xf32>
    %c0_3 = arith.constant 0 : index
    %c0_4 = arith.constant 0 : index
    %2 = vector.load %arg2[%c0_3, %c0_4] : memref<8x1xf32, #tpu.memory_space<vmem>>, vector<8x1xf32>
    %c0_5 = arith.constant 0 : index
    %c0_6 = arith.constant 0 : index
    %3 = vector.load %arg6[%c0_5, %c0_6] : memref<8x1xf32, #tpu.memory_space<vmem>>, vector<8x1xf32>
    %c0_7 = arith.constant 0 : index
    %c0_8 = arith.constant 0 : index
    %c0_9 = arith.constant 0 : index
    %c0_10 = arith.constant 0 : index
    %4 = vector.load %arg0[%c0_7, %c0_8, %c0_9, %c0_10] : memref<2x4x16x16xf32, #tpu.memory_space<vmem>>, vector<1x4x16x16xf32>
    %5 = vector.shape_cast %4 : vector<1x4x16x16xf32> to vector<4x16x16xf32>
    %6 = vector.extract_strided_slice %5 {offsets = [0, 0, 0], sizes = [4, 14, 14], strides = [1, 1, 1]} : vector<4x16x16xf32> to vector<4x14x14xf32>
    %7 = vector.shape_cast %6 : vector<4x14x14xf32> to vector<4x196xf32>
    %8 = vector.extract_strided_slice %5 {offsets = [0, 0, 1], sizes = [4, 14, 14], strides = [1, 1, 1]} : vector<4x16x16xf32> to vector<4x14x14xf32>
    %9 = vector.shape_cast %8 : vector<4x14x14xf32> to vector<4x196xf32>
    %10 = vector.extract_strided_slice %5 {offsets = [0, 0, 2], sizes = [4, 14, 14], strides = [1, 1, 1]} : vector<4x16x16xf32> to vector<4x14x14xf32>
    %11 = vector.shape_cast %10 : vector<4x14x14xf32> to vector<4x196xf32>
    %12 = vector.extract_strided_slice %5 {offsets = [0, 1, 0], sizes = [4, 14, 14], strides = [1, 1, 1]} : vector<4x16x16xf32> to vector<4x14x14xf32>
    %13 = vector.shape_cast %12 : vector<4x14x14xf32> to vector<4x196xf32>
    %14 = vector.extract_strided_slice %5 {offsets = [0, 1, 1], sizes = [4, 14, 14], strides = [1, 1, 1]} : vector<4x16x16xf32> to vector<4x14x14xf32>
    %15 = vector.shape_cast %14 : vector<4x14x14xf32> to vector<4x196xf32>
    %16 = vector.extract_strided_slice %5 {offsets = [0, 1, 2], sizes = [4, 14, 14], strides = [1, 1, 1]} : vector<4x16x16xf32> to vector<4x14x14xf32>
    %17 = vector.shape_cast %16 : vector<4x14x14xf32> to vector<4x196xf32>
    %18 = vector.extract_strided_slice %5 {offsets = [0, 2, 0], sizes = [4, 14, 14], strides = [1, 1, 1]} : vector<4x16x16xf32> to vector<4x14x14xf32>
    %19 = vector.shape_cast %18 : vector<4x14x14xf32> to vector<4x196xf32>
    %20 = vector.extract_strided_slice %5 {offsets = [0, 2, 1], sizes = [4, 14, 14], strides = [1, 1, 1]} : vector<4x16x16xf32> to vector<4x14x14xf32>
    %21 = vector.shape_cast %20 : vector<4x14x14xf32> to vector<4x196xf32>
    %22 = vector.extract_strided_slice %5 {offsets = [0, 2, 2], sizes = [4, 14, 14], strides = [1, 1, 1]} : vector<4x16x16xf32> to vector<4x14x14xf32>
    %23 = vector.shape_cast %22 : vector<4x14x14xf32> to vector<4x196xf32>
    %24 = tpu.concatenate %7, %9, %11, %13, %15, %17, %19, %21, %23 in 0 : vector<4x196xf32>, vector<4x196xf32>, vector<4x196xf32>, vector<4x196xf32>, vector<4x196xf32>, vector<4x196xf32>, vector<4x196xf32>, vector<4x196xf32>, vector<4x196xf32> -> vector<36x196xf32>
    %cst = arith.constant dense<0.000000e+00> : vector<8x196xf32>
    %25 = tpu.matmul %0, %24, %cst {dimension_numbers = #tpu.dot_dimension_numbers<[1], [0], [0], [1], [0, 0, 1, 1], [], []>} : vector<8x36xf32>, vector<36x196xf32>, vector<8x196xf32> -> vector<8x196xf32>
    %26 = vector.broadcast %2 : vector<8x1xf32> to vector<8x196xf32>
    %27 = arith.addf %25, %26 : vector<8x196xf32>
    %c1 = arith.constant 1 : index
    %c0_11 = arith.constant 0 : index
    %c0_12 = arith.constant 0 : index
    %c0_13 = arith.constant 0 : index
    %28 = vector.load %arg0[%c1, %c0_11, %c0_12, %c0_13] : memref<2x4x16x16xf32, #tpu.memory_space<vmem>>, vector<1x4x16x16xf32>
    %29 = vector.shape_cast %28 : vector<1x4x16x16xf32> to vector<4x16x16xf32>
    %30 = vector.extract_strided_slice %29 {offsets = [0, 0, 0], sizes = [4, 14, 14], strides = [1, 1, 1]} : vector<4x16x16xf32> to vector<4x14x14xf32>
    %31 = vector.shape_cast %30 : vector<4x14x14xf32> to vector<4x196xf32>
    %32 = vector.extract_strided_slice %29 {offsets = [0, 0, 1], sizes = [4, 14, 14], strides = [1, 1, 1]} : vector<4x16x16xf32> to vector<4x14x14xf32>
    %33 = vector.shape_cast %32 : vector<4x14x14xf32> to vector<4x196xf32>
    %34 = vector.extract_strided_slice %29 {offsets = [0, 0, 2], sizes = [4, 14, 14], strides = [1, 1, 1]} : vector<4x16x16xf32> to vector<4x14x14xf32>
    %35 = vector.shape_cast %34 : vector<4x14x14xf32> to vector<4x196xf32>
    %36 = vector.extract_strided_slice %29 {offsets = [0, 1, 0], sizes = [4, 14, 14], strides = [1, 1, 1]} : vector<4x16x16xf32> to vector<4x14x14xf32>
    %37 = vector.shape_cast %36 : vector<4x14x14xf32> to vector<4x196xf32>
    %38 = vector.extract_strided_slice %29 {offsets = [0, 1, 1], sizes = [4, 14, 14], strides = [1, 1, 1]} : vector<4x16x16xf32> to vector<4x14x14xf32>
    %39 = vector.shape_cast %38 : vector<4x14x14xf32> to vector<4x196xf32>
    %40 = vector.extract_strided_slice %29 {offsets = [0, 1, 2], sizes = [4, 14, 14], strides = [1, 1, 1]} : vector<4x16x16xf32> to vector<4x14x14xf32>
    %41 = vector.shape_cast %40 : vector<4x14x14xf32> to vector<4x196xf32>
    %42 = vector.extract_strided_slice %29 {offsets = [0, 2, 0], sizes = [4, 14, 14], strides = [1, 1, 1]} : vector<4x16x16xf32> to vector<4x14x14xf32>
    %43 = vector.shape_cast %42 : vector<4x14x14xf32> to vector<4x196xf32>
    %44 = vector.extract_strided_slice %29 {offsets = [0, 2, 1], sizes = [4, 14, 14], strides = [1, 1, 1]} : vector<4x16x16xf32> to vector<4x14x14xf32>
    %45 = vector.shape_cast %44 : vector<4x14x14xf32> to vector<4x196xf32>
    %46 = vector.extract_strided_slice %29 {offsets = [0, 2, 2], sizes = [4, 14, 14], strides = [1, 1, 1]} : vector<4x16x16xf32> to vector<4x14x14xf32>
    %47 = vector.shape_cast %46 : vector<4x14x14xf32> to vector<4x196xf32>
    %48 = tpu.concatenate %31, %33, %35, %37, %39, %41, %43, %45, %47 in 0 : vector<4x196xf32>, vector<4x196xf32>, vector<4x196xf32>, vector<4x196xf32>, vector<4x196xf32>, vector<4x196xf32>, vector<4x196xf32>, vector<4x196xf32>, vector<4x196xf32> -> vector<36x196xf32>
    %cst_14 = arith.constant dense<0.000000e+00> : vector<8x196xf32>
    %49 = tpu.matmul %0, %48, %cst_14 {dimension_numbers = #tpu.dot_dimension_numbers<[1], [0], [0], [1], [0, 0, 1, 1], [], []>} : vector<8x36xf32>, vector<36x196xf32>, vector<8x196xf32> -> vector<8x196xf32>
    %50 = vector.broadcast %2 : vector<8x1xf32> to vector<8x196xf32>
    %51 = arith.addf %49, %50 : vector<8x196xf32>
    %cst_15 = arith.constant dense<0.000000e+00> : vector<8xf32>
    %52 = vector.multi_reduction <add>, %27, %cst_15 [1] : vector<8x196xf32> to vector<8xf32>
    %53 = vector.shape_cast %52 : vector<8xf32> to vector<8x1xf32>
    %cst_16 = arith.constant 0.000000e+00 : f32
    %54 = vector.broadcast %cst_16 : f32 to vector<8x1xf32>
    %55 = arith.addf %54, %53 : vector<8x1xf32>
    %cst_17 = arith.constant dense<0.000000e+00> : vector<8xf32>
    %56 = vector.multi_reduction <add>, %51, %cst_17 [1] : vector<8x196xf32> to vector<8xf32>
    %57 = vector.shape_cast %56 : vector<8xf32> to vector<8x1xf32>
    %58 = arith.addf %55, %57 : vector<8x1xf32>
    %cst_18 = arith.constant 3.920000e+02 : f32
    %59 = vector.broadcast %cst_18 : f32 to vector<8x1xf32>
    %60 = arith.divf %58, %59 : vector<8x1xf32>
    %61 = vector.broadcast %60 : vector<8x1xf32> to vector<8x196xf32>
    %62 = arith.subf %27, %61 : vector<8x196xf32>
    %63 = arith.mulf %62, %62 : vector<8x196xf32>
    %cst_19 = arith.constant dense<0.000000e+00> : vector<8xf32>
    %64 = vector.multi_reduction <add>, %63, %cst_19 [1] : vector<8x196xf32> to vector<8xf32>
    %65 = vector.shape_cast %64 : vector<8xf32> to vector<8x1xf32>
    %cst_20 = arith.constant 0.000000e+00 : f32
    %66 = vector.broadcast %cst_20 : f32 to vector<8x1xf32>
    %67 = arith.addf %66, %65 : vector<8x1xf32>
    %68 = vector.broadcast %60 : vector<8x1xf32> to vector<8x196xf32>
    %69 = arith.subf %51, %68 : vector<8x196xf32>
    %70 = arith.mulf %69, %69 : vector<8x196xf32>
    %cst_21 = arith.constant dense<0.000000e+00> : vector<8xf32>
    %71 = vector.multi_reduction <add>, %70, %cst_21 [1] : vector<8x196xf32> to vector<8xf32>
    %72 = vector.shape_cast %71 : vector<8xf32> to vector<8x1xf32>
    %73 = arith.addf %67, %72 : vector<8x1xf32>
    %cst_22 = arith.constant 3.920000e+02 : f32
    %74 = vector.broadcast %cst_22 : f32 to vector<8x1xf32>
    %75 = arith.divf %73, %74 : vector<8x1xf32>
    %c0_23 = arith.constant 0 : index
    %c0_24 = arith.constant 0 : index
    %76 = vector.load %arg3[%c0_23, %c0_24] : memref<8x1xf32, #tpu.memory_space<vmem>>, vector<8x1xf32>
    %cst_25 = arith.constant 9.99999974E-6 : f32
    %77 = vector.broadcast %cst_25 : f32 to vector<8x1xf32>
    %78 = arith.addf %75, %77 : vector<8x1xf32>
    %79 = math.rsqrt %78 : vector<8x1xf32>
    %80 = arith.mulf %76, %79 : vector<8x1xf32>
    %c0_26 = arith.constant 0 : index
    %c0_27 = arith.constant 0 : index
    %81 = vector.load %arg4[%c0_26, %c0_27] : memref<8x1xf32, #tpu.memory_space<vmem>>, vector<8x1xf32>
    %82 = arith.mulf %60, %80 : vector<8x1xf32>
    %83 = arith.subf %81, %82 : vector<8x1xf32>
    %84 = vector.broadcast %80 : vector<8x1xf32> to vector<8x196xf32>
    %85 = arith.mulf %27, %84 : vector<8x196xf32>
    %86 = vector.broadcast %83 : vector<8x1xf32> to vector<8x196xf32>
    %87 = arith.addf %85, %86 : vector<8x196xf32>
    %cst_28 = arith.constant 0.000000e+00 : f32
    %88 = vector.broadcast %cst_28 : f32 to vector<8x196xf32>
    %89 = arith.maximumf %87, %88 : vector<8x196xf32>
    %90 = vector.broadcast %80 : vector<8x1xf32> to vector<8x196xf32>
    %91 = arith.mulf %51, %90 : vector<8x196xf32>
    %92 = vector.broadcast %83 : vector<8x1xf32> to vector<8x196xf32>
    %93 = arith.addf %91, %92 : vector<8x196xf32>
    %cst_29 = arith.constant 0.000000e+00 : f32
    %94 = vector.broadcast %cst_29 : f32 to vector<8x196xf32>
    %95 = arith.maximumf %93, %94 : vector<8x196xf32>
    %96 = vector.shape_cast %89 : vector<8x196xf32> to vector<8x14x14xf32>
    %97 = vector.extract_strided_slice %96 {offsets = [0, 0, 0], sizes = [8, 12, 12], strides = [1, 1, 1]} : vector<8x14x14xf32> to vector<8x12x12xf32>
    %98 = vector.shape_cast %97 : vector<8x12x12xf32> to vector<8x144xf32>
    %99 = vector.extract_strided_slice %96 {offsets = [0, 0, 1], sizes = [8, 12, 12], strides = [1, 1, 1]} : vector<8x14x14xf32> to vector<8x12x12xf32>
    %100 = vector.shape_cast %99 : vector<8x12x12xf32> to vector<8x144xf32>
    %101 = vector.extract_strided_slice %96 {offsets = [0, 0, 2], sizes = [8, 12, 12], strides = [1, 1, 1]} : vector<8x14x14xf32> to vector<8x12x12xf32>
    %102 = vector.shape_cast %101 : vector<8x12x12xf32> to vector<8x144xf32>
    %103 = vector.extract_strided_slice %96 {offsets = [0, 1, 0], sizes = [8, 12, 12], strides = [1, 1, 1]} : vector<8x14x14xf32> to vector<8x12x12xf32>
    %104 = vector.shape_cast %103 : vector<8x12x12xf32> to vector<8x144xf32>
    %105 = vector.extract_strided_slice %96 {offsets = [0, 1, 1], sizes = [8, 12, 12], strides = [1, 1, 1]} : vector<8x14x14xf32> to vector<8x12x12xf32>
    %106 = vector.shape_cast %105 : vector<8x12x12xf32> to vector<8x144xf32>
    %107 = vector.extract_strided_slice %96 {offsets = [0, 1, 2], sizes = [8, 12, 12], strides = [1, 1, 1]} : vector<8x14x14xf32> to vector<8x12x12xf32>
    %108 = vector.shape_cast %107 : vector<8x12x12xf32> to vector<8x144xf32>
    %109 = vector.extract_strided_slice %96 {offsets = [0, 2, 0], sizes = [8, 12, 12], strides = [1, 1, 1]} : vector<8x14x14xf32> to vector<8x12x12xf32>
    %110 = vector.shape_cast %109 : vector<8x12x12xf32> to vector<8x144xf32>
    %111 = vector.extract_strided_slice %96 {offsets = [0, 2, 1], sizes = [8, 12, 12], strides = [1, 1, 1]} : vector<8x14x14xf32> to vector<8x12x12xf32>
    %112 = vector.shape_cast %111 : vector<8x12x12xf32> to vector<8x144xf32>
    %113 = vector.extract_strided_slice %96 {offsets = [0, 2, 2], sizes = [8, 12, 12], strides = [1, 1, 1]} : vector<8x14x14xf32> to vector<8x12x12xf32>
    %114 = vector.shape_cast %113 : vector<8x12x12xf32> to vector<8x144xf32>
    %115 = tpu.concatenate %98, %100, %102, %104, %106, %108, %110, %112, %114 in 0 : vector<8x144xf32>, vector<8x144xf32>, vector<8x144xf32>, vector<8x144xf32>, vector<8x144xf32>, vector<8x144xf32>, vector<8x144xf32>, vector<8x144xf32>, vector<8x144xf32> -> vector<72x144xf32>
    %cst_30 = arith.constant dense<0.000000e+00> : vector<8x144xf32>
    %116 = tpu.matmul %1, %115, %cst_30 {dimension_numbers = #tpu.dot_dimension_numbers<[1], [0], [0], [1], [0, 0, 1, 1], [], []>} : vector<8x72xf32>, vector<72x144xf32>, vector<8x144xf32> -> vector<8x144xf32>
    %117 = vector.broadcast %3 : vector<8x1xf32> to vector<8x144xf32>
    %118 = arith.addf %116, %117 : vector<8x144xf32>
    %119 = vector.shape_cast %95 : vector<8x196xf32> to vector<8x14x14xf32>
    %120 = vector.extract_strided_slice %119 {offsets = [0, 0, 0], sizes = [8, 12, 12], strides = [1, 1, 1]} : vector<8x14x14xf32> to vector<8x12x12xf32>
    %121 = vector.shape_cast %120 : vector<8x12x12xf32> to vector<8x144xf32>
    %122 = vector.extract_strided_slice %119 {offsets = [0, 0, 1], sizes = [8, 12, 12], strides = [1, 1, 1]} : vector<8x14x14xf32> to vector<8x12x12xf32>
    %123 = vector.shape_cast %122 : vector<8x12x12xf32> to vector<8x144xf32>
    %124 = vector.extract_strided_slice %119 {offsets = [0, 0, 2], sizes = [8, 12, 12], strides = [1, 1, 1]} : vector<8x14x14xf32> to vector<8x12x12xf32>
    %125 = vector.shape_cast %124 : vector<8x12x12xf32> to vector<8x144xf32>
    %126 = vector.extract_strided_slice %119 {offsets = [0, 1, 0], sizes = [8, 12, 12], strides = [1, 1, 1]} : vector<8x14x14xf32> to vector<8x12x12xf32>
    %127 = vector.shape_cast %126 : vector<8x12x12xf32> to vector<8x144xf32>
    %128 = vector.extract_strided_slice %119 {offsets = [0, 1, 1], sizes = [8, 12, 12], strides = [1, 1, 1]} : vector<8x14x14xf32> to vector<8x12x12xf32>
    %129 = vector.shape_cast %128 : vector<8x12x12xf32> to vector<8x144xf32>
    %130 = vector.extract_strided_slice %119 {offsets = [0, 1, 2], sizes = [8, 12, 12], strides = [1, 1, 1]} : vector<8x14x14xf32> to vector<8x12x12xf32>
    %131 = vector.shape_cast %130 : vector<8x12x12xf32> to vector<8x144xf32>
    %132 = vector.extract_strided_slice %119 {offsets = [0, 2, 0], sizes = [8, 12, 12], strides = [1, 1, 1]} : vector<8x14x14xf32> to vector<8x12x12xf32>
    %133 = vector.shape_cast %132 : vector<8x12x12xf32> to vector<8x144xf32>
    %134 = vector.extract_strided_slice %119 {offsets = [0, 2, 1], sizes = [8, 12, 12], strides = [1, 1, 1]} : vector<8x14x14xf32> to vector<8x12x12xf32>
    %135 = vector.shape_cast %134 : vector<8x12x12xf32> to vector<8x144xf32>
    %136 = vector.extract_strided_slice %119 {offsets = [0, 2, 2], sizes = [8, 12, 12], strides = [1, 1, 1]} : vector<8x14x14xf32> to vector<8x12x12xf32>
    %137 = vector.shape_cast %136 : vector<8x12x12xf32> to vector<8x144xf32>
    %138 = tpu.concatenate %121, %123, %125, %127, %129, %131, %133, %135, %137 in 0 : vector<8x144xf32>, vector<8x144xf32>, vector<8x144xf32>, vector<8x144xf32>, vector<8x144xf32>, vector<8x144xf32>, vector<8x144xf32>, vector<8x144xf32>, vector<8x144xf32> -> vector<72x144xf32>
    %cst_31 = arith.constant dense<0.000000e+00> : vector<8x144xf32>
    %139 = tpu.matmul %1, %138, %cst_31 {dimension_numbers = #tpu.dot_dimension_numbers<[1], [0], [0], [1], [0, 0, 1, 1], [], []>} : vector<8x72xf32>, vector<72x144xf32>, vector<8x144xf32> -> vector<8x144xf32>
    %140 = vector.broadcast %3 : vector<8x1xf32> to vector<8x144xf32>
    %141 = arith.addf %139, %140 : vector<8x144xf32>
    %cst_32 = arith.constant dense<0.000000e+00> : vector<8xf32>
    %142 = vector.multi_reduction <add>, %118, %cst_32 [1] : vector<8x144xf32> to vector<8xf32>
    %143 = vector.shape_cast %142 : vector<8xf32> to vector<8x1xf32>
    %cst_33 = arith.constant 0.000000e+00 : f32
    %144 = vector.broadcast %cst_33 : f32 to vector<8x1xf32>
    %145 = arith.addf %144, %143 : vector<8x1xf32>
    %cst_34 = arith.constant dense<0.000000e+00> : vector<8xf32>
    %146 = vector.multi_reduction <add>, %141, %cst_34 [1] : vector<8x144xf32> to vector<8xf32>
    %147 = vector.shape_cast %146 : vector<8xf32> to vector<8x1xf32>
    %148 = arith.addf %145, %147 : vector<8x1xf32>
    %cst_35 = arith.constant 2.880000e+02 : f32
    %149 = vector.broadcast %cst_35 : f32 to vector<8x1xf32>
    %150 = arith.divf %148, %149 : vector<8x1xf32>
    %151 = vector.broadcast %150 : vector<8x1xf32> to vector<8x144xf32>
    %152 = arith.subf %118, %151 : vector<8x144xf32>
    %153 = arith.mulf %152, %152 : vector<8x144xf32>
    %cst_36 = arith.constant dense<0.000000e+00> : vector<8xf32>
    %154 = vector.multi_reduction <add>, %153, %cst_36 [1] : vector<8x144xf32> to vector<8xf32>
    %155 = vector.shape_cast %154 : vector<8xf32> to vector<8x1xf32>
    %cst_37 = arith.constant 0.000000e+00 : f32
    %156 = vector.broadcast %cst_37 : f32 to vector<8x1xf32>
    %157 = arith.addf %156, %155 : vector<8x1xf32>
    %158 = vector.broadcast %150 : vector<8x1xf32> to vector<8x144xf32>
    %159 = arith.subf %141, %158 : vector<8x144xf32>
    %160 = arith.mulf %159, %159 : vector<8x144xf32>
    %cst_38 = arith.constant dense<0.000000e+00> : vector<8xf32>
    %161 = vector.multi_reduction <add>, %160, %cst_38 [1] : vector<8x144xf32> to vector<8xf32>
    %162 = vector.shape_cast %161 : vector<8xf32> to vector<8x1xf32>
    %163 = arith.addf %157, %162 : vector<8x1xf32>
    %cst_39 = arith.constant 2.880000e+02 : f32
    %164 = vector.broadcast %cst_39 : f32 to vector<8x1xf32>
    %165 = arith.divf %163, %164 : vector<8x1xf32>
    %c0_40 = arith.constant 0 : index
    %c0_41 = arith.constant 0 : index
    %166 = vector.load %arg7[%c0_40, %c0_41] : memref<8x1xf32, #tpu.memory_space<vmem>>, vector<8x1xf32>
    %cst_42 = arith.constant 9.99999974E-6 : f32
    %167 = vector.broadcast %cst_42 : f32 to vector<8x1xf32>
    %168 = arith.addf %165, %167 : vector<8x1xf32>
    %169 = math.rsqrt %168 : vector<8x1xf32>
    %170 = arith.mulf %166, %169 : vector<8x1xf32>
    %c0_43 = arith.constant 0 : index
    %c0_44 = arith.constant 0 : index
    %171 = vector.load %arg8[%c0_43, %c0_44] : memref<8x1xf32, #tpu.memory_space<vmem>>, vector<8x1xf32>
    %172 = arith.mulf %150, %170 : vector<8x1xf32>
    %173 = arith.subf %171, %172 : vector<8x1xf32>
    %174 = vector.broadcast %170 : vector<8x1xf32> to vector<8x144xf32>
    %175 = arith.mulf %118, %174 : vector<8x144xf32>
    %176 = vector.broadcast %173 : vector<8x1xf32> to vector<8x144xf32>
    %177 = arith.addf %175, %176 : vector<8x144xf32>
    %cst_45 = arith.constant 0.000000e+00 : f32
    %178 = vector.broadcast %cst_45 : f32 to vector<8x144xf32>
    %179 = arith.maximumf %177, %178 : vector<8x144xf32>
    %c0_46 = arith.constant 0 : index
    %c0_47 = arith.constant 0 : index
    %c0_48 = arith.constant 0 : index
    %180 = vector.load %arg9[%c0_46, %c0_47, %c0_48] : memref<2x8x144xf32, #tpu.memory_space<vmem>>, vector<1x8x144xf32>
    %181 = vector.shape_cast %180 : vector<1x8x144xf32> to vector<8x144xf32>
    %182 = vector.shape_cast %179 : vector<8x144xf32> to vector<1x8x144xf32>
    tpu.vector_store %arg9[%c0_46, %c0_47, %c0_48], %182 {strides = array<i32>} : memref<2x8x144xf32, #tpu.memory_space<vmem>>, vector<1x8x144xf32>,
    %183 = vector.broadcast %170 : vector<8x1xf32> to vector<8x144xf32>
    %184 = arith.mulf %141, %183 : vector<8x144xf32>
    %185 = vector.broadcast %173 : vector<8x1xf32> to vector<8x144xf32>
    %186 = arith.addf %184, %185 : vector<8x144xf32>
    %cst_49 = arith.constant 0.000000e+00 : f32
    %187 = vector.broadcast %cst_49 : f32 to vector<8x144xf32>
    %188 = arith.maximumf %186, %187 : vector<8x144xf32>
    %c1_50 = arith.constant 1 : index
    %c0_51 = arith.constant 0 : index
    %c0_52 = arith.constant 0 : index
    %189 = vector.load %arg9[%c1_50, %c0_51, %c0_52] : memref<2x8x144xf32, #tpu.memory_space<vmem>>, vector<1x8x144xf32>
    %190 = vector.shape_cast %189 : vector<1x8x144xf32> to vector<8x144xf32>
    %191 = vector.shape_cast %188 : vector<8x144xf32> to vector<1x8x144xf32>
    tpu.vector_store %arg9[%c1_50, %c0_51, %c0_52], %191 {strides = array<i32>} : memref<2x8x144xf32, #tpu.memory_space<vmem>>, vector<1x8x144xf32>,
    return
  }
}

</mosaic_0001>

<bundles_post_ra>
// kernel: tpu_custom_call.1
= control target key start
LH: loop header
LB: loop body
LE: loop exit
PB: predicated region body
PF: predicated region fallthrough
CT: control target
= control target key end

     0   :  { %14 = vsyncpa [#allocation3], 0  ;;  %s17386_s0 = inlined_call_operand.hbm [shape: f32[2,4,16,16], index: 0, kind: input, shape index: {}]   ;;  %s17387_s1 = inlined_call_operand.vmem [shape: f32[8,36], index: 1, kind: input, shape index: {}]   ;;  %s17388_s2 = inlined_call_operand.vmem [shape: f32[8,1], index: 2, kind: input, shape index: {}]   ;;  %s17389_s3 = inlined_call_operand.vmem [shape: f32[8,1], index: 3, kind: input, shape index: {}]   ;;  %s17390_s4 = inlined_call_operand.vmem [shape: f32[8,1], index: 4, kind: input, shape index: {}]   ;;  %s17391_s5 = inlined_call_operand.vmem [shape: f32[8,72], index: 5, kind: input, shape index: {}]   ;;  %s17392_s6 = inlined_call_operand.vmem [shape: f32[8,1], index: 6, kind: input, shape index: {}]   ;;  %s17393_s7 = inlined_call_operand.vmem [shape: f32[8,1], index: 7, kind: input, shape index: {}]   ;;  %s17394_s8 = inlined_call_operand.vmem [shape: f32[8,1], index: 8, kind: input, shape index: {}]   ;;  %s17395_s9 = inlined_call_operand.hbm [shape: f32[2,8,144], index: 9, kind: output, shape index: {}]  }
   0x1   :  { %15 = vsyncpa [#allocation4], 0  ;;  %s10643_s30 = smov [#allocation2]  }
   0x2   :  { %s21_s10 = sshll.u32 %s10643_s30, 4  ;;  %s22_s10 = int_to_ptr.vmem [resolvable:$true] %s21_s10 }
   0x3   :  { %s10607_s11 = scalar_lea.vmem %s22_s10, 2048  ;;  %p10612_p1 = scmp.lt.s32.totalorder %s22_s10, %s22_s10 }
   0x4   :  { %p10608_p0 = scmp.ne.s32.totalorder %s22_s10, %s10607_s11  ;;  %p10613_p2 = scmp.lt.s32.totalorder %s10607_s11, %s10607_s11 }
   0x6   :  { %p10614_p3 = por %p10613_p2, %p10612_p1 }
   0x8   :  { %p10615_p4 = pnand %p10614_p3, %p10608_p0 }
   0xa   :  { %10618 = shalt.err (!%p10615_p4)
}
   0xb   :  { %s10644_s12 = smov 128   ;;  %s10645_s13 = smov 8  }
   0xc   :  { %27 = dma.hbm_to_vmem [thread:$0]  %s17386_s0, 2048, %s22_s10, [#allocation3], %s10644_s12, %s10644_s12, %s10645_s13  }
   0xd   :  { %10639 = dma.done.wait [#allocation3], 2048  }
   0xe   :  { %10640 = vsyncadd [#allocation3], 4294965248  ;;  %v64_v0 = vlaneseq  ;;  %v10646_v1 = vmov 1983009808   ;;  %v17396_v4 = vmov 0.0   ;;  %v10744_v9 = vld [vmem:[#allocation2] sm:$0xff] }
   0xf   :  { %v62_v2 = vunpack.c.l.s4 %v10646_v1  ;;  %2106 = vmatprep.mubr.f32.mxu0 %v17396_v4  ;;  %4144 = vmatprep.mubr.f32.mxu1 %v17396_v4  ;;  %v10648_v6 = vmov 1934713408   ;;  %v10746_v10 = vld [vmem:[#allocation2 + $0x10] sm:$0xff]  ;;  %v10748_v11 = vld [vmem:[#allocation2 + $0x20] sm:$0xff]  ;;  %v10756_v16 = vld [vmem:[#allocation2 + $0x8] sm:$0xff]  ;;  %s10649_s0 = smov 56  }
  0x10   :  { %v65_v3 = vshrl.u32 %v64_v0, 7  ;;  %v94_v7 = vunpack.c.l.s4 %v10648_v6  ;;  %v10750_v13 = vld [vmem:[#allocation2 + $0x30] sm:$0xff]  ;;  %v60_v14 = vcombine.high %v10744_v9, %v10748_v11  ;;  %v59_v15 = vcombine.low %v10744_v9, %v10748_v11  ;;  %v10758_v17 = vld [vmem:[#allocation2 + $0x18] sm:$0xff]  ;;  %v10764_v20 = vld [vmem:[#allocation2 + $0x28] sm:$0xff]  ;;  %s10650_s16 = smov 28   ;;  %s10651_s17 = smov 84  }
  0x11   :  { %v63_v5 = vunpack.c.0.s8 %v62_v2  ;;  %v76_v18 = vcombine.high %v10746_v10, %v10750_v13  ;;  %v75_v19 = vcombine.low %v10746_v10, %v10750_v13  ;;  %v10766_v21 = vld [vmem:[#allocation2 + $0x38] sm:$0xff]  ;;  %v127_v24 = vcombine.low %v10756_v16, %v10764_v20  ;;  %s10652_s18 = smov 14   ;;  %s10653_s19 = smov 112  }
  0x12   :  { %v95_v12 = vunpack.c.0.s8 %v94_v7  ;;  %v143_v25 = vcombine.low %v10758_v17, %v10766_v21  ;;  %v128_v44 = vcombine.high %v10756_v16, %v10764_v20  ;;  %v144_v45 = vcombine.high %v10758_v17, %v10766_v21  ;;  %s10654_s20 = smov 70   ;;  %s10655_s21 = smov 12  }
  0x13   :  { %v10742_v8 = vsub.s32 %v63_v5, %v65_v3  ;;  %s10656_s22 = smov 98   ;;  %s10657_s23 = smov 42   ;;  %v10819_v56 = vrot.slane %v10756_v16, 1  ;;  %v10822_v57 = vrot.slane %v10758_v17, 1  ;;  %v10825_v58 = vrot.slane %v10764_v20, 1 }
  0x14   :  { %v10775_v27 = vsub.s32 %v95_v12, %v65_v3  ;;  %s10658_s24 = smov 126   ;;  %s10659_s25 = smov 40   ;;  %v10828_v59 = vrot.slane %v10766_v21, 1  ;;  %v705_v60 = vrot.slane %v10744_v9, 1  ;;  %v708_v61 = vrot.slane %v10746_v10, 1 }
  0x15   :  { %17806 = vst [vmem:[#allocation8_spill] sm:$0xff] %v10742_v8  ;;  %v74_v22 = vrot.slane %v60_v14, %v10742_v8  ;;  %v67_v23 = vrot.slane %v59_v15, %v10742_v8  ;;  %v90_v26 = vrot.slane %v76_v18, %v10742_v8  ;;  %v83_v28 = vrot.slane %v75_v19, %v10742_v8  ;;  %s10660_s26 = smov 26   ;;  %s10661_s27 = smov 127  }
  0x16   :  { %17807 = vst [vmem:[#allocation9_spill] sm:$0xff] %v10775_v27  ;;  %v135_v29 = vrot.slane %v127_v24, %v10742_v8  ;;  %v151_v30 = vrot.slane %v143_v25, %v10742_v8  ;;  %v142_v48 = vrot.slane %v128_v44, %v10742_v8  ;;  %v158_v49 = vrot.slane %v144_v45, %v10742_v8  ;;  %s10662_s28 = smov 54   ;;  %s10676_s29 = smov 88  }
  0x17   :  { %v107_v31 = vcombine.low %v74_v22, %v90_v26  ;;  %v92_v32 = vcombine.high %v67_v23, %v83_v28  ;;  %v91_v33 = vcombine.low %v67_v23, %v83_v28  ;;  %v108_v34 = vcombine.high %v74_v22, %v90_v26  ;;  %s10677_s30 = smov 24   ;;  %s10679_s10 = smov 48  }
  0x18   :  { %v159_v38 = vcombine.low %v135_v29, %v151_v30  ;;  %v160_v42 = vcombine.high %v135_v29, %v151_v30  ;;  %v175_v52 = vcombine.low %v142_v48, %v158_v49  ;;  %v711_v62 = vrot.slane %v10748_v11, 1  ;;  %s10680_s11 = smov 60   ;;  %s10681_s12 = smov 96  }
  0x19   :  { %v115_v35 = vrot.slane %v107_v31, %v10775_v27  ;;  %v106_v36 = vrot.slane %v92_v32, %v10775_v27  ;;  %v10783_v37 = vrot.slane %v91_v33, %v10775_v27  ;;  %v122_v39 = vrot.slane %v108_v34, %v10775_v27  ;;  %s10683_s13 = smov 120   ;;  %s10684_s14 = smov 4  }
  0x1a   :  { %v167_v41 = vrot.slane %v159_v38, %v10775_v27  ;;  %v174_v46 = vrot.slane %v160_v42, %v10775_v27  ;;  %v182_v53 = vrot.slane %v175_v52, %v10775_v27  ;;  %v714_v63 = vrot.slane %v10750_v13, 1 }
  0x1b   :  { %199 = vrot.lane.b32.xlu1 %v115_v35, %s10649_s0  ;;  %191 = vrot.lane.b32.xlu0 %v106_v36, %s10650_s16  ;;  %v123_v40 = vcombine.high %v10783_v37, %v17396_v4  ;;  %v125_v43 = vcombine.high %v115_v35, %v17396_v4  ;;  %v126_v47 = vcombine.high %v122_v39, %v17396_v4  ;;  %vm17444_vm0 = vcmask 1046528  }
  0x1c   :  { %v124_v50 = vcombine.high %v106_v36, %v17396_v4  ;;  %v183_v51 = vcombine.high %v167_v41, %v17396_v4  ;;  %v184_v54 = vcombine.high %v174_v46, %v17396_v4  ;;  %v185_v55 = vcombine.high %v182_v53, %v17396_v4 }
  0x1d   :  { %v10844_v0 = vsel %vm17444_vm0, %v705_v60, %v10819_v56  ;;  %v10848_v1 = vsel %vm17444_vm0, %v708_v61, %v10822_v57  ;;  %v10852_v2 = vsel %vm17444_vm0, %v711_v62, %v10825_v58  ;;  %v10856_v3 = vsel %vm17444_vm0, %v714_v63, %v10828_v59 }
  0x1e   :  { %v725_v5 = vcombine.low %v10844_v0, %v10852_v2  ;;  %v741_v6 = vcombine.low %v10848_v1, %v10856_v3  ;;  %v726_v14 = vcombine.high %v10844_v0, %v10852_v2  ;;  %v742_v18 = vcombine.high %v10848_v1, %v10856_v3 }
  0x1f   :  { %207 = vrot.lane.b32.xlu1 %v122_v39, %s10651_s17  ;;  %187 = vrot.lane.b32.xlu0 %v123_v40, %s10652_s18  ;;  %v793_v25 = vcombine.low %v10819_v56, %v10825_v58  ;;  %v809_v26 = vcombine.low %v10822_v57, %v10828_v59  ;;  %v794_v40 = vcombine.high %v10819_v56, %v10825_v58  ;;  %vm17423_vm1 = vcmask 1045504  }
  0x20   :  { %v733_v7 = vrot.slane %v725_v5, %v10742_v8  ;;  %v749_v12 = vrot.slane %v741_v6, %v10742_v8  ;;  %v740_v19 = vrot.slane %v726_v14, %v10742_v8  ;;  %v756_v24 = vrot.slane %v742_v18, %v10742_v8 }
  0x21   :  { %v801_v32 = vrot.slane %v793_v25, %v10742_v8  ;;  %v817_v35 = vrot.slane %v809_v26, %v10742_v8  ;;  %v808_v45 = vrot.slane %v794_v40, %v10742_v8  ;;  %vm238_vm2 = vcmask 113664  }
  0x22   :  { %v757_v15 = vcombine.low %v733_v7, %v749_v12  ;;  %v758_v23 = vcombine.high %v733_v7, %v749_v12  ;;  %v773_v30 = vcombine.low %v740_v19, %v756_v24  ;;  %v774_v31 = vcombine.high %v740_v19, %v756_v24 }
  0x23   :  { %215 = vrot.lane.b32.xlu1 %v167_v41, %s10653_s19  ;;  %203 = vrot.lane.b32.xlu0 %v125_v43, %s10654_s20  ;;  %v825_v39 = vcombine.low %v801_v32, %v817_v35  ;;  %v810_v41 = vcombine.high %v10822_v57, %v10828_v59  ;;  %v826_v44 = vcombine.high %v801_v32, %v817_v35  ;;  %vm240_vm3 = vcmask 228352  }
  0x24   :  { %v10886_v22 = vrot.slane %v757_v15, %v10775_v27  ;;  %v772_v29 = vrot.slane %v758_v23, %v10775_v27  ;;  %v781_v34 = vrot.slane %v773_v30, %v10775_v27  ;;  %v788_v38 = vrot.slane %v774_v31, %v10775_v27 }
  0x25   :  { %v833_v43 = vrot.slane %v825_v39, %v10775_v27  ;;  %v840_v48 = vrot.slane %v826_v44, %v10775_v27  ;;  %vm242_vm4 = vcmask 343040   ;;  %vm244_vm5 = vcmask 457728  }
  0x26   :  { %v789_v28 = vcombine.high %v10886_v22, %v17396_v4  ;;  %v790_v33 = vcombine.high %v772_v29, %v17396_v4  ;;  %v791_v36 = vcombine.high %v781_v34, %v17396_v4  ;;  %v792_v42 = vcombine.high %v788_v38, %v17396_v4 }
  0x27   :  { %223 = vrot.lane.b32.xlu1 %v174_v46, %s10655_s21  ;;  %211 = vrot.lane.b32.xlu0 %v126_v47, %s10656_s22  ;;  %v824_v46 = vrot.slane %v810_v41, %v10742_v8  ;;  %v849_v47 = vcombine.high %v833_v43, %v17396_v4  ;;  %vm246_vm6 = vcmask 572416   ;;  %vm256_vm7 = vcmask 97280  }
  0x28   :  { %vm248_vm8 = vcmask 687104   ;;  %vm258_vm9 = vcmask 211968   ;;  %vm250_vm10 = vcmask 801792   ;;  %vm260_vm11 = vcmask 326656  }
  0x29   :  { %v841_v49 = vcombine.low %v808_v45, %v824_v46  ;;  %vm252_vm12 = vcmask 916480   ;;  %vm262_vm13 = vcmask 441344   ;;  %vm254_vm14 = vcmask 1031168  }
  0x2a   :  { %vm2018_vm15 = vcmask 1043456  }
  0x2b   :  { %195 = vrot.lane.b32.xlu1 %v124_v50, %s10657_s23  ;;  %219 = vrot.lane.b32.xlu0 %v183_v51, %s10658_s24  ;;  %v850_v50 = vcombine.high %v840_v48, %v17396_v4  ;;  %v848_v51 = vrot.slane %v841_v49, %v10775_v27 }
  0x2d   :  { %v851_v52 = vcombine.high %v848_v51, %v17396_v4 }
  0x2f   :  { %231 = vrot.lane.b32.xlu1 %v182_v53, %s10659_s25  ;;  %227 = vrot.lane.b32.xlu0 %v184_v54, %s10660_s26 }
  0x33   :  { %272 = vrot.lane.b32.xlu1 %v10744_v9, %s10661_s27  ;;  %235 = vrot.lane.b32.xlu0 %v185_v55, %s10662_s28 }
  0x37   :  { %276 = vrot.lane.b32.xlu1 %v10746_v10, %s10661_s27  ;;  %274 = vrot.lane.b32.xlu0 %v10756_v16, %s10661_s27 }
  0x3b   :  { %280 = vrot.lane.b32.xlu1 %v10748_v11, %s10661_s27  ;;  %278 = vrot.lane.b32.xlu0 %v10758_v17, %s10661_s27 }
  0x3f   :  { %284 = vrot.lane.b32.xlu1 %v10750_v13, %s10661_s27  ;;  %282 = vrot.lane.b32.xlu0 %v10764_v20, %s10661_s27 }
  0x43   :  { %286 = vrot.lane.b32.xlu0 %v10766_v21, %s10661_s27  ;;  %490 = vrot.lane.b32.xlu1 %v10756_v16, %s10658_s24 }
  0x47   :  { %488 = vrot.lane.b32.xlu0 %v10744_v9, %s10658_s24  ;;  %494 = vrot.lane.b32.xlu1 %v10758_v17, %s10658_s24 }
  0x4b   :  { %492 = vrot.lane.b32.xlu0 %v10746_v10, %s10658_s24  ;;  %498 = vrot.lane.b32.xlu1 %v10764_v20, %s10658_s24 }
  0x4f   :  { %496 = vrot.lane.b32.xlu0 %v10748_v11, %s10658_s24  ;;  %502 = vrot.lane.b32.xlu1 %v10766_v21, %s10658_s24 }
  0x53   :  { %500 = vrot.lane.b32.xlu0 %v10750_v13, %s10658_s24  ;;  %853 = vrot.lane.b32.xlu1 %v789_v28, %s10652_s18 }
  0x57   :  { %857 = vrot.lane.b32.xlu0 %v772_v29, %s10650_s16  ;;  %861 = vrot.lane.b32.xlu1 %v790_v33, %s10657_s23 }
  0x5b   :  { %865 = vrot.lane.b32.xlu0 %v781_v34, %s10649_s0  ;;  %869 = vrot.lane.b32.xlu1 %v791_v36, %s10654_s20 }
  0x5f   :  { %873 = vrot.lane.b32.xlu0 %v788_v38, %s10651_s17  ;;  %877 = vrot.lane.b32.xlu1 %v792_v42, %s10656_s22 }
  0x63   :  { %881 = vrot.lane.b32.xlu0 %v833_v43, %s10653_s19  ;;  %885 = vrot.lane.b32.xlu1 %v849_v47, %s10658_s24 }
  0x67   :  { %889 = vrot.lane.b32.xlu0 %v840_v48, %s10655_s21  ;;  %893 = vrot.lane.b32.xlu1 %v850_v50, %s10660_s26 }
  0x6b   :  { %897 = vrot.lane.b32.xlu0 %v848_v51, %s10659_s25  ;;  %901 = vrot.lane.b32.xlu1 %v851_v52, %s10662_s28 }
  0x8d   :  { %v10934_v53 = vpop.permute.xlu1 %199  ;;  %v10936_v54 = vpop.permute.xlu0 %191 }
  0x91   :  { %v10938_v55 = vpop.permute.xlu1 %207  ;;  %v10940_v60 = vpop.permute.xlu0 %187 }
  0x95   :  { %v10942_v61 = vpop.permute.xlu1 %215  ;;  %v10944_v62 = vpop.permute.xlu0 %203 }
  0x96   :  { %17808 = vst [vmem:[#allocation10_spill] sm:$0xff] %v10942_v61 }
  0x99   :  { %v10946_v63 = vpop.permute.xlu1 %223  ;;  %v10948_v5 = vpop.permute.xlu0 %211 }
  0x9a   :  { %17809 = vst [vmem:[#allocation11_spill] sm:$0xff] %v10946_v63  ;;  %17810 = vst [vmem:[#allocation12_spill] sm:$0xff] %v10948_v5 }
  0x9d   :  { %v10950_v6 = vpop.permute.xlu1 %195  ;;  %v10952_v7 = vpop.permute.xlu0 %219 }
  0x9e   :  { %17811 = vst [vmem:[#allocation13_spill] sm:$0xff] %v10952_v7 }
  0xa1   :  { %v10954_v12 = vpop.permute.xlu1 %231  ;;  %v10956_v14 = vpop.permute.xlu0 %227 }
  0xa2   :  { %17812 = vst [vmem:[#allocation14_spill] sm:$0xff] %v10954_v12  ;;  %17813 = vst [vmem:[#allocation15_spill] sm:$0xff] %v10956_v14 }
  0xa5   :  { %v273_v15 = vpop.permute.xlu1 %272  ;;  %v10958_v18 = vpop.permute.xlu0 %235 }
  0xa6   :  { %17814 = vst [vmem:[#allocation16_spill] sm:$0xff] %v10958_v18 }
  0xa9   :  { %v277_v19 = vpop.permute.xlu1 %276  ;;  %v275_v23 = vpop.permute.xlu0 %274 }
  0xad   :  { %v281_v24 = vpop.permute.xlu1 %280  ;;  %v279_v25 = vpop.permute.xlu0 %278 }
  0xae   :  { %v296_v26 = vcombine.low %v273_v15, %v281_v24  ;;  %v297_v30 = vcombine.high %v273_v15, %v281_v24 }
  0xb0   :  { %v10961_v33 = vrot.slane %v296_v26, %v10742_v8  ;;  %v311_v38 = vrot.slane %v297_v30, %v10742_v8 }
  0xb1   :  { %v285_v28 = vpop.permute.xlu1 %284  ;;  %v283_v29 = vpop.permute.xlu0 %282 }
  0xb2   :  { %v312_v31 = vcombine.low %v277_v19, %v285_v28  ;;  %v313_v32 = vcombine.high %v277_v19, %v285_v28  ;;  %v364_v45 = vcombine.low %v275_v23, %v283_v29  ;;  %v365_v24 = vcombine.high %v275_v23, %v283_v29 }
  0xb4   :  { %v10964_v34 = vrot.slane %v312_v31, %v10742_v8  ;;  %v327_v35 = vrot.slane %v313_v32, %v10742_v8  ;;  %v372_v51 = vrot.slane %v364_v45, %v10742_v8 }
  0xb5   :  { %v287_v36 = vpop.permute.xlu0 %286  ;;  %v10970_v40 = vpop.permute.xlu1 %490 }
  0xb6   :  { %v329_v39 = vcombine.high %v10961_v33, %v10964_v34  ;;  %v380_v41 = vcombine.low %v279_v25, %v287_v36  ;;  %v344_v43 = vcombine.low %v311_v38, %v327_v35  ;;  %v345_v48 = vcombine.high %v311_v38, %v327_v35 }
  0xb7   :  { %v381_v52 = vcombine.high %v279_v25, %v287_v36  ;;  %v379_v38 = vrot.slane %v365_v24, %v10742_v8 }
  0xb8   :  { %v10973_v42 = vrot.slane %v329_v39, %v10775_v27  ;;  %v388_v46 = vrot.slane %v380_v41, %v10742_v8  ;;  %v10979_v47 = vrot.slane %v344_v43, %v10775_v27  ;;  %v10985_v15 = vrot.slane %v345_v48, %v10775_v27 }
  0xb9   :  { %v489_v44 = vpop.permute.xlu0 %488  ;;  %v495_v49 = vpop.permute.xlu1 %494  ;;  %v395_v28 = vrot.slane %v381_v52, %v10742_v8 }
  0xba   :  { %428 = vrot.lane.b32.xlu0 %v10973_v42, %s10650_s16  ;;  %v396_v19 = vcombine.low %v372_v51, %v388_v46  ;;  %v397_v35 = vcombine.high %v372_v51, %v388_v46 }
  0xbb   :  { %v412_v23 = vcombine.low %v379_v38, %v395_v28 }
  0xbc   :  { %v10991_v32 = vrot.slane %v396_v19, %v10775_v27  ;;  %v11000_v48 = vrot.slane %v397_v35, %v10775_v27 }
  0xbd   :  { %v493_v50 = vpop.permute.xlu0 %492  ;;  %v499_v30 = vpop.permute.xlu1 %498  ;;  %v419_v19 = vrot.slane %v412_v23, %v10775_v27 }
  0xbe   :  { %436 = vrot.lane.b32.xlu0 %v10979_v47, %s10649_s0 }
  0xc1   :  { %v497_v26 = vpop.permute.xlu0 %496  ;;  %v503_v46 = vpop.permute.xlu1 %502 }
  0xc2   :  { %444 = vrot.lane.b32.xlu0 %v10985_v15, %s10651_s17  ;;  %v512_v31 = vcombine.low %v489_v44, %v497_v26  ;;  %v513_v36 = vcombine.high %v489_v44, %v497_v26  ;;  %v596_v24 = vcombine.low %v495_v49, %v503_v46  ;;  %v597_v23 = vcombine.high %v495_v49, %v503_v46 }
  0xc4   :  { %v520_v29 = vrot.slane %v512_v31, %v10742_v8  ;;  %v527_v51 = vrot.slane %v513_v36, %v10742_v8  ;;  %v604_v38 = vrot.slane %v596_v24, %v10742_v8 }
  0xc5   :  { %v501_v25 = vpop.permute.xlu0 %500 }
  0xc6   :  { %v528_v39 = vcombine.low %v493_v50, %v501_v25  ;;  %v529_v41 = vcombine.high %v493_v50, %v501_v25  ;;  %452 = vrot.lane.b32.xlu0 %v10991_v32, %s10653_s19  ;;  %v580_v50 = vcombine.low %v10970_v40, %v499_v30 }
  0xc8   :  { %v536_v43 = vrot.slane %v528_v39, %v10742_v8  ;;  %v543_v45 = vrot.slane %v529_v41, %v10742_v8  ;;  %v588_v35 = vrot.slane %v580_v50, %v10742_v8  ;;  %v581_v41 = vcombine.high %v10970_v40, %v499_v30 }
  0xc9   :  { %v328_v40 = vcombine.low %v10961_v33, %v10964_v34 }
  0xca   :  { %v544_v52 = vcombine.low %v520_v29, %v536_v43  ;;  %460 = vrot.lane.b32.xlu0 %v11000_v48, %s10655_s21  ;;  %v545_v44 = vcombine.high %v520_v29, %v536_v43  ;;  %v560_v28 = vcombine.low %v527_v51, %v543_v45  ;;  %v561_v39 = vcombine.high %v527_v51, %v543_v45 }
  0xcb   :  { %v611_v45 = vrot.slane %v597_v23, %v10742_v8  ;;  %v613_v24 = vcombine.high %v588_v35, %v604_v38 }
  0xcc   :  { %v559_v26 = vrot.slane %v545_v44, %v10775_v27  ;;  %v11009_v31 = vrot.slane %v544_v52, %v10775_v27  ;;  %v568_v25 = vrot.slane %v560_v28, %v10775_v27  ;;  %v575_v29 = vrot.slane %v561_v39, %v10775_v27 }
  0xcd   :  { %v612_v52 = vcombine.low %v588_v35, %v604_v38  ;;  %v595_v44 = vrot.slane %v581_v41, %v10742_v8  ;;  %v627_v49 = vrot.slane %v613_v24, %v10775_v27  ;;  %v11040_v35 = vrot.slane %v328_v40, %v10775_v27 }
  0xce   :  { %468 = vrot.lane.b32.xlu0 %v419_v19, %s10659_s25  ;;  %644 = vrot.lane.b32.xlu1 %v559_v26, %s10650_s16  ;;  %v576_v36 = vcombine.high %v11009_v31, %v17396_v4  ;;  %v577_v43 = vcombine.high %v559_v26, %v17396_v4  ;;  %v578_v50 = vcombine.high %v568_v25, %v17396_v4 }
  0xcf   :  { %v620_v51 = vrot.slane %v612_v52, %v10775_v27  ;;  %v579_v30 = vcombine.high %v575_v29, %v17396_v4  ;;  %v628_v46 = vcombine.low %v595_v44, %v611_v45  ;;  %v360_v33 = vcombine.high %v11040_v35, %v17396_v4 }
  0xd0   :  { %v637_v34 = vcombine.high %v627_v49, %v17396_v4  ;;  %v361_v38 = vcombine.high %v10973_v42, %v17396_v4  ;;  %v363_v39 = vcombine.high %v10985_v15, %v17396_v4  ;;  %v420_v42 = vcombine.high %v10991_v32, %v17396_v4  ;;  %v11080_v32 = vpop.permute.xlu0 %857 }
  0xd1   :  { %v635_v26 = vrot.slane %v628_v46, %v10775_v27  ;;  %v636_v28 = vcombine.high %v620_v51, %v17396_v4  ;;  %v422_v15 = vcombine.high %v419_v19, %v17396_v4  ;;  %v11090_v19 = vpop.permute.xlu1 %853 }
  0xd2   :  { %652 = vrot.lane.b32.xlu1 %v568_v25, %s10649_s0  ;;  %640 = vrot.lane.b32.xlu0 %v576_v36, %s10652_s18  ;;  %v362_v36 = vcombine.high %v10979_v47, %v17396_v4  ;;  %v421_v47 = vcombine.high %v11000_v48, %v17396_v4 }
  0xd3   :  { %v638_v25 = vcombine.high %v635_v26, %v17396_v4 }
  0xd4   :  { %v11086_v48 = vpop.permute.xlu0 %865 }
  0xd6   :  { %660 = vrot.lane.b32.xlu1 %v575_v29, %s10651_s17  ;;  %648 = vrot.lane.b32.xlu0 %v577_v43, %s10657_s23  ;;  %v11094_v29 = vpop.permute.xlu1 %861 }
  0xd8   :  { %v11088_v41 = vpop.permute.xlu0 %873 }
  0xda   :  { %668 = vrot.lane.b32.xlu1 %v620_v51, %s10653_s19  ;;  %656 = vrot.lane.b32.xlu0 %v578_v50, %s10654_s20  ;;  %v11098_v52 = vpop.permute.xlu1 %869 }
  0xdc   :  { %v11092_v23 = vpop.permute.xlu0 %881 }
  0xde   :  { %676 = vrot.lane.b32.xlu1 %v627_v49, %s10655_s21  ;;  %664 = vrot.lane.b32.xlu0 %v579_v30, %s10656_s22  ;;  %v11102_v45 = vpop.permute.xlu1 %877 }
  0xe0   :  { %v11096_v43 = vpop.permute.xlu0 %889 }
  0xe2   :  { %684 = vrot.lane.b32.xlu1 %v635_v26, %s10659_s25  ;;  %672 = vrot.lane.b32.xlu0 %v636_v28, %s10658_s24  ;;  %v11108_v24 = vpop.permute.xlu1 %885 }
  0xe4   :  { %v11100_v44 = vpop.permute.xlu0 %897 }
  0xe6   :  { %424 = vrot.lane.b32.xlu1 %v360_v33, %s10652_s18  ;;  %680 = vrot.lane.b32.xlu0 %v637_v34, %s10660_s26  ;;  %v11112_v49 = vpop.permute.xlu1 %893 }
  0xea   :  { %432 = vrot.lane.b32.xlu1 %v361_v38, %s10657_s23  ;;  %688 = vrot.lane.b32.xlu0 %v638_v25, %s10662_s28  ;;  %v11116_v46 = vpop.permute.xlu1 %901 }
  0xeb   :  { %17818 = vst [vmem:[#allocation20_spill] sm:$0xff] %v11116_v46 }
  0xee   :  { %440 = vrot.lane.b32.xlu1 %v362_v36, %s10654_s20  ;;  %917 = vrot.lane.b32.xlu0 %v10844_v0, %s10661_s27 }
  0xf2   :  { %448 = vrot.lane.b32.xlu1 %v363_v39, %s10656_s22  ;;  %921 = vrot.lane.b32.xlu0 %v10848_v1, %s10661_s27 }
  0xf6   :  { %456 = vrot.lane.b32.xlu1 %v420_v42, %s10658_s24  ;;  %925 = vrot.lane.b32.xlu0 %v10852_v2, %s10661_s27 }
  0xfa   :  { %464 = vrot.lane.b32.xlu1 %v421_v47, %s10660_s26  ;;  %929 = vrot.lane.b32.xlu0 %v10856_v3, %s10661_s27 }
  0xfe   :  { %472 = vrot.lane.b32.xlu1 %v422_v15, %s10662_s28 }
 0x102   :  { %919 = vrot.lane.b32.xlu1 %v10819_v56, %s10661_s27 }
 0x106   :  { %923 = vrot.lane.b32.xlu1 %v10822_v57, %s10661_s27 }
 0x10a   :  { %927 = vrot.lane.b32.xlu1 %v10825_v58, %s10661_s27 }
 0x10e   :  { %931 = vrot.lane.b32.xlu1 %v10828_v59, %s10661_s27 }
 0x12c   :  { %v11104_v51 = vpop.permute.xlu0 %428 }
 0x130   :  { %v11106_v50 = vpop.permute.xlu0 %436 }
 0x131   :  { %17815 = vst [vmem:[#allocation17_spill] sm:$0xff] %v11106_v50 }
 0x134   :  { %v11110_v40 = vpop.permute.xlu0 %444 }
 0x135   :  { %17816 = vst [vmem:[#allocation18_spill] sm:$0xff] %v11110_v40 }
 0x138   :  { %v11114_v30 = vpop.permute.xlu0 %452 }
 0x139   :  { %17817 = vst [vmem:[#allocation19_spill] sm:$0xff] %v11114_v30 }
 0x13c   :  { %v11118_v26 = vpop.permute.xlu0 %460 }
 0x13d   :  { %17819 = vst [vmem:[#allocation21_spill] sm:$0xff] %v11118_v26 }
 0x140   :  { %v11120_v28 = vpop.permute.xlu1 %644  ;;  %v11122_v33 = vpop.permute.xlu0 %468 }
 0x141   :  { %17820 = vst [vmem:[#allocation22_spill] sm:$0xff] %v11122_v33 }
 0x144   :  { %v11124_v34 = vpop.permute.xlu1 %652  ;;  %v11126_v38 = vpop.permute.xlu0 %640 }
 0x145   :  { %17821 = vst [vmem:[#allocation23_spill] sm:$0xff] %v11124_v34 }
 0x148   :  { %v11128_v25 = vpop.permute.xlu1 %660  ;;  %v11130_v36 = vpop.permute.xlu0 %648 }
 0x149   :  { %17822 = vst [vmem:[#allocation24_spill] sm:$0xff] %v11128_v25 }
 0x14c   :  { %v11132_v39 = vpop.permute.xlu1 %668  ;;  %v11134_v42 = vpop.permute.xlu0 %656 }
 0x14d   :  { %17823 = vst [vmem:[#allocation25_spill] sm:$0xff] %v11132_v39  ;;  %17824 = vst [vmem:[#allocation26_spill] sm:$0xff] %v11134_v42 }
 0x150   :  { %v11136_v47 = vpop.permute.xlu1 %676  ;;  %v11138_v15 = vpop.permute.xlu0 %664 }
 0x151   :  { %17825 = vst [vmem:[#allocation27_spill] sm:$0xff] %v11136_v47  ;;  %17826 = vst [vmem:[#allocation28_spill] sm:$0xff] %v11138_v15 }
 0x154   :  { %v11140_v4 = vpop.permute.xlu1 %684  ;;  %v11142_v18 = vpop.permute.xlu0 %672 }
 0x155   :  { %17827 = vst [vmem:[#allocation29_spill] sm:$0xff] %v11140_v4  ;;  %17828 = vst [vmem:[#allocation30_spill] sm:$0xff] %v11142_v18 }
 0x158   :  { %v11144_v12 = vpop.permute.xlu1 %424  ;;  %v11146_v61 = vpop.permute.xlu0 %680 }
 0x159   :  { %17829 = vst [vmem:[#allocation31_spill] sm:$0xff] %v11146_v61 }
 0x15c   :  { %v11148_v33 = vpop.permute.xlu1 %432  ;;  %v11150_v30 = vpop.permute.xlu0 %688 }
 0x15d   :  { %17830 = vst [vmem:[#allocation32_spill] sm:$0xff] %v11150_v30 }
 0x160   :  { %v11152_v25 = vpop.permute.xlu1 %440  ;;  %v918_v39 = vpop.permute.xlu0 %917 }
 0x161   :  { %17831 = vst [vmem:[#allocation33_spill] sm:$0xff] %v11152_v25 }
 0x164   :  { %v11154_v26 = vpop.permute.xlu1 %448  ;;  %v922_v47 = vpop.permute.xlu0 %921 }
 0x165   :  { %17832 = vst [vmem:[#allocation34_spill] sm:$0xff] %v11154_v26 }
 0x168   :  { %v11156_v40 = vpop.permute.xlu1 %456  ;;  %v926_v15 = vpop.permute.xlu0 %925 }
 0x169   :  { %17833 = vst [vmem:[#allocation35_spill] sm:$0xff] %v11156_v40  ;;  %v941_v4 = vcombine.low %v918_v39, %v926_v15  ;;  %v942_v34 = vcombine.high %v918_v39, %v926_v15 }
 0x16b   :  { %v949_v7 = vrot.slane %v941_v4, %v10742_v8  ;;  %v956_v26 = vrot.slane %v942_v34, %v10742_v8  ;;  %v17837_v4 = vmov 0.0  }
 0x16c   :  { %v11158_v42 = vpop.permute.xlu1 %464  ;;  %v930_v18 = vpop.permute.xlu0 %929 }
 0x16d   :  { %17834 = vst [vmem:[#allocation36_spill] sm:$0xff] %v11158_v42  ;;  %v957_v14 = vcombine.low %v922_v47, %v930_v18  ;;  %v958_v61 = vcombine.high %v922_v47, %v930_v18 }
 0x16f   :  { %v965_v30 = vrot.slane %v957_v14, %v10742_v8  ;;  %v972_v63 = vrot.slane %v958_v61, %v10742_v8 }
 0x170   :  { %v11163_v5 = vpop.permute.xlu1 %472 }
 0x171   :  { %17835 = vst [vmem:[#allocation37_spill] sm:$0xff] %v11163_v5  ;;  %v973_v25 = vcombine.low %v949_v7, %v965_v30  ;;  %v974_v40 = vcombine.high %v949_v7, %v965_v30  ;;  %v989_v39 = vcombine.low %v956_v26, %v972_v63  ;;  %v990_v18 = vcombine.high %v956_v26, %v972_v63 }
 0x173   :  { %v988_v46 = vrot.slane %v974_v40, %v10775_v27  ;;  %v11168_v42 = vrot.slane %v973_v25, %v10775_v27  ;;  %v997_v61 = vrot.slane %v989_v39, %v10775_v27  ;;  %v1004_v40 = vrot.slane %v990_v18, %v10775_v27 }
 0x174   :  { %v920_v15 = vpop.permute.xlu1 %919 }
 0x175   :  { %17836 = vst [vmem:[#allocation38_spill] sm:$0xff] %v11168_v42  ;;  %1073 = vrot.lane.b32.xlu1 %v988_v46, %s10650_s16  ;;  %v1005_v14 = vcombine.high %v11168_v42, %v17837_v4  ;;  %v1006_v7 = vcombine.high %v988_v46, %v17837_v4  ;;  %v1007_v25 = vcombine.high %v997_v61, %v17837_v4 }
 0x176   :  { %v1008_v26 = vcombine.high %v1004_v40, %v17837_v4 }
 0x177   :  { %1069 = vrot.lane.b32.xlu0 %v1005_v14, %s10652_s18 }
 0x178   :  { %v924_v34 = vpop.permute.xlu1 %923 }
 0x179   :  { %1081 = vrot.lane.b32.xlu1 %v997_v61, %s10649_s0 }
 0x17b   :  { %1077 = vrot.lane.b32.xlu0 %v1006_v7, %s10657_s23 }
 0x17c   :  { %v928_v30 = vpop.permute.xlu1 %927 }
 0x17d   :  { %1089 = vrot.lane.b32.xlu1 %v1004_v40, %s10651_s17  ;;  %v1009_v47 = vcombine.low %v920_v15, %v928_v30  ;;  %v1010_v5 = vcombine.high %v920_v15, %v928_v30 }
 0x17f   :  { %1085 = vrot.lane.b32.xlu0 %v1007_v25, %s10654_s20  ;;  %v1017_v46 = vrot.slane %v1009_v47, %v10742_v8  ;;  %v1024_v61 = vrot.slane %v1010_v5, %v10742_v8 }
 0x180   :  { %v932_v14 = vpop.permute.xlu1 %931 }
 0x181   :  { %v1025_v39 = vcombine.low %v924_v34, %v932_v14  ;;  %v1026_v63 = vcombine.high %v924_v34, %v932_v14 }
 0x183   :  { %v1033_v7 = vrot.slane %v1025_v39, %v10742_v8  ;;  %1093 = vrot.lane.b32.xlu0 %v1008_v26, %s10656_s22  ;;  %v1040_v18 = vrot.slane %v1026_v63, %v10742_v8 }
 0x185   :  { %v1041_v42 = vcombine.low %v1017_v46, %v1033_v7  ;;  %v1042_v50 = vcombine.high %v1017_v46, %v1033_v7  ;;  %v1057_v40 = vcombine.low %v1024_v61, %v1040_v18 }
 0x187   :  { %v1049_v25 = vrot.slane %v1041_v42, %v10775_v27  ;;  %v1056_v15 = vrot.slane %v1042_v50, %v10775_v27  ;;  %v1064_v47 = vrot.slane %v1057_v40, %v10775_v27 }
 0x189   :  { %1097 = vrot.lane.b32.xlu1 %v1049_v25, %s10653_s19  ;;  %v1065_v34 = vcombine.high %v1049_v25, %v17837_v4  ;;  %v1066_v30 = vcombine.high %v1056_v15, %v17837_v4  ;;  %v1067_v5 = vcombine.high %v1064_v47, %v17837_v4 }
 0x18b   :  { %1101 = vrot.lane.b32.xlu0 %v1065_v34, %s10658_s24 }
 0x18d   :  { %1105 = vrot.lane.b32.xlu1 %v1056_v15, %s10655_s21 }
 0x18f   :  { %1109 = vrot.lane.b32.xlu0 %v1066_v30, %s10660_s26 }
 0x191   :  { %1113 = vrot.lane.b32.xlu1 %v1064_v47, %s10659_s25 }
 0x193   :  { %1117 = vrot.lane.b32.xlu0 %v1067_v5, %s10662_s28  ;;  %v11243_v5 = vrot.slane %v10756_v16, 2  ;;  %v1353_v16 = vrot.slane %v10746_v10, 2 }
 0x195   :  { %1133 = vrot.lane.b32.xlu1 %v10844_v0, %s10658_s24 }
 0x197   :  { %1135 = vrot.lane.b32.xlu0 %v10819_v56, %s10658_s24 }
 0x199   :  { %1137 = vrot.lane.b32.xlu1 %v10848_v1, %s10658_s24 }
 0x19b   :  { %1139 = vrot.lane.b32.xlu0 %v10822_v57, %s10658_s24 }
 0x19d   :  { %1141 = vrot.lane.b32.xlu1 %v10852_v2, %s10658_s24 }
 0x19f   :  { %1143 = vrot.lane.b32.xlu0 %v10825_v58, %s10658_s24 }
 0x1a1   :  { %1145 = vrot.lane.b32.xlu1 %v10856_v3, %s10658_s24 }
 0x1a3   :  { %1147 = vrot.lane.b32.xlu0 %v10828_v59, %s10658_s24 }
 0x1e7   :  { %v11218_v56 = vpop.permute.xlu1 %1073 }
 0x1e8   :  { %17838 = vst [vmem:[#allocation39_spill] sm:$0xff] %v11218_v56 }
 0x1e9   :  { %v11216_v0 = vpop.permute.xlu0 %1069 }
 0x1eb   :  { %v11222_v50 = vpop.permute.xlu1 %1081 }
 0x1ec   :  { %17840 = vst [vmem:[#allocation41_spill] sm:$0xff] %v11222_v50 }
 0x1ed   :  { %v11220_v1 = vpop.permute.xlu0 %1077 }
 0x1ee   :  { %17839 = vst [vmem:[#allocation40_spill] sm:$0xff] %v11220_v1 }
 0x1ef   :  { %v11226_v2 = vpop.permute.xlu1 %1089 }
 0x1f0   :  { %17842 = vst [vmem:[#allocation43_spill] sm:$0xff] %v11226_v2 }
 0x1f1   :  { %v11224_v57 = vpop.permute.xlu0 %1085 }
 0x1f2   :  { %17841 = vst [vmem:[#allocation42_spill] sm:$0xff] %v11224_v57 }
 0x1f5   :  { %v11228_v42 = vpop.permute.xlu0 %1093 }
 0x1f6   :  { %17843 = vst [vmem:[#allocation44_spill] sm:$0xff] %v11228_v42 }
 0x1fb   :  { %v11230_v58 = vpop.permute.xlu1 %1097 }
 0x1fc   :  { %17844 = vst [vmem:[#allocation45_spill] sm:$0xff] %v11230_v58  ;;  %v11246_v58 = vrot.slane %v10758_v17, 2  ;;  %v1356_v17 = vrot.slane %v10748_v11, 2 }
 0x1fd   :  { %v11232_v3 = vpop.permute.xlu0 %1101 }
 0x1fe   :  { %17845 = vst [vmem:[#allocation46_spill] sm:$0xff] %v11232_v3  ;;  %v11275_v11 = vsel %vm17423_vm1, %v1353_v16, %v11246_v58 }
 0x1ff   :  { %v11234_v14 = vpop.permute.xlu1 %1105 }
 0x200   :  { %17846 = vst [vmem:[#allocation47_spill] sm:$0xff] %v11234_v14 }
 0x201   :  { %v11236_v59 = vpop.permute.xlu0 %1109 }
 0x202   :  { %17847 = vst [vmem:[#allocation48_spill] sm:$0xff] %v11236_v59 }
 0x203   :  { %v11238_v39 = vpop.permute.xlu1 %1113 }
 0x204   :  { %17848 = vst [vmem:[#allocation49_spill] sm:$0xff] %v11238_v39  ;;  %v11249_v39 = vrot.slane %v10764_v20, 2 }
 0x205   :  { %v11240_v63 = vpop.permute.xlu0 %1117 }
 0x206   :  { %17849 = vst [vmem:[#allocation50_spill] sm:$0xff] %v11240_v63  ;;  %v11252_v63 = vrot.slane %v10766_v21, 2 }
 0x207   :  { %v1134_v26 = vpop.permute.xlu1 %1133 }
 0x209   :  { %v1136_v46 = vpop.permute.xlu0 %1135 }
 0x20b   :  { %v1138_v7 = vpop.permute.xlu1 %1137 }
 0x20d   :  { %v1140_v18 = vpop.permute.xlu0 %1139 }
 0x20f   :  { %v1142_v61 = vpop.permute.xlu1 %1141 }
 0x210   :  { %v1157_v34 = vcombine.low %v1134_v26, %v1142_v61  ;;  %v1158_v40 = vcombine.high %v1134_v26, %v1142_v61 }
 0x211   :  { %v1144_v25 = vpop.permute.xlu0 %1143 }
 0x212   :  { %v1165_v42 = vrot.slane %v1157_v34, %v10742_v8  ;;  %v1172_v20 = vrot.slane %v1158_v40, %v10742_v8  ;;  %v1225_v3 = vcombine.low %v1136_v46, %v1144_v25 }
 0x213   :  { %v1146_v15 = vpop.permute.xlu1 %1145 }
 0x214   :  { %v1173_v30 = vcombine.low %v1138_v7, %v1146_v15  ;;  %v1174_v47 = vcombine.high %v1138_v7, %v1146_v15  ;;  %v1350_v7 = vrot.slane %v10744_v9, 2  ;;  %v1359_v15 = vrot.slane %v10750_v13, 2 }
 0x215   :  { %v1148_v61 = vpop.permute.xlu0 %1147  ;;  %v11279_v13 = vsel %vm17423_vm1, %v1356_v17, %v11249_v39 }
 0x216   :  { %v1181_v59 = vrot.slane %v1173_v30, %v10742_v8  ;;  %v1188_v26 = vrot.slane %v1174_v47, %v10742_v8  ;;  %v1241_v14 = vcombine.low %v1140_v18, %v1148_v61  ;;  %v11268_v9 = vsel %vm17423_vm1, %v1350_v7, %v11243_v5 }
 0x217   :  { %v1370_v16 = vcombine.low %v11268_v9, %v11279_v13 }
 0x218   :  { %v1189_v2 = vcombine.low %v1165_v42, %v1181_v59  ;;  %v1190_v21 = vcombine.high %v1165_v42, %v1181_v59  ;;  %v1205_v34 = vcombine.low %v1172_v20, %v1188_v26  ;;  %v1206_v42 = vcombine.high %v1172_v20, %v1188_v26 }
 0x219   :  { %v1233_v59 = vrot.slane %v1225_v3, %v10742_v8  ;;  %v1249_v40 = vrot.slane %v1241_v14, %v10742_v8  ;;  %v1242_v26 = vcombine.high %v1140_v18, %v1148_v61  ;;  %v1378_v14 = vrot.slane %v1370_v16, %v10742_v8 }
 0x21a   :  { %v1204_v30 = vrot.slane %v1190_v21, %v10775_v27  ;;  %v11264_v47 = vrot.slane %v1189_v2, %v10775_v27  ;;  %v11283_v2 = vsel %vm17423_vm1, %v1359_v15, %v11252_v63  ;;  %v1213_v7 = vrot.slane %v1205_v34, %v10775_v27 }
 0x21b   :  { %v1386_v17 = vcombine.low %v11275_v11, %v11283_v2  ;;  %v1226_v21 = vcombine.high %v1136_v46, %v1144_v25  ;;  %v1257_v20 = vcombine.low %v1233_v59, %v1249_v40  ;;  %v1220_v3 = vrot.slane %v1206_v42, %v10775_v27 }
 0x21c   :  { %1289 = vrot.lane.b32.xlu0 %v1204_v30, %s10650_s16  ;;  %v1221_v10 = vcombine.high %v11264_v47, %v17837_v4  ;;  %v1222_v15 = vcombine.high %v1204_v30, %v17837_v4  ;;  %v1256_v50 = vrot.slane %v1242_v26, %v10742_v8  ;;  %v1258_v30 = vcombine.high %v1233_v59, %v1249_v40 }
 0x21d   :  { %v1394_v34 = vrot.slane %v1386_v17, %v10742_v8  ;;  %v1240_v57 = vrot.slane %v1226_v21, %v10742_v8  ;;  %v1265_v46 = vrot.slane %v1257_v20, %v10775_v27  ;;  %v1224_v25 = vcombine.high %v1220_v3, %v17837_v4 }
 0x21e   :  { %1285 = vrot.lane.b32.xlu1 %v1221_v10, %s10652_s18  ;;  %v1223_v10 = vcombine.high %v1213_v7, %v17837_v4  ;;  %v1371_v61 = vcombine.high %v11268_v9, %v11279_v13  ;;  %v1387_v42 = vcombine.high %v11275_v11, %v11283_v2  ;;  %v1272_v59 = vrot.slane %v1258_v30, %v10775_v27 }
 0x21f   :  { %v1402_v18 = vcombine.low %v1378_v14, %v1394_v34  ;;  %v1403_v16 = vcombine.high %v1378_v14, %v1394_v34  ;;  %v1281_v17 = vcombine.high %v1265_v46, %v17837_v4  ;;  %v1438_v14 = vcombine.low %v11243_v5, %v11249_v39 }
 0x220   :  { %1297 = vrot.lane.b32.xlu0 %v1213_v7, %s10649_s0  ;;  %v1273_v7 = vcombine.low %v1240_v57, %v1256_v50  ;;  %v1401_v21 = vrot.slane %v1387_v42, %v10742_v8  ;;  %v1282_v20 = vcombine.high %v1272_v59, %v17837_v4  ;;  %v1454_v34 = vcombine.low %v11246_v58, %v11252_v63 }
 0x221   :  { %v11314_v40 = vrot.slane %v1402_v18, %v10775_v27  ;;  %v1417_v26 = vrot.slane %v1403_v16, %v10775_v27  ;;  %v1439_v16 = vcombine.high %v11243_v5, %v11249_v39 }
 0x222   :  { %1293 = vrot.lane.b32.xlu1 %v1222_v15, %s10657_s23  ;;  %v1385_v15 = vrot.slane %v1371_v61, %v10742_v8  ;;  %v1280_v50 = vrot.slane %v1273_v7, %v10775_v27  ;;  %v1462_v61 = vrot.slane %v1454_v34, %v10742_v8 }
 0x223   :  { %17850 = vst [vmem:[#allocation51_spill] sm:$0xff] %v11314_v40  ;;  %v1434_v57 = vcombine.high %v11314_v40, %v17837_v4 }
 0x224   :  { %1305 = vrot.lane.b32.xlu0 %v1220_v3, %s10651_s17  ;;  %v1418_v3 = vcombine.low %v1385_v15, %v1401_v21  ;;  %v1419_v30 = vcombine.high %v1385_v15, %v1401_v21 }
 0x226   :  { %1301 = vrot.lane.b32.xlu1 %v1223_v10, %s10654_s20  ;;  %v1435_v10 = vcombine.high %v1417_v26, %v17837_v4  ;;  %v1426_v18 = vrot.slane %v1418_v3, %v10775_v27  ;;  %v1433_v42 = vrot.slane %v1419_v30, %v10775_v27 }
 0x228   :  { %1313 = vrot.lane.b32.xlu0 %v1265_v46, %s10653_s19  ;;  %v1283_v46 = vcombine.high %v1280_v50, %v17837_v4  ;;  %v1436_v7 = vcombine.high %v1426_v18, %v17837_v4  ;;  %v1437_v15 = vcombine.high %v1433_v42, %v17837_v4 }
 0x22a   :  { %1309 = vrot.lane.b32.xlu1 %v1224_v25, %s10656_s22  ;;  %v1446_v25 = vrot.slane %v1438_v14, %v10742_v8 }
 0x22c   :  { %1321 = vrot.lane.b32.xlu0 %v1272_v59, %s10655_s21  ;;  %v1470_v59 = vcombine.low %v1446_v25, %v1462_v61 }
 0x22e   :  { %1317 = vrot.lane.b32.xlu1 %v1281_v17, %s10658_s24  ;;  %v1455_v17 = vcombine.high %v11246_v58, %v11252_v63  ;;  %v1478_v21 = vrot.slane %v1470_v59, %v10775_v27 }
 0x230   :  { %1329 = vrot.lane.b32.xlu0 %v1280_v50, %s10659_s25  ;;  %v1471_v50 = vcombine.high %v1446_v25, %v1462_v61  ;;  %v1494_v3 = vcombine.high %v1478_v21, %v17837_v4 }
 0x232   :  { %1325 = vrot.lane.b32.xlu1 %v1282_v20, %s10660_s26  ;;  %v1469_v20 = vrot.slane %v1455_v17, %v10742_v8  ;;  %v1485_v14 = vrot.slane %v1471_v50, %v10775_v27 }
 0x234   :  { %1498 = vrot.lane.b32.xlu0 %v1434_v57, %s10652_s18  ;;  %v1453_v57 = vrot.slane %v1439_v16, %v10742_v8  ;;  %v1495_v34 = vcombine.high %v1485_v14, %v17837_v4 }
 0x236   :  { %1333 = vrot.lane.b32.xlu1 %v1283_v46, %s10662_s28 }
 0x238   :  { %1506 = vrot.lane.b32.xlu0 %v1435_v10, %s10657_s23 }
 0x23a   :  { %1502 = vrot.lane.b32.xlu1 %v1417_v26, %s10650_s16  ;;  %v1486_v26 = vcombine.low %v1453_v57, %v1469_v20 }
 0x23c   :  { %1514 = vrot.lane.b32.xlu0 %v1436_v7, %s10654_s20  ;;  %v1493_v10 = vrot.slane %v1486_v26, %v10775_v27 }
 0x23e   :  { %1510 = vrot.lane.b32.xlu1 %v1426_v18, %s10649_s0  ;;  %v1496_v30 = vcombine.high %v1493_v10, %v17837_v4 }
 0x240   :  { %1522 = vrot.lane.b32.xlu0 %v1437_v15, %s10656_s22 }
 0x242   :  { %1518 = vrot.lane.b32.xlu1 %v1433_v42, %s10651_s17 }
 0x244   :  { %1530 = vrot.lane.b32.xlu0 %v1494_v3, %s10658_s24 }
 0x246   :  { %1526 = vrot.lane.b32.xlu1 %v1478_v21, %s10653_s19 }
 0x248   :  { %1538 = vrot.lane.b32.xlu0 %v1495_v34, %s10660_s26 }
 0x24a   :  { %1534 = vrot.lane.b32.xlu1 %v1485_v14, %s10655_s21 }
 0x24c   :  { %1546 = vrot.lane.b32.xlu0 %v1496_v30, %s10662_s28 }
 0x24e   :  { %1542 = vrot.lane.b32.xlu1 %v1493_v10, %s10659_s25 }
 0x250   :  { %1564 = vrot.lane.b32.xlu0 %v11243_v5, %s10661_s27 }
 0x252   :  { %1562 = vrot.lane.b32.xlu1 %v11268_v9, %s10661_s27 }
 0x254   :  { %1568 = vrot.lane.b32.xlu0 %v11246_v58, %s10661_s27 }
 0x256   :  { %1566 = vrot.lane.b32.xlu1 %v11275_v11, %s10661_s27 }
 0x258   :  { %1572 = vrot.lane.b32.xlu0 %v11249_v39, %s10661_s27 }
 0x25a   :  { %1570 = vrot.lane.b32.xlu1 %v11279_v13, %s10661_s27 }
 0x25c   :  { %1576 = vrot.lane.b32.xlu0 %v11252_v63, %s10661_s27 }
 0x25e   :  { %1574 = vrot.lane.b32.xlu1 %v11283_v2, %s10661_s27 }
 0x28e   :  { %v11382_v46 = vpop.permute.xlu0 %1289 }
 0x28f   :  { %17851 = vst [vmem:[#allocation52_spill] sm:$0xff] %v11382_v46 }
 0x290   :  { %v11384_v18 = vpop.permute.xlu1 %1285 }
 0x292   :  { %v11386_v25 = vpop.permute.xlu0 %1297 }
 0x293   :  { %17852 = vst [vmem:[#allocation53_spill] sm:$0xff] %v11386_v25 }
 0x294   :  { %v11388_v61 = vpop.permute.xlu1 %1293 }
 0x295   :  { %17853 = vst [vmem:[#allocation54_spill] sm:$0xff] %v11388_v61 }
 0x296   :  { %v11390_v42 = vpop.permute.xlu0 %1305 }
 0x297   :  { %17854 = vst [vmem:[#allocation55_spill] sm:$0xff] %v11390_v42 }
 0x298   :  { %v11392_v7 = vpop.permute.xlu1 %1301 }
 0x299   :  { %17855 = vst [vmem:[#allocation56_spill] sm:$0xff] %v11392_v7 }
 0x29a   :  { %v11394_v59 = vpop.permute.xlu0 %1313 }
 0x29b   :  { %17856 = vst [vmem:[#allocation57_spill] sm:$0xff] %v11394_v59 }
 0x29c   :  { %v11396_v16 = vpop.permute.xlu1 %1309 }
 0x29d   :  { %17857 = vst [vmem:[#allocation58_spill] sm:$0xff] %v11396_v16 }
 0x29e   :  { %v11398_v17 = vpop.permute.xlu0 %1321 }
 0x29f   :  { %17858 = vst [vmem:[#allocation59_spill] sm:$0xff] %v11398_v17 }
 0x2a0   :  { %v11400_v15 = vpop.permute.xlu1 %1317 }
 0x2a1   :  { %17859 = vst [vmem:[#allocation60_spill] sm:$0xff] %v11400_v15 }
 0x2a2   :  { %v11402_v21 = vpop.permute.xlu0 %1329 }
 0x2a3   :  { %17860 = vst [vmem:[#allocation61_spill] sm:$0xff] %v11402_v21 }
 0x2a4   :  { %v11404_v50 = vpop.permute.xlu1 %1325 }
 0x2a5   :  { %17861 = vst [vmem:[#allocation62_spill] sm:$0xff] %v11404_v50 }
 0x2a6   :  { %v11406_v57 = vpop.permute.xlu0 %1498 }
 0x2a7   :  { %17862 = vst [vmem:[#allocation63_spill] sm:$0xff] %v11406_v57 }
 0x2a8   :  { %v11408_v20 = vpop.permute.xlu1 %1333 }
 0x2a9   :  { %17863 = vst [vmem:[#allocation64_spill] sm:$0xff] %v11408_v20 }
 0x2aa   :  { %v11410_v3 = vpop.permute.xlu0 %1506 }
 0x2ab   :  { %17864 = vst [vmem:[#allocation65_spill] sm:$0xff] %v11410_v3 }
 0x2ac   :  { %v11412_v14 = vpop.permute.xlu1 %1502 }
 0x2ad   :  { %17865 = vst [vmem:[#allocation66_spill] sm:$0xff] %v11412_v14 }
 0x2ae   :  { %v11414_v26 = vpop.permute.xlu0 %1514 }
 0x2af   :  { %17866 = vst [vmem:[#allocation67_spill] sm:$0xff] %v11414_v26 }
 0x2b0   :  { %v11416_v34 = vpop.permute.xlu1 %1510 }
 0x2b1   :  { %17867 = vst [vmem:[#allocation68_spill] sm:$0xff] %v11416_v34 }
 0x2b2   :  { %v11418_v10 = vpop.permute.xlu0 %1522 }
 0x2b3   :  { %17868 = vst [vmem:[#allocation69_spill] sm:$0xff] %v11418_v10 }
 0x2b4   :  { %v11420_v30 = vpop.permute.xlu1 %1518 }
 0x2b5   :  { %17869 = vst [vmem:[#allocation70_spill] sm:$0xff] %v11420_v30 }
 0x2b6   :  { %v11422_v59 = vpop.permute.xlu0 %1530 }
 0x2b7   :  { %17870 = vst [vmem:[#allocation71_spill] sm:$0xff] %v11422_v59 }
 0x2b8   :  { %v11424_v21 = vpop.permute.xlu1 %1526 }
 0x2b9   :  { %17871 = vst [vmem:[#allocation72_spill] sm:$0xff] %v11424_v21 }
 0x2ba   :  { %v11426_v16 = vpop.permute.xlu0 %1538 }
 0x2bb   :  { %17872 = vst [vmem:[#allocation73_spill] sm:$0xff] %v11426_v16 }
 0x2bc   :  { %v11428_v50 = vpop.permute.xlu1 %1534 }
 0x2bd   :  { %17873 = vst [vmem:[#allocation74_spill] sm:$0xff] %v11428_v50 }
 0x2be   :  { %v11430_v20 = vpop.permute.xlu0 %1546 }
 0x2bf   :  { %17874 = vst [vmem:[#allocation75_spill] sm:$0xff] %v11430_v20 }
 0x2c0   :  { %v11432_v42 = vpop.permute.xlu1 %1542 }
 0x2c1   :  { %17875 = vst [vmem:[#allocation76_spill] sm:$0xff] %v11432_v42 }
 0x2c2   :  { %v1565_v15 = vpop.permute.xlu0 %1564 }
 0x2c4   :  { %v1563_v26 = vpop.permute.xlu1 %1562 }
 0x2c6   :  { %v1569_v34 = vpop.permute.xlu0 %1568 }
 0x2c8   :  { %v1567_v17 = vpop.permute.xlu1 %1566 }
 0x2ca   :  { %v1573_v10 = vpop.permute.xlu0 %1572 }
 0x2cb   :  { %v1654_v1 = vcombine.low %v1565_v15, %v1573_v10 }
 0x2cc   :  { %v1571_v3 = vpop.permute.xlu1 %1570 }
 0x2cd   :  { %v1586_v7 = vcombine.low %v1563_v26, %v1571_v3  ;;  %v1587_v25 = vcombine.high %v1563_v26, %v1571_v3 }
 0x2ce   :  { %v1577_v20 = vpop.permute.xlu0 %1576 }
 0x2cf   :  { %v1594_v21 = vrot.slane %v1586_v7, %v10742_v8  ;;  %v1601_v42 = vrot.slane %v1587_v25, %v10742_v8  ;;  %v1670_v57 = vcombine.low %v1569_v34, %v1577_v20 }
 0x2d0   :  { %v1575_v30 = vpop.permute.xlu1 %1574 }
 0x2d1   :  { %v1602_v59 = vcombine.low %v1567_v17, %v1575_v30  ;;  %v1603_v14 = vcombine.high %v1567_v17, %v1575_v30  ;;  %v1678_v25 = vrot.slane %v1670_v57, %v10742_v8 }
 0x2d3   :  { %v1610_v16 = vrot.slane %v1602_v59, %v10742_v8  ;;  %v1617_v50 = vrot.slane %v1603_v14, %v10742_v8  ;;  %v1662_v59 = vrot.slane %v1654_v1, %v10742_v8 }
 0x2d5   :  { %v1618_v61 = vcombine.low %v1594_v21, %v1610_v16  ;;  %v1619_v46 = vcombine.high %v1594_v21, %v1610_v16  ;;  %v1634_v40 = vcombine.low %v1601_v42, %v1617_v50  ;;  %v1635_v17 = vcombine.high %v1601_v42, %v1617_v50 }
 0x2d6   :  { %v1671_v21 = vcombine.high %v1569_v34, %v1577_v20  ;;  %v1686_v14 = vcombine.low %v1662_v59, %v1678_v25 }
 0x2d7   :  { %v1633_v56 = vrot.slane %v1619_v46, %v10775_v27  ;;  %v11440_v3 = vrot.slane %v1618_v61, %v10775_v27  ;;  %v1642_v16 = vrot.slane %v1634_v40, %v10775_v27  ;;  %v1655_v61 = vcombine.high %v1565_v15, %v1573_v10 }
 0x2d8   :  { %v1649_v26 = vrot.slane %v1635_v17, %v10775_v27  ;;  %v1685_v50 = vrot.slane %v1671_v21, %v10742_v8  ;;  %v1687_v40 = vcombine.high %v1662_v59, %v1678_v25 }
 0x2d9   :  { %1718 = vrot.lane.b32.xlu0 %v1633_v56, %s10650_s16  ;;  %v1650_v7 = vcombine.high %v11440_v3, %v17837_v4  ;;  %v1651_v46 = vcombine.high %v1633_v56, %v17837_v4  ;;  %v1652_v1 = vcombine.high %v1642_v16, %v17837_v4  ;;  %v1669_v42 = vrot.slane %v1655_v61, %v10742_v8 }
 0x2da   :  { %v1694_v56 = vrot.slane %v1686_v14, %v10775_v27  ;;  %v1653_v15 = vcombine.high %v1649_v26, %v17837_v4  ;;  %v1701_v20 = vrot.slane %v1687_v40, %v10775_v27 }
 0x2db   :  { %1714 = vrot.lane.b32.xlu1 %v1650_v7, %s10652_s18  ;;  %v1702_v57 = vcombine.low %v1669_v42, %v1685_v50 }
 0x2dc   :  { %v1710_v34 = vcombine.high %v1694_v56, %v17837_v4  ;;  %v1711_v30 = vcombine.high %v1701_v20, %v17837_v4 }
 0x2dd   :  { %1726 = vrot.lane.b32.xlu0 %v1642_v16, %s10649_s0  ;;  %v1709_v10 = vrot.slane %v1702_v57, %v10775_v27 }
 0x2df   :  { %1722 = vrot.lane.b32.xlu1 %v1651_v46, %s10657_s23  ;;  %v1712_v7 = vcombine.high %v1709_v10, %v17837_v4 }
 0x2e1   :  { %1734 = vrot.lane.b32.xlu0 %v1649_v26, %s10651_s17 }
 0x2e3   :  { %1730 = vrot.lane.b32.xlu1 %v1652_v1, %s10654_s20 }
 0x2e5   :  { %1742 = vrot.lane.b32.xlu0 %v1694_v56, %s10653_s19 }
 0x2e7   :  { %1738 = vrot.lane.b32.xlu1 %v1653_v15, %s10656_s22 }
 0x2e9   :  { %1750 = vrot.lane.b32.xlu0 %v1701_v20, %s10655_s21 }
 0x2eb   :  { %1746 = vrot.lane.b32.xlu1 %v1710_v34, %s10658_s24 }
 0x2ed   :  { %1758 = vrot.lane.b32.xlu0 %v1709_v10, %s10659_s25 }
 0x2ef   :  { %1754 = vrot.lane.b32.xlu1 %v1711_v30, %s10660_s26 }
 0x2f1   :  { %1778 = vrot.lane.b32.xlu0 %v11268_v9, %s10658_s24  ;;  %v10663_v9 = vmov 0  }
 0x2f2   :  { %10588 = vset.pattern.permute.xlu1 %v10663_v9  ;;  %10589 = vset.pattern.permute.xlu0 %v10663_v9 }
 0x2f3   :  { %1762 = vrot.lane.b32.xlu1 %v1712_v7, %s10662_s28 }
 0x2f5   :  { %1782 = vrot.lane.b32.xlu0 %v11275_v11, %s10658_s24 }
 0x2f7   :  { %1780 = vrot.lane.b32.xlu1 %v11243_v5, %s10658_s24 }
 0x2f9   :  { %1786 = vrot.lane.b32.xlu0 %v11279_v13, %s10658_s24 }
 0x2fb   :  { %1784 = vrot.lane.b32.xlu1 %v11246_v58, %s10658_s24 }
 0x2fd   :  { %1790 = vrot.lane.b32.xlu0 %v11283_v2, %s10658_s24 }
 0x2ff   :  { %1788 = vrot.lane.b32.xlu1 %v11249_v39, %s10658_s24 }
 0x303   :  { %1792 = vrot.lane.b32.xlu1 %v11252_v63, %s10658_s24 }
 0x34b   :  { %v11488_v11 = vpop.permute.xlu0 %1718 }
 0x34d   :  { %v11490_v5 = vpop.permute.xlu1 %1714 }
 0x34f   :  { %v11492_v13 = vpop.permute.xlu0 %1726 }
 0x351   :  { %v11494_v59 = vpop.permute.xlu1 %1722 }
 0x353   :  { %v11496_v58 = vpop.permute.xlu0 %1734 }
 0x355   :  { %v11498_v2 = vpop.permute.xlu1 %1730 }
 0x357   :  { %v11500_v17 = vpop.permute.xlu0 %1742 }
 0x358   :  { %17876 = vst [vmem:[#allocation77_spill] sm:$0xff] %v11500_v17 }
 0x359   :  { %v11502_v39 = vpop.permute.xlu1 %1738 }
 0x35a   :  { %17877 = vst [vmem:[#allocation78_spill] sm:$0xff] %v11502_v39 }
 0x35b   :  { %v11504_v63 = vpop.permute.xlu0 %1750 }
 0x35d   :  { %v11506_v25 = vpop.permute.xlu1 %1746 }
 0x35f   :  { %v11508_v16 = vpop.permute.xlu0 %1758 }
 0x360   :  { %17878 = vst [vmem:[#allocation79_spill] sm:$0xff] %v11508_v16 }
 0x361   :  { %v11510_v46 = vpop.permute.xlu1 %1754 }
 0x362   :  { %17879 = vst [vmem:[#allocation80_spill] sm:$0xff] %v11510_v46 }
 0x363   :  { %v1779_v61 = vpop.permute.xlu0 %1778 }
 0x365   :  { %v11512_v21 = vpop.permute.xlu1 %1762 }
 0x366   :  { %17880 = vst [vmem:[#allocation81_spill] sm:$0xff] %v11512_v21 }
 0x367   :  { %v1783_v14 = vpop.permute.xlu0 %1782 }
 0x369   :  { %v1781_v26 = vpop.permute.xlu1 %1780 }
 0x36b   :  { %v1787_v1 = vpop.permute.xlu0 %1786 }
 0x36c   :  { %v1802_v50 = vcombine.low %v1779_v61, %v1787_v1  ;;  %v1803_v56 = vcombine.high %v1779_v61, %v1787_v1 }
 0x36d   :  { %v1785_v42 = vpop.permute.xlu1 %1784 }
 0x36e   :  { %v1810_v34 = vrot.slane %v1802_v50, %v10742_v8  ;;  %v1817_v7 = vrot.slane %v1803_v56, %v10742_v8 }
 0x36f   :  { %v1791_v40 = vpop.permute.xlu0 %1790 }
 0x370   :  { %v1818_v15 = vcombine.low %v1783_v14, %v1791_v40  ;;  %v1819_v57 = vcombine.high %v1783_v14, %v1791_v40 }
 0x371   :  { %v1789_v20 = vpop.permute.xlu1 %1788 }
 0x372   :  { %v1826_v10 = vrot.slane %v1818_v15, %v10742_v8  ;;  %v1833_v30 = vrot.slane %v1819_v57, %v10742_v8  ;;  %v1870_v14 = vcombine.low %v1781_v26, %v1789_v20 }
 0x374   :  { %v1834_v9 = vcombine.low %v1810_v34, %v1826_v10  ;;  %v1835_v21 = vcombine.high %v1810_v34, %v1826_v10  ;;  %v1850_v16 = vcombine.low %v1817_v7, %v1833_v30  ;;  %v1851_v50 = vcombine.high %v1817_v7, %v1833_v30  ;;  %v11535_v30 = vld [vmem:[#allocation2 + $0x60] sm:$0xff]  ;;  %v11539_v7 = vld [vmem:[#allocation2 + $0x70] sm:$0xff] }
 0x375   :  { %v1793_v17 = vpop.permute.xlu1 %1792  ;;  %v1878_v15 = vrot.slane %v1870_v14, %v10742_v8 }
 0x376   :  { %v1886_v39 = vcombine.low %v1785_v42, %v1793_v17  ;;  %v1849_v46 = vrot.slane %v1835_v21, %v10775_v27  ;;  %v11520_v61 = vrot.slane %v1834_v9, %v10775_v27  ;;  %v1858_v56 = vrot.slane %v1850_v16, %v10775_v27  ;;  %v11533_v9 = vld [vmem:[#allocation2 + $0x40] sm:$0xff] }
 0x377   :  { %v1887_v57 = vcombine.high %v1785_v42, %v1793_v17  ;;  %v1865_v10 = vrot.slane %v1851_v50, %v10775_v27  ;;  %v1871_v16 = vcombine.high %v1781_v26, %v1789_v20  ;;  %v2122_v17 = vcombine.low %v11533_v9, %v11535_v30 }
 0x378   :  { %1934 = vrot.lane.b32.xlu1 %v1849_v46, %s10650_s16  ;;  %v1866_v1 = vcombine.high %v11520_v61, %v17837_v4  ;;  %v1894_v40 = vrot.slane %v1886_v39, %v10742_v8  ;;  %v1867_v21 = vcombine.high %v1849_v46, %v17837_v4  ;;  %v11537_v39 = vld [vmem:[#allocation2 + $0x50] sm:$0xff]  ;;  %v1868_v14 = vcombine.high %v1858_v56, %v17837_v4 }
 0x379   :  { %v1901_v46 = vrot.slane %v1887_v57, %v10742_v8  ;;  %v2138_v50 = vcombine.low %v11537_v39, %v11539_v7  ;;  %v1869_v26 = vcombine.high %v1865_v10, %v17837_v4 }
 0x37a   :  { %1930 = vrot.lane.b32.xlu0 %v1866_v1, %s10652_s18  ;;  %v1902_v34 = vcombine.low %v1878_v15, %v1894_v40  ;;  %v1903_v42 = vcombine.high %v1878_v15, %v1894_v40  ;;  %v2130_v40 = vrot.slane %v2122_v17, %v10742_v8 }
 0x37b   :  { %v2146_v15 = vrot.slane %v2138_v50, %v10742_v8 }
 0x37c   :  { %1942 = vrot.lane.b32.xlu1 %v1858_v56, %s10649_s0  ;;  %v1910_v1 = vrot.slane %v1902_v34, %v10775_v27  ;;  %v1917_v56 = vrot.slane %v1903_v42, %v10775_v27  ;;  %v2123_v34 = vcombine.high %v11533_v9, %v11535_v30 }
 0x37e   :  { %1938 = vrot.lane.b32.xlu0 %v1867_v21, %s10657_s23  ;;  %v1885_v21 = vrot.slane %v1871_v16, %v10742_v8  ;;  %v1926_v57 = vcombine.high %v1910_v1, %v17837_v4  ;;  %v2139_v16 = vcombine.high %v11537_v39, %v11539_v7  ;;  %v1927_v17 = vcombine.high %v1917_v56, %v17837_v4 }
 0x380   :  { %1950 = vrot.lane.b32.xlu1 %v1865_v10, %s10651_s17  ;;  %v1918_v20 = vcombine.low %v1885_v21, %v1901_v46  ;;  %v11568_v46 = vrot.slane %v2123_v34, %v10742_v8  ;;  %v11571_v42 = vrot.slane %v2139_v16, %v10742_v8  ;;  %v2155_v21 = vcombine.high %v2130_v40, %v2146_v15  ;;  %v11587_v34 = vld [vmem:[#allocation2 + $0x58] sm:$0xff]  ;;  %v11590_v16 = vld [vmem:[#allocation2 + $0x48] sm:$0xff] }
 0x381   :  { %v2763_v8 = vrot.slane %v11539_v7, 1 }
 0x382   :  { %1946 = vrot.lane.b32.xlu0 %v1868_v14, %s10654_s20  ;;  %v1925_v10 = vrot.slane %v1918_v20, %v10775_v27  ;;  %v2154_v14 = vcombine.low %v2130_v40, %v2146_v15  ;;  %17881 = vst [vmem:[#allocation82_spill] sm:$0xff] %v11568_v46  ;;  %17882 = vst [vmem:[#allocation83_spill] sm:$0xff] %v11571_v42  ;;  %v2170_v20 = vcombine.low %v11568_v46, %v11571_v42 }
 0x383   :  { %v3401_v15 = vrot.slane %v11537_v39, 2  ;;  %v3404_v46 = vrot.slane %v11535_v30, 2 }
 0x384   :  { %1958 = vrot.lane.b32.xlu1 %v1910_v1, %s10653_s19  ;;  %v49_v1 = vld [vmem:[%s17388_s2] sm:$0xff]  ;;  %v11578_v50 = vrot.slane %v2154_v14, %v10775_v27  ;;  %v11593_v40 = vrot.slane %v2170_v20, %v10775_v27  ;;  %s10678_s2 = smov 36  }
 0x386   :  { %1954 = vrot.lane.b32.xlu0 %v1869_v26, %s10656_s22  ;;  %17883 = vst [vmem:[#allocation84_spill] sm:$0xff] %v11578_v50  ;;  %v1928_v26 = vcombine.high %v1925_v10, %v17837_v4  ;;  %17884 = vst [vmem:[#allocation85_spill] sm:$0xff] %v11593_v40 }
 0x388   :  { %1966 = vrot.lane.b32.xlu1 %v1917_v56, %s10655_s21  ;;  %v2186_v56 = vcombine.high %v11578_v50, %v17837_v4 }
 0x38a   :  { %1962 = vrot.lane.b32.xlu0 %v1926_v57, %s10658_s24  ;;  %v2169_v57 = vrot.slane %v2155_v21, %v10775_v27  ;;  %v11605_v21 = vrot.slane %v11590_v16, 2 }
 0x38c   :  { %1974 = vrot.lane.b32.xlu1 %v1925_v10, %s10659_s25  ;;  %v11597_v10 = vrot.slane %v11587_v34, 2  ;;  %v2187_v14 = vcombine.high %v2169_v57, %v17837_v4  ;;  %v2760_v4 = vrot.slane %v11535_v30, 1 }
 0x38e   :  { %1970 = vrot.lane.b32.xlu0 %v1927_v17, %s10660_s26  ;;  %v11601_v17 = vld [vmem:[#allocation2 + $0x78] sm:$0xff]  ;;  %v11613_v20 = vsel %vm17423_vm1, %v3401_v15, %v11597_v10 }
 0x38f   :  { %17885 = vst [vmem:[#allocation86_spill] sm:$0xff] %v11613_v20 }
 0x390   :  { %2029 = vperm.xlu1 %10588, %v49_v1   ;;  %v3398_v1 = vrot.slane %v11533_v9, 2 }
 0x392   :  { %1978 = vrot.lane.b32.xlu0 %v1928_v26, %s10662_s28  ;;  %v11609_v26 = vld [vmem:[#allocation2 + $0x68] sm:$0xff]  ;;  %v11622_v50 = vsel %vm17423_vm1, %v3398_v1, %v11605_v21  ;;  %v2757_v1 = vrot.slane %v11537_v39, 1 }
 0x393   :  { %17886 = vst [vmem:[#allocation87_spill] sm:$0xff] %v11622_v50  ;;  %v11626_v42 = vrot.slane %v11609_v26, 2 }
 0x394   :  { %2254 = vrot.lane.b32.xlu1 %v2169_v57, %s10650_s16  ;;  %v11617_v57 = vrot.slane %v11601_v17, 2 }
 0x396   :  { %2250 = vrot.lane.b32.xlu0 %v2186_v56, %s10652_s18  ;;  %v3407_v56 = vrot.slane %v11539_v7, 2 }
 0x398   :  { %2262 = vrot.lane.b32.xlu1 %v11593_v40, %s10649_s0  ;;  %v11632_v15 = vsel %vm17423_vm1, %v3407_v56, %v11617_v57  ;;  %v11648_v56 = vrot.slane %v11587_v34, 1  ;;  %v11654_v40 = vrot.slane %v11590_v16, 1 }
 0x399   :  { %17887 = vst [vmem:[#allocation88_spill] sm:$0xff] %v11632_v15 }
 0x39a   :  { %2258 = vrot.lane.b32.xlu0 %v2187_v14, %s10657_s23  ;;  %v11638_v14 = vsel %vm17423_vm1, %v3404_v46, %v11626_v42  ;;  %v2754_v46 = vrot.slane %v11533_v9, 1  ;;  %v11660_v27 = vsel %vm17444_vm0, %v2757_v1, %v11648_v56  ;;  %vm2032_vm1 = vcmask 293888  }
 0x39b   :  { %17888 = vst [vmem:[#allocation89_spill] sm:$0xff] %v11638_v14 }
 0x39c   :  { %3614 = vrot.lane.b32.xlu1 %v11613_v20, %s10661_s27 }
 0x39e   :  { %3610 = vrot.lane.b32.xlu0 %v11622_v50, %s10661_s27 }
 0x3a0   :  { %3622 = vrot.lane.b32.xlu1 %v11632_v15, %s10661_s27 }
 0x3a2   :  { %3618 = vrot.lane.b32.xlu0 %v11638_v14, %s10661_s27 }
 0x3a4   :  { %3830 = vrot.lane.b32.xlu1 %v11613_v20, %s10658_s24  ;;  %v11664_v20 = vrot.slane %v11601_v17, 1 }
 0x3a6   :  { %3826 = vrot.lane.b32.xlu0 %v11622_v50, %s10658_s24  ;;  %v11670_v50 = vsel %vm17444_vm0, %v2754_v46, %v11654_v40  ;;  %v11680_v1 = vsel %vm17444_vm0, %v2763_v8, %v11664_v20  ;;  %v904_v8 = vsel %vm238_vm2, %v10886_v22, %v11090_v19  ;;  %v239_v22 = vsel %vm238_vm2, %v10783_v37, %v10940_v60  ;;  %v17890_v46 = vld [vmem:[#allocation20_spill] sm:$0xff] }
 0x3a7   :  { %v241_v19 = vsel %vm240_vm3, %v239_v22, %v10936_v54  ;;  %v913_v60 = vsel %vm256_vm7, %v11108_v24, %v11096_v43  ;;  %v17894_v22 = vld [vmem:[#allocation13_spill] sm:$0xff] }
 0x3a8   :  { %3838 = vrot.lane.b32.xlu1 %v11632_v15, %s10658_s24  ;;  %v11674_v15 = vrot.slane %v11609_v26, 1  ;;  %v914_v43 = vsel %vm258_vm9, %v913_v60, %v11112_v49  ;;  %v17896_v60 = vld [vmem:[#allocation15_spill] sm:$0xff] }
 0x3aa   :  { %3834 = vrot.lane.b32.xlu0 %v11638_v14, %s10658_s24  ;;  %v11686_v14 = vsel %vm17444_vm0, %v2760_v4, %v11674_v15  ;;  %v905_v4 = vsel %vm240_vm3, %v904_v8, %v11080_v32  ;;  %v17891_v8 = vld [vmem:[#allocation33_spill] sm:$0xff]  ;;  %vm4151_vm0 = vcmask 556032  }
 0x3ac   :  { %3186 = vrot.lane.b32.xlu1 %v11660_v27, %s10658_s24 }
 0x3ae   :  { %3182 = vrot.lane.b32.xlu0 %v11670_v50, %s10658_s24 }
 0x3b0   :  { %3194 = vrot.lane.b32.xlu1 %v11680_v1, %s10658_s24 }
 0x3b2   :  { %3190 = vrot.lane.b32.xlu0 %v11686_v14, %s10658_s24 }
 0x3b4   :  { %2970 = vrot.lane.b32.xlu1 %v11660_v27, %s10661_s27 }
 0x3b6   :  { %2966 = vrot.lane.b32.xlu0 %v11670_v50, %s10661_s27 }
 0x3b8   :  { %2978 = vrot.lane.b32.xlu1 %v11680_v1, %s10661_s27 }
 0x3ba   :  { %2974 = vrot.lane.b32.xlu0 %v11686_v14, %s10661_s27 }
 0x3bc   :  { %3616 = vrot.lane.b32.xlu1 %v11597_v10, %s10661_s27 }
 0x3be   :  { %3612 = vrot.lane.b32.xlu0 %v11605_v21, %s10661_s27 }
 0x3c0   :  { %3624 = vrot.lane.b32.xlu1 %v11617_v57, %s10661_s27 }
 0x3c2   :  { %3620 = vrot.lane.b32.xlu0 %v11626_v42, %s10661_s27 }
 0x3c4   :  { %3832 = vrot.lane.b32.xlu1 %v11597_v10, %s10658_s24 }
 0x3c6   :  { %3828 = vrot.lane.b32.xlu0 %v11605_v21, %s10658_s24 }
 0x3c8   :  { %3840 = vrot.lane.b32.xlu1 %v11617_v57, %s10658_s24 }
 0x3ca   :  { %3836 = vrot.lane.b32.xlu0 %v11626_v42, %s10658_s24 }
 0x3cc   :  { %2326 = vrot.lane.b32.xlu1 %v11537_v39, %s10661_s27 }
 0x3ce   :  { %2322 = vrot.lane.b32.xlu0 %v11533_v9, %s10661_s27 }
 0x3d0   :  { %2334 = vrot.lane.b32.xlu1 %v11539_v7, %s10661_s27 }
 0x3d2   :  { %2330 = vrot.lane.b32.xlu0 %v11535_v30, %s10661_s27 }
 0x3d4   :  { %2542 = vrot.lane.b32.xlu1 %v11537_v39, %s10658_s24 }
 0x3d6   :  { %2538 = vrot.lane.b32.xlu0 %v11533_v9, %s10658_s24  ;;  %v906_v9 = vsel %vm242_vm4, %v905_v4, %v11094_v29  ;;  %v243_v29 = vsel %vm242_vm4, %v241_v19, %v10950_v6  ;;  %v475_v6 = vsel %vm238_vm2, %v11040_v35, %v11144_v12  ;;  %v17892_v4 = vld [vmem:[#allocation12_spill] sm:$0xff]  ;;  %v17895_v19 = vld [vmem:[#allocation38_spill] sm:$0xff] }
 0x3d7   :  { %v907_v32 = vsel %vm244_vm5, %v906_v9, %v11086_v48  ;;  %v245_v54 = vsel %vm244_vm5, %v243_v29, %v10934_v53  ;;  %v691_v53 = vsel %vm238_vm2, %v11009_v31, %v11126_v38  ;;  %v476_v12 = vsel %vm240_vm3, %v475_v6, %v11104_v51  ;;  %v17893_v9 = vld [vmem:[#allocation11_spill] sm:$0xff] }
 0x3d8   :  { %2550 = vrot.lane.b32.xlu1 %v11539_v7, %s10658_s24  ;;  %v908_v37 = vsel %vm246_vm6, %v907_v32, %v11098_v52  ;;  %v477_v49 = vsel %vm242_vm4, %v476_v12, %v11148_v33  ;;  %v692_v51 = vsel %vm240_vm3, %v691_v53, %v11120_v28  ;;  %v257_v32 = vsel %vm256_vm7, %v17894_v22, %v17893_v9  ;;  %v17899_v53 = vld [vmem:[#allocation18_spill] sm:$0xff] }
 0x3d9   :  { %v909_v48 = vsel %vm248_vm8, %v908_v37, %v11088_v41  ;;  %v693_v33 = vsel %vm242_vm4, %v692_v51, %v11130_v36  ;;  %v1120_v29 = vsel %vm238_vm2, %v17895_v19, %v11216_v0  ;;  %v1336_v0 = vsel %vm238_vm2, %v11264_v47, %v11384_v18  ;;  %v17902_v18 = vld [vmem:[#allocation63_spill] sm:$0xff] }
 0x3da   :  { %2546 = vrot.lane.b32.xlu0 %v11535_v30, %s10658_s24  ;;  %v247_v30 = vsel %vm246_vm6, %v245_v54, %v10944_v62  ;;  %v910_v41 = vsel %vm250_vm10, %v909_v48, %v11102_v45  ;;  %v915_v62 = vsel %vm260_vm11, %v914_v43, %v11100_v44  ;;  %v17889_v44 = vld [vmem:[#allocation17_spill] sm:$0xff]  ;;  %v17897_v54 = vld [vmem:[#allocation23_spill] sm:$0xff]  ;;  %v17898_v43 = vld [vmem:[#allocation26_spill] sm:$0xff] }
 0x3db   :  { %v249_v31 = vsel %vm248_vm8, %v247_v30, %v10938_v55  ;;  %v911_v45 = vsel %vm252_vm12, %v910_v41, %v11092_v23  ;;  %v478_v38 = vsel %vm244_vm5, %v477_v49, %v17889_v44  ;;  %v11813_v55 = vsel %vm262_vm13, %v915_v62, %v17890_v46  ;;  %v17900_v49 = vld [vmem:[#allocation34_spill] sm:$0xff]  ;;  %v17903_v51 = vld [vmem:[#allocation51_spill] sm:$0xff]  ;;  %v17904_v44 = vld [vmem:[#allocation21_spill] sm:$0xff] }
 0x3dc   :  { %3188 = vrot.lane.b32.xlu1 %v11648_v56, %s10658_s24  ;;  %v479_v28 = vsel %vm246_vm6, %v478_v38, %v17891_v8  ;;  %v1765_v23 = vsel %vm238_vm2, %v11440_v3, %v11490_v5  ;;  %v11822_v36 = vsel %vm250_vm10, %v249_v31, %v17892_v4  ;;  %v11836_v3 = vsel %vm258_vm9, %v257_v32, %v17896_v60  ;;  %v17901_v31 = vld [vmem:[#allocation39_spill] sm:$0xff]  ;;  %v17906_v46 = vld [vmem:[#allocation40_spill] sm:$0xff]  ;;  %v17910_v32 = vld [vmem:[#allocation30_spill] sm:$0xff] }
 0x3dd   :  { %v11840_v5 = vsel %vm254_vm14, %v911_v45, %v11108_v24  ;;  %v694_v6 = vsel %vm244_vm5, %v693_v33, %v17897_v54  ;;  %v2003_v48 = vrot.slane %v11813_v55, 4  ;;  %v480_v12 = vsel %vm248_vm8, %v479_v28, %v17899_v53  ;;  %v17905_v38 = vld [vmem:[#allocation35_spill] sm:$0xff]  ;;  %v17907_v8 = vld [vmem:[#allocation52_spill] sm:$0xff]  ;;  %v17912_v54 = vld [vmem:[#allocation54_spill] sm:$0xff] }
 0x3de   :  { %3184 = vrot.lane.b32.xlu0 %v11654_v40, %s10658_s24  ;;  %v695_v30 = vsel %vm246_vm6, %v694_v6, %v17898_v43  ;;  %v1766_v41 = vsel %vm240_vm3, %v1765_v23, %v11488_v11  ;;  %v481_v62 = vsel %vm250_vm10, %v480_v12, %v17900_v49  ;;  %v1121_v47 = vsel %vm240_vm3, %v1120_v29, %v17901_v31  ;;  %v17908_v4 = vld [vmem:[#allocation24_spill] sm:$0xff]  ;;  %v17916_v49 = vld [vmem:[#allocation19_spill] sm:$0xff] }
 0x3df   :  { %v1549_v45 = vsel %vm238_vm2, %v17903_v51, %v17902_v18  ;;  %v1767_v33 = vsel %vm242_vm4, %v1766_v41, %v11494_v59  ;;  %v484_v11 = vsel %vm256_vm7, %v17905_v38, %v17904_v44  ;;  %v1337_v28 = vsel %vm240_vm3, %v1336_v0, %v17907_v8  ;;  %v17909_v59 = vld [vmem:[#allocation27_spill] sm:$0xff]  ;;  %v17911_v29 = vld [vmem:[#allocation36_spill] sm:$0xff]  ;;  %v17918_v44 = vld [vmem:[#allocation22_spill] sm:$0xff] }
 0x3e0   :  { %3196 = vrot.lane.b32.xlu1 %v11664_v20, %s10658_s24  ;;  %v696_v9 = vsel %vm248_vm8, %v695_v30, %v17908_v4  ;;  %v700_v19 = vsel %vm256_vm7, %v17910_v32, %v17909_v59  ;;  %v485_v60 = vsel %vm258_vm9, %v484_v11, %v17911_v29  ;;  %v1338_v6 = vsel %vm242_vm4, %v1337_v28, %v17912_v54  ;;  %v17913_v43 = vld [vmem:[#allocation28_spill] sm:$0xff]  ;;  %v17915_v30 = vld [vmem:[#allocation66_spill] sm:$0xff]  ;;  %v17925_v59 = vld [vmem:[#allocation37_spill] sm:$0xff] }
 0x3e1   :  { %v1550_v53 = vsel %vm240_vm3, %v1549_v45, %v17915_v30  ;;  %v1768_v12 = vsel %vm244_vm5, %v1767_v33, %v11492_v13  ;;  %v11903_v31 = vsel %vm252_vm12, %v481_v62, %v17916_v49  ;;  %v486_v13 = vsel %vm260_vm11, %v485_v60, %v17918_v44  ;;  %v17919_v33 = vld [vmem:[#allocation42_spill] sm:$0xff]  ;;  %v17923_v28 = vld [vmem:[#allocation56_spill] sm:$0xff]  ;;  %v17929_v30 = vld [vmem:[#allocation59_spill] sm:$0xff] }
 0x3e2   :  { %3192 = vrot.lane.b32.xlu0 %v11674_v15, %s10658_s24  ;;  %v1769_v51 = vsel %vm246_vm6, %v1768_v12, %v11498_v2  ;;  %v17922_v8 = vld [vmem:[#allocation46_spill] sm:$0xff]  ;;  %v17927_v60 = vld [vmem:[#allocation80_spill] sm:$0xff] }
 0x3e3   :  { %v1770_v29 = vsel %vm248_vm8, %v1769_v51, %v11496_v58  ;;  %v17931_v12 = vld [vmem:[#allocation78_spill] sm:$0xff]  ;;  %v17932_v58 = vld [vmem:[#allocation48_spill] sm:$0xff] }
 0x3e4   :  { %2972 = vrot.lane.b32.xlu1 %v11648_v56, %s10661_s27  ;;  %v1771_v49 = vsel %vm250_vm10, %v1770_v29, %v17931_v12  ;;  %v47_v55 = vld [vmem:[%s17387_s1] sm:$0xff] }
 0x3e6   :  { %2968 = vrot.lane.b32.xlu0 %v11654_v40, %s10661_s27 }
 0x3e8   :  { %2980 = vrot.lane.b32.xlu1 %v11664_v20, %s10661_s27 }
 0x3ea   :  { %v11774_v52 = vpop.permute.xlu1 %1934  ;;  %2976 = vrot.lane.b32.xlu0 %v11674_v15, %s10661_s27 }
 0x3ec   :  { %v1931_v35 = vpop.permute.xlu0 %1930  ;;  %2328 = vrot.lane.b32.xlu1 %v11587_v34, %s10661_s27 }
 0x3ed   :  { %v1981_v23 = vsel %vm238_vm2, %v11520_v61, %v1931_v35  ;;  %v11889_v61 = vsel %vm250_vm10, %v696_v9, %v17913_v43  ;;  %v1774_v9 = vsel %vm256_vm7, %v11506_v25, %v11504_v63  ;;  %v17928_v43 = vld [vmem:[#allocation43_spill] sm:$0xff] }
 0x3ee   :  { %v11795_v39 = vpop.permute.xlu1 %1942  ;;  %2324 = vrot.lane.b32.xlu0 %v11590_v16, %s10661_s27  ;;  %v1982_v45 = vsel %vm240_vm3, %v1981_v23, %v11774_v52  ;;  %v17924_v23 = vld [vmem:[#allocation65_spill] sm:$0xff]  ;;  %v1775_v54 = vsel %vm258_vm9, %v1774_v9, %v17927_v60  ;;  %v17940_v9 = vld [vmem:[#allocation70_spill] sm:$0xff] }
 0x3ef   :  { %v1551_v4 = vsel %vm242_vm4, %v1550_v53, %v17924_v23  ;;  %v17930_v53 = vld [vmem:[#allocation60_spill] sm:$0xff] }
 0x3f0   :  { %v1939_v7 = vpop.permute.xlu0 %1938  ;;  %2336 = vrot.lane.b32.xlu1 %v11601_v17, %s10661_s27  ;;  %v1345_v63 = vsel %vm256_vm7, %v17930_v53, %v17929_v30 }
 0x3f1   :  { %v1983_v62 = vsel %vm242_vm4, %v1982_v45, %v1939_v7  ;;  %v11932_v7 = vsel %vm262_vm13, %v486_v13, %v17925_v59  ;;  %v17933_v45 = vld [vmem:[#allocation55_spill] sm:$0xff]  ;;  %v17934_v13 = vld [vmem:[#allocation62_spill] sm:$0xff]  ;;  %v17941_v59 = vld [vmem:[#allocation77_spill] sm:$0xff] }
 0x3f2   :  { %v11830_v37 = vpop.permute.xlu1 %1950  ;;  %2332 = vrot.lane.b32.xlu0 %v11609_v26, %s10661_s27 }
 0x3f4   :  { %v1947_v24 = vpop.permute.xlu0 %1946  ;;  %2544 = vrot.lane.b32.xlu1 %v11587_v34, %s10658_s24  ;;  %v1122_v34 = vsel %vm242_vm4, %v1121_v47, %v17906_v46  ;;  %v17917_v47 = vld [vmem:[#allocation41_spill] sm:$0xff] }
 0x3f5   :  { %v1123_v18 = vsel %vm244_vm5, %v1122_v34, %v17917_v47  ;;  %v17921_v34 = vld [vmem:[#allocation47_spill] sm:$0xff]  ;;  %v1984_v47 = vsel %vm244_vm5, %v1983_v62, %v11795_v39  ;;  %v17937_v39 = vld [vmem:[#allocation74_spill] sm:$0xff] }
 0x3f6   :  { %2540 = vrot.lane.b32.xlu0 %v11590_v16, %s10658_s24  ;;  %v11885_v0 = vpop.permute.xlu1 %1958  ;;  %v17914_v16 = vld [vmem:[#allocation31_spill] sm:$0xff]  ;;  %v1124_v11 = vsel %vm246_vm6, %v1123_v18, %v17919_v33  ;;  %v1129_v2 = vsel %vm256_vm7, %v17922_v8, %v17921_v34  ;;  %v1346_v33 = vsel %vm258_vm9, %v1345_v63, %v17934_v13 }
 0x3f7   :  { %v11893_v35 = vsel %vm258_vm9, %v700_v19, %v17914_v16  ;;  %v17926_v19 = vld [vmem:[#allocation68_spill] sm:$0xff]  ;;  %v1125_v16 = vsel %vm248_vm8, %v1124_v11, %v17928_v43  ;;  %v1130_v51 = vsel %vm258_vm9, %v1129_v2, %v17932_v58  ;;  %v1985_v11 = vsel %vm246_vm6, %v1984_v47, %v1947_v24  ;;  %v17936_v34 = vld [vmem:[#allocation67_spill] sm:$0xff]  ;;  %v17942_v24 = vld [vmem:[#allocation81_spill] sm:$0xff] }
 0x3f8   :  { %v1955_v41 = vpop.permute.xlu0 %1954  ;;  %2552 = vrot.lane.b32.xlu1 %v11601_v17, %s10658_s24  ;;  %v17920_v17 = vld [vmem:[#allocation53_spill] sm:$0xff]  ;;  %v17938_v62 = vld [vmem:[#allocation71_spill] sm:$0xff]  ;;  %v17945_v58 = vld [vmem:[#allocation64_spill] sm:$0xff] }
 0x3f9   :  { %v1339_v46 = vsel %vm244_vm5, %v1338_v6, %v17920_v17  ;;  %v17935_v17 = vld [vmem:[#allocation58_spill] sm:$0xff]  ;;  %v1558_v23 = vsel %vm256_vm7, %v17938_v62, %v17937_v39  ;;  %v17944_v47 = vld [vmem:[#allocation57_spill] sm:$0xff] }
 0x3fa   :  { %2548 = vrot.lane.b32.xlu0 %v11609_v26, %s10658_s24  ;;  %v1340_v52 = vsel %vm246_vm6, %v1339_v46, %v17923_v28  ;;  %v1552_v26 = vsel %vm244_vm5, %v1551_v4, %v17926_v19  ;;  %v1967_v18 = vpop.permute.xlu1 %1966  ;;  %v17939_v4 = vld [vmem:[#allocation79_spill] sm:$0xff]  ;;  %v1772_v19 = vsel %vm252_vm12, %v1771_v49, %v17941_v59  ;;  %v17951_v59 = vld [vmem:[#allocation49_spill] sm:$0xff] }
 0x3fb   :  { %v1341_v44 = vsel %vm248_vm8, %v1340_v52, %v17933_v45  ;;  %v1553_v28 = vsel %vm246_vm6, %v1552_v26, %v17936_v34  ;;  %v1776_v2 = vsel %vm260_vm11, %v1775_v54, %v17939_v4  ;;  %v17943_v26 = vld [vmem:[#allocation61_spill] sm:$0xff]  ;;  %v1773_v63 = vsel %vm254_vm14, %v1772_v19, %v11506_v25  ;;  %v17950_v4 = vld [vmem:[#allocation72_spill] sm:$0xff] }
 0x3fc   :  { %v1963_v6 = vpop.permute.xlu0 %1962  ;;  %v1342_v46 = vsel %vm250_vm10, %v1341_v44, %v17935_v17  ;;  %v1554_v52 = vsel %vm248_vm8, %v1553_v28, %v17940_v9  ;;  %v1777_v29 = vsel %vm262_vm13, %v1776_v2, %v17942_v24  ;;  %v1347_v30 = vsel %vm260_vm11, %v1346_v33, %v17943_v26  ;;  %v17946_v44 = vld [vmem:[#allocation73_spill] sm:$0xff] }
 0x3fd   :  { %v1990_v60 = vsel %vm256_vm7, %v1963_v6, %v1967_v18  ;;  %v1986_v54 = vsel %vm248_vm8, %v1985_v11, %v11830_v37  ;;  %v1343_v49 = vsel %vm252_vm12, %v1342_v46, %v17944_v47  ;;  %v1348_v45 = vsel %vm262_vm13, %v1347_v30, %v17945_v58  ;;  %v17947_v25 = vld [vmem:[#allocation69_spill] sm:$0xff]  ;;  %v17948_v37 = vld [vmem:[#allocation76_spill] sm:$0xff] }
 0x3fe   :  { %v1559_v18 = vsel %vm258_vm9, %v1558_v23, %v17946_v44  ;;  %v1987_v13 = vsel %vm250_vm10, %v1986_v54, %v1955_v41  ;;  %v1344_v33 = vsel %vm254_vm14, %v1343_v49, %v17930_v53  ;;  %v1555_v17 = vsel %vm250_vm10, %v1554_v52, %v17947_v25  ;;  %v1975_v28 = vpop.permute.xlu1 %1974  ;;  %v17949_v46 = vld [vmem:[#allocation44_spill] sm:$0xff]  ;;  %v17955_v47 = vld [vmem:[#allocation25_spill] sm:$0xff] }
 0x3ff   :  { %v1560_v11 = vsel %vm260_vm11, %v1559_v18, %v17948_v37  ;;  %v2015_v34 = vrot.slane %v1777_v29, 4  ;;  %v1126_v39 = vsel %vm250_vm10, %v1125_v16, %v17949_v46  ;;  %v1556_v2 = vsel %vm252_vm12, %v1555_v17, %v17950_v4  ;;  %v17952_v29 = vld [vmem:[#allocation45_spill] sm:$0xff] }
 0x400   :  { %v1971_v43 = vpop.permute.xlu0 %1970  ;;  %v2014_v23 = vrot.slane %v1773_v63, 4  ;;  %v1131_v53 = vsel %vm260_vm11, %v1130_v51, %v17951_v59  ;;  %v2009_v19 = vrot.slane %v1348_v45, 4  ;;  %v1988_v24 = vsel %vm252_vm12, %v1987_v13, %v11885_v0  ;;  %v17954_v63 = vld [vmem:[#allocation29_spill] sm:$0xff]  ;;  %v17957_v45 = vld [vmem:[#allocation50_spill] sm:$0xff] }
 0x401   :  { %v1991_v12 = vsel %vm258_vm9, %v1990_v60, %v1971_v43  ;;  %v1127_v60 = vsel %vm252_vm12, %v1126_v39, %v17952_v29  ;;  %v2008_v16 = vrot.slane %v1344_v33, 4  ;;  %v17953_v43 = vld [vmem:[#allocation75_spill] sm:$0xff]  ;;  %v1989_v30 = vsel %vm254_vm14, %v1988_v24, %v1963_v6  ;;  %v17956_v6 = vld [vmem:[#allocation32_spill] sm:$0xff]  ;;  %v17959_v13 = vld [vmem:[#allocation10_spill] sm:$0xff] }
 0x402   :  { %v1992_v41 = vsel %vm260_vm11, %v1991_v12, %v1975_v28  ;;  %v1561_v26 = vsel %vm262_vm13, %v1560_v11, %v17953_v43  ;;  %v702_v51 = vsel %vm260_vm11, %v11893_v35, %v17954_v63  ;;  %v483_v54 = vsel %vm254_vm14, %v11903_v31, %v17905_v38  ;;  %v17960_v11 = vld [vmem:[#allocation14_spill] sm:$0xff]  ;;  %v17967_v24 = vld [vmem:[#allocation89_spill] sm:$0xff]  ;;  %v17968_v29 = vld [vmem:[#allocation87_spill] sm:$0xff] }
 0x403   :  { %v1557_v0 = vsel %vm254_vm14, %v1556_v2, %v17938_v62  ;;  %v2026_v12 = vsel %vm2018_vm15, %v1561_v26, %v2015_v34  ;;  %v698_v49 = vsel %vm252_vm12, %v11889_v61, %v17955_v47  ;;  %v703_v58 = vsel %vm262_vm13, %v702_v51, %v17956_v6  ;;  %v17962_v34 = vld [vmem:[#allocation16_spill] sm:$0xff]  ;;  %v17970_v43 = vld [vmem:[#allocation86_spill] sm:$0xff] }
 0x404   :  { %v1979_v9 = vpop.permute.xlu0 %1978  ;;  %v1132_v35 = vsel %vm262_vm13, %v1131_v53, %v17957_v45  ;;  %v2025_v38 = vsel %vm2018_vm15, %v1557_v0, %v2014_v23  ;;  %v699_v62 = vsel %vm254_vm14, %v698_v49, %v17910_v32  ;;  %v1997_v44 = vrot.slane %v11932_v7, 4  ;;  %v17972_v45 = vld [vmem:[#allocation9_spill] sm:$0xff] }
 0x405   :  { %v1993_v52 = vsel %vm262_vm13, %v1992_v41, %v1979_v9  ;;  %v1128_v18 = vsel %vm254_vm14, %v1127_v60, %v17922_v8  ;;  %v2024_v61 = vsel %vm2018_vm15, %v1132_v35, %v2009_v19  ;;  %v253_v33 = vsel %vm252_vm12, %v11822_v36, %v17959_v13 }
 0x406   :  { %10512 = vmatprep.subr.msk.mxu0 %vm2018_vm15, %v1993_v52  ;;  %v2002_v25 = vrot.slane %v11840_v5, 4  ;;  %v1996_v17 = vrot.slane %v483_v54, 4  ;;  %v2023_v37 = vsel %vm2018_vm15, %v1128_v18, %v2008_v16  ;;  %v261_v32 = vsel %vm260_vm11, %v11836_v3, %v17960_v11  ;;  %v17969_v16 = vld [vmem:[#allocation88_spill] sm:$0xff] }
 0x407   :  { %10513 = vmatpush1.msk.msra.mxu0 %vm2018_vm15, %v1989_v30  ;;  %v2022_v8 = vsel %vm2018_vm15, %v703_v58, %v2003_v48  ;;  %v263_v36 = vsel %vm262_vm13, %v261_v32, %v17962_v34  ;;  %v255_v46 = vsel %vm254_vm14, %v253_v33, %v17894_v22  ;;  %v17965_v2 = vmov 0.0   ;;  %v17971_v30 = vld [vmem:[#allocation8_spill] sm:$0xff] }
 0x408   :  { %2066 = vmatprep.subr.mxu0 %v2026_v12  ;;  %v12026_v31 = vpop.permute.xlu0 %2250  ;;  %v2021_v5 = vsel %vm2018_vm15, %v699_v62, %v2002_v25  ;;  %v2020_v3 = vsel %vm2018_vm15, %v263_v36, %v1997_v44  ;;  %v2019_v48 = vsel %vm2018_vm15, %v255_v46, %v1996_v17  ;;  %v3418_v60 = vcombine.low %v17968_v29, %v17967_v24 }
 0x409   :  { %17958 = vst [vmem:[#allocation17_spill] sm:$0xff] %v12026_v31  ;;  %2067 = vmatpush1.msra.mxu0 %v2025_v38  ;;  %v3434_v26 = vcombine.low %v17970_v43, %v17969_v16 }
 0x40a   :  { %2068 = vmatprep.subr.mxu0 %v2024_v61  ;;  %v3426_v49 = vrot.slane %v3418_v60, %v17971_v30 }
 0x40b   :  { %2069 = vmatpush1.msra.mxu0 %v2023_v37  ;;  %v12042_v7 = vpop.permute.xlu1 %2029  ;;  %v3442_v6 = vrot.slane %v3434_v26, %v17971_v30 }
 0x40c   :  { %17961 = vst [vmem:[#allocation20_spill] sm:$0xff] %v12042_v7  ;;  %2070 = vmatprep.subr.mxu0 %v2022_v8  ;;  %v12050_v28 = vpop.permute.xlu0 %2258 }
 0x40d   :  { %17963 = vst [vmem:[#allocation33_spill] sm:$0xff] %v12050_v28  ;;  %2071 = vmatpush1.msra.mxu0 %v2021_v5  ;;  %v3450_v25 = vcombine.low %v3426_v49, %v3442_v6 }
 0x40e   :  { %2072 = vmatprep.subr.mxu0 %v2020_v3 }
 0x40f   :  { %2073 = vmatpush1.msra.mxu0 %v2019_v48  ;;  %v12059_v39 = vpop.permute.xlu1 %2254  ;;  %v12121_v34 = vrot.slane %v3450_v25, %v17972_v45 }
 0x410   :  { %17964 = vst [vmem:[#allocation12_spill] sm:$0xff] %v12059_v39  ;;  %10514 = vmatmul.mubr.msk.f32.vlgmr.msra.gmra.mxu0 %vm2032_vm1, %v47_v55  ;;  %v12062_v4 = vpop.permute.xlu0 %3610 }
 0x411   :  { %7322 = vmatprep.mubr.f32.mxu0 %v17965_v2  ;;  %17975 = vst [vmem:[#allocation15_spill] sm:$0xff] %v12121_v34 }
 0x413   :  { %v12065_v22 = vpop.permute.xlu1 %2262 }
 0x414   :  { %17966 = vst [vmem:[#allocation11_spill] sm:$0xff] %v12065_v22  ;;  %v12067_v23 = vpop.permute.xlu0 %3618 }
 0x415   :  { %v3634_v59 = vcombine.low %v12062_v4, %v12067_v23 }
 0x417   :  { %v12069_v9 = vpop.permute.xlu1 %3614  ;;  %v3642_v63 = vrot.slane %v3634_v59, %v17971_v30  ;;  %v3482_v59 = vcombine.high %v12121_v34, %v17965_v2 }
 0x418   :  { %v12071_v41 = vpop.permute.xlu0 %3826 }
 0x41b   :  { %v12075_v53 = vpop.permute.xlu1 %3622 }
 0x41c   :  { %v3650_v19 = vcombine.low %v12069_v9, %v12075_v53  ;;  %v12079_v52 = vpop.permute.xlu0 %3834 }
 0x41d   :  { %v3850_v58 = vcombine.low %v12071_v41, %v12079_v52 }
 0x41e   :  { %v3658_v51 = vrot.slane %v3650_v19, %v17971_v30 }
 0x41f   :  { %v12087_v54 = vpop.permute.xlu1 %3830  ;;  %v3858_v13 = vrot.slane %v3850_v58, %v17971_v30 }
 0x420   :  { %v3666_v0 = vcombine.low %v3642_v63, %v3658_v51  ;;  %v3667_v12 = vcombine.high %v3642_v63, %v3658_v51  ;;  %v12089_v47 = vpop.permute.xlu0 %3182 }
 0x422   :  { %v3681_v35 = vrot.slane %v3667_v12, %v17972_v45  ;;  %v12097_v38 = vrot.slane %v3666_v0, %v17972_v45  ;;  %v2774_v0 = vcombine.low %v11670_v50, %v11686_v14  ;;  %v2790_v12 = vcombine.low %v11660_v27, %v11680_v1 }
 0x423   :  { %v12099_v62 = vpop.permute.xlu1 %3838 }
 0x424   :  { %17973 = vst [vmem:[#allocation13_spill] sm:$0xff] %v12097_v38  ;;  %v3866_v44 = vcombine.low %v12087_v54, %v12099_v62  ;;  %3766 = vrot.lane.b32.xlu1 %v3681_v35, %s10650_s16  ;;  %v3698_v18 = vcombine.high %v12097_v38, %v17965_v2  ;;  %v12106_v61 = vpop.permute.xlu0 %3190 }
 0x425   :  { %v3206_v32 = vcombine.low %v12089_v47, %v12106_v61 }
 0x426   :  { %v3874_v33 = vrot.slane %v3866_v44, %v17971_v30  ;;  %3762 = vrot.lane.b32.xlu0 %v3698_v18, %s10652_s18  ;;  %v3451_v44 = vcombine.high %v3426_v49, %v3442_v6  ;;  %v3651_v18 = vcombine.high %v12069_v9, %v12075_v53  ;;  %v12165_v49 = vrot.slane %v2774_v0, %v17971_v30 }
 0x427   :  { %v12111_v17 = vpop.permute.xlu1 %3186  ;;  %v3214_v55 = vrot.slane %v3206_v32, %v17971_v30  ;;  %v12168_v9 = vrot.slane %v2790_v12, %v17971_v30  ;;  %v3635_v53 = vcombine.high %v12062_v4, %v12067_v23  ;;  %v3699_v4 = vcombine.high %v3681_v35, %v17965_v2 }
 0x428   :  { %v3882_v37 = vcombine.low %v3858_v13, %v3874_v33  ;;  %v12113_v11 = vpop.permute.xlu0 %2966  ;;  %v3883_v60 = vcombine.high %v3858_v13, %v3874_v33 }
 0x429   :  { %v12191_v12 = vrot.slane %v3635_v53, %v17971_v30 }
 0x42a   :  { %v12118_v8 = vrot.slane %v3882_v37, %v17972_v45  ;;  %v3897_v33 = vrot.slane %v3883_v60, %v17972_v45 }
 0x42b   :  { %v12123_v36 = vpop.permute.xlu1 %3194 }
 0x42c   :  { %17974 = vst [vmem:[#allocation38_spill] sm:$0xff] %v12118_v8  ;;  %v3222_v5 = vcombine.low %v12111_v17, %v12123_v36  ;;  %v3914_v46 = vcombine.high %v12118_v8, %v17965_v2  ;;  %v12129_v3 = vpop.permute.xlu0 %2974 }
 0x42d   :  { %v2990_v63 = vcombine.low %v12113_v11, %v12129_v3 }
 0x42e   :  { %v3230_v48 = vrot.slane %v3222_v5, %v17971_v30  ;;  %3978 = vrot.lane.b32.xlu0 %v3914_v46, %s10652_s18  ;;  %v3465_v46 = vrot.slane %v3451_v44, %v17972_v45  ;;  %v2806_v44 = vcombine.low %v12165_v49, %v12168_v9 }
 0x42f   :  { %v12136_v19 = vpop.permute.xlu1 %2970  ;;  %v12158_v37 = vrot.slane %v2990_v63, %v17971_v30 }
 0x430   :  { %v3238_v26 = vcombine.low %v3214_v55, %v3230_v48  ;;  %v12140_v51 = vpop.permute.xlu0 %3612 }
 0x432   :  { %3546 = vrot.lane.b32.xlu0 %v3482_v59, %s10652_s18  ;;  %v12148_v58 = vrot.slane %v3238_v26, %v17972_v45  ;;  %v12179_v59 = vrot.slane %v3651_v18, %v17971_v30  ;;  %v3239_v26 = vcombine.high %v3214_v55, %v3230_v48  ;;  %v3915_v18 = vcombine.high %v3897_v33, %v17965_v2 }
 0x433   :  { %v12152_v13 = vpop.permute.xlu1 %2978 }
 0x434   :  { %17976 = vst [vmem:[#allocation23_spill] sm:$0xff] %v12148_v58  ;;  %v3270_v25 = vcombine.high %v12148_v58, %v17965_v2  ;;  %v3006_v32 = vcombine.low %v12136_v19, %v12152_v13  ;;  %v12162_v5 = vpop.permute.xlu0 %3620  ;;  %v3682_v35 = vcombine.low %v12191_v12, %v12179_v59 }
 0x435   :  { %v3702_v23 = vcombine.low %v12140_v51, %v12162_v5 }
 0x436   :  { %3982 = vrot.lane.b32.xlu0 %v3897_v33, %s10650_s16  ;;  %3334 = vrot.lane.b32.xlu1 %v3270_v25, %s10652_s18  ;;  %v12175_v6 = vrot.slane %v3006_v32, %v17971_v30  ;;  %v3253_v25 = vrot.slane %v3239_v26, %v17972_v45  ;;  %v3690_v39 = vrot.slane %v3682_v35, %v17972_v45 }
 0x437   :  { %v12181_v60 = vpop.permute.xlu1 %3616  ;;  %v3710_v32 = vrot.slane %v3702_v23, %v17971_v30  ;;  %v3867_v23 = vcombine.high %v12087_v54, %v12099_v62  ;;  %v3419_v35 = vcombine.high %v17968_v29, %v17967_v24 }
 0x438   :  { %v3022_v63 = vcombine.low %v12158_v37, %v12175_v6  ;;  %v12188_v0 = vpop.permute.xlu0 %3828  ;;  %v3271_v29 = vcombine.high %v3253_v25, %v17965_v2 }
 0x439   :  { %v12239_v62 = vrot.slane %v3867_v23, %v17971_v30  ;;  %v3023_v23 = vcombine.high %v12158_v37, %v12175_v6 }
 0x43a   :  { %3550 = vrot.lane.b32.xlu0 %v3465_v46, %s10650_s16  ;;  %3770 = vrot.lane.b32.xlu1 %v3699_v4, %s10657_s23  ;;  %v12198_v55 = vrot.slane %v3022_v63, %v17972_v45  ;;  %v12212_v4 = vrot.slane %v2806_v44, %v17972_v45 }
 0x43b   :  { %v12202_v48 = vpop.permute.xlu1 %3624 }
 0x43c   :  { %17977 = vst [vmem:[#allocation26_spill] sm:$0xff] %v12198_v55  ;;  %v3718_v53 = vcombine.low %v12181_v60, %v12202_v48  ;;  %v12209_v22 = vpop.permute.xlu0 %3836  ;;  %17978 = vst [vmem:[#allocation18_spill] sm:$0xff] %v12212_v4  ;;  %v3054_v33 = vcombine.high %v12198_v55, %v17965_v2  ;;  %v2838_v44 = vcombine.high %v12212_v4, %v17965_v2 }
 0x43e   :  { %3986 = vrot.lane.b32.xlu0 %v3915_v18, %s10657_s23  ;;  %3338 = vrot.lane.b32.xlu1 %v3253_v25, %s10650_s16  ;;  %v3726_v63 = vrot.slane %v3718_v53, %v17971_v30  ;;  %v3851_v18 = vcombine.high %v12071_v41, %v12079_v52  ;;  %v3483_v53 = vcombine.high %v3465_v46, %v17965_v2 }
 0x43f   :  { %v12219_v26 = vpop.permute.xlu1 %3832  ;;  %v3435_v41 = vcombine.high %v17970_v43, %v17969_v16  ;;  %v3223_v43 = vcombine.high %v12111_v17, %v12123_v36  ;;  %v3207_v17 = vcombine.high %v12089_v47, %v12106_v61  ;;  %v2807_v36 = vcombine.high %v12165_v49, %v12168_v9 }
 0x440   :  { %v3734_v28 = vcombine.low %v3710_v32, %v3726_v63  ;;  %v12224_v31 = vpop.permute.xlu0 %2322  ;;  %v12248_v52 = vrot.slane %v3851_v18, %v17971_v30 }
 0x441   :  { %v12263_v16 = vrot.slane %v3435_v41, %v17971_v30  ;;  %v3700_v41 = vcombine.high %v3690_v39, %v17965_v2  ;;  %v12290_v6 = vrot.slane %v3223_v43, %v17971_v30  ;;  %v2821_v43 = vrot.slane %v2807_v36, %v17972_v45 }
 0x442   :  { %3774 = vrot.lane.b32.xlu1 %v3690_v39, %s10649_s0  ;;  %3118 = vrot.lane.b32.xlu0 %v3054_v33, %s10652_s18  ;;  %v12234_v55 = vrot.slane %v3734_v28, %v17972_v45  ;;  %v3898_v24 = vcombine.low %v12248_v52, %v12239_v62  ;;  %v12260_v33 = vrot.slane %v3419_v35, %v17971_v30 }
 0x443   :  { %v12236_v54 = vpop.permute.xlu1 %3840  ;;  %v3683_v36 = vcombine.high %v12191_v12, %v12179_v59 }
 0x444   :  { %v12243_v4 = vpop.permute.xlu0 %2330  ;;  %v3758_v28 = vcombine.high %v12234_v55, %v17965_v2  ;;  %v3934_v35 = vcombine.low %v12219_v26, %v12236_v54  ;;  %v3466_v37 = vcombine.low %v12260_v33, %v12263_v16 }
 0x445   :  { %v2346_v49 = vcombine.low %v12224_v31, %v12243_v4  ;;  %v3697_v59 = vrot.slane %v3683_v36, %v17972_v45 }
 0x446   :  { %2902 = vrot.lane.b32.xlu1 %v2838_v44, %s10652_s18  ;;  %3554 = vrot.lane.b32.xlu0 %v3483_v53, %s10657_s23  ;;  %v3918_v44 = vcombine.low %v12188_v0, %v12209_v22  ;;  %v3735_v53 = vcombine.high %v3710_v32, %v3726_v63  ;;  %v12294_v32 = vrot.slane %v3023_v23, %v17972_v45 }
 0x447   :  { %v12254_v46 = vpop.permute.xlu1 %2326  ;;  %v3942_v47 = vrot.slane %v3934_v35, %v17971_v30  ;;  %v12314_v23 = vrot.slane %v3466_v37, %v17972_v45 }
 0x448   :  { %17979 = vst [vmem:[#allocation34_spill] sm:$0xff] %v12254_v46  ;;  %v12275_v18 = vpop.permute.xlu0 %2538  ;;  %v3926_v39 = vrot.slane %v3918_v44, %v17971_v30  ;;  %v3749_v61 = vrot.slane %v3735_v53, %v17972_v45 }
 0x449   :  { %17981 = vst [vmem:[#allocation63_spill] sm:$0xff] %v12275_v18 }
 0x44a   :  { %3342 = vrot.lane.b32.xlu1 %v3271_v29, %s10657_s23  ;;  %3794 = vrot.lane.b32.xlu0 %v3758_v28, %s10658_s24  ;;  %v3906_v28 = vrot.slane %v3898_v24, %v17972_v45  ;;  %v12305_v24 = vrot.slane %v3207_v17, %v17971_v30  ;;  %v3950_v35 = vcombine.low %v3926_v39, %v3942_v47 }
 0x44b   :  { %v12273_v25 = vpop.permute.xlu1 %2334  ;;  %v3759_v58 = vcombine.high %v3749_v61, %v17965_v2  ;;  %v3951_v36 = vcombine.high %v3926_v39, %v3942_v47  ;;  %v2839_v39 = vcombine.high %v2821_v43, %v17965_v2 }
 0x44c   :  { %17980 = vst [vmem:[#allocation39_spill] sm:$0xff] %v12273_v25  ;;  %v2362_v9 = vcombine.low %v12254_v46, %v12273_v25  ;;  %v12307_v29 = vpop.permute.xlu0 %2546  ;;  %v3254_v44 = vcombine.low %v12305_v24, %v12290_v6  ;;  %v12344_v8 = vrot.slane %v3950_v35, %v17972_v45 }
 0x44d   :  { %17983 = vst [vmem:[#allocation21_spill] sm:$0xff] %v12307_v29  ;;  %v3965_v46 = vrot.slane %v3951_v36, %v17972_v45  ;;  %v3055_v36 = vcombine.high %v12294_v32, %v17965_v2 }
 0x44e   :  { %3778 = vrot.lane.b32.xlu1 %v3700_v41, %s10654_s20  ;;  %3990 = vrot.lane.b32.xlu0 %v3906_v28, %s10649_s0  ;;  %v12321_v41 = vrot.slane %v2346_v49, %v17971_v30  ;;  %v12324_v17 = vrot.slane %v2362_v9, %v17971_v30  ;;  %v3262_v37 = vrot.slane %v3254_v44, %v17972_v45 }
 0x44f   :  { %v12296_v63 = vpop.permute.xlu1 %2542  ;;  %v2562_v9 = vcombine.low %v12275_v18, %v12307_v29  ;;  %17985 = vst [vmem:[#allocation40_spill] sm:$0xff] %v12344_v8  ;;  %v3974_v44 = vcombine.high %v12344_v8, %v17965_v2 }
 0x450   :  { %17982 = vst [vmem:[#allocation51_spill] sm:$0xff] %v12296_v63  ;;  %v12333_v34 = vpop.permute.xlu0 %3184  ;;  %v2378_v49 = vcombine.low %v12321_v41, %v12324_v17 }
 0x451   :  { %v12350_v12 = vrot.slane %v2562_v9, %v17971_v30  ;;  %v3916_v9 = vcombine.high %v3906_v28, %v17965_v2 }
 0x452   :  { %3798 = vrot.lane.b32.xlu1 %v3749_v61, %s10655_s21  ;;  %3122 = vrot.lane.b32.xlu0 %v12294_v32, %s10650_s16 }
 0x453   :  { %v12318_v53 = vpop.permute.xlu1 %2550 }
 0x454   :  { %17984 = vst [vmem:[#allocation35_spill] sm:$0xff] %v12318_v53  ;;  %v2578_v7 = vcombine.low %v12296_v63, %v12318_v53  ;;  %v12358_v63 = vrot.slane %v2378_v49, %v17972_v45  ;;  %v12360_v35 = vpop.permute.xlu0 %3192 }
 0x455   :  { %v3274_v18 = vcombine.low %v12333_v34, %v12360_v35 }
 0x456   :  { %2906 = vrot.lane.b32.xlu1 %v2821_v43, %s10650_s16  ;;  %3558 = vrot.lane.b32.xlu0 %v12314_v23, %s10649_s0  ;;  %v12353_v61 = vrot.slane %v2578_v7, %v17971_v30  ;;  %17986 = vst [vmem:[#allocation52_spill] sm:$0xff] %v12358_v63  ;;  %v3502_v7 = vcombine.low %v11597_v10, %v11617_v57 }
 0x457   :  { %v12335_v38 = vpop.permute.xlu1 %3188  ;;  %v2410_v8 = vcombine.high %v12358_v63, %v17965_v2  ;;  %v3282_v29 = vrot.slane %v3274_v18, %v17971_v30 }
 0x458   :  { %v2594_v49 = vcombine.low %v12350_v12, %v12353_v61  ;;  %v3510_v47 = vrot.slane %v3502_v7, %v17971_v30 }
 0x45a   :  { %3346 = vrot.lane.b32.xlu1 %v3262_v37, %s10649_s0  ;;  %3802 = vrot.lane.b32.xlu0 %v3759_v58, %s10660_s26  ;;  %v3486_v58 = vcombine.low %v11605_v21, %v11626_v42  ;;  %v12388_v25 = vrot.slane %v2594_v49, %v17972_v45 }
 0x45b   :  { %v12362_v53 = vpop.permute.xlu1 %3196 }
 0x45c   :  { %v3494_v28 = vrot.slane %v3486_v58, %v17971_v30  ;;  %17987 = vst [vmem:[#allocation24_spill] sm:$0xff] %v12388_v25  ;;  %v3272_v58 = vcombine.high %v3262_v37, %v17965_v2  ;;  %v2626_v7 = vcombine.high %v12388_v25, %v17965_v2  ;;  %v3719_v37 = vcombine.high %v12181_v60, %v12202_v48 }
 0x45e   :  { %3782 = vrot.lane.b32.xlu1 %v3697_v59, %s10651_s17  ;;  %4010 = vrot.lane.b32.xlu0 %v3974_v44, %s10658_s24  ;;  %v3290_v44 = vcombine.low %v12335_v38, %v12362_v53  ;;  %v3733_v48 = vrot.slane %v3719_v37, %v17971_v30 }
 0x460   :  { %v3298_v63 = vrot.slane %v3290_v44, %v17971_v30 }
 0x462   :  { %3994 = vrot.lane.b32.xlu1 %v3916_v9, %s10654_s20  ;;  %2474 = vrot.lane.b32.xlu0 %v2410_v8, %s10652_s18  ;;  %v3518_v8 = vcombine.low %v3494_v28, %v3510_v47  ;;  %v3306_v9 = vcombine.low %v3282_v29, %v3298_v63  ;;  %v3307_v43 = vcombine.high %v3282_v29, %v3298_v63 }
 0x463   :  { %v3703_v29 = vcombine.high %v12140_v51, %v12162_v5  ;;  %v3519_v51 = vcombine.high %v3494_v28, %v3510_v47  ;;  %v3899_v5 = vcombine.high %v12248_v52, %v12239_v62  ;;  %v2379_v62 = vcombine.high %v12321_v41, %v12324_v17  ;;  %v12441_v28 = vpop.permute.xlu0 %2968 }
 0x464   :  { %v12398_v18 = vrot.slane %v3518_v8, %v17972_v45  ;;  %v3321_v49 = vrot.slane %v3307_v43, %v17972_v45  ;;  %v12404_v44 = vrot.slane %v3306_v9, %v17972_v45  ;;  %v2791_v8 = vcombine.high %v11660_v27, %v11680_v1 }
 0x465   :  { %v3484_v9 = vcombine.high %v12314_v23, %v17965_v2  ;;  %v3717_v60 = vrot.slane %v3703_v29, %v17971_v30  ;;  %v3533_v1 = vrot.slane %v3519_v51, %v17972_v45  ;;  %v3913_v52 = vrot.slane %v3899_v5, %v17972_v45 }
 0x466   :  { %4014 = vrot.lane.b32.xlu1 %v3965_v46, %s10655_s21  ;;  %2910 = vrot.lane.b32.xlu0 %v2839_v39, %s10657_s23  ;;  %v3542_v63 = vcombine.high %v12398_v18, %v17965_v2  ;;  %v3330_v32 = vcombine.high %v12404_v44, %v17965_v2  ;;  %v2775_v39 = vcombine.high %v11670_v50, %v11686_v14 }
 0x467   :  { %v3701_v50 = vcombine.high %v3697_v59, %v17965_v2  ;;  %v12433_v27 = vrot.slane %v2791_v8, %v17971_v30  ;;  %v3750_v23 = vcombine.low %v3717_v60, %v3733_v48  ;;  %v2991_v47 = vcombine.high %v12113_v11, %v12129_v3 }
 0x468   :  { %v12430_v14 = vrot.slane %v2775_v39, %v17971_v30  ;;  %v3007_v43 = vcombine.high %v12136_v19, %v12152_v13  ;;  %v3255_v11 = vcombine.high %v12305_v24, %v12290_v6  ;;  %v2595_v19 = vcombine.high %v12350_v12, %v12353_v61  ;;  %v12468_v13 = vpop.permute.xlu1 %2972 }
 0x469   :  { %v3757_v41 = vrot.slane %v3750_v23, %v17972_v45  ;;  %v3467_v29 = vcombine.high %v12260_v33, %v12263_v16  ;;  %v3935_v39 = vcombine.high %v12219_v26, %v12236_v54  ;;  %v3543_v51 = vcombine.high %v3533_v1, %v17965_v2 }
 0x46a   :  { %3350 = vrot.lane.b32.xlu0 %v3272_v58, %s10654_s20  ;;  %2690 = vrot.lane.b32.xlu1 %v2626_v7, %s10652_s18  ;;  %v2822_v59 = vcombine.low %v12430_v14, %v12433_v27  ;;  %v2393_v58 = vrot.slane %v2379_v62, %v17972_v45  ;;  %v12456_v7 = vpop.permute.xlu0 %2976  ;;  %v12464_v3 = vrot.slane %v3007_v43, %v17971_v30  ;;  %s10668_s18 = smov 102  }
 0x46b   :  { %v12478_v24 = vrot.slane %v3255_v11, %v17972_v45  ;;  %v2609_v37 = vrot.slane %v2595_v19, %v17972_v45  ;;  %v2842_v5 = vcombine.low %v11654_v40, %v11674_v15  ;;  %v3949_v54 = vrot.slane %v3935_v39, %v17971_v30 }
 0x46c   :  { %v2830_v17 = vrot.slane %v2822_v59, %v17972_v45  ;;  %v12483_v61 = vpop.permute.xlu1 %2980  ;;  %v3760_v23 = vcombine.high %v3757_v41, %v17965_v2 }
 0x46d   :  { %v2627_v39 = vcombine.high %v2609_v37, %v17965_v2 }
 0x46e   :  { %3126 = vrot.lane.b32.xlu1 %v3055_v36, %s10657_s23  ;;  %3370 = vrot.lane.b32.xlu0 %v3321_v49, %s10655_s21  ;;  %v12459_v36 = vrot.slane %v2991_v47, %v17971_v30  ;;  %v12481_v12 = vpop.permute.xlu0 %2324  ;;  %v2411_v47 = vcombine.high %v2393_v58, %v17965_v2  ;;  %v2840_v11 = vcombine.high %v2830_v17, %v17965_v2 }
 0x470   :  { %v3038_v6 = vcombine.low %v12459_v36, %v12464_v3  ;;  %v12501_v8 = vpop.permute.xlu1 %2328 }
 0x472   :  { %3578 = vrot.lane.b32.xlu0 %v3542_v63, %s10658_s24  ;;  %3366 = vrot.lane.b32.xlu1 %v3330_v32, %s10658_s24  ;;  %v3975_v63 = vcombine.high %v3965_v46, %v17965_v2  ;;  %v12489_v46 = vrot.slane %v3467_v29, %v17972_v45  ;;  %v3046_v33 = vrot.slane %v3038_v6, %v17972_v45  ;;  %v12495_v16 = vpop.permute.xlu0 %2332 }
 0x473   :  { %v3919_v32 = vcombine.high %v12188_v0, %v12209_v22  ;;  %v2858_v22 = vcombine.low %v11648_v56, %v11664_v20  ;;  %v3917_v0 = vcombine.high %v3913_v52, %v17965_v2 }
 0x474   :  { %v12521_v48 = vpop.permute.xlu1 %2336 }
 0x475   :  { %v3933_v26 = vrot.slane %v3919_v32, %v17971_v30 }
 0x476   :  { %3786 = vrot.lane.b32.xlu0 %v3701_v50, %s10656_s22  ;;  %3562 = vrot.lane.b32.xlu1 %v3484_v9, %s10654_s20  ;;  %v3331_v9 = vcombine.high %v3321_v49, %v17965_v2  ;;  %v3074_v49 = vcombine.low %v12468_v13, %v12483_v61  ;;  %v12519_v60 = vpop.permute.xlu0 %2540  ;;  %v2850_v50 = vrot.slane %v2842_v5, %v17971_v30 }
 0x477   :  { %v3966_v62 = vcombine.low %v3933_v26, %v3949_v54  ;;  %v3487_v54 = vcombine.high %v11605_v21, %v11626_v42 }
 0x478   :  { %v12536_v6 = vpop.permute.xlu1 %2544 }
 0x47a   :  { %3998 = vrot.lane.b32.xlu0 %v3913_v52, %s10651_s17  ;;  %3582 = vrot.lane.b32.xlu1 %v3533_v1, %s10655_s21  ;;  %v2866_v1 = vrot.slane %v2858_v22, %v17971_v30  ;;  %v3082_v52 = vrot.slane %v3074_v49, %v17971_v30  ;;  %v12531_v43 = vpop.permute.xlu0 %2548  ;;  %v3275_v22 = vcombine.high %v12333_v34, %v12360_v35  ;;  %v17988_v35 = vld [vmem:[#allocation39_spill] sm:$0xff] }
 0x47b   :  { %v3503_v49 = vcombine.high %v11597_v10, %v11617_v57  ;;  %v2347_v34 = vcombine.high %v12224_v31, %v12243_v4  ;;  %v3485_v10 = vcombine.high %v12489_v46, %v17965_v2  ;;  %v3501_v57 = vrot.slane %v3487_v54, %v17971_v30 }
 0x47c   :  { %v2875_v19 = vcombine.high %v2850_v50, %v2866_v1 }
 0x47d   :  { %v3517_v31 = vrot.slane %v3503_v49, %v17971_v30  ;;  %v12597_v4 = vrot.slane %v2347_v34, %v17971_v30  ;;  %v17994_v49 = vld [vmem:[#allocation40_spill] sm:$0xff] }
 0x47e   :  { %2478 = vrot.lane.b32.xlu0 %v2393_v58, %s10650_s16  ;;  %3806 = vrot.lane.b32.xlu1 %v3757_v41, %s10659_s25  ;;  %v12539_v41 = vrot.slane %v3966_v62, %v17972_v45  ;;  %v12545_v58 = vrot.slane %v2875_v19, %v17972_v45  ;;  %v17990_v19 = vld [vmem:[#allocation21_spill] sm:$0xff] }
 0x482   :  { %2914 = vrot.lane.b32.xlu0 %v2830_v17, %s10649_s0  ;;  %4018 = vrot.lane.b32.xlu1 %v3975_v63, %s10660_s26  ;;  %v2874_v63 = vcombine.low %v2850_v50, %v2866_v1  ;;  %v3289_v1 = vrot.slane %v3275_v22, %v17971_v30 }
 0x484   :  { %v12548_v32 = vrot.slane %v2874_v63, %v17972_v45  ;;  %v17991_v63 = vld [vmem:[#allocation63_spill] sm:$0xff] }
 0x486   :  { %3354 = vrot.lane.b32.xlu0 %v12478_v24, %s10651_s17  ;;  %2694 = vrot.lane.b32.xlu1 %v2609_v37, %s10650_s16  ;;  %v2898_v5 = vcombine.high %v12548_v32, %v17965_v2  ;;  %s10667_s16 = smov 100  }
 0x48a   :  { %3566 = vrot.lane.b32.xlu0 %v12489_v46, %s10651_s17  ;;  %3130 = vrot.lane.b32.xlu1 %v3046_v33, %s10649_s0  ;;  %v3534_v46 = vcombine.low %v3501_v57, %v3517_v31  ;;  %v3976_v57 = vcombine.high %v12539_v41, %v17965_v2 }
 0x48c   :  { %v3541_v34 = vrot.slane %v3534_v46, %v17972_v45  ;;  %v2899_v46 = vcombine.high %v12545_v58, %v17965_v2 }
 0x48e   :  { %3790 = vrot.lane.b32.xlu0 %v12234_v55, %s10653_s19  ;;  %3374 = vrot.lane.b32.xlu1 %v3331_v9, %s10660_s26  ;;  %v3058_v55 = vcombine.low %v12441_v28, %v12456_v7 }
 0x490   :  { %v3066_v59 = vrot.slane %v3058_v55, %v17971_v30  ;;  %v17989_v55 = vld [vmem:[#allocation34_spill] sm:$0xff] }
 0x491   :  { %v2363_v50 = vcombine.high %v17989_v55, %v17988_v35 }
 0x492   :  { %4002 = vrot.lane.b32.xlu0 %v3917_v0, %s10656_s22  ;;  %3586 = vrot.lane.b32.xlu1 %v3543_v51, %s10660_s26  ;;  %v3090_v29 = vcombine.low %v3066_v59, %v3082_v52  ;;  %v12556_v51 = vpop.permute.xlu1 %2552  ;;  %v3291_v0 = vcombine.high %v12335_v38, %v12362_v53  ;;  %v3056_v38 = vcombine.high %v3046_v33, %v17965_v2 }
 0x493   :  { %v3273_v53 = vcombine.high %v12478_v24, %v17965_v2  ;;  %v3091_v62 = vcombine.high %v3066_v59, %v3082_v52  ;;  %v12600_v24 = vrot.slane %v2363_v50, %v17971_v30 }
 0x494   :  { %v12554_v9 = vrot.slane %v3090_v29, %v17972_v45  ;;  %v2563_v29 = vcombine.high %v17991_v63, %v17990_v19  ;;  %v2646_v19 = vcombine.low %v12536_v6, %v12556_v51  ;;  %v2630_v63 = vcombine.low %v12519_v60, %v12531_v43 }
 0x496   :  { %2482 = vrot.lane.b32.xlu0 %v2411_v47, %s10657_s23  ;;  %3810 = vrot.lane.b32.xlu1 %v3760_v23, %s10662_s28  ;;  %v3114_v26 = vcombine.high %v12554_v9, %v17965_v2  ;;  %v3305_v23 = vrot.slane %v3291_v0, %v17971_v30  ;;  %v12586_v42 = vpop.permute.xlu1 %3766  ;;  %v3105_v47 = vrot.slane %v3091_v62, %v17972_v45 }
 0x498   :  { %v12550_v17 = vpop.permute.xlu0 %3762  ;;  %v3322_v33 = vcombine.low %v3289_v1, %v3305_v23 }
 0x49a   :  { %2918 = vrot.lane.b32.xlu0 %v2840_v11, %s10654_s20  ;;  %4022 = vrot.lane.b32.xlu1 %v12539_v41, %s10659_s25  ;;  %v2394_v11 = vcombine.low %v12597_v4, %v12600_v24  ;;  %v3329_v54 = vrot.slane %v3322_v33, %v17972_v45  ;;  %v2414_v41 = vcombine.low %v12481_v12, %v12495_v16 }
 0x49c   :  { %v2402_v1 = vrot.slane %v2394_v11, %v17972_v45  ;;  %v2430_v11 = vcombine.low %v12501_v8, %v12521_v48 }
 0x49e   :  { %2938 = vrot.lane.b32.xlu0 %v12545_v58, %s10655_s21  ;;  %2698 = vrot.lane.b32.xlu1 %v2627_v39, %s10657_s23  ;;  %v17992_v39 = vld [vmem:[#allocation35_spill] sm:$0xff]  ;;  %v2422_v58 = vrot.slane %v2414_v41, %v17971_v30  ;;  %s10672_s23 = smov 58  }
 0x4a0   :  { %v12567_v37 = vpop.permute.xlu0 %3978 }
 0x4a2   :  { %2934 = vrot.lane.b32.xlu1 %v2898_v5, %s10658_s24  ;;  %3150 = vrot.lane.b32.xlu0 %v3114_v26, %s10658_s24  ;;  %v17993_v5 = vld [vmem:[#allocation51_spill] sm:$0xff] }
 0x4a3   :  { %v2579_v22 = vcombine.high %v17993_v5, %v17992_v39  ;;  %v2438_v5 = vrot.slane %v2430_v11, %v17971_v30 }
 0x4a4   :  { %v12588_v21 = vpop.permute.xlu0 %3546 }
 0x4a5   :  { %v12630_v35 = vrot.slane %v2579_v22, %v17971_v30  ;;  %v2654_v22 = vrot.slane %v2646_v19, %v17971_v30 }
 0x4a6   :  { %3134 = vrot.lane.b32.xlu1 %v3056_v38, %s10654_s20  ;;  %3358 = vrot.lane.b32.xlu0 %v3273_v53, %s10656_s22  ;;  %v2823_v38 = vcombine.high %v12430_v14, %v12433_v27  ;;  %v12627_v53 = vrot.slane %v2563_v29, %v17971_v30  ;;  %v3039_v14 = vcombine.high %v12459_v36, %v12464_v3 }
 0x4a8   :  { %v12602_v52 = vpop.permute.xlu0 %3982  ;;  %v12604_v59 = vpop.permute.xlu1 %3334  ;;  %v2837_v23 = vrot.slane %v2823_v38, %v17972_v45  ;;  %v2610_v27 = vcombine.low %v12627_v53, %v12630_v35  ;;  %v3053_v3 = vrot.slane %v3039_v14, %v17972_v45 }
 0x4aa   :  { %3154 = vrot.lane.b32.xlu1 %v3105_v47, %s10655_s21  ;;  %3570 = vrot.lane.b32.xlu0 %v3485_v10, %s10656_s22  ;;  %v2618_v36 = vrot.slane %v2610_v27, %v17972_v45  ;;  %v3115_v27 = vcombine.high %v3105_v47, %v17965_v2  ;;  %v3544_v47 = vcombine.high %v3541_v34, %v17965_v2 }
 0x4ac   :  { %v12615_v0 = vpop.permute.xlu0 %3550  ;;  %v12617_v26 = vpop.permute.xlu1 %3770 }
 0x4ae   :  { %3378 = vrot.lane.b32.xlu1 %v3329_v54, %s10659_s25  ;;  %4006 = vrot.lane.b32.xlu0 %v17994_v49, %s10653_s19  ;;  %v2638_v49 = vrot.slane %v2630_v63, %v17971_v30  ;;  %v3332_v63 = vcombine.high %v3329_v54, %v17965_v2  ;;  %v2843_v54 = vcombine.high %v11654_v40, %v11674_v15 }
 0x4af   :  { %v3075_v15 = vcombine.high %v12468_v13, %v12483_v61  ;;  %v2395_v13 = vcombine.high %v12597_v4, %v12600_v24 }
 0x4b0   :  { %v12632_v55 = vpop.permute.xlu0 %3986  ;;  %v12634_v50 = vpop.permute.xlu1 %3338  ;;  %v2662_v41 = vcombine.low %v2638_v49, %v2654_v22  ;;  %v2857_v40 = vrot.slane %v2843_v54, %v17971_v30  ;;  %v3057_v54 = vcombine.high %v3053_v3, %v17965_v2 }
 0x4b1   :  { %v3089_v61 = vrot.slane %v3075_v15, %v17971_v30 }
 0x4b2   :  { %3590 = vrot.lane.b32.xlu1 %v3541_v34, %s10659_s25  ;;  %2486 = vrot.lane.b32.xlu0 %v2402_v1, %s10649_s0  ;;  %v2859_v34 = vcombine.high %v11648_v56, %v11664_v20  ;;  %v3059_v56 = vcombine.high %v12441_v28, %v12456_v7 }
 0x4b4   :  { %v12644_v62 = vpop.permute.xlu0 %3118  ;;  %v12646_v10 = vpop.permute.xlu1 %3774  ;;  %v2873_v20 = vrot.slane %v2859_v34, %v17971_v30  ;;  %v3073_v28 = vrot.slane %v3059_v56, %v17971_v30 }
 0x4b6   :  { %4026 = vrot.lane.b32.xlu1 %v3976_v57, %s10662_s28  ;;  %2922 = vrot.lane.b32.xlu0 %v2837_v23, %s10651_s17  ;;  %v2446_v57 = vcombine.low %v2422_v58, %v2438_v5  ;;  %v3106_v4 = vcombine.low %v3073_v28, %v3089_v61 }
 0x4b8   :  { %v12652_v31 = vpop.permute.xlu0 %3554  ;;  %v12654_v33 = vpop.permute.xlu1 %2902 }
 0x4ba   :  { %2702 = vrot.lane.b32.xlu1 %v2618_v36, %s10649_s0  ;;  %3138 = vrot.lane.b32.xlu0 %v3053_v3, %s10651_s17  ;;  %v2611_v3 = vcombine.high %v12627_v53, %v12630_v35  ;;  %v12772_v53 = vld [vmem:[#allocation2 + $0x48] sm:$0xff]  ;;  %s10665_s0 = smov 114  }
 0x4bb   :  { %v12774_v35 = vld [vmem:[#allocation2 + $0x68] sm:$0xff] }
 0x4bc   :  { %v12670_v29 = vpop.permute.xlu0 %3794  ;;  %v12672_v39 = vpop.permute.xlu1 %3342  ;;  %v12767_v15 = vrot.slane %v2611_v3, %v17972_v45  ;;  %v2190_v56 = vcombine.low %v12772_v53, %v12774_v35 }
 0x4be   :  { %2942 = vrot.lane.b32.xlu1 %v2899_v46, %s10660_s26  ;;  %3362 = vrot.lane.b32.xlu0 %v12404_v44, %s10653_s19  ;;  %v2412_v44 = vcombine.high %v2402_v1, %v17965_v2  ;;  %v2447_v46 = vcombine.high %v2422_v58, %v2438_v5  ;;  %v12704_v58 = vrot.slane %v2446_v57, %v17972_v45 }
 0x4bf   :  { %v12707_v5 = vrot.slane %v2662_v41, %v17972_v45  ;;  %v2841_v41 = vcombine.high %v2837_v23, %v17965_v2  ;;  %v2890_v23 = vcombine.low %v2857_v40, %v2873_v20  ;;  %v3113_v20 = vrot.slane %v3106_v4, %v17972_v45 }
 0x4c0   :  { %v12681_v38 = vpop.permute.xlu0 %3990  ;;  %v12683_v14 = vpop.permute.xlu1 %3778  ;;  %v2461_v1 = vrot.slane %v2447_v46, %v17972_v45  ;;  %v2470_v57 = vcombine.high %v12704_v58, %v17965_v2  ;;  %v2198_v28 = vrot.slane %v2190_v56, %v17971_v30  ;;  %v2431_v4 = vcombine.high %v12501_v8, %v12521_v48 }
 0x4c1   :  { %v2686_v46 = vcombine.high %v12707_v5, %v17965_v2 }
 0x4c2   :  { %3158 = vrot.lane.b32.xlu1 %v3115_v27, %s10660_s26  ;;  %3574 = vrot.lane.b32.xlu0 %v12398_v18, %s10653_s19  ;;  %v2471_v61 = vcombine.high %v2461_v1, %v17965_v2 }
 0x4c4   :  { %v12690_v11 = vpop.permute.xlu0 %3122  ;;  %v12692_v19 = vpop.permute.xlu1 %3798 }
 0x4c6   :  { %3382 = vrot.lane.b32.xlu1 %v3332_v63, %s10662_s28  ;;  %2490 = vrot.lane.b32.xlu0 %v2412_v44, %s10654_s20 }
 0x4c8   :  { %v12698_v27 = vpop.permute.xlu0 %3558  ;;  %v12700_v18 = vpop.permute.xlu1 %2906 }
 0x4c9   :  { %17995 = vst [vmem:[#allocation27_spill] sm:$0xff] %v12700_v18 }
 0x4ca   :  { %3594 = vrot.lane.b32.xlu1 %v3544_v47, %s10662_s28  ;;  %2510 = vrot.lane.b32.xlu0 %v2461_v1, %s10655_s21  ;;  %v2663_v47 = vcombine.high %v2638_v49, %v2654_v22  ;;  %v2897_v49 = vrot.slane %v2890_v23, %v17972_v45 }
 0x4cc   :  { %v12715_v44 = vpop.permute.xlu0 %3802  ;;  %v12717_v63 = vpop.permute.xlu1 %3346 }
 0x4ce   :  { %2506 = vrot.lane.b32.xlu1 %v2470_v57, %s10658_s24  ;;  %2722 = vrot.lane.b32.xlu0 %v2686_v46, %s10658_s24  ;;  %v2628_v57 = vcombine.high %v2618_v36, %v17965_v2  ;;  %v2677_v36 = vrot.slane %v2663_v47, %v17972_v45  ;;  %v2409_v46 = vrot.slane %v2395_v13, %v17972_v45  ;;  %v12778_v47 = vld [vmem:[#allocation2 + $0x58] sm:$0xff] }
 0x4d0   :  { %v12732_v25 = vpop.permute.xlu0 %4010  ;;  %v12734_v18 = vpop.permute.xlu1 %3782  ;;  %v2687_v1 = vcombine.high %v2677_v36, %v17965_v2 }
 0x4d2   :  { %2706 = vrot.lane.b32.xlu1 %v2628_v57, %s10654_s20  ;;  %2926 = vrot.lane.b32.xlu0 %v2841_v41, %s10656_s22  ;;  %v12780_v57 = vld [vmem:[#allocation2 + $0x78] sm:$0xff] }
 0x4d3   :  { %v2206_v23 = vcombine.low %v12778_v47, %v12780_v57 }
 0x4d4   :  { %v12744_v7 = vpop.permute.xlu0 %2474  ;;  %v12746_v22 = vpop.permute.xlu1 %3994 }
 0x4d5   :  { %17996 = vst [vmem:[#allocation30_spill] sm:$0xff] %v12744_v7  ;;  %v2214_v3 = vrot.slane %v2206_v23, %v17971_v30  ;;  %v2415_v7 = vcombine.high %v12481_v12, %v12495_v16  ;;  %v2445_v12 = vrot.slane %v2431_v4, %v17971_v30  ;;  %v2647_v23 = vcombine.high %v12536_v6, %v12556_v51 }
 0x4d6   :  { %2726 = vrot.lane.b32.xlu1 %v2677_v36, %s10655_s21  ;;  %3142 = vrot.lane.b32.xlu0 %v3057_v54, %s10656_s22  ;;  %v2631_v36 = vcombine.high %v12519_v60, %v12531_v43  ;;  %v3116_v43 = vcombine.high %v3113_v20, %v17965_v2 }
 0x4d7   :  { %v2223_v8 = vcombine.high %v2198_v28, %v2214_v3  ;;  %v2222_v48 = vcombine.low %v2198_v28, %v2214_v3  ;;  %v2429_v16 = vrot.slane %v2415_v7, %v17971_v30  ;;  %v2661_v7 = vrot.slane %v2647_v23, %v17971_v30 }
 0x4d8   :  { %v12754_v24 = vpop.permute.xlu0 %2910  ;;  %v12756_v34 = vpop.permute.xlu1 %4014  ;;  %v2645_v6 = vrot.slane %v2631_v36, %v17971_v30  ;;  %v18002_v36 = vld [vmem:[#allocation83_spill] sm:$0xff] }
 0x4d9   :  { %17997 = vst [vmem:[#allocation36_spill] sm:$0xff] %v12754_v24  ;;  %v2230_v28 = vrot.slane %v2222_v48, %v17972_v45  ;;  %v2462_v3 = vcombine.low %v2429_v16, %v2445_v12  ;;  %v2413_v16 = vcombine.high %v2409_v46, %v17965_v2 }
 0x4da   :  { %2946 = vrot.lane.b32.xlu1 %v2897_v49, %s10659_s25  ;;  %2494 = vrot.lane.b32.xlu0 %v2409_v46, %s10651_s17  ;;  %v2629_v46 = vcombine.high %v12767_v15, %v17965_v2 }
 0x4db   :  { %v2246_v4 = vcombine.high %v2230_v28, %v17965_v2 }
 0x4dc   :  { %v12761_v41 = vpop.permute.xlu0 %3350  ;;  %v12763_v40 = vpop.permute.xlu1 %2690 }
 0x4dd   :  { %17998 = vst [vmem:[#allocation54_spill] sm:$0xff] %v12763_v40 }
 0x4de   :  { %3162 = vrot.lane.b32.xlu1 %v3113_v20, %s10659_s25  ;;  %2710 = vrot.lane.b32.xlu0 %v12767_v15, %s10651_s17 }
 0x4e0   :  { %v12784_v54 = vpop.permute.xlu0 %3370  ;;  %v12786_v13 = vpop.permute.xlu1 %3126 }
 0x4e2   :  { %2514 = vrot.lane.b32.xlu1 %v2471_v61, %s10660_s26  ;;  %2930 = vrot.lane.b32.xlu0 %v12548_v32, %s10653_s19  ;;  %v2900_v61 = vcombine.high %v2897_v49, %v17965_v2  ;;  %v17999_v32 = vld [vmem:[#allocation85_spill] sm:$0xff] }
 0x4e3   :  { %v2188_v56 = vcombine.high %v17999_v32, %v17965_v2 }
 0x4e4   :  { %v12798_v40 = vpop.permute.xlu0 %3578  ;;  %v12800_v24 = vpop.permute.xlu1 %3366 }
 0x4e6   :  { %2730 = vrot.lane.b32.xlu1 %v2687_v1, %s10660_s26  ;;  %3146 = vrot.lane.b32.xlu0 %v12554_v9, %s10653_s19  ;;  %v2237_v9 = vrot.slane %v2223_v8, %v17972_v45  ;;  %v2469_v8 = vrot.slane %v2462_v3, %v17972_v45  ;;  %v18003_v3 = vld [vmem:[#allocation82_spill] sm:$0xff] }
 0x4e8   :  { %v12815_v49 = vpop.permute.xlu0 %3786  ;;  %v12817_v1 = vpop.permute.xlu1 %3562  ;;  %v2247_v23 = vcombine.high %v2237_v9, %v17965_v2 }
 0x4ea   :  { %2950 = vrot.lane.b32.xlu1 %v2900_v61, %s10662_s28  ;;  %2266 = vrot.lane.b32.xlu0 %v2188_v56, %s10654_s20  ;;  %v2678_v61 = vcombine.low %v2645_v6, %v2661_v7  ;;  %v2171_v7 = vcombine.high %v18003_v3, %v18002_v36  ;;  %v2191_v6 = vcombine.high %v12772_v53, %v12774_v35  ;;  %s10670_s20 = smov 74  }
 0x4ec   :  { %v12825_v51 = vpop.permute.xlu0 %3998  ;;  %v12827_v60 = vpop.permute.xlu1 %3582  ;;  %v2685_v12 = vrot.slane %v2678_v61, %v17972_v45 }
 0x4ee   :  { %3166 = vrot.lane.b32.xlu1 %v3116_v43, %s10662_s28  ;;  %2286 = vrot.lane.b32.xlu0 %v2237_v9, %s10655_s21  ;;  %v2207_v43 = vcombine.high %v12778_v47, %v12780_v57  ;;  %v2185_v9 = vrot.slane %v2171_v7, %v17972_v45  ;;  %v2472_v57 = vcombine.high %v2469_v8, %v17965_v2 }
 0x4ef   :  { %v2688_v3 = vcombine.high %v2685_v12, %v17965_v2 }
 0x4f0   :  { %v12833_v32 = vpop.permute.xlu0 %2478  ;;  %v12835_v56 = vpop.permute.xlu1 %3806  ;;  %v2221_v53 = vrot.slane %v2207_v43, %v17971_v30 }
 0x4f1   :  { %18000 = vst [vmem:[#allocation28_spill] sm:$0xff] %v12833_v32  ;;  %v2108_v32 = vpop.f32.mrf.mxu0 }
 0x4f2   :  { %2282 = vrot.lane.b32.xlu1 %v2246_v4, %s10658_s24  ;;  %2518 = vrot.lane.b32.xlu0 %v2469_v8, %s10659_s25 }
 0x4f4   :  { %v12840_v48 = vpop.permute.xlu0 %2914  ;;  %v12842_v20 = vpop.permute.xlu1 %4018 }
 0x4f5   :  { %18001 = vst [vmem:[#allocation31_spill] sm:$0xff] %v12840_v48 }
 0x4f6   :  { %2734 = vrot.lane.b32.xlu0 %v2685_v12, %s10659_s25  ;;  %2498 = vrot.lane.b32.xlu1 %v2413_v16, %s10656_s22  ;;  %v2205_v16 = vrot.slane %v2191_v6, %v17971_v30 }
 0x4f8   :  { %v12855_v4 = vpop.permute.xlu0 %3354  ;;  %v12857_v61 = vpop.permute.xlu1 %2694  ;;  %v2238_v15 = vcombine.low %v2205_v16, %v2221_v53 }
 0x4f9   :  { %18004 = vst [vmem:[#allocation66_spill] sm:$0xff] %v12857_v61 }
 0x4fa   :  { %2290 = vrot.lane.b32.xlu0 %v2247_v23, %s10660_s26  ;;  %2714 = vrot.lane.b32.xlu1 %v2629_v46, %s10656_s22  ;;  %v2245_v7 = vrot.slane %v2238_v15, %v17972_v45  ;;  %v2189_v46 = vcombine.high %v2185_v9, %v17965_v2  ;;  %s10674_s26 = smov 30  }
 0x4fc   :  { %v12866_v35 = vpop.permute.xlu0 %3566  ;;  %v12868_v47 = vpop.permute.xlu1 %3130  ;;  %v2248_v43 = vcombine.high %v2245_v7, %v17965_v2 }
 0x4fe   :  { %2522 = vrot.lane.b32.xlu0 %v2472_v57, %s10662_s28  ;;  %2270 = vrot.lane.b32.xlu1 %v2185_v9, %s10651_s17 }
 0x500   :  { %v12873_v23 = vpop.permute.xlu0 %3790  ;;  %v12875_v36 = vpop.permute.xlu1 %3374 }
 0x502   :  { %2738 = vrot.lane.b32.xlu0 %v2688_v3, %s10662_s28  ;;  %2502 = vrot.lane.b32.xlu1 %v12704_v58, %s10653_s19 }
 0x504   :  { %v4003_v6 = vpop.permute.xlu0 %4002  ;;  %v12882_v8 = vpop.permute.xlu1 %3586 }
 0x506   :  { %2294 = vrot.lane.b32.xlu0 %v2245_v7, %s10659_s25  ;;  %2718 = vrot.lane.b32.xlu1 %v12707_v5, %s10653_s19  ;;  %s10673_s25 = smov 44  }
 0x508   :  { %v12889_v12 = vpop.permute.xlu0 %2482  ;;  %v12891_v16 = vpop.permute.xlu1 %3810 }
 0x509   :  { %18005 = vst [vmem:[#allocation19_spill] sm:$0xff] %v12889_v12 }
 0x50a   :  { %2298 = vrot.lane.b32.xlu0 %v2248_v43, %s10662_s28  ;;  %2274 = vrot.lane.b32.xlu1 %v2189_v46, %s10656_s22  ;;  %v18009_v46 = vld [vmem:[#allocation38_spill] sm:$0xff]  ;;  %s10671_s22 = smov 72   ;;  %s10675_s28 = smov 116  }
 0x50b   :  { %v4029_v30 = vsel %vm238_vm2, %v18009_v46, %v12567_v37  ;;  %v2110_v46 = vpop.f32.mrf.mxu0 }
 0x50c   :  { %v12895_v58 = vpop.permute.xlu0 %2918  ;;  %v4023_v53 = vpop.permute.xlu1 %4022  ;;  %v4030_v12 = vsel %vm240_vm3, %v4029_v30, %v12602_v52  ;;  %v4038_v30 = vsel %vm256_vm7, %v12732_v25, %v12756_v34 }
 0x50d   :  { %18006 = vst [vmem:[#allocation41_spill] sm:$0xff] %v12895_v58 }
 0x50e   :  { %2278 = vrot.lane.b32.xlu1 %v2230_v28, %s10653_s19  ;;  %s10669_s19 = smov 86  }
 0x510   :  { %v12898_v57 = vpop.permute.xlu0 %2938  ;;  %v12900_v5 = vpop.permute.xlu1 %2698 }
 0x511   :  { %18007 = vst [vmem:[#allocation22_spill] sm:$0xff] %v12900_v5  ;;  %v4031_v5 = vsel %vm242_vm4, %v4030_v12, %v12632_v55  ;;  %v4039_v55 = vsel %vm258_vm9, %v4038_v30, %v12842_v20 }
 0x512   :  { %v4032_v61 = vsel %vm244_vm5, %v4031_v5, %v12681_v38  ;;  %v18011_v5 = vld [vmem:[#allocation20_spill] sm:$0xff] }
 0x513   :  { %v4033_v58 = vsel %vm246_vm6, %v4032_v61, %v12746_v22  ;;  %v4040_v22 = vsel %vm260_vm11, %v4039_v55, %v4023_v53  ;;  %v18012_v53 = vld [vmem:[#allocation13_spill] sm:$0xff]  ;;  %v18013_v55 = vld [vmem:[#allocation15_spill] sm:$0xff] }
 0x514   :  { %v12902_v15 = vpop.permute.xlu0 %3150  ;;  %v12904_v9 = vpop.permute.xlu1 %2934  ;;  %v4034_v37 = vsel %vm248_vm8, %v4033_v58, %v12825_v51 }
 0x515   :  { %18008 = vst [vmem:[#allocation42_spill] sm:$0xff] %v12904_v9  ;;  %v4035_v52 = vsel %vm250_vm10, %v4034_v37, %v4003_v6  ;;  %v12957_v37 = vadd.f32 %v2108_v32, %v18011_v5 }
 0x518   :  { %v12906_v3 = vpop.permute.xlu0 %3358  ;;  %v12908_v7 = vpop.permute.xlu1 %3134 }
 0x51c   :  { %v3571_v43 = vpop.permute.xlu0 %3570  ;;  %v12910_v45 = vpop.permute.xlu1 %3154 }
 0x520   :  { %v4007_v28 = vpop.permute.xlu0 %4006  ;;  %v12915_v2 = vpop.permute.xlu1 %3378 }
 0x521   :  { %v4036_v38 = vsel %vm252_vm12, %v4035_v52, %v4007_v28  ;;  %v3813_v28 = vsel %vm238_vm2, %v18012_v53, %v12550_v17 }
 0x522   :  { %v4037_v34 = vsel %vm254_vm14, %v4036_v38, %v12732_v25  ;;  %v3814_v52 = vsel %vm240_vm3, %v3813_v28, %v12586_v42  ;;  %v3597_v38 = vsel %vm238_vm2, %v18013_v55, %v12588_v21 }
 0x523   :  { %v3598_v17 = vsel %vm240_vm3, %v3597_v38, %v12615_v0  ;;  %v3822_v0 = vsel %vm256_vm7, %v12670_v29, %v12692_v19 }
 0x524   :  { %v12925_v48 = vpop.permute.xlu0 %2486  ;;  %v3591_v9 = vpop.permute.xlu1 %3590 }
 0x525   :  { %18010 = vst [vmem:[#allocation53_spill] sm:$0xff] %v12925_v48  ;;  %v12940_v48 = vadd.f32 %v2110_v46, %v18011_v5 }
 0x527   :  { %v4152_v58 = vsel %vm4151_vm0, %v12940_v48, 0.0 }
 0x528   :  { %v12937_v61 = vpop.permute.xlu0 %2922  ;;  %v4027_v12 = vpop.permute.xlu1 %4026  ;;  %v4153_v30 = vadd.f32 %v4152_v58, %v12957_v37 }
 0x529   :  { %v4041_v51 = vsel %vm262_vm13, %v4040_v22, %v4027_v12  ;;  %v3815_v22 = vsel %vm242_vm4, %v3814_v52, %v12617_v26  ;;  %v3599_v12 = vsel %vm242_vm4, %v3598_v17, %v12652_v31 }
 0x52a   :  { %10515 = vmatprep.subr.msk.mxu1 %vm2018_vm15, %v4041_v51  ;;  %v3816_v32 = vsel %vm244_vm5, %v3815_v22, %v12646_v10  ;;  %v3600_v21 = vsel %vm244_vm5, %v3599_v12, %v12698_v27 }
 0x52b   :  { %10516 = vmatpush1.msk.msra.mxu1 %vm2018_vm15, %v4037_v34  ;;  %v3817_v42 = vsel %vm246_vm6, %v3816_v32, %v12683_v14  ;;  %v3601_v31 = vsel %vm246_vm6, %v3600_v21, %v12817_v1  ;;  %v3823_v14 = vsel %vm258_vm9, %v3822_v0, %v12715_v44  ;;  %v3606_v44 = vsel %vm256_vm7, %v12798_v40, %v12827_v60 }
 0x52c   :  { %v12947_v20 = vpop.permute.xlu0 %3138  ;;  %v12949_v6 = vpop.permute.xlu1 %2702  ;;  %v3818_v26 = vsel %vm248_vm8, %v3817_v42, %v12734_v18  ;;  %v3602_v58 = vsel %vm248_vm8, %v3601_v31, %v12866_v35  ;;  %v3824_v18 = vsel %vm260_vm11, %v3823_v14, %v12835_v56  ;;  %v3607_v56 = vsel %vm258_vm9, %v3606_v44, %v12882_v8 }
 0x52d   :  { %v3819_v10 = vsel %vm250_vm10, %v3818_v26, %v12815_v49  ;;  %v3603_v19 = vsel %vm250_vm10, %v3602_v58, %v3571_v43  ;;  %v3825_v1 = vsel %vm262_vm13, %v3824_v18, %v12891_v16  ;;  %v3608_v43 = vsel %vm260_vm11, %v3607_v56, %v3591_v9  ;;  %v18014_v26 = vld [vmem:[#allocation23_spill] sm:$0xff]  ;;  %v18015_v58 = vld [vmem:[#allocation26_spill] sm:$0xff] }
 0x52e   :  { %v3820_v27 = vsel %vm252_vm12, %v3819_v10, %v12873_v23  ;;  %v4063_v23 = vrot.slane %v3825_v1, 4  ;;  %v3385_v0 = vsel %vm238_vm2, %v18014_v26, %v12604_v59 }
 0x52f   :  { %v3821_v35 = vsel %vm254_vm14, %v3820_v27, %v12670_v29  ;;  %v3386_v14 = vsel %vm240_vm3, %v3385_v0, %v12634_v50  ;;  %v3169_v27 = vsel %vm238_vm2, %v18015_v58, %v12644_v62 }
 0x530   :  { %v12959_v46 = vpop.permute.xlu0 %3362  ;;  %v12961_v25 = vpop.permute.xlu1 %2942  ;;  %v4062_v55 = vrot.slane %v3821_v35, 4  ;;  %v3387_v18 = vsel %vm242_vm4, %v3386_v14, %v12672_v39  ;;  %v18017_v14 = vld [vmem:[#allocation27_spill] sm:$0xff] }
 0x531   :  { %v3388_v59 = vsel %vm244_vm5, %v3387_v18, %v12717_v63 }
 0x532   :  { %4154 = vadd.xlane.f32.xlu1 %v4153_v30  ;;  %v3389_v1 = vsel %vm246_vm6, %v3388_v59, %v12761_v41 }
 0x533   :  { %v3390_v62 = vsel %vm248_vm8, %v3389_v1, %v12855_v4  ;;  %v18020_v1 = vld [vmem:[#allocation31_spill] sm:$0xff] }
 0x534   :  { %v3575_v51 = vpop.permute.xlu0 %3574  ;;  %v12979_v34 = vpop.permute.xlu1 %3158  ;;  %v3391_v63 = vsel %vm250_vm10, %v3390_v62, %v12906_v3  ;;  %v18021_v62 = vld [vmem:[#allocation41_spill] sm:$0xff] }
 0x535   :  { %v3604_v28 = vsel %vm252_vm12, %v3603_v19, %v3575_v51  ;;  %v3170_v19 = vsel %vm240_vm3, %v3169_v27, %v12690_v11  ;;  %v3394_v11 = vsel %vm256_vm7, %v12800_v24, %v12784_v54  ;;  %v3392_v4 = vsel %vm252_vm12, %v3391_v63, %v12959_v46  ;;  %v18018_v27 = vld [vmem:[#allocation36_spill] sm:$0xff] }
 0x536   :  { %v3605_v16 = vsel %vm254_vm14, %v3604_v28, %v12798_v40  ;;  %v3171_v28 = vsel %vm242_vm4, %v3170_v19, %v12786_v13  ;;  %v3395_v13 = vsel %vm258_vm9, %v3394_v11, %v12875_v36  ;;  %v3178_v36 = vsel %vm256_vm7, %v12902_v15, %v12910_v45  ;;  %v18019_v19 = vld [vmem:[#allocation42_spill] sm:$0xff] }
 0x537   :  { %v4072_v29 = vsel %vm2018_vm15, %v3605_v16, %v4062_v55  ;;  %v3172_v39 = vsel %vm244_vm5, %v3171_v28, %v12868_v47  ;;  %v3396_v47 = vsel %vm260_vm11, %v3395_v13, %v12915_v2  ;;  %v3179_v46 = vsel %vm258_vm9, %v3178_v36, %v12979_v34 }
 0x538   :  { %v13001_v53 = vpop.permute.xlu0 %2490  ;;  %v3383_v49 = vpop.permute.xlu1 %3382  ;;  %v3173_v41 = vsel %vm246_vm6, %v3172_v39, %v12908_v7  ;;  %v2962_v59 = vsel %vm256_vm7, %v18019_v19, %v12898_v57  ;;  %v18023_v57 = vld [vmem:[#allocation24_spill] sm:$0xff] }
 0x539   :  { %v3174_v35 = vsel %vm248_vm8, %v3173_v41, %v12947_v20  ;;  %v3393_v20 = vsel %vm254_vm14, %v3392_v4, %v12800_v24 }
 0x53a   :  { %v4056_v55 = vrot.slane %v3393_v20, 4  ;;  %v18027_v20 = vld [vmem:[#allocation28_spill] sm:$0xff] }
 0x53c   :  { %v13014_v30 = vpop.permute.xlu0 %2510  ;;  %v3595_v52 = vpop.permute.xlu1 %3594 }
 0x53d   :  { %v3609_v38 = vsel %vm262_vm13, %v3608_v43, %v3595_v52 }
 0x53e   :  { %v4073_v60 = vsel %vm2018_vm15, %v3609_v38, %v4063_v23  ;;  %v3397_v23 = vsel %vm262_vm13, %v3396_v47, %v3383_v49 }
 0x53f   :  { %4104 = vmatprep.subr.mxu1 %v4073_v60  ;;  %v4057_v2 = vrot.slane %v3397_v23, 4 }
 0x540   :  { %v13021_v22 = vpop.permute.xlu0 %2722  ;;  %4105 = vmatpush1.msra.mxu1 %v4072_v29  ;;  %v13023_v8 = vpop.permute.xlu1 %2506 }
 0x544   :  { %v13025_v9 = vpop.permute.xlu0 %2926  ;;  %v13027_v17 = vpop.permute.xlu1 %2706 }
 0x548   :  { %v3143_v32 = vpop.permute.xlu0 %3142  ;;  %v13029_v12 = vpop.permute.xlu1 %2726 }
 0x549   :  { %v3175_v54 = vsel %vm250_vm10, %v3174_v35, %v3143_v32  ;;  %v18022_v35 = vld [vmem:[#allocation54_spill] sm:$0xff] }
 0x54a   :  { %v2741_v4 = vsel %vm238_vm2, %v18023_v57, %v18022_v35  ;;  %v18034_v35 = vld [vmem:[#allocation33_spill] sm:$0xff] }
 0x54c   :  { %v13031_v40 = vpop.permute.xlu0 %2494  ;;  %v2947_v42 = vpop.permute.xlu1 %2946 }
 0x550   :  { %v13033_v51 = vpop.permute.xlu0 %2710  ;;  %v3163_v21 = vpop.permute.xlu1 %3162 }
 0x551   :  { %v3180_v43 = vsel %vm260_vm11, %v3179_v46, %v3163_v21  ;;  %v18016_v21 = vld [vmem:[#allocation18_spill] sm:$0xff] }
 0x552   :  { %v2953_v26 = vsel %vm238_vm2, %v18016_v21, %v12654_v33 }
 0x553   :  { %v2954_v58 = vsel %vm240_vm3, %v2953_v26, %v18017_v14  ;;  %v2534_v26 = vsel %vm256_vm7, %v13023_v8, %v13014_v30 }
 0x554   :  { %v13038_v10 = vpop.permute.xlu0 %2930  ;;  %v13040_v31 = vpop.permute.xlu1 %2514  ;;  %v2955_v18 = vsel %vm242_vm4, %v2954_v58, %v18018_v27  ;;  %v18032_v27 = vld [vmem:[#allocation53_spill] sm:$0xff] }
 0x555   :  { %v2956_v28 = vsel %vm244_vm5, %v2955_v18, %v18020_v1  ;;  %v18033_v1 = vld [vmem:[#allocation12_spill] sm:$0xff] }
 0x556   :  { %v2957_v33 = vsel %vm246_vm6, %v2956_v28, %v18021_v62 }
 0x557   :  { %v2958_v41 = vsel %vm248_vm8, %v2957_v33, %v12937_v61 }
 0x558   :  { %v3147_v50 = vpop.permute.xlu0 %3146  ;;  %v2731_v44 = vpop.permute.xlu1 %2730  ;;  %v2959_v47 = vsel %vm250_vm10, %v2958_v41, %v13025_v9  ;;  %v18028_v9 = vld [vmem:[#allocation22_spill] sm:$0xff] }
 0x559   :  { %v3176_v7 = vsel %vm252_vm12, %v3175_v54, %v3147_v50  ;;  %v2963_v50 = vsel %vm258_vm9, %v2962_v59, %v12961_v25  ;;  %v2750_v25 = vsel %vm256_vm7, %v13021_v22, %v13029_v12  ;;  %v18024_v54 = vld [vmem:[#allocation30_spill] sm:$0xff]  ;;  %v2535_v59 = vsel %vm258_vm9, %v2534_v26, %v13040_v31 }
 0x55a   :  { %v3177_v49 = vsel %vm254_vm14, %v3176_v7, %v12902_v15  ;;  %v2964_v39 = vsel %vm260_vm11, %v2963_v50, %v2947_v42  ;;  %v18025_v42 = vld [vmem:[#allocation52_spill] sm:$0xff]  ;;  %v18026_v7 = vld [vmem:[#allocation66_spill] sm:$0xff]  ;;  %v2751_v36 = vsel %vm258_vm9, %v2750_v25, %v2731_v44  ;;  %v18035_v25 = vld [vmem:[#allocation11_spill] sm:$0xff] }
 0x55b   :  { %v4070_v24 = vsel %vm2018_vm15, %v3177_v49, %v4056_v55  ;;  %v2525_v23 = vsel %vm238_vm2, %v18025_v42, %v18024_v54  ;;  %v2742_v61 = vsel %vm240_vm3, %v2741_v4, %v18026_v7  ;;  %v18029_v55 = vld [vmem:[#allocation17_spill] sm:$0xff] }
 0x55c   :  { %v13077_v56 = vpop.permute.xlu0 %2266  ;;  %v2951_v3 = vpop.permute.xlu1 %2950  ;;  %v2526_v46 = vsel %vm240_vm3, %v2525_v23, %v18027_v20 }
 0x55d   :  { %v2965_v13 = vsel %vm262_vm13, %v2964_v39, %v2951_v3  ;;  %v2960_v3 = vsel %vm252_vm12, %v2959_v47, %v13038_v10 }
 0x55e   :  { %v2961_v14 = vsel %vm254_vm14, %v2960_v3, %v18019_v19 }
 0x560   :  { %v13089_v52 = vpop.permute.xlu0 %2286  ;;  %v3167_v16 = vpop.permute.xlu1 %3166 }
 0x561   :  { %v3181_v38 = vsel %vm262_vm13, %v3180_v43, %v3167_v16  ;;  %v4051_v43 = vrot.slane %v2965_v13, 4 }
 0x562   :  { %v4071_v45 = vsel %vm2018_vm15, %v3181_v38, %v4057_v2  ;;  %v2743_v2 = vsel %vm242_vm4, %v2742_v61, %v18028_v9  ;;  %v18030_v38 = vld [vmem:[#allocation84_spill] sm:$0xff] }
 0x563   :  { %4106 = vmatprep.subr.mxu1 %v4071_v45  ;;  %v2301_v45 = vsel %vm238_vm2, %v18030_v38, %v18029_v55  ;;  %v2744_v44 = vsel %vm244_vm5, %v2743_v2, %v12949_v6  ;;  %vm18060_vm2 = vcmask 1046528  }
 0x564   :  { %v2519_v60 = vpop.permute.xlu0 %2518  ;;  %4107 = vmatpush1.msra.mxu1 %v4070_v24  ;;  %v13096_v34 = vpop.permute.xlu1 %2282  ;;  %v18031_v24 = vld [vmem:[#allocation19_spill] sm:$0xff]  ;;  %v2302_v30 = vsel %vm240_vm3, %v2301_v45, %v18033_v1  ;;  %vm18062_vm3 = vmmov %vm18060_vm2 }
 0x565   :  { %v2527_v10 = vsel %vm242_vm4, %v2526_v46, %v18031_v24  ;;  %v2536_v19 = vsel %vm260_vm11, %v2535_v59, %v2519_v60  ;;  %v2310_v41 = vsel %vm256_vm7, %v13096_v34, %v13089_v52 }
 0x566   :  { %v2528_v18 = vsel %vm244_vm5, %v2527_v10, %v18032_v27 }
 0x568   :  { %v2735_v29 = vpop.permute.xlu0 %2734  ;;  %v2499_v32 = vpop.permute.xlu1 %2498 }
 0x569   :  { %v2752_v12 = vsel %vm260_vm11, %v2751_v36, %v2735_v29  ;;  %v2745_v29 = vsel %vm246_vm6, %v2744_v44, %v13027_v17  ;;  %v2529_v17 = vsel %vm246_vm6, %v2528_v18, %v13001_v53 }
 0x56a   :  { %v2746_v6 = vsel %vm248_vm8, %v2745_v29, %v13033_v51  ;;  %v2530_v33 = vsel %vm248_vm8, %v2529_v17, %v13031_v40  ;;  %v4050_v51 = vrot.slane %v2961_v14, 4 }
 0x56b   :  { %v2531_v53 = vsel %vm250_vm10, %v2530_v33, %v2499_v32 }
 0x56c   :  { %v2291_v0 = vpop.permute.xlu0 %2290  ;;  %v2715_v15 = vpop.permute.xlu1 %2714 }
 0x56d   :  { %v2747_v28 = vsel %vm250_vm10, %v2746_v6, %v2715_v15  ;;  %v2311_v15 = vsel %vm258_vm9, %v2310_v41, %v2291_v0  ;;  %vm18073_vm9 = vmmov %vm18060_vm2 }
 0x570   :  { %v2523_v11 = vpop.permute.xlu0 %2522  ;;  %v2271_v63 = vpop.permute.xlu1 %2270 }
 0x571   :  { %v2537_v39 = vsel %vm262_vm13, %v2536_v19, %v2523_v11  ;;  %v2303_v11 = vsel %vm242_vm4, %v2302_v30, %v18034_v35  ;;  %v4183_v19 = vld [vmem:[%s17389_s3] sm:$0xff]  ;;  %s10664_s3 = smov 16   ;;  %vm18064_vm4 = vmmov %vm18060_vm2 }
 0x572   :  { %v4045_v57 = vrot.slane %v2537_v39, 4  ;;  %v2304_v32 = vsel %vm244_vm5, %v2303_v11, %v18035_v25  ;;  %vm18066_vm5 = vmmov %vm18060_vm2 }
 0x573   :  { %v2305_v0 = vsel %vm246_vm6, %v2304_v32, %v13077_v56  ;;  %v18036_v56 = vmov 0.0   ;;  %vm18071_vm6 = vmmov %vm18060_vm2 }
 0x574   :  { %v2739_v16 = vpop.permute.xlu0 %2738  ;;  %v2503_v49 = vpop.permute.xlu1 %2502  ;;  %v2306_v23 = vsel %vm248_vm8, %v2305_v0, %v2271_v63 }
 0x575   :  { %v2753_v21 = vsel %vm262_vm13, %v2752_v12, %v2739_v16  ;;  %v2532_v13 = vsel %vm252_vm12, %v2531_v53, %v2503_v49 }
 0x576   :  { %v4069_v58 = vsel %vm2018_vm15, %v2753_v21, %v4051_v43  ;;  %v2533_v54 = vsel %vm254_vm14, %v2532_v13, %v13023_v8  ;;  %v10598_v8 = vld [vmem:[%s17387_s1] sm:$0xff]  ;;  %s10682_s1 = smov 108  }
 0x577   :  { %4108 = vmatprep.subr.mxu1 %v4069_v58  ;;  %v4044_v3 = vrot.slane %v2533_v54, 4 }
 0x578   :  { %v2295_v50 = vpop.permute.xlu0 %2294  ;;  %v2719_v62 = vpop.permute.xlu1 %2718 }
 0x579   :  { %v2748_v31 = vsel %vm252_vm12, %v2747_v28, %v2719_v62  ;;  %v2312_v4 = vsel %vm260_vm11, %v2311_v15, %v2295_v50  ;;  %v4187_v62 = vld [vmem:[%s17390_s4] sm:$0xff]  ;;  %s10666_s4 = smov 2   ;;  %vm18079_vm11 = vmmov %vm18060_vm2 }
 0x57a   :  { %v2749_v60 = vsel %vm254_vm14, %v2748_v31, %v13021_v22 }
 0x57b   :  { %v4068_v40 = vsel %vm2018_vm15, %v2749_v60, %v4050_v51 }
 0x57c   :  { %v2299_v47 = vpop.permute.xlu0 %2298  ;;  %4109 = vmatpush1.msra.mxu1 %v4068_v40  ;;  %v2275_v52 = vpop.permute.xlu1 %2274 }
 0x57d   :  { %v2313_v22 = vsel %vm262_vm13, %v2312_v4, %v2299_v47  ;;  %v2307_v7 = vsel %vm250_vm10, %v2306_v23, %v2275_v52  ;;  %vm18077_vm10 = vmmov %vm18060_vm2 }
 0x57e   :  { %v4067_v42 = vsel %vm2018_vm15, %v2313_v22, %v4045_v57 }
 0x57f   :  { %4110 = vmatprep.subr.mxu1 %v4067_v42 }
 0x580   :  { %v2279_v61 = vpop.permute.xlu1 %2278 }
 0x581   :  { %v2308_v36 = vsel %vm252_vm12, %v2307_v7, %v2279_v61  ;;  %v18037_v61 = vld [vmem:[#allocation8_spill] sm:$0xff]  ;;  %vm18085_vm12 = vcmask 1045504  }
 0x582   :  { %v2309_v20 = vsel %vm254_vm14, %v2308_v36, %v13096_v34  ;;  %vm18095_vm13 = vmmov %vm18085_vm12 }
 0x583   :  { %v4066_v46 = vsel %vm2018_vm15, %v2309_v20, %v4044_v3  ;;  %vm18097_vm14 = vmmov %vm18085_vm12 }
 0x584   :  { %4111 = vmatpush1.msra.mxu1 %v4066_v46  ;;  %vm18102_vm15 = vmmov %vm18085_vm12 }
 0x585   :  { %10517 = vmatmul.mubr.msk.f32.vlgmr.msra.gmra.mxu1 %vm2032_vm1, %v10598_v8 }
 0x586   :  { %10422 = vmatprep.mubr.f32.mxu1 %v18036_v56 }
 0x5bb   :  { %v4155_v16 = vpop.xlane.xlu1 %4154 }
 0x645   :  { %v4146_v63 = vpop.f32.mrf.mxu1 }
 0x646   :  { %v4147_v43 = vadd.f32 %v4146_v63, %v18011_v5 }
 0x647   :  { %v4148_v9 = vpop.f32.mrf.mxu1 }
 0x648   :  { %v13203_v2 = vadd.f32 %v4148_v9, %v18011_v5 }
 0x64a   :  { %v4157_v34 = vsel %vm4151_vm0, %v13203_v2, 0.0 }
 0x64b   :  { %v4158_v12 = vadd.f32 %v4157_v34, %v4147_v43  ;;  %v18038_v34 = vld [vmem:[#allocation9_spill] sm:$0xff] }
 0x64d   :  { %4159 = vadd.xlane.f32.xlu0 %v4158_v12 }
 0x6d6   :  { %v4160_v49 = vpop.xlane.xlu0 %4159 }
 0x6d7   :  { %v4161_v55 = vadd.f32 %v4160_v49, %v4155_v16 }
 0x6d9   :  { %v4163_v38 = vmul.f32 0.0025510204, %v4161_v55 }
 0x6db   :  { %v4173_v45 = vsub.f32 %v4147_v43, %v4163_v38  ;;  %v4174_v24 = vsub.f32 %v13203_v2, %v4163_v38  ;;  %v4164_v10 = vsub.f32 %v12957_v37, %v4163_v38  ;;  %v4165_v44 = vsub.f32 %v12940_v48, %v4163_v38 }
 0x6dd   :  { %v4175_v21 = vmul.f32 %v4173_v45, %v4173_v45  ;;  %v4176_v26 = vmul.f32 %v4174_v24, %v4174_v24  ;;  %v4166_v29 = vmul.f32 %v4164_v10, %v4164_v10  ;;  %v4167_v5 = vmul.f32 %v4165_v44, %v4165_v44 }
 0x6df   :  { %v4177_v14 = vsel %vm4151_vm0, %v4176_v26, 0.0  ;;  %v4168_v58 = vsel %vm4151_vm0, %v4167_v5, 0.0  ;;  %vm4242_vm0 = vcmask 15360  }
 0x6e0   :  { %v4178_v27 = vadd.f32 %v4177_v14, %v4175_v21  ;;  %v4169_v18 = vadd.f32 %v4168_v58, %v4166_v29 }
 0x6e2   :  { %4179 = vadd.xlane.f32.xlu1 %v4178_v27  ;;  %4170 = vadd.xlane.f32.xlu0 %v4169_v18 }
 0x76b   :  { %v4180_v6 = vpop.xlane.xlu1 %4179  ;;  %v4171_v59 = vpop.xlane.xlu0 %4170 }
 0x76c   :  { %v4181_v1 = vadd.f32 %v4180_v6, %v4171_v59 }
 0x76e   :  { %v4182_v30 = vmul.f32 0.0025510204, %v4181_v1 }
 0x770   :  { %v4184_v17 = vadd.f32 1e-05, %v4182_v30 }
 0x772   :  { %10590 = vrsqrt.f32 %v4184_v17 }
 0x77f   :  { %v10591_v28 = vpop.eup %10590 }
 0x780   :  { %v4186_v50 = vmul.f32 %v10591_v28, %v4183_v19 }
 0x782   :  { %4192 = vperm.xlu0 %10589, %v4186_v50   ;;  %v4188_v33 = vmul.f32 %v4186_v50, %v4163_v38 }
 0x784   :  { %v4189_v51 = vsub.f32 %v4187_v62, %v4188_v33 }
 0x786   :  { %4199 = vperm.xlu1 %10588, %v4189_v51  }
 0x7fd   :  { %v4193_v39 = vpop.permute.xlu0 %4192 }
 0x7fe   :  { %v4195_v31 = vmul.f32 %v4193_v39, %v12957_v37  ;;  %v4196_v53 = vmul.f32 %v4193_v39, %v12940_v48  ;;  %v4206_v35 = vmul.f32 %v4193_v39, %v4147_v43  ;;  %v4207_v11 = vmul.f32 %v4193_v39, %v13203_v2 }
 0x801   :  { %v4200_v41 = vpop.permute.xlu1 %4199 }
 0x802   :  { %v4202_v60 = vadd.f32 %v4200_v41, %v4195_v31  ;;  %v4203_v15 = vadd.f32 %v4200_v41, %v4196_v53  ;;  %v4208_v48 = vadd.f32 %v4206_v35, %v4200_v41  ;;  %v4209_v57 = vadd.f32 %v4207_v11, %v4200_v41 }
 0x804   :  { %v4204_v13 = vmax.f32 %v4202_v60, 0.0  ;;  %v4205_v40 = vmax.f32 %v4203_v15, 0.0  ;;  %v13227_v37 = vmax.f32 %v4208_v48, 0.0  ;;  %v4211_v4 = vmax.f32 %v4209_v57, 0.0 }
 0x806   :  { %4234 = vrot.lane.b32.xlu0 %v4204_v13, %s10664_s3  ;;  %4213 = vrot.lane.b32.xlu1 %v4204_v13, %s10665_s0 }
 0x80a   :  { %4240 = vrot.lane.b32.xlu0 %v4205_v40, %s10666_s4  ;;  %4216 = vrot.lane.b32.xlu1 %v4204_v13, %s10667_s16 }
 0x80e   :  { %4248 = vrot.lane.b32.xlu0 %v4205_v40, %s10668_s18  ;;  %4219 = vrot.lane.b32.xlu1 %v4204_v13, %s10669_s19 }
 0x812   :  { %4254 = vrot.lane.b32.xlu0 %v4205_v40, %s10670_s20  ;;  %4222 = vrot.lane.b32.xlu1 %v4204_v13, %s10671_s22 }
 0x816   :  { %4225 = vrot.lane.b32.xlu1 %v4204_v13, %s10672_s23  ;;  %7355 = vrot.lane.b32.xlu0 %v13227_v37, %s10666_s4 }
 0x81a   :  { %4228 = vrot.lane.b32.xlu1 %v4204_v13, %s10673_s25  ;;  %7330 = vrot.lane.b32.xlu0 %v13227_v37, %s10665_s0 }
 0x81e   :  { %4231 = vrot.lane.b32.xlu1 %v4204_v13, %s10674_s26  ;;  %7336 = vrot.lane.b32.xlu0 %v13227_v37, %s10669_s19 }
 0x822   :  { %4238 = vrot.lane.b32.xlu1 %v4204_v13, %s10666_s4  ;;  %7342 = vrot.lane.b32.xlu0 %v13227_v37, %s10672_s23 }
 0x826   :  { %4245 = vrot.lane.b32.xlu1 %v4205_v40, %s10675_s28  ;;  %7348 = vrot.lane.b32.xlu0 %v13227_v37, %s10674_s26 }
 0x82a   :  { %4251 = vrot.lane.b32.xlu1 %v4205_v40, %s10676_s29  ;;  %7361 = vrot.lane.b32.xlu0 %v4211_v4, %s10675_s28 }
 0x82e   :  { %7357 = vrot.lane.b32.xlu1 %v4211_v4, %s10666_s4  ;;  %7367 = vrot.lane.b32.xlu0 %v4211_v4, %s10676_s29  ;;  %s10685_s4 = smov [#allocation5]  }
 0x832   :  { %7333 = vrot.lane.b32.xlu1 %v13227_v37, %s10667_s16  ;;  %s10500_s16 = sshll.u32 %s10685_s4, 4  ;;  %s10501_s16 = int_to_ptr.vmem [resolvable:$true] %s10500_s16 }
 0x833   :  { %p10624_p6 = scmp.lt.s32.totalorder %s10501_s16, %s10501_s16 }
 0x836   :  { %7339 = vrot.lane.b32.xlu1 %v13227_v37, %s10671_s22 }
 0x83a   :  { %7345 = vrot.lane.b32.xlu1 %v13227_v37, %s10673_s25 }
 0x83e   :  { %7351 = vrot.lane.b32.xlu1 %v13227_v37, %s10664_s3 }
 0x842   :  { %7364 = vrot.lane.b32.xlu1 %v4211_v4, %s10668_s18 }
 0x846   :  { %7370 = vrot.lane.b32.xlu1 %v4211_v4, %s10670_s20 }
 0x878   :  { %v13247_v47 = vpop.permute.xlu0 %4234  ;;  %v4214_v52 = vpop.permute.xlu1 %4213 }
 0x87c   :  { %v13249_v25 = vpop.permute.xlu0 %4240  ;;  %v4217_v32 = vpop.permute.xlu1 %4216 }
 0x87d   :  { %v4257_v22 = vcombine.low %v4204_v13, %v4217_v32  ;;  %v4258_v0 = vcombine.high %v4204_v13, %v4217_v32 }
 0x87f   :  { %v4265_v3 = vrot.slane %v4257_v22, %v18037_v61  ;;  %v4272_v36 = vrot.slane %v4258_v0, %v18037_v61 }
 0x880   :  { %v4220_v54 = vpop.permute.xlu1 %4219  ;;  %v13251_v42 = vpop.permute.xlu0 %4248 }
 0x881   :  { %v4273_v23 = vcombine.low %v4214_v52, %v4220_v54  ;;  %v4274_v7 = vcombine.high %v4214_v52, %v4220_v54 }
 0x883   :  { %v4281_v20 = vrot.slane %v4273_v23, %v18037_v61  ;;  %v4288_v46 = vrot.slane %v4274_v7, %v18037_v61 }
 0x884   :  { %v4223_v8 = vpop.permute.xlu1 %4222  ;;  %v13265_v38 = vpop.permute.xlu0 %4254 }
 0x885   :  { %v4321_v63 = vcombine.low %v4265_v3, %v4281_v20  ;;  %v4322_v9 = vcombine.high %v4265_v3, %v4281_v20  ;;  %v4337_v2 = vcombine.low %v4272_v36, %v4288_v46  ;;  %v4338_v43 = vcombine.high %v4272_v36, %v4288_v46 }
 0x887   :  { %v4329_v12 = vrot.slane %v4321_v63, %v18038_v34  ;;  %v4336_v16 = vrot.slane %v4322_v9, %v18038_v34  ;;  %v13260_v49 = vrot.slane %v4337_v2, %v18038_v34  ;;  %v13263_v55 = vrot.slane %v4338_v43, %v18038_v34 }
 0x888   :  { %v4226_v45 = vpop.permute.xlu1 %4225  ;;  %v13275_v27 = vpop.permute.xlu0 %7355 }
 0x889   :  { %v10518_v24 = vcombine.low %v4329_v12, %v4336_v16  ;;  %v10520_v10 = vcombine.high %v4329_v12, %v4336_v16  ;;  %v10522_v44 = vcombine.low %v13260_v49, %v13263_v55  ;;  %v10524_v21 = vcombine.high %v13260_v49, %v13263_v55 }
 0x88b   :  { %v4535_v26 = vrot.slane %v10518_v24, %v18037_v61  ;;  %v4551_v29 = vrot.slane %v10520_v10, %v18037_v61  ;;  %v4567_v5 = vrot.slane %v10522_v44, %v18037_v61  ;;  %v4583_v14 = vrot.slane %v10524_v21, %v18037_v61 }
 0x88c   :  { %v4229_v58 = vpop.permute.xlu1 %4228  ;;  %v13298_v60 = vpop.permute.xlu0 %7330 }
 0x88d   :  { %v4591_v18 = vcombine.low %v4535_v26, %v4551_v29  ;;  %v4623_v6 = vcombine.low %v4567_v5, %v4583_v14  ;;  %v4592_v59 = vcombine.high %v4535_v26, %v4551_v29  ;;  %v4624_v1 = vcombine.high %v4567_v5, %v4583_v14 }
 0x88e   :  { %v4289_v30 = vcombine.low %v4223_v8, %v4229_v58  ;;  %v4290_v32 = vcombine.high %v4223_v8, %v4229_v58 }
 0x88f   :  { %v13278_v17 = vrot.slane %v4591_v18, %v18038_v34  ;;  %v13281_v19 = vrot.slane %v4623_v6, %v18038_v34  ;;  %v13284_v50 = vrot.slane %v4592_v59, %v18038_v34  ;;  %v13287_v62 = vrot.slane %v4624_v1, %v18038_v34 }
 0x890   :  { %v4232_v28 = vpop.permute.xlu1 %4231  ;;  %v4297_v53 = vrot.slane %v4289_v30, %v18037_v61  ;;  %v13304_v11 = vpop.permute.xlu0 %7336  ;;  %v4304_v3 = vrot.slane %v4290_v32, %v18037_v61 }
 0x891   :  { %18039 = vst [vmem:[#allocation47_spill] sm:$0xff] %v13278_v17  ;;  %18040 = vst [vmem:[#allocation46_spill] sm:$0xff] %v13281_v19  ;;  %v4305_v33 = vcombine.low %v4226_v45, %v4232_v28  ;;  %v4306_v57 = vcombine.high %v4226_v45, %v4232_v28  ;;  %v7389_v29 = vcombine.low %v13298_v60, %v13304_v11 }
 0x892   :  { %18041 = vst [vmem:[#allocation56_spill] sm:$0xff] %v13284_v50  ;;  %18042 = vst [vmem:[#allocation65_spill] sm:$0xff] %v13287_v62 }
 0x893   :  { %v4313_v15 = vrot.slane %v4305_v33, %v18037_v61  ;;  %v4320_v0 = vrot.slane %v4306_v57, %v18037_v61 }
 0x894   :  { %v4239_v13 = vpop.permute.xlu1 %4238  ;;  %v7343_v7 = vpop.permute.xlu0 %7342 }
 0x895   :  { %v4353_v40 = vcombine.low %v4297_v53, %v4313_v15  ;;  %v4354_v4 = vcombine.high %v4297_v53, %v4313_v15  ;;  %v4369_v20 = vcombine.low %v4304_v3, %v4320_v0  ;;  %v4243_v43 = vsel %vm4242_vm0, %v4239_v13, %v13249_v25 }
 0x896   :  { %v4370_v24 = vcombine.high %v4304_v3, %v4320_v0  ;;  %v4440_v25 = vcombine.high %v13265_v38, %v18036_v56  ;;  %v4409_v21 = vcombine.low %v4243_v43, %v13251_v42  ;;  %v4410_v5 = vcombine.high %v4243_v43, %v13251_v42 }
 0x897   :  { %v13302_v35 = vrot.slane %v4353_v40, %v18038_v34  ;;  %v13315_v54 = vrot.slane %v4354_v4, %v18038_v34  ;;  %v13337_v9 = vrot.slane %v4369_v20, %v18038_v34  ;;  %v13389_v53 = vrot.slane %v7389_v29, %v18037_v61 }
 0x898   :  { %v4246_v48 = vpop.permute.xlu1 %4245  ;;  %v7349_v63 = vpop.permute.xlu0 %7348  ;;  %v13374_v18 = vrot.slane %v4370_v24, %v18038_v34  ;;  %v4454_v1 = vrot.slane %v4440_v25, %v18037_v61  ;;  %v4417_v30 = vrot.slane %v4409_v21, %v18037_v61  ;;  %v4424_v15 = vrot.slane %v4410_v5, %v18037_v61 }
 0x899   :  { %v13307_v52 = vcombine.low %v4329_v12, %v13302_v35  ;;  %v13318_v23 = vcombine.high %v4329_v12, %v13302_v35  ;;  %v13328_v46 = vcombine.low %v4336_v16, %v13315_v54  ;;  %18043 = vst [vmem:[#allocation37_spill] sm:$0xff] %v13337_v9  ;;  %v13340_v2 = vcombine.high %v4336_v16, %v13315_v54 }
 0x89a   :  { %v4393_v12 = vcombine.low %v13247_v47, %v4246_v48  ;;  %v4394_v10 = vcombine.high %v13247_v47, %v4246_v48  ;;  %v13355_v16 = vcombine.low %v13260_v49, %v13337_v9  ;;  %v4447_v47 = vrot.slane %v13265_v38, %v18037_v61 }
 0x89b   :  { %5117 = vrot.lane.b32.xlu1 %v13307_v52, %s10658_s24  ;;  %4810 = vrot.lane.b32.xlu0 %v13307_v52, %s10661_s27  ;;  %v13380_v59 = vcombine.high %v13260_v49, %v13337_v9  ;;  %v7390_v38 = vcombine.high %v13298_v60, %v13304_v11  ;;  %v7421_v28 = vcombine.low %v7343_v7, %v7349_v63  ;;  %v5424_v24 = vrot.slane %v13307_v52, 1 }
 0x89c   :  { %v4252_v22 = vpop.permute.xlu1 %4251  ;;  %v13360_v26 = vpop.permute.xlu0 %7361  ;;  %v4401_v14 = vrot.slane %v4393_v12, %v18037_v61  ;;  %v4408_v6 = vrot.slane %v4394_v10, %v18037_v61  ;;  %v7422_v13 = vcombine.high %v7343_v7, %v7349_v63  ;;  %v13435_v5 = vcombine.high %v13263_v55, %v13374_v18 }
 0x89d   :  { %v4425_v44 = vcombine.high %v4252_v22, %v18036_v56  ;;  %v4432_v58 = vrot.slane %v4252_v22, %v18037_v61  ;;  %v13398_v22 = vcombine.low %v13263_v55, %v13374_v18  ;;  %v7404_v0 = vrot.slane %v7390_v38, %v18037_v61 }
 0x89e   :  { %v4455_v49 = vcombine.low %v4401_v14, %v4417_v30  ;;  %v4456_v40 = vcombine.high %v4401_v14, %v4417_v30  ;;  %v4471_v57 = vcombine.low %v4408_v6, %v4424_v15  ;;  %v4472_v4 = vcombine.high %v4408_v6, %v4424_v15 }
 0x89f   :  { %5121 = vrot.lane.b32.xlu1 %v13318_v23, %s10658_s24  ;;  %4814 = vrot.lane.b32.xlu0 %v13318_v23, %s10661_s27  ;;  %v4439_v42 = vrot.slane %v4425_v44, %v18037_v61  ;;  %v4487_v60 = vcombine.low %v4432_v58, %v4447_v47  ;;  %v4488_v48 = vcombine.high %v4432_v58, %v4447_v47 }
 0x8a0   :  { %v13325_v36 = vpop.permute.xlu1 %7357  ;;  %v7368_v11 = vpop.permute.xlu0 %7367  ;;  %v13402_v7 = vrot.slane %v7421_v28, %v18037_v61  ;;  %v13407_v63 = vrot.slane %v7422_v13, %v18037_v61  ;;  %v13418_v10 = vrot.slane %v4455_v49, %v18038_v34  ;;  %v13421_v44 = vrot.slane %v4456_v40, %v18038_v34 }
 0x8a1   :  { %v4503_v32 = vcombine.low %v4439_v42, %v4454_v1  ;;  %v4504_v3 = vcombine.high %v4439_v42, %v4454_v1  ;;  %v7541_v43 = vcombine.high %v7368_v11, %v18036_v56  ;;  %v4495_v25 = vrot.slane %v4487_v60, %v18038_v34 }
 0x8a2   :  { %18044 = vst [vmem:[#allocation68_spill] sm:$0xff] %v13418_v10  ;;  %18045 = vst [vmem:[#allocation80_spill] sm:$0xff] %v13421_v44  ;;  %v4502_v21 = vrot.slane %v4488_v48, %v18038_v34  ;;  %v13441_v14 = vsel %vm4242_vm0, %v13275_v27, %v13325_v36  ;;  %v5427_v42 = vrot.slane %v13318_v23, 1  ;;  %v13447_v1 = vrot.slane %v7368_v11, %v18037_v61 }
 0x8a3   :  { %5125 = vrot.lane.b32.xlu1 %v13328_v46, %s10658_s24  ;;  %4818 = vrot.lane.b32.xlu0 %v13328_v46, %s10661_s27  ;;  %v4511_v47 = vrot.slane %v4503_v32, %v18038_v34  ;;  %v4518_v6 = vrot.slane %v4504_v3, %v18038_v34  ;;  %v13450_v38 = vrot.slane %v7541_v43, %v18037_v61  ;;  %v5430_v27 = vrot.slane %v13328_v46, 1  ;;  %vm18104_vm0 = vmmov %vm18085_vm12 }
 0x8a4   :  { %v13334_v8 = vpop.permute.xlu1 %7333  ;;  %v4519_v36 = vcombine.low %v13418_v10, %v4495_v25  ;;  %v4520_v30 = vcombine.high %v13418_v10, %v4495_v25  ;;  %v4521_v28 = vcombine.low %v13421_v44, %v4502_v21  ;;  %v13462_v15 = vcombine.high %v13421_v44, %v4502_v21 }
 0x8a5   :  { %v7373_v20 = vcombine.low %v13227_v37, %v13334_v8  ;;  %v7374_v12 = vcombine.high %v13227_v37, %v13334_v8  ;;  %v13428_v37 = vrot.slane %v4471_v57, %v18038_v34  ;;  %v13431_v8 = vrot.slane %v4472_v4, %v18038_v34 }
 0x8a6   :  { %v5433_v40 = vrot.slane %v13340_v2, 1  ;;  %v5436_v60 = vrot.slane %v13355_v16, 1  ;;  %v13485_v25 = vrot.slane %v4519_v36, 1  ;;  %v13489_v21 = vrot.slane %v4521_v28, 1 }
 0x8a7   :  { %5129 = vrot.lane.b32.xlu1 %v13340_v2, %s10658_s24  ;;  %4822 = vrot.lane.b32.xlu0 %v13340_v2, %s10661_s27  ;;  %18046 = vst [vmem:[#allocation43_spill] sm:$0xff] %v13428_v37  ;;  %18047 = vst [vmem:[#allocation59_spill] sm:$0xff] %v13431_v8  ;;  %v7381_v58 = vrot.slane %v7373_v20, %v18037_v61  ;;  %v7388_v55 = vrot.slane %v7374_v12, %v18037_v61  ;;  %v5439_v12 = vrot.slane %v13380_v59, 1 }
 0x8a8   :  { %v13349_v45 = vpop.permute.xlu1 %7339  ;;  %v13465_v13 = vcombine.low %v13428_v37, %v4511_v47  ;;  %v13468_v49 = vcombine.high %v13428_v37, %v4511_v47  ;;  %v13475_v4 = vcombine.low %v13431_v8, %v4518_v6  ;;  %v13478_v32 = vcombine.high %v13431_v8, %v4518_v6  ;;  %18049 = vst [vmem:[#allocation78_spill] sm:$0xff] %v13489_v21 }
 0x8a9   :  { %v7437_v48 = vcombine.low %v7381_v58, %v13389_v53  ;;  %v7438_v11 = vcombine.high %v7381_v58, %v13389_v53  ;;  %v7453_v3 = vcombine.low %v7388_v55, %v7404_v0  ;;  %v7454_v20 = vcombine.high %v7388_v55, %v7404_v0 }
 0x8aa   :  { %v13487_v53 = vrot.slane %v4520_v30, 1  ;;  %v13492_v47 = vrot.slane %v13462_v15, 1  ;;  %v13497_v58 = vrot.slane %v13465_v13, 1  ;;  %v13500_v6 = vrot.slane %v13468_v49, 1 }
 0x8ab   :  { %5133 = vrot.lane.b32.xlu1 %v13355_v16, %s10658_s24  ;;  %4826 = vrot.lane.b32.xlu0 %v13355_v16, %s10661_s27  ;;  %v13502_v55 = vrot.slane %v4519_v36, 2  ;;  %v13505_v41 = vrot.slane %v7437_v48, %v18038_v34  ;;  %v13508_v31 = vrot.slane %v7438_v11, %v18038_v34  ;;  %v13511_v39 = vrot.slane %v13475_v4, 1 }
 0x8ac   :  { %v13386_v33 = vpop.permute.xlu1 %7345  ;;  %18048 = vst [vmem:[#allocation60_spill] sm:$0xff] %v13487_v53  ;;  %18050 = vst [vmem:[#allocation48_spill] sm:$0xff] %v13492_v47  ;;  %v13514_v51 = vrot.slane %v13478_v32, 1  ;;  %v13524_v48 = vrot.slane %v4521_v28, 2  ;;  %v13527_v62 = vrot.slane %v4520_v30, 2  ;;  %v13530_v50 = vrot.slane %v13465_v13, 2 }
 0x8ad   :  { %v7405_v43 = vcombine.low %v13349_v45, %v13386_v33  ;;  %v7406_v0 = vcombine.high %v13349_v45, %v13386_v33  ;;  %18051 = vst [vmem:[#allocation55_spill] sm:$0xff] %v13502_v55  ;;  %18052 = vst [vmem:[#allocation62_spill] sm:$0xff] %v13505_v41  ;;  %v13517_v45 = vrot.slane %v7453_v3, %v18038_v34  ;;  %v5442_v10 = vrot.slane %v13398_v22, 1 }
 0x8ae   :  { %18053 = vst [vmem:[#allocation58_spill] sm:$0xff] %v13508_v31  ;;  %18054 = vst [vmem:[#allocation67_spill] sm:$0xff] %v13514_v51  ;;  %v13520_v33 = vrot.slane %v7454_v20, %v18038_v34  ;;  %v13534_v3 = vsel %vm18060_vm2, %v5424_v24, %v13485_v25  ;;  %v13538_v20 = vsel %vm18062_vm3, %v5430_v27, %v13489_v21  ;;  %v13552_v24 = vrot.slane %v13462_v15, 2 }
 0x8af   :  { %5137 = vrot.lane.b32.xlu1 %v13380_v59, %s10658_s24  ;;  %4830 = vrot.lane.b32.xlu0 %v13380_v59, %s10661_s27  ;;  %18055 = vst [vmem:[#allocation74_spill] sm:$0xff] %v13517_v45  ;;  %18057 = vst [vmem:[#allocation79_spill] sm:$0xff] %v13524_v48  ;;  %v13544_v17 = vsel %vm18064_vm4, %v5427_v42, %v13487_v53  ;;  %v13555_v27 = vrot.slane %v13475_v4, 2 }
 0x8b0   :  { %v13425_v29 = vpop.permute.xlu1 %7351  ;;  %18056 = vst [vmem:[#allocation71_spill] sm:$0xff] %v13520_v33  ;;  %18058 = vst [vmem:[#allocation70_spill] sm:$0xff] %v13527_v62 }
 0x8b1   :  { %18059 = vst [vmem:[#allocation77_spill] sm:$0xff] %v13530_v50  ;;  %18061 = vst [vmem:[#allocation81_spill] sm:$0xff] %v13534_v3  ;;  %v7509_v42 = vcombine.low %v13425_v29, %v13360_v26 }
 0x8b2   :  { %18063 = vst [vmem:[#allocation61_spill] sm:$0xff] %v13538_v20  ;;  %18065 = vst [vmem:[#allocation57_spill] sm:$0xff] %v13544_v17 }
 0x8b3   :  { %5141 = vrot.lane.b32.xlu1 %v13398_v22, %s10658_s24  ;;  %4834 = vrot.lane.b32.xlu0 %v13398_v22, %s10661_s27  ;;  %18068 = vst [vmem:[#allocation73_spill] sm:$0xff] %v13552_v24  ;;  %18069 = vst [vmem:[#allocation69_spill] sm:$0xff] %v13555_v27 }
 0x8b4   :  { %v7365_v57 = vpop.permute.xlu1 %7364  ;;  %vm18106_vm2 = vmmov %vm18104_vm0 }
 0x8b5   :  { %v7525_v19 = vcombine.low %v13441_v14, %v7365_v57  ;;  %v7526_v37 = vcombine.high %v13441_v14, %v7365_v57  ;;  %v5464_v14 = vcombine.low %v13534_v3, %v13538_v20  ;;  %v13579_v20 = vsel %vm18071_vm6, %v5436_v60, %v13497_v58  ;;  %vm18112_vm3 = vmmov %vm18104_vm0 }
 0x8b6   :  { %18072 = vst [vmem:[#allocation44_spill] sm:$0xff] %v13579_v20  ;;  %v13604_v60 = vsel %vm18077_vm10, %v5439_v12, %v13500_v6  ;;  %v6337_v12 = vrot.slane %v13307_v52, 2  ;;  %vm18114_vm4 = vmmov %vm18104_vm0 }
 0x8b7   :  { %5145 = vrot.lane.b32.xlu1 %v13435_v5, %s10658_s24  ;;  %4838 = vrot.lane.b32.xlu0 %v13435_v5, %s10661_s27  ;;  %v7533_v9 = vrot.slane %v7525_v19, %v18037_v61  ;;  %18078 = vst [vmem:[#allocation75_spill] sm:$0xff] %v13604_v60  ;;  %vm18123_vm6 = vmmov %vm18104_vm0 }
 0x8b8   :  { %v7371_v11 = vpop.permute.xlu1 %7370  ;;  %v13636_v52 = vsel %vm18085_vm12, %v6337_v12, %v13502_v55  ;;  %v6355_v12 = vrot.slane %v13398_v22, 2  ;;  %vm18139_vm10 = vmmov %vm18104_vm0 }
 0x8b9   :  { %v7563_v8 = vrot.slane %v7371_v11, %v18037_v61  ;;  %v7556_v57 = vcombine.high %v7371_v11, %v18036_v56  ;;  %v7540_v56 = vrot.slane %v7526_v37, %v18037_v61  ;;  %18086 = vst [vmem:[#allocation14_spill] sm:$0xff] %v13636_v52  ;;  %vm18143_vm12 = vmmov %vm18104_vm0 }
 0x8bb   :  { %4812 = vrot.lane.b32.xlu1 %v4519_v36, %s10661_s27  ;;  %5119 = vrot.lane.b32.xlu0 %v4519_v36, %s10658_s24  ;;  %v7413_v36 = vrot.slane %v7405_v43, %v18037_v61  ;;  %v7420_v43 = vrot.slane %v7406_v0, %v18037_v61  ;;  %v13558_v0 = vrot.slane %v13468_v49, 2  ;;  %v7603_v19 = vcombine.low %v13447_v1, %v7563_v8 }
 0x8bd   :  { %18070 = vst [vmem:[#allocation76_spill] sm:$0xff] %v13558_v0  ;;  %v7469_v21 = vcombine.low %v7413_v36, %v13402_v7  ;;  %v7470_v44 = vcombine.high %v7413_v36, %v13402_v7  ;;  %v7485_v53 = vcombine.low %v7420_v43, %v13407_v63  ;;  %v7517_v36 = vrot.slane %v7509_v42, %v18037_v61 }
 0x8bf   :  { %4816 = vrot.lane.b32.xlu1 %v4520_v30, %s10661_s27  ;;  %5123 = vrot.lane.b32.xlu0 %v4520_v30, %s10658_s24  ;;  %v13548_v30 = vsel %vm18066_vm5, %v5433_v40, %v13492_v47  ;;  %v7510_v40 = vcombine.high %v13425_v29, %v13360_v26  ;;  %v7486_v26 = vcombine.high %v7420_v43, %v13407_v63  ;;  %vm18121_vm5 = vmmov %vm18104_vm0 }
 0x8c0   :  { %18067 = vst [vmem:[#allocation64_spill] sm:$0xff] %v13548_v30  ;;  %v5480_v47 = vcombine.low %v13544_v17, %v13548_v30  ;;  %v13585_v29 = vsel %vm18073_vm9, %v5442_v10, %v13511_v39  ;;  %v13589_v7 = vrot.slane %v7469_v21, %v18038_v34  ;;  %v13596_v63 = vrot.slane %v5464_v14, %v18037_v61  ;;  %vm18137_vm9 = vmmov %vm18104_vm0 }
 0x8c1   :  { %18074 = vst [vmem:[#allocation72_spill] sm:$0xff] %v13585_v29  ;;  %v7524_v37 = vrot.slane %v7510_v40, %v18037_v61  ;;  %v7570_v10 = vrot.slane %v7556_v57, %v18037_v61  ;;  %v13611_v11 = vrot.slane %v7470_v44, %v18038_v34  ;;  %v7571_v43 = vcombine.low %v7517_v36, %v7533_v9 }
 0x8c2   :  { %18075 = vst [vmem:[#allocation49_spill] sm:$0xff] %v13589_v7  ;;  %18076 = vst [vmem:[#allocation45_spill] sm:$0xff] %v13596_v63  ;;  %v7572_v42 = vcombine.high %v7517_v36, %v7533_v9  ;;  %v5496_v14 = vcombine.low %v13579_v20, %v13585_v29  ;;  %v13616_v40 = vrot.slane %v7485_v53, %v18038_v34 }
 0x8c3   :  { %4820 = vrot.lane.b32.xlu1 %v4521_v28, %s10661_s27  ;;  %5127 = vrot.lane.b32.xlu0 %v4521_v28, %s10658_s24  ;;  %v5445_v28 = vrot.slane %v13435_v5, 1  ;;  %18081 = vst [vmem:[#allocation25_spill] sm:$0xff] %v13611_v11  ;;  %v7588_v57 = vcombine.high %v7524_v37, %v7540_v56  ;;  %v13620_v30 = vrot.slane %v7486_v26, %v18038_v34  ;;  %v6340_v26 = vrot.slane %v13318_v23, 2 }
 0x8c4   :  { %18082 = vst [vmem:[#allocation32_spill] sm:$0xff] %v13616_v40  ;;  %v13626_v9 = vrot.slane %v5480_v47, %v18037_v61  ;;  %v7604_v53 = vcombine.high %v13447_v1, %v7563_v8  ;;  %v13640_v36 = vrot.slane %v7571_v43, %v18038_v34  ;;  %v13643_v47 = vrot.slane %v7572_v42, %v18038_v34 }
 0x8c5   :  { %v13608_v21 = vsel %vm18079_vm11, %v5445_v28, %v13514_v51  ;;  %18083 = vst [vmem:[#allocation50_spill] sm:$0xff] %v13620_v30  ;;  %v7611_v28 = vrot.slane %v7603_v19, %v18038_v34  ;;  %v13646_v19 = vrot.slane %v5496_v14, %v18037_v61  ;;  %v6343_v8 = vrot.slane %v13328_v46, 2  ;;  %vm18141_vm11 = vmmov %vm18104_vm0 }
 0x8c6   :  { %18080 = vst [vmem:[#allocation29_spill] sm:$0xff] %v13608_v21  ;;  %18084 = vst [vmem:[#allocation10_spill] sm:$0xff] %v13626_v9  ;;  %v5512_v44 = vcombine.low %v13604_v60, %v13608_v21  ;;  %v6346_v23 = vrot.slane %v13340_v2, 2  ;;  %v13670_v14 = vsel %vm18095_vm13, %v6340_v26, %v13527_v62  ;;  %v13708_v26 = vsel %vm18106_vm2, %v6355_v12, %v13555_v27  ;;  %v18136_v60 = vld [vmem:[#allocation37_spill] sm:$0xff] }
 0x8c7   :  { %4824 = vrot.lane.b32.xlu1 %v13462_v15, %s10661_s27  ;;  %5131 = vrot.lane.b32.xlu0 %v13462_v15, %s10658_s24  ;;  %v7587_v15 = vcombine.low %v7524_v37, %v7540_v56  ;;  %v7619_v56 = vcombine.low %v13450_v38, %v7570_v10  ;;  %18087 = vst [vmem:[#allocation16_spill] sm:$0xff] %v13640_v36  ;;  %18088 = vst [vmem:[#allocation89_spill] sm:$0xff] %v13643_v47 }
 0x8c8   :  { %18089 = vst [vmem:[#allocation87_spill] sm:$0xff] %v13646_v19  ;;  %v7620_v37 = vcombine.high %v13450_v38, %v7570_v10  ;;  %v13658_v43 = vcombine.low %v13640_v36, %v7611_v28  ;;  %v13661_v42 = vcombine.high %v13640_v36, %v7611_v28  ;;  %v13666_v46 = vrot.slane %v5512_v44, %v18037_v61  ;;  %vm18154_vm13 = vmmov %vm18104_vm0 }
 0x8c9   :  { %v13650_v1 = vrot.slane %v7587_v15, %v18038_v34  ;;  %18096 = vst [vmem:[#allocation63_spill] sm:$0xff] %v13670_v14  ;;  %v7618_v38 = vrot.slane %v7604_v53, %v18038_v34  ;;  %v7627_v2 = vrot.slane %v7619_v56, %v18038_v34  ;;  %v13678_v10 = vsel %vm18097_vm14, %v6343_v8, %v13524_v48  ;;  %vm18157_vm14 = vmmov %vm18104_vm0 }
 0x8ca   :  { %18092 = vst [vmem:[#allocation39_spill] sm:$0xff] %v13658_v43  ;;  %18093 = vst [vmem:[#allocation34_spill] sm:$0xff] %v13661_v42  ;;  %v13681_v15 = vrot.slane %v13478_v32, 2  ;;  %v13687_v28 = vcombine.low %v13505_v41, %v13589_v7  ;;  %v13691_v44 = vcombine.high %v13505_v41, %v13589_v7  ;;  %v13696_v53 = vsel %vm18102_vm15, %v6346_v23, %v13552_v24  ;;  %v18149_v24 = vld [vmem:[#allocation43_spill] sm:$0xff] }
 0x8cb   :  { %4828 = vrot.lane.b32.xlu1 %v13465_v13, %s10661_s27  ;;  %5135 = vrot.lane.b32.xlu0 %v13465_v13, %s10658_s24  ;;  %18090 = vst [vmem:[#allocation88_spill] sm:$0xff] %v13650_v1  ;;  %v13653_v13 = vrot.slane %v7588_v57, %v18038_v34  ;;  %18094 = vst [vmem:[#allocation21_spill] sm:$0xff] %v13666_v46  ;;  %v6349_v57 = vrot.slane %v13355_v16, 2  ;;  %v6352_v56 = vrot.slane %v13380_v59, 2  ;;  %v6358_v16 = vrot.slane %v13435_v5, 2 }
 0x8cc   :  { %18098 = vst [vmem:[#allocation35_spill] sm:$0xff] %v13678_v10  ;;  %18099 = vst [vmem:[#allocation51_spill] sm:$0xff] %v13681_v15  ;;  %v13711_v8 = vrot.slane %v13658_v43, 2  ;;  %v13717_v59 = vcombine.low %v13643_v47, %v7618_v38  ;;  %v13720_v5 = vcombine.low %v13650_v1, %v7627_v2  ;;  %v13733_v12 = vcombine.high %v13650_v1, %v7627_v2 }
 0x8cd   :  { %18091 = vst [vmem:[#allocation86_spill] sm:$0xff] %v13653_v13  ;;  %18100 = vst [vmem:[#allocation40_spill] sm:$0xff] %v13687_v28  ;;  %v13704_v22 = vsel %vm18104_vm0, %v6349_v57, %v13530_v50  ;;  %v13726_v23 = vsel %vm18112_vm3, %v6352_v56, %v13558_v0  ;;  %v13730_v57 = vsel %vm18114_vm4, %v6358_v16, %v13681_v15  ;;  %v9445_v36 = vrot.slane %v13687_v28, 2 }
 0x8ce   :  { %18101 = vst [vmem:[#allocation85_spill] sm:$0xff] %v13691_v44  ;;  %18103 = vst [vmem:[#allocation83_spill] sm:$0xff] %v13696_v53  ;;  %v9448_v7 = vrot.slane %v13691_v44, 2  ;;  %v13739_v21 = vcombine.low %v13508_v31, %v13611_v11  ;;  %v13772_v2 = vcombine.low %v13517_v45, %v13616_v40  ;;  %v13776_v1 = vcombine.high %v13517_v45, %v13616_v40 }
 0x8cf   :  { %4832 = vrot.lane.b32.xlu1 %v13468_v49, %s10661_s27  ;;  %5139 = vrot.lane.b32.xlu0 %v13468_v49, %s10658_s24  ;;  %v7634_v49 = vrot.slane %v7620_v37, %v18038_v34  ;;  %18105 = vst [vmem:[#allocation82_spill] sm:$0xff] %v13704_v22  ;;  %18107 = vst [vmem:[#allocation38_spill] sm:$0xff] %v13708_v26  ;;  %v13714_v37 = vrot.slane %v13661_v42, 2  ;;  %v13758_v15 = vsel %vm18121_vm5, %v9445_v36, %v13711_v8  ;;  %vm18188_vm15 = vcmask 1046528  }
 0x8d0   :  { %18108 = vst [vmem:[#allocation20_spill] sm:$0xff] %v13711_v8  ;;  %18110 = vst [vmem:[#allocation15_spill] sm:$0xff] %v13717_v59  ;;  %v13780_v36 = vcombine.low %v13520_v33, %v13620_v30  ;;  %v10523_v20 = vcombine.low %v18136_v60, %v13374_v18  ;;  %v10525_v45 = vcombine.high %v18136_v60, %v13374_v18 }
 0x8d1   :  { %18109 = vst [vmem:[#allocation13_spill] sm:$0xff] %v13714_v37  ;;  %18111 = vst [vmem:[#allocation23_spill] sm:$0xff] %v13720_v5  ;;  %v13745_v56 = vcombine.low %v13653_v13, %v7634_v49  ;;  %v13748_v16 = vcombine.high %v13653_v13, %v7634_v49  ;;  %v13766_v49 = vcombine.high %v13508_v31, %v13611_v11  ;;  %v13794_v11 = vrot.slane %v13733_v12, 2 }
 0x8d2   :  { %18113 = vst [vmem:[#allocation26_spill] sm:$0xff] %v13726_v23  ;;  %18115 = vst [vmem:[#allocation18_spill] sm:$0xff] %v13730_v57  ;;  %v10521_v13 = vcombine.high %v13302_v35, %v13315_v54  ;;  %v4574_v17 = vrot.slane %v10523_v20, %v18037_v61  ;;  %v4590_v3 = vrot.slane %v10525_v45, %v18037_v61  ;;  %v18145_v20 = vld [vmem:[#allocation60_spill] sm:$0xff] }
 0x8d3   :  { %4836 = vrot.lane.b32.xlu1 %v13475_v4, %s10661_s27  ;;  %5143 = vrot.lane.b32.xlu0 %v13475_v4, %s10658_s24  ;;  %18116 = vst [vmem:[#allocation27_spill] sm:$0xff] %v13733_v12  ;;  %18117 = vst [vmem:[#allocation36_spill] sm:$0xff] %v13739_v21  ;;  %v13742_v4 = vcombine.high %v13643_v47, %v7618_v38  ;;  %v13762_v38 = vsel %vm18123_vm6, %v9448_v7, %v13714_v37  ;;  %v13791_v47 = vrot.slane %v13720_v5, 2 }
 0x8d4   :  { %18119 = vst [vmem:[#allocation31_spill] sm:$0xff] %v13745_v56  ;;  %18120 = vst [vmem:[#allocation41_spill] sm:$0xff] %v13748_v16  ;;  %v13784_v7 = vcombine.high %v13520_v33, %v13620_v30  ;;  %v13797_v40 = vrot.slane %v13745_v56, 2  ;;  %v13800_v37 = vrot.slane %v13748_v16, 2  ;;  %v10519_v30 = vcombine.low %v13302_v35, %v13315_v54 }
 0x8d5   :  { %18118 = vst [vmem:[#allocation42_spill] sm:$0xff] %v13742_v4  ;;  %18122 = vst [vmem:[#allocation54_spill] sm:$0xff] %v13758_v15  ;;  %v13810_v29 = vrot.slane %v13742_v4, 2  ;;  %v9457_v33 = vrot.slane %v13772_v2, 2  ;;  %v9460_v35 = vrot.slane %v13776_v1, 2  ;;  %v9463_v54 = vrot.slane %v13780_v36, 2 }
 0x8d6   :  { %18124 = vst [vmem:[#allocation24_spill] sm:$0xff] %v13762_v38  ;;  %18125 = vst [vmem:[#allocation30_spill] sm:$0xff] %v13766_v49  ;;  %v9466_v8 = vrot.slane %v13784_v7, 2  ;;  %v4542_v41 = vrot.slane %v10519_v30, %v18037_v61  ;;  %v4558_v31 = vrot.slane %v10521_v13, %v18037_v61  ;;  %v4639_v13 = vcombine.low %v4574_v17, %v4590_v3 }
 0x8d7   :  { %4840 = vrot.lane.b32.xlu1 %v13478_v32, %s10661_s27  ;;  %5147 = vrot.lane.b32.xlu0 %v13478_v32, %s10658_s24  ;;  %18126 = vst [vmem:[#allocation52_spill] sm:$0xff] %v13772_v2  ;;  %18127 = vst [vmem:[#allocation66_spill] sm:$0xff] %v13776_v1  ;;  %v13788_v32 = vrot.slane %v13717_v59, 2  ;;  %v13828_v18 = vsel %vm18137_vm9, %v9457_v33, %v13791_v47  ;;  %v13832_v60 = vsel %vm18139_vm10, %v9460_v35, %v13794_v11  ;;  %v18146_v35 = vld [vmem:[#allocation80_spill] sm:$0xff]  ;;  %vm4776_vm10 = vcmask 195584  }
 0x8d8   :  { %18128 = vst [vmem:[#allocation28_spill] sm:$0xff] %v13780_v36  ;;  %18129 = vst [vmem:[#allocation22_spill] sm:$0xff] %v13784_v7  ;;  %v13836_v0 = vsel %vm18141_vm11, %v9463_v54, %v13797_v40  ;;  %v13840_v30 = vsel %vm18143_vm12, %v9466_v8, %v13800_v37  ;;  %v4607_v45 = vcombine.low %v4542_v41, %v4558_v31  ;;  %vm4779_vm11 = vcmask 392192  }
 0x8d9   :  { %18130 = vst [vmem:[#allocation17_spill] sm:$0xff] %v13788_v32  ;;  %18131 = vst [vmem:[#allocation84_spill] sm:$0xff] %v13791_v47  ;;  %v4608_v27 = vcombine.high %v4542_v41, %v4558_v31  ;;  %v4640_v33 = vcombine.high %v4574_v17, %v4590_v3  ;;  %v13858_v17 = vrot.slane %v4639_v13, %v18038_v34  ;;  %vm4781_vm12 = vcmask 490496  }
 0x8da   :  { %18132 = vst [vmem:[#allocation19_spill] sm:$0xff] %v13794_v11  ;;  %18133 = vst [vmem:[#allocation53_spill] sm:$0xff] %v13797_v40  ;;  %v18147_v11 = vld [vmem:[#allocation68_spill] sm:$0xff]  ;;  %v18148_v40 = vld [vmem:[#allocation59_spill] sm:$0xff]  ;;  %v13855_v50 = vrot.slane %v4607_v45, %v18038_v34  ;;  %v5624_v13 = vcombine.low %v13500_v6, %v13514_v51 }
 0x8db   :  { %18134 = vst [vmem:[#allocation12_spill] sm:$0xff] %v13800_v37  ;;  %6032 = vrot.lane.b32.xlu1 %v13485_v25, %s10658_s24  ;;  %18135 = vst [vmem:[#allocation33_spill] sm:$0xff] %v13810_v29  ;;  %5725 = vrot.lane.b32.xlu0 %v13485_v25, %s10661_s27  ;;  %v10526_v47 = vcombine.low %v18147_v11, %v18146_v35  ;;  %v10527_v54 = vcombine.high %v18147_v11, %v18146_v35  ;;  %v18152_v45 = vld [vmem:[#allocation48_spill] sm:$0xff] }
 0x8dc   :  { %18138 = vst [vmem:[#allocation11_spill] sm:$0xff] %v13828_v18  ;;  %18140 = vst [vmem:[#allocation8_spill] sm:$0xff] %v13832_v60  ;;  %v10528_v8 = vcombine.low %v18149_v24, %v18148_v40  ;;  %v10529_v37 = vcombine.high %v18149_v24, %v18148_v40  ;;  %v13861_v31 = vrot.slane %v4608_v27, %v18038_v34  ;;  %v18151_v40 = vld [vmem:[#allocation78_spill] sm:$0xff] }
 0x8dd   :  { %18142 = vst [vmem:[#allocation9_spill] sm:$0xff] %v13836_v0  ;;  %18144 = vst [vmem:[#allocation37_spill] sm:$0xff] %v13840_v30  ;;  %v13864_v41 = vrot.slane %v4640_v33, %v18038_v34  ;;  %v4670_v3 = vrot.slane %v10526_v47, %v18037_v61  ;;  %v4678_v11 = vrot.slane %v10527_v54, %v18037_v61 }
 0x8de   :  { %v4686_v35 = vrot.slane %v10528_v8, %v18037_v61  ;;  %v4694_v24 = vrot.slane %v10529_v37, %v18037_v61  ;;  %v5600_v44 = vcombine.low %v13485_v25, %v18151_v40  ;;  %v5608_v28 = vcombine.low %v18145_v20, %v18152_v45  ;;  %vm18190_vm0 = vmmov %vm18188_vm15 }
 0x8df   :  { %6036 = vrot.lane.b32.xlu1 %v18145_v20, %s10658_s24  ;;  %5729 = vrot.lane.b32.xlu0 %v18145_v20, %s10661_s27  ;;  %18150 = vst [vmem:[#allocation60_spill] sm:$0xff] %v13864_v41  ;;  %v4695_v33 = vcombine.low %v4670_v3, %v4678_v11  ;;  %v4696_v54 = vcombine.high %v4670_v3, %v4678_v11  ;;  %vm18192_vm2 = vmmov %vm18190_vm0 }
 0x8e0   :  { %v4711_v37 = vcombine.low %v4686_v35, %v4694_v24  ;;  %v4712_v8 = vcombine.high %v4686_v35, %v4694_v24  ;;  %v5616_v27 = vcombine.low %v13497_v58, %v13511_v39  ;;  %v5607_v20 = vrot.slane %v5600_v44, %v18037_v61  ;;  %vm18194_vm3 = vmmov %vm18190_vm0 }
 0x8e1   :  { %v13891_v47 = vrot.slane %v4695_v33, %v18038_v34  ;;  %v13897_v3 = vrot.slane %v4696_v54, %v18038_v34  ;;  %v5615_v11 = vrot.slane %v5608_v28, %v18037_v61  ;;  %v5631_v24 = vrot.slane %v5624_v13, %v18037_v61  ;;  %vm18197_vm4 = vmmov %vm18190_vm0 }
 0x8e2   :  { %v13894_v41 = vrot.slane %v4711_v37, %v18038_v34  ;;  %v13900_v25 = vrot.slane %v4712_v8, %v18038_v34  ;;  %v5623_v35 = vrot.slane %v5616_v27, %v18037_v61  ;;  %v18153_v13 = vrot.slane %v13739_v21, 2  ;;  %vm18199_vm5 = vmmov %vm18190_vm0 }
 0x8e3   :  { %6040 = vrot.lane.b32.xlu1 %v18151_v40, %s10658_s24  ;;  %5733 = vrot.lane.b32.xlu0 %v18151_v40, %s10661_s27  ;;  %v5632_v28 = vcombine.low %v5607_v20, %v5615_v11  ;;  %v5633_v27 = vcombine.high %v5607_v20, %v5615_v11  ;;  %v18156_v40 = vrot.slane %v13766_v49, 2  ;;  %v5528_v37 = vcombine.low %v13596_v63, %v13626_v9  ;;  %vm18201_vm6 = vmmov %vm18190_vm0 }
 0x8e4   :  { %v5648_v54 = vcombine.low %v5623_v35, %v5631_v24  ;;  %v5649_v8 = vcombine.high %v5623_v35, %v5631_v24  ;;  %v5560_v44 = vcombine.low %v13646_v19, %v13666_v46  ;;  %vm18203_vm9 = vmmov %vm18190_vm0 }
 0x8e5   :  { %v13928_v33 = vsel %vm18157_vm14, %v18156_v40, %v13810_v29  ;;  %v13937_v20 = vrot.slane %v5632_v28, %v18038_v34  ;;  %v13943_v35 = vrot.slane %v5633_v27, %v18038_v34  ;;  %v9517_v40 = vcombine.low %v13828_v18, %v13836_v0 }
 0x8e6   :  { %18158 = vst [vmem:[#allocation68_spill] sm:$0xff] %v13928_v33  ;;  %v13940_v11 = vrot.slane %v5648_v54, %v18038_v34  ;;  %v13946_v24 = vrot.slane %v5649_v8, %v18038_v34  ;;  %v13955_v28 = vrot.slane %v5528_v37, %v18038_v34  ;;  %v13958_v54 = vrot.slane %v5560_v44, %v18038_v34 }
 0x8e7   :  { %6044 = vrot.lane.b32.xlu1 %v18152_v45, %s10658_s24  ;;  %5737 = vrot.lane.b32.xlu0 %v18152_v45, %s10661_s27  ;;  %v13922_v45 = vsel %vm18154_vm13, %v18153_v13, %v13788_v32  ;;  %18159 = vst [vmem:[#allocation59_spill] sm:$0xff] %v13943_v35  ;;  %v9533_v13 = vcombine.low %v13832_v60, %v13840_v30  ;;  %vm4783_vm13 = vcmask 588800   ;;  %vm4786_vm14 = vcmask 785408  }
 0x8e8   :  { %18155 = vst [vmem:[#allocation80_spill] sm:$0xff] %v13922_v45  ;;  %18160 = vst [vmem:[#allocation43_spill] sm:$0xff] %v13946_v24  ;;  %v6377_v32 = vcombine.low %v13636_v52, %v13678_v10  ;;  %v6393_v37 = vcombine.low %v13670_v14, %v13696_v53  ;;  %v9485_v44 = vcombine.low %v13758_v15, %v13922_v45 }
 0x8e9   :  { %18161 = vst [vmem:[#allocation78_spill] sm:$0xff] %v13955_v28  ;;  %18162 = vst [vmem:[#allocation48_spill] sm:$0xff] %v13958_v54  ;;  %v9501_v27 = vcombine.low %v13762_v38, %v13928_v33  ;;  %v18163_v29 = vcombine.low %v13704_v22, %v13708_v26  ;;  %v18165_v24 = vcombine.low %v13726_v23, %v13730_v57 }
 0x8ea   :  { %v13995_v63 = vrot.slane %v9517_v40, %v18037_v61  ;;  %v14004_v28 = vrot.slane %v6393_v37, %v18037_v61  ;;  %v14035_v37 = vrot.slane %v13658_v43, 1  ;;  %v8541_v43 = vrot.slane %v13766_v49, 1 }
 0x8eb   :  { %6048 = vrot.lane.b32.xlu1 %v13497_v58, %s10658_s24  ;;  %5741 = vrot.lane.b32.xlu0 %v13497_v58, %s10661_s27  ;;  %v13986_v8 = vrot.slane %v18163_v29, %v18037_v61  ;;  %v13992_v35 = vrot.slane %v18165_v24, %v18037_v61  ;;  %v13998_v58 = vrot.slane %v9533_v13, %v18037_v61 }
 0x8ec   :  { %18167 = vst [vmem:[#allocation92_spill] sm:$0xff] %v13995_v63  ;;  %18170 = vst [vmem:[#allocation95_spill] sm:$0xff] %v14004_v28  ;;  %v14007_v29 = vrot.slane %v9485_v44, %v18037_v61  ;;  %v14010_v54 = vrot.slane %v9501_v27, %v18037_v61  ;;  %v14038_v44 = vrot.slane %v13661_v42, 1 }
 0x8ed   :  { %18164 = vst [vmem:[#allocation90_spill] sm:$0xff] %v13986_v8  ;;  %18166 = vst [vmem:[#allocation91_spill] sm:$0xff] %v13992_v35  ;;  %v6473_v24 = vcombine.low %v13986_v8, %v13992_v35  ;;  %v18187_v8 = vld [vmem:[#allocation77_spill] sm:$0xff] }
 0x8ee   :  { %18168 = vst [vmem:[#allocation93_spill] sm:$0xff] %v13998_v58  ;;  %18171 = vst [vmem:[#allocation96_spill] sm:$0xff] %v14007_v29  ;;  %v9549_v13 = vcombine.low %v14007_v29, %v14010_v54 }
 0x8ef   :  { %6052 = vrot.lane.b32.xlu1 %v13500_v6, %s10658_s24  ;;  %5745 = vrot.lane.b32.xlu0 %v13500_v6, %s10661_s27  ;;  %v14001_v6 = vrot.slane %v6377_v32, %v18037_v61  ;;  %18172 = vst [vmem:[#allocation97_spill] sm:$0xff] %v14010_v54  ;;  %v9581_v32 = vcombine.low %v13995_v63, %v13998_v58  ;;  %18175 = vst [vmem:[#allocation100_spill] sm:$0xff] %v14035_v37  ;;  %v14055_v63 = vrot.slane %v13745_v56, 1 }
 0x8f0   :  { %18176 = vst [vmem:[#allocation101_spill] sm:$0xff] %v14038_v44  ;;  %v14044_v54 = vrot.slane %v9549_v13, %v18038_v34  ;;  %v14058_v58 = vrot.slane %v13748_v16, 1  ;;  %v14066_v13 = vrot.slane %v13742_v4, 1  ;;  %v8550_v16 = vrot.slane %v13780_v36, 1 }
 0x8f1   :  { %18169 = vst [vmem:[#allocation94_spill] sm:$0xff] %v14001_v6  ;;  %v6441_v40 = vcombine.low %v14001_v6, %v14004_v28  ;;  %v14032_v27 = vrot.slane %v9581_v32, %v18038_v34  ;;  %v14052_v32 = vrot.slane %v13733_v12, 1  ;;  %18181 = vst [vmem:[#allocation106_spill] sm:$0xff] %v14055_v63  ;;  %v8544_v6 = vrot.slane %v13772_v2, 1  ;;  %v18185_v12 = vld [vmem:[#allocation40_spill] sm:$0xff]  ;;  %v18222_v2 = vld [vmem:[#allocation58_spill] sm:$0xff] }
 0x8f2   :  { %18178 = vst [vmem:[#allocation103_spill] sm:$0xff] %v14044_v54  ;;  %18182 = vst [vmem:[#allocation107_spill] sm:$0xff] %v14058_v58  ;;  %v8547_v28 = vrot.slane %v13776_v1, 1  ;;  %v8553_v56 = vrot.slane %v13784_v7, 1  ;;  %v8538_v4 = vrot.slane %v13739_v21, 1 }
 0x8f3   :  { %6056 = vrot.lane.b32.xlu1 %v13511_v39, %s10658_s24  ;;  %5749 = vrot.lane.b32.xlu0 %v13511_v39, %s10661_s27  ;;  %v14029_v39 = vrot.slane %v6473_v24, %v18038_v34  ;;  %18174 = vst [vmem:[#allocation99_spill] sm:$0xff] %v14032_v27  ;;  %v14041_v29 = vrot.slane %v6441_v40, %v18038_v34  ;;  %v14049_v24 = vrot.slane %v13720_v5, 1  ;;  %18180 = vst [vmem:[#allocation105_spill] sm:$0xff] %v14052_v32 }
 0x8f4   :  { %v14063_v40 = vrot.slane %v13717_v59, 1  ;;  %18184 = vst [vmem:[#allocation109_spill] sm:$0xff] %v14066_v13  ;;  %v8532_v5 = vrot.slane %v18185_v12, 1  ;;  %v18186_v59 = vld [vmem:[#allocation85_spill] sm:$0xff]  ;;  %v14088_v54 = vsel %vm18190_vm0, %v8547_v28, %v14052_v32  ;;  %v14092_v27 = vsel %vm18192_vm2, %v8550_v16, %v14055_v63  ;;  %v18225_v12 = vld [vmem:[#allocation74_spill] sm:$0xff] }
 0x8f5   :  { %18173 = vst [vmem:[#allocation98_spill] sm:$0xff] %v14029_v39  ;;  %18177 = vst [vmem:[#allocation102_spill] sm:$0xff] %v14041_v29  ;;  %v8535_v42 = vrot.slane %v18186_v59, 1  ;;  %v14084_v35 = vsel %vm18188_vm15, %v8544_v6, %v14049_v24  ;;  %v14096_v29 = vsel %vm18194_vm3, %v8553_v56, %v14058_v58  ;;  %v18196_v39 = vld [vmem:[#allocation73_spill] sm:$0xff]  ;;  %v14114_v16 = vsel %vm18203_vm9, %v8541_v43, %v14066_v13  ;;  %v18224_v59 = vld [vmem:[#allocation71_spill] sm:$0xff] }
 0x8f6   :  { %18179 = vst [vmem:[#allocation104_spill] sm:$0xff] %v14049_v24  ;;  %18183 = vst [vmem:[#allocation108_spill] sm:$0xff] %v14063_v40  ;;  %v14110_v28 = vsel %vm18201_vm6, %v8538_v4, %v14063_v40  ;;  %v8604_v56 = vcombine.low %v14084_v35, %v14092_v27  ;;  %v8620_v58 = vcombine.low %v14088_v54, %v14096_v29  ;;  %v18209_v24 = vld [vmem:[#allocation81_spill] sm:$0xff]  ;;  %vm4788_vm15 = vcmask 883712  }
 0x8f7   :  { %6945 = vrot.lane.b32.xlu1 %v13502_v55, %s10658_s24  ;;  %5753 = vrot.lane.b32.xlu0 %v13514_v51, %s10661_s27  ;;  %18189 = vst [vmem:[#allocation110_spill] sm:$0xff] %v14084_v35  ;;  %18191 = vst [vmem:[#allocation111_spill] sm:$0xff] %v14088_v54  ;;  %v14102_v51 = vsel %vm18197_vm4, %v8532_v5, %v14035_v37  ;;  %v14106_v6 = vsel %vm18199_vm5, %v8535_v42, %v14038_v44  ;;  %v18205_v5 = vld [vmem:[#allocation69_spill] sm:$0xff]  ;;  %v18206_v42 = vld [vmem:[#allocation76_spill] sm:$0xff]  ;;  %vm4792_vm0 = vcmask 31744   ;;  %vm4790_vm2 = vcmask 982016  }
 0x8f8   :  { %18193 = vst [vmem:[#allocation112_spill] sm:$0xff] %v14092_v27  ;;  %18195 = vst [vmem:[#allocation113_spill] sm:$0xff] %v14096_v29  ;;  %v8572_v4 = vcombine.low %v14102_v51, %v14110_v28  ;;  %v8588_v63 = vcombine.low %v14106_v6, %v14114_v16  ;;  %v14129_v43 = vrot.slane %v8604_v56, %v18037_v61  ;;  %v18212_v56 = vld [vmem:[#allocation57_spill] sm:$0xff] }
 0x8f9   :  { %18198 = vst [vmem:[#allocation114_spill] sm:$0xff] %v14102_v51  ;;  %18200 = vst [vmem:[#allocation115_spill] sm:$0xff] %v14106_v6  ;;  %v14132_v32 = vrot.slane %v8620_v58, %v18037_v61 }
 0x8fa   :  { %18202 = vst [vmem:[#allocation116_spill] sm:$0xff] %v14110_v28  ;;  %18204 = vst [vmem:[#allocation117_spill] sm:$0xff] %v14114_v16  ;;  %v14139_v13 = vrot.slane %v8572_v4, %v18037_v61  ;;  %v14142_v40 = vrot.slane %v8588_v63, %v18037_v61  ;;  %v18216_v63 = vld [vmem:[#allocation61_spill] sm:$0xff] }
 0x8fb   :  { %6953 = vrot.lane.b32.xlu1 %v13524_v48, %s10658_s24  ;;  %6949 = vrot.lane.b32.xlu0 %v13527_v62, %s10658_s24  ;;  %18207 = vst [vmem:[#allocation118_spill] sm:$0xff] %v14129_v43  ;;  %18208 = vst [vmem:[#allocation119_spill] sm:$0xff] %v14132_v32  ;;  %v8668_v44 = vcombine.low %v14129_v43, %v14132_v32 }
 0x8fc   :  { %18210 = vst [vmem:[#allocation81_spill] sm:$0xff] %v14139_v13  ;;  %18211 = vst [vmem:[#allocation120_spill] sm:$0xff] %v14142_v40  ;;  %v8636_v58 = vcombine.low %v14139_v13, %v14142_v40  ;;  %v18219_v40 = vld [vmem:[#allocation64_spill] sm:$0xff]  ;;  %v10537_v13 = vcombine.high %v18225_v12, %v18224_v59 }
 0x8fd   :  { %v14157_v4 = vrot.slane %v8668_v44, %v18038_v34 }
 0x8fe   :  { %v14164_v43 = vrot.slane %v8636_v58, %v18038_v34  ;;  %v18223_v58 = vld [vmem:[#allocation62_spill] sm:$0xff] }
 0x8ff   :  { %6961 = vrot.lane.b32.xlu1 %v18187_v8, %s10658_s24  ;;  %6957 = vrot.lane.b32.xlu0 %v18196_v39, %s10658_s24  ;;  %18215 = vst [vmem:[#allocation122_spill] sm:$0xff] %v14157_v4  ;;  %v10531_v49 = vcombine.low %v18223_v58, %v18222_v2  ;;  %v10533_v21 = vcombine.high %v18223_v58, %v18222_v2 }
 0x900   :  { %18217 = vst [vmem:[#allocation61_spill] sm:$0xff] %v14164_v43  ;;  %v18226_v43 = vld [vmem:[#allocation44_spill] sm:$0xff] }
 0x901   :  { %v14197_v39 = vrot.slane %v10531_v49, %v18037_v61  ;;  %v14200_v2 = vrot.slane %v10533_v21, %v18037_v61 }
 0x903   :  { %6969 = vrot.lane.b32.xlu1 %v18205_v5, %s10658_s24  ;;  %6965 = vrot.lane.b32.xlu0 %v18206_v42, %s10658_s24  ;;  %v10535_v42 = vcombine.low %v18225_v12, %v18224_v59  ;;  %18228 = vst [vmem:[#allocation62_spill] sm:$0xff] %v14197_v39  ;;  %18229 = vst [vmem:[#allocation71_spill] sm:$0xff] %v14200_v2  ;;  %v14206_v59 = vrot.slane %v10537_v13, %v18037_v61  ;;  %v18232_v12 = vld [vmem:[#allocation75_spill] sm:$0xff] }
 0x904   :  { %v7707_v21 = vcombine.low %v14197_v39, %v14200_v2  ;;  %v18238_v39 = vld [vmem:[#allocation29_spill] sm:$0xff] }
 0x905   :  { %v14203_v58 = vrot.slane %v10535_v42, %v18037_v61  ;;  %18231 = vst [vmem:[#allocation44_spill] sm:$0xff] %v14206_v59  ;;  %v18234_v42 = vld [vmem:[#allocation72_spill] sm:$0xff] }
 0x906   :  { %v14229_v55 = vrot.slane %v7707_v21, %v18038_v34 }
 0x907   :  { %5723 = vrot.lane.b32.xlu1 %v18209_v24, %s10661_s27  ;;  %6030 = vrot.lane.b32.xlu0 %v18209_v24, %s10658_s24  ;;  %18230 = vst [vmem:[#allocation74_spill] sm:$0xff] %v14203_v58  ;;  %v7739_v49 = vcombine.low %v14203_v58, %v14206_v59 }
 0x908   :  { %18236 = vst [vmem:[#allocation125_spill] sm:$0xff] %v14229_v55 }
 0x909   :  { %v14232_v9 = vrot.slane %v7739_v49, %v18038_v34 }
 0x90b   :  { %5727 = vrot.lane.b32.xlu1 %v18212_v56, %s10661_s27  ;;  %6034 = vrot.lane.b32.xlu0 %v18212_v56, %s10658_s24  ;;  %18237 = vst [vmem:[#allocation126_spill] sm:$0xff] %v14232_v9 }
 0x90d   :  { %v14152_v37 = vpop.permute.xlu1 %5117  ;;  %v14154_v7 = vpop.permute.xlu0 %4810 }
 0x90e   :  { %18213 = vst [vmem:[#allocation57_spill] sm:$0xff] %v14152_v37  ;;  %18214 = vst [vmem:[#allocation121_spill] sm:$0xff] %v14154_v7 }
 0x90f   :  { %5731 = vrot.lane.b32.xlu1 %v18216_v63, %s10661_s27  ;;  %6038 = vrot.lane.b32.xlu0 %v18216_v63, %s10658_s24 }
 0x911   :  { %v14166_v32 = vpop.permute.xlu1 %5121  ;;  %v14168_v36 = vpop.permute.xlu0 %4814 }
 0x912   :  { %18218 = vst [vmem:[#allocation123_spill] sm:$0xff] %v14166_v32 }
 0x913   :  { %5735 = vrot.lane.b32.xlu1 %v18219_v40, %s10661_s27  ;;  %6042 = vrot.lane.b32.xlu0 %v18219_v40, %s10658_s24 }
 0x915   :  { %v14176_v44 = vpop.permute.xlu1 %5125  ;;  %v14178_v1 = vpop.permute.xlu0 %4818 }
 0x916   :  { %18220 = vst [vmem:[#allocation64_spill] sm:$0xff] %v14176_v44  ;;  %18221 = vst [vmem:[#allocation124_spill] sm:$0xff] %v14178_v1  ;;  %v5165_v46 = vcombine.low %v14152_v37, %v14176_v44  ;;  %v4858_v2 = vcombine.low %v14154_v7, %v14178_v1 }
 0x917   :  { %5739 = vrot.lane.b32.xlu1 %v18226_v43, %s10661_s27  ;;  %6046 = vrot.lane.b32.xlu0 %v18226_v43, %s10658_s24 }
 0x919   :  { %v14192_v4 = vpop.permute.xlu1 %5129  ;;  %v14194_v5 = vpop.permute.xlu0 %4822 }
 0x91a   :  { %18227 = vst [vmem:[#allocation58_spill] sm:$0xff] %v14192_v4  ;;  %v5181_v21 = vcombine.low %v14166_v32, %v14192_v4  ;;  %v4874_v49 = vcombine.low %v14168_v36, %v14194_v5 }
 0x91b   :  { %5743 = vrot.lane.b32.xlu1 %v18232_v12, %s10661_s27  ;;  %6050 = vrot.lane.b32.xlu0 %v18232_v12, %s10658_s24 }
 0x91c   :  { %v14272_v37 = vrot.slane %v4874_v49, %v18037_v61  ;;  %v14291_v49 = vrot.slane %v4858_v2, %v18037_v61 }
 0x91d   :  { %v14212_v8 = vpop.permute.xlu1 %5133  ;;  %v14214_v62 = vpop.permute.xlu0 %4826 }
 0x91e   :  { %18233 = vst [vmem:[#allocation75_spill] sm:$0xff] %v14212_v8 }
 0x91f   :  { %5747 = vrot.lane.b32.xlu1 %v18234_v42, %s10661_s27  ;;  %6054 = vrot.lane.b32.xlu0 %v18234_v42, %s10658_s24 }
 0x921   :  { %v14224_v13 = vpop.permute.xlu1 %5137  ;;  %v14226_v48 = vpop.permute.xlu0 %4830 }
 0x922   :  { %18235 = vst [vmem:[#allocation72_spill] sm:$0xff] %v14224_v13 }
 0x923   :  { %5751 = vrot.lane.b32.xlu1 %v18238_v39, %s10661_s27  ;;  %6943 = vrot.lane.b32.xlu0 %v13636_v52, %s10658_s24 }
 0x925   :  { %v14238_v58 = vpop.permute.xlu1 %5141  ;;  %v14240_v59 = vpop.permute.xlu0 %4834 }
 0x926   :  { %18239 = vst [vmem:[#allocation29_spill] sm:$0xff] %v14238_v58  ;;  %v5197_v19 = vcombine.low %v14212_v8, %v14238_v58  ;;  %v4890_v55 = vcombine.low %v14214_v62, %v14240_v59  ;;  %v14269_v58 = vrot.slane %v5181_v21, %v18037_v61  ;;  %v14288_v21 = vrot.slane %v5165_v46, %v18037_v61 }
 0x927   :  { %6947 = vrot.lane.b32.xlu1 %v13670_v14, %s10658_s24  ;;  %6951 = vrot.lane.b32.xlu0 %v13678_v10, %s10658_s24  ;;  %v4922_v46 = vcombine.low %v14291_v49, %v14272_v37 }
 0x928   :  { %18241 = vst [vmem:[#allocation128_spill] sm:$0xff] %v14269_v58  ;;  %v14277_v44 = vrot.slane %v5197_v19, %v18037_v61  ;;  %18243 = vst [vmem:[#allocation130_spill] sm:$0xff] %v14288_v21 }
 0x929   :  { %v14260_v9 = vpop.permute.xlu1 %5145  ;;  %v14262_v32 = vpop.permute.xlu0 %4838 }
 0x92a   :  { %18240 = vst [vmem:[#allocation127_spill] sm:$0xff] %v14260_v9  ;;  %v5213_v4 = vcombine.low %v14224_v13, %v14260_v9  ;;  %v4906_v8 = vcombine.low %v14226_v48, %v14262_v32  ;;  %18242 = vst [vmem:[#allocation129_spill] sm:$0xff] %v14277_v44  ;;  %v14294_v9 = vrot.slane %v4890_v55, %v18037_v61 }
 0x92b   :  { %6955 = vrot.lane.b32.xlu1 %v13696_v53, %s10658_s24  ;;  %6959 = vrot.lane.b32.xlu0 %v13704_v22, %s10658_s24 }
 0x92c   :  { %v14280_v7 = vrot.slane %v5213_v4, %v18037_v61  ;;  %v14283_v13 = vrot.slane %v4906_v8, %v18037_v61  ;;  %v5229_v4 = vcombine.low %v14288_v21, %v14269_v58  ;;  %v14325_v58 = vrot.slane %v4922_v46, %v18038_v34 }
 0x92d   :  { %v14296_v19 = vpop.permute.xlu1 %4812  ;;  %v14298_v1 = vpop.permute.xlu0 %5119 }
 0x92e   :  { %18244 = vst [vmem:[#allocation131_spill] sm:$0xff] %v14296_v19  ;;  %18245 = vst [vmem:[#allocation132_spill] sm:$0xff] %v14298_v1  ;;  %v5261_v8 = vcombine.low %v14277_v44, %v14280_v7  ;;  %v4954_v2 = vcombine.low %v14294_v9, %v14283_v13  ;;  %v14328_v44 = vrot.slane %v5229_v4, %v18038_v34 }
 0x92f   :  { %6963 = vrot.lane.b32.xlu1 %v13726_v23, %s10658_s24  ;;  %6967 = vrot.lane.b32.xlu0 %v13708_v26, %s10658_s24  ;;  %18250 = vst [vmem:[#allocation137_spill] sm:$0xff] %v14325_v58 }
 0x930   :  { %v14315_v1 = vrot.slane %v4954_v2, %v18038_v34  ;;  %v14318_v19 = vrot.slane %v5261_v8, %v18038_v34  ;;  %18251 = vst [vmem:[#allocation138_spill] sm:$0xff] %v14328_v44 }
 0x931   :  { %v14312_v55 = vpop.permute.xlu1 %4816  ;;  %v14320_v21 = vpop.permute.xlu0 %5123 }
 0x932   :  { %18246 = vst [vmem:[#allocation133_spill] sm:$0xff] %v14312_v55  ;;  %18247 = vst [vmem:[#allocation134_spill] sm:$0xff] %v14315_v1 }
 0x933   :  { %18248 = vst [vmem:[#allocation135_spill] sm:$0xff] %v14318_v19  ;;  %18249 = vst [vmem:[#allocation136_spill] sm:$0xff] %v14320_v21  ;;  %6971 = vrot.lane.b32.xlu1 %v13730_v57, %s10658_s24  ;;  %10051 = vrot.lane.b32.xlu0 %v13758_v15, %s10658_s24 }
 0x935   :  { %v14332_v55 = vpop.permute.xlu1 %4820  ;;  %v14338_v21 = vpop.permute.xlu0 %5127 }
 0x936   :  { %18252 = vst [vmem:[#allocation139_spill] sm:$0xff] %v14332_v55  ;;  %18253 = vst [vmem:[#allocation140_spill] sm:$0xff] %v14338_v21 }
 0x937   :  { %10055 = vrot.lane.b32.xlu1 %v13762_v38, %s10658_s24  ;;  %10059 = vrot.lane.b32.xlu0 %v13922_v45, %s10658_s24 }
 0x939   :  { %v14344_v4 = vpop.permute.xlu1 %4824  ;;  %v14346_v46 = vpop.permute.xlu0 %5131 }
 0x93a   :  { %18254 = vst [vmem:[#allocation141_spill] sm:$0xff] %v14344_v4  ;;  %18255 = vst [vmem:[#allocation142_spill] sm:$0xff] %v14346_v46 }
 0x93b   :  { %10063 = vrot.lane.b32.xlu1 %v13928_v33, %s10658_s24  ;;  %10067 = vrot.lane.b32.xlu0 %v13828_v18, %s10658_s24 }
 0x93d   :  { %v14352_v8 = vpop.permute.xlu1 %4828  ;;  %v14354_v2 = vpop.permute.xlu0 %5135 }
 0x93e   :  { %18256 = vst [vmem:[#allocation143_spill] sm:$0xff] %v14352_v8  ;;  %18257 = vst [vmem:[#allocation144_spill] sm:$0xff] %v14354_v2 }
 0x93f   :  { %10071 = vrot.lane.b32.xlu1 %v13832_v60, %s10658_s24  ;;  %10075 = vrot.lane.b32.xlu0 %v13836_v0, %s10658_s24 }
 0x941   :  { %v14360_v21 = vpop.permute.xlu1 %4832  ;;  %v14362_v55 = vpop.permute.xlu0 %5139 }
 0x942   :  { %18258 = vst [vmem:[#allocation145_spill] sm:$0xff] %v14362_v55 }
 0x943   :  { %10079 = vrot.lane.b32.xlu1 %v13840_v30, %s10658_s24  ;;  %6636 = vrot.lane.b32.xlu0 %v13636_v52, %s10661_s27 }
 0x945   :  { %v14368_v46 = vpop.permute.xlu1 %4836  ;;  %v14370_v8 = vpop.permute.xlu0 %5143 }
 0x947   :  { %6640 = vrot.lane.b32.xlu1 %v13670_v14, %s10661_s27  ;;  %6644 = vrot.lane.b32.xlu0 %v13678_v10, %s10661_s27 }
 0x949   :  { %v14376_v2 = vpop.permute.xlu1 %4840  ;;  %v14378_v4 = vpop.permute.xlu0 %5147 }
 0x94b   :  { %6648 = vrot.lane.b32.xlu1 %v13696_v53, %s10661_s27  ;;  %6652 = vrot.lane.b32.xlu0 %v13704_v22, %s10661_s27  ;;  %v18283_v22 = vld [vmem:[#allocation65_spill] sm:$0xff] }
 0x94d   :  { %v14384_v52 = vpop.permute.xlu1 %6032  ;;  %v14386_v55 = vpop.permute.xlu0 %5725 }
 0x94e   :  { %18259 = vst [vmem:[#allocation146_spill] sm:$0xff] %v14384_v52  ;;  %18260 = vst [vmem:[#allocation147_spill] sm:$0xff] %v14386_v55 }
 0x94f   :  { %6656 = vrot.lane.b32.xlu1 %v13726_v23, %s10661_s27  ;;  %6660 = vrot.lane.b32.xlu0 %v13708_v26, %s10661_s27 }
 0x951   :  { %v14392_v14 = vpop.permute.xlu1 %6036  ;;  %v14394_v10 = vpop.permute.xlu0 %5729 }
 0x952   :  { %18261 = vst [vmem:[#allocation148_spill] sm:$0xff] %v14392_v14  ;;  %18262 = vst [vmem:[#allocation149_spill] sm:$0xff] %v14394_v10 }
 0x953   :  { %6664 = vrot.lane.b32.xlu1 %v13730_v57, %s10661_s27  ;;  %9744 = vrot.lane.b32.xlu0 %v13758_v15, %s10661_s27 }
 0x955   :  { %v14400_v53 = vpop.permute.xlu1 %6040  ;;  %v14402_v52 = vpop.permute.xlu0 %5733 }
 0x956   :  { %18263 = vst [vmem:[#allocation150_spill] sm:$0xff] %v14400_v53  ;;  %18264 = vst [vmem:[#allocation151_spill] sm:$0xff] %v14402_v52 }
 0x957   :  { %9748 = vrot.lane.b32.xlu1 %v13762_v38, %s10661_s27  ;;  %9752 = vrot.lane.b32.xlu0 %v13922_v45, %s10661_s27  ;;  %v18280_v45 = vld [vmem:[#allocation46_spill] sm:$0xff] }
 0x959   :  { %v14408_v23 = vpop.permute.xlu1 %6044  ;;  %v14410_v14 = vpop.permute.xlu0 %5737 }
 0x95a   :  { %18265 = vst [vmem:[#allocation152_spill] sm:$0xff] %v14408_v23  ;;  %18266 = vst [vmem:[#allocation153_spill] sm:$0xff] %v14410_v14 }
 0x95b   :  { %9756 = vrot.lane.b32.xlu1 %v13928_v33, %s10661_s27  ;;  %9760 = vrot.lane.b32.xlu0 %v13828_v18, %s10661_s27 }
 0x95d   :  { %v14416_v15 = vpop.permute.xlu1 %6048  ;;  %v14418_v53 = vpop.permute.xlu0 %5741 }
 0x95e   :  { %18267 = vst [vmem:[#allocation154_spill] sm:$0xff] %v14416_v15  ;;  %18268 = vst [vmem:[#allocation155_spill] sm:$0xff] %v14418_v53  ;;  %v18312_v53 = vld [vmem:[#allocation43_spill] sm:$0xff] }
 0x95f   :  { %9764 = vrot.lane.b32.xlu1 %v13832_v60, %s10661_s27  ;;  %9768 = vrot.lane.b32.xlu0 %v13836_v0, %s10661_s27 }
 0x961   :  { %v14424_v38 = vpop.permute.xlu1 %6052  ;;  %v14426_v23 = vpop.permute.xlu0 %5745 }
 0x962   :  { %18269 = vst [vmem:[#allocation156_spill] sm:$0xff] %v14424_v38 }
 0x963   :  { %9772 = vrot.lane.b32.xlu1 %v13840_v30, %s10661_s27  ;;  %6058 = vrot.lane.b32.xlu0 %v18238_v39, %s10658_s24 }
 0x965   :  { %v14432_v18 = vpop.permute.xlu1 %6056  ;;  %v14434_v15 = vpop.permute.xlu0 %5749 }
 0x966   :  { %18270 = vst [vmem:[#allocation157_spill] sm:$0xff] %v14432_v18  ;;  %18271 = vst [vmem:[#allocation158_spill] sm:$0xff] %v14434_v15 }
 0x967   :  { %9138 = vrot.lane.b32.xlu1 %v14102_v51, %s10658_s24  ;;  %9142 = vrot.lane.b32.xlu0 %v14106_v6, %s10658_s24 }
 0x969   :  { %v14440_v60 = vpop.permute.xlu1 %6945  ;;  %v14442_v38 = vpop.permute.xlu0 %5753 }
 0x96a   :  { %18272 = vst [vmem:[#allocation159_spill] sm:$0xff] %v14440_v60 }
 0x96b   :  { %9146 = vrot.lane.b32.xlu1 %v14110_v28, %s10658_s24  ;;  %9150 = vrot.lane.b32.xlu0 %v14114_v16, %s10658_s24 }
 0x96d   :  { %v14448_v30 = vpop.permute.xlu1 %6953  ;;  %v14450_v18 = vpop.permute.xlu0 %6949 }
 0x96e   :  { %18273 = vst [vmem:[#allocation160_spill] sm:$0xff] %v14448_v30  ;;  %18274 = vst [vmem:[#allocation161_spill] sm:$0xff] %v14450_v18  ;;  %v18279_v18 = vld [vmem:[#allocation47_spill] sm:$0xff] }
 0x96f   :  { %9154 = vrot.lane.b32.xlu1 %v14084_v35, %s10658_s24  ;;  %9158 = vrot.lane.b32.xlu0 %v14088_v54, %s10658_s24  ;;  %v18281_v57 = vcombine.high %v18279_v18, %v18280_v45 }
 0x971   :  { %v14456_v0 = vpop.permute.xlu1 %6961  ;;  %v14458_v60 = vpop.permute.xlu0 %6957 }
 0x972   :  { %18275 = vst [vmem:[#allocation162_spill] sm:$0xff] %v14456_v0  ;;  %18276 = vst [vmem:[#allocation163_spill] sm:$0xff] %v14458_v60  ;;  %v18282_v0 = vld [vmem:[#allocation56_spill] sm:$0xff] }
 0x973   :  { %9162 = vrot.lane.b32.xlu1 %v14092_v27, %s10658_s24  ;;  %9166 = vrot.lane.b32.xlu0 %v14096_v29, %s10658_s24  ;;  %v18284_v60 = vcombine.low %v18282_v0, %v18283_v22 }
 0x975   :  { %v14464_v33 = vpop.permute.xlu1 %6969  ;;  %v14466_v30 = vpop.permute.xlu0 %6965 }
 0x976   :  { %18277 = vst [vmem:[#allocation164_spill] sm:$0xff] %v14464_v33  ;;  %18278 = vst [vmem:[#allocation165_spill] sm:$0xff] %v14466_v30  ;;  %v18287_v33 = vcombine.high %v18282_v0, %v18283_v22  ;;  %v18292_v0 = vld [vmem:[#allocation60_spill] sm:$0xff] }
 0x977   :  { %4732 = vrot.lane.b32.xlu1 %v18281_v57, %s10655_s21  ;;  %4736 = vrot.lane.b32.xlu0 %v18284_v60, %s10677_s30  ;;  %v18288_v57 = vcombine.low %v13855_v50, %v13858_v17  ;;  %v18291_v60 = vcombine.high %v13855_v50, %v13858_v17  ;;  %v18293_v22 = vcombine.low %v13861_v31, %v18292_v0 }
 0x978   :  { %v18297_v50 = vcombine.low %v13891_v47, %v13894_v41 }
 0x979   :  { %v14476_v26 = vpop.permute.xlu1 %5723  ;;  %v14478_v55 = vpop.permute.xlu0 %6030 }
 0x97a   :  { %18285 = vst [vmem:[#allocation56_spill] sm:$0xff] %v14476_v26  ;;  %18286 = vst [vmem:[#allocation65_spill] sm:$0xff] %v14478_v55 }
 0x97b   :  { %4740 = vrot.lane.b32.xlu1 %v18287_v33, %s10678_s2  ;;  %4744 = vrot.lane.b32.xlu0 %v18288_v57, %s10679_s10  ;;  %v18296_v57 = vcombine.high %v13861_v31, %v18292_v0  ;;  %v18301_v31 = vcombine.low %v13897_v3, %v13900_v25  ;;  %v5497_v0 = vcombine.high %v18226_v43, %v18234_v42 }
 0x97d   :  { %v14488_v45 = vpop.permute.xlu1 %5727  ;;  %v14490_v18 = vpop.permute.xlu0 %6034  ;;  %v5511_v43 = vrot.slane %v5497_v0, %v18037_v61  ;;  %v18310_v0 = vld [vmem:[#allocation45_spill] sm:$0xff] }
 0x97e   :  { %18289 = vst [vmem:[#allocation166_spill] sm:$0xff] %v14488_v45  ;;  %18290 = vst [vmem:[#allocation167_spill] sm:$0xff] %v14490_v18 }
 0x97f   :  { %4748 = vrot.lane.b32.xlu1 %v18291_v60, %s10680_s11  ;;  %4752 = vrot.lane.b32.xlu0 %v18293_v22, %s10671_s22  ;;  %v18300_v22 = vcombine.high %v13891_v47, %v13894_v41  ;;  %v5465_v41 = vcombine.high %v18209_v24, %v18216_v63  ;;  %v5481_v47 = vcombine.high %v18212_v56, %v18219_v40  ;;  %v18305_v24 = vld [vmem:[#allocation21_spill] sm:$0xff]  ;;  %v18306_v63 = vld [vmem:[#allocation87_spill] sm:$0xff] }
 0x980   :  { %v5561_v40 = vcombine.high %v18306_v63, %v18305_v24 }
 0x981   :  { %v14500_v33 = vpop.permute.xlu1 %5731  ;;  %v14502_v30 = vpop.permute.xlu0 %6038 }
 0x982   :  { %18294 = vst [vmem:[#allocation60_spill] sm:$0xff] %v14500_v33  ;;  %18295 = vst [vmem:[#allocation168_spill] sm:$0xff] %v14502_v30  ;;  %v5575_v63 = vrot.slane %v5561_v40, %v18038_v34  ;;  %v5771_v40 = vcombine.low %v14476_v26, %v14500_v33 }
 0x983   :  { %4756 = vrot.lane.b32.xlu1 %v18296_v57, %s10651_s17  ;;  %4760 = vrot.lane.b32.xlu0 %v18297_v50, %s10681_s12  ;;  %v5513_v57 = vcombine.high %v18232_v12, %v18238_v39  ;;  %v18304_v39 = vcombine.high %v13937_v20, %v13940_v11 }
 0x984   :  { %v14596_v33 = vrot.slane %v5771_v40, %v18037_v61 }
 0x985   :  { %v14512_v17 = vpop.permute.xlu1 %5735  ;;  %v14514_v60 = vpop.permute.xlu0 %6042  ;;  %v5527_v12 = vrot.slane %v5513_v57, %v18037_v61  ;;  %v18311_v57 = vld [vmem:[#allocation59_spill] sm:$0xff] }
 0x986   :  { %18298 = vst [vmem:[#allocation169_spill] sm:$0xff] %v14512_v17  ;;  %18299 = vst [vmem:[#allocation170_spill] sm:$0xff] %v14514_v60  ;;  %v18313_v15 = vcombine.high %v18311_v57, %v18312_v53 }
 0x987   :  { %4764 = vrot.lane.b32.xlu1 %v18300_v22, %s10682_s1  ;;  %4768 = vrot.lane.b32.xlu0 %v18301_v31, %s10683_s13  ;;  %v18303_v22 = vcombine.high %v13897_v3, %v13900_v25  ;;  %v5479_v31 = vrot.slane %v5465_v41, %v18037_v61  ;;  %v5495_v3 = vrot.slane %v5481_v47, %v18037_v61 }
 0x988   :  { %v18308_v25 = vcombine.low %v13937_v20, %v13940_v11  ;;  %v5576_v41 = vcombine.low %v5511_v43, %v5527_v12  ;;  %v5787_v47 = vcombine.low %v14488_v45, %v14512_v17  ;;  %v18315_v20 = vld [vmem:[#allocation48_spill] sm:$0xff]  ;;  %v18316_v11 = vld [vmem:[#allocation78_spill] sm:$0xff]  ;;  %18319 = vst [vmem:[#allocation45_spill] sm:$0xff] %v14596_v33 }
 0x989   :  { %v14528_v50 = vpop.permute.xlu1 %5739  ;;  %v14530_v52 = vpop.permute.xlu0 %6046 }
 0x98a   :  { %18302 = vst [vmem:[#allocation171_spill] sm:$0xff] %v14530_v52 }
 0x98b   :  { %4772 = vrot.lane.b32.xlu1 %v18303_v22, %s10684_s14  ;;  %5701 = vrot.lane.b32.xlu0 %v18304_v39, %s10682_s1  ;;  %v18309_v22 = vld [vmem:[#allocation10_spill] sm:$0xff] }
 0x98c   :  { %v5529_v39 = vcombine.high %v18310_v0, %v18309_v22  ;;  %v18317_v22 = vcombine.low %v18311_v57, %v18312_v53  ;;  %v5544_v0 = vcombine.low %v5479_v31, %v5495_v3  ;;  %v14587_v53 = vrot.slane %v5787_v47, %v18037_v61 }
 0x98d   :  { %v14546_v42 = vpop.permute.xlu1 %5743  ;;  %v14550_v56 = vpop.permute.xlu0 %6050 }
 0x98e   :  { %18307 = vst [vmem:[#allocation21_spill] sm:$0xff] %v14550_v56  ;;  %v5552_v26 = vrot.slane %v5544_v0, %v18038_v34 }
 0x98f   :  { %5697 = vrot.lane.b32.xlu1 %v18308_v25, %s10681_s12  ;;  %5709 = vrot.lane.b32.xlu0 %v18313_v15, %s10684_s14  ;;  %v5593_v25 = vcombine.high %v18316_v11, %v18315_v20  ;;  %v5543_v15 = vrot.slane %v5529_v39, %v18038_v34  ;;  %v5584_v20 = vrot.slane %v5576_v41, %v18038_v34 }
 0x990   :  { %v5577_v11 = vcombine.high %v5511_v43, %v5527_v12 }
 0x991   :  { %v14564_v24 = vpop.permute.xlu1 %5747  ;;  %v14569_v10 = vpop.permute.xlu0 %6054  ;;  %v5594_v17 = vcombine.low %v5543_v15, %v5575_v63  ;;  %v5596_v47 = vcombine.low %v5552_v26, %v5584_v20 }
 0x992   :  { %18314 = vst [vmem:[#allocation87_spill] sm:$0xff] %v14569_v10  ;;  %v5803_v14 = vcombine.low %v14528_v50, %v14564_v24 }
 0x993   :  { %5705 = vrot.lane.b32.xlu1 %v18317_v22, %s10683_s13  ;;  %5669 = vrot.lane.b32.xlu0 %v5593_v25, %s10655_s21  ;;  %v5595_v22 = vcombine.high %v5543_v15, %v5575_v63  ;;  %v5545_v25 = vcombine.high %v5479_v31, %v5495_v3  ;;  %v5591_v63 = vrot.slane %v5577_v11, %v18038_v34 }
 0x994   :  { %v14599_v41 = vrot.slane %v5803_v14, %v18037_v61  ;;  %v5597_v14 = vcombine.high %v5552_v26, %v5584_v20 }
 0x995   :  { %v14583_v45 = vpop.permute.xlu1 %5751  ;;  %v14591_v57 = vpop.permute.xlu0 %6943  ;;  %v5559_v15 = vrot.slane %v5545_v25, %v18038_v34 }
 0x996   :  { %v5819_v39 = vcombine.low %v14546_v42, %v14583_v45  ;;  %18318 = vst [vmem:[#allocation10_spill] sm:$0xff] %v14591_v57 }
 0x997   :  { %5673 = vrot.lane.b32.xlu1 %v5594_v17, %s10677_s30  ;;  %5677 = vrot.lane.b32.xlu0 %v5595_v22, %s10678_s2  ;;  %v5835_v17 = vcombine.low %v14596_v33, %v14587_v53  ;;  %v5598_v11 = vcombine.low %v5559_v15, %v5591_v63  ;;  %v5599_v22 = vcombine.high %v5559_v15, %v5591_v63 }
 0x998   :  { %v14602_v43 = vrot.slane %v5819_v39, %v18037_v61 }
 0x999   :  { %v14605_v12 = vpop.permute.xlu1 %6947  ;;  %v14612_v3 = vpop.permute.xlu0 %6951  ;;  %v14625_v33 = vrot.slane %v5835_v17, %v18038_v34 }
 0x99a   :  { %18320 = vst [vmem:[#allocation59_spill] sm:$0xff] %v14605_v12  ;;  %v5867_v31 = vcombine.low %v14599_v41, %v14602_v43  ;;  %18321 = vst [vmem:[#allocation43_spill] sm:$0xff] %v14612_v3  ;;  %v6991_v63 = vcombine.low %v14591_v57, %v14612_v3 }
 0x99b   :  { %5681 = vrot.lane.b32.xlu1 %v5596_v47, %s10679_s10  ;;  %5685 = vrot.lane.b32.xlu0 %v5597_v14, %s10680_s11  ;;  %18325 = vst [vmem:[#allocation175_spill] sm:$0xff] %v14625_v33  ;;  %v18329_v14 = vld [vmem:[#allocation51_spill] sm:$0xff] }
 0x99c   :  { %v14618_v0 = vrot.slane %v5867_v31, %v18038_v34  ;;  %v18328_v31 = vld [vmem:[#allocation20_spill] sm:$0xff]  ;;  %v14657_v57 = vrot.slane %v6991_v63, %v18037_v61 }
 0x99d   :  { %v14620_v40 = vpop.permute.xlu1 %6955  ;;  %v14622_v39 = vpop.permute.xlu0 %6959  ;;  %v18340_v63 = vld [vmem:[#allocation84_spill] sm:$0xff] }
 0x99e   :  { %18322 = vst [vmem:[#allocation172_spill] sm:$0xff] %v14618_v0  ;;  %18323 = vst [vmem:[#allocation173_spill] sm:$0xff] %v14620_v40  ;;  %v7007_v25 = vcombine.low %v14605_v12, %v14620_v40  ;;  %v18333_v12 = vld [vmem:[#allocation17_spill] sm:$0xff] }
 0x99f   :  { %18324 = vst [vmem:[#allocation174_spill] sm:$0xff] %v14622_v39  ;;  %5689 = vrot.lane.b32.xlu1 %v5598_v11, %s10671_s22  ;;  %5693 = vrot.lane.b32.xlu0 %v5599_v22, %s10651_s17  ;;  %18334 = vst [vmem:[#allocation181_spill] sm:$0xff] %v14657_v57 }
 0x9a0   :  { %v14648_v11 = vrot.slane %v7007_v25, %v18037_v61  ;;  %v18337_v25 = vld [vmem:[#allocation13_spill] sm:$0xff] }
 0x9a1   :  { %v14631_v20 = vpop.permute.xlu1 %6963  ;;  %v14635_v47 = vpop.permute.xlu0 %6967 }
 0x9a2   :  { %18326 = vst [vmem:[#allocation176_spill] sm:$0xff] %v14631_v20  ;;  %18327 = vst [vmem:[#allocation177_spill] sm:$0xff] %v14635_v47  ;;  %v7023_v17 = vcombine.low %v14622_v39, %v14635_v47  ;;  %v7055_v40 = vcombine.low %v14657_v57, %v14648_v11 }
 0x9a3   :  { %10053 = vrot.lane.b32.xlu1 %v18328_v31, %s10658_s24  ;;  %6973 = vrot.lane.b32.xlu0 %v18329_v14, %s10658_s24  ;;  %18331 = vst [vmem:[#allocation179_spill] sm:$0xff] %v14648_v11  ;;  %v18346_v11 = vld [vmem:[#allocation53_spill] sm:$0xff] }
 0x9a4   :  { %v14660_v3 = vrot.slane %v7023_v17, %v18037_v61  ;;  %v18341_v17 = vld [vmem:[#allocation33_spill] sm:$0xff]  ;;  %v14687_v57 = vrot.slane %v7055_v40, %v18038_v34 }
 0x9a5   :  { %v14645_v15 = vpop.permute.xlu1 %6971  ;;  %v14652_v26 = vpop.permute.xlu0 %10051 }
 0x9a6   :  { %18330 = vst [vmem:[#allocation178_spill] sm:$0xff] %v14645_v15  ;;  %v7039_v22 = vcombine.low %v14631_v20, %v14645_v15  ;;  %18332 = vst [vmem:[#allocation180_spill] sm:$0xff] %v14652_v26 }
 0x9a7   :  { %10061 = vrot.lane.b32.xlu1 %v18333_v12, %s10658_s24  ;;  %18335 = vst [vmem:[#allocation182_spill] sm:$0xff] %v14660_v3  ;;  %10057 = vrot.lane.b32.xlu0 %v18337_v25, %s10658_s24  ;;  %18345 = vst [vmem:[#allocation189_spill] sm:$0xff] %v14687_v57 }
 0x9a8   :  { %v14663_v39 = vrot.slane %v7039_v22, %v18037_v61 }
 0x9a9   :  { %v14667_v47 = vpop.permute.xlu1 %10055  ;;  %v14673_v15 = vpop.permute.xlu0 %10059 }
 0x9aa   :  { %18336 = vst [vmem:[#allocation183_spill] sm:$0xff] %v14663_v39  ;;  %18338 = vst [vmem:[#allocation184_spill] sm:$0xff] %v14667_v47  ;;  %v7087_v20 = vcombine.low %v14660_v3, %v14663_v39  ;;  %v18347_v3 = vld [vmem:[#allocation19_spill] sm:$0xff]  ;;  %v10099_v40 = vcombine.low %v14652_v26, %v14673_v15 }
 0x9ab   :  { %18339 = vst [vmem:[#allocation185_spill] sm:$0xff] %v14673_v15  ;;  %10069 = vrot.lane.b32.xlu1 %v18340_v63, %s10658_s24  ;;  %10065 = vrot.lane.b32.xlu0 %v18341_v17, %s10658_s24 }
 0x9ac   :  { %v14680_v22 = vrot.slane %v7087_v20, %v18038_v34 }
 0x9ad   :  { %v14682_v12 = vpop.permute.xlu1 %10063  ;;  %v14684_v25 = vpop.permute.xlu0 %10067 }
 0x9ae   :  { %18342 = vst [vmem:[#allocation186_spill] sm:$0xff] %v14680_v22  ;;  %18343 = vst [vmem:[#allocation187_spill] sm:$0xff] %v14682_v12  ;;  %v10115_v20 = vcombine.low %v14667_v47, %v14682_v12 }
 0x9af   :  { %18344 = vst [vmem:[#allocation188_spill] sm:$0xff] %v14684_v25  ;;  %10077 = vrot.lane.b32.xlu1 %v18346_v11, %s10658_s24  ;;  %10073 = vrot.lane.b32.xlu0 %v18347_v3, %s10658_s24  ;;  %v18350_v3 = vld [vmem:[#allocation12_spill] sm:$0xff] }
 0x9b0   :  { %v14712_v57 = vrot.slane %v10115_v20, %v18037_v61 }
 0x9b1   :  { %v14695_v63 = vpop.permute.xlu1 %10071  ;;  %v14699_v17 = vpop.permute.xlu0 %10075 }
 0x9b2   :  { %18348 = vst [vmem:[#allocation190_spill] sm:$0xff] %v14695_v63  ;;  %18349 = vst [vmem:[#allocation191_spill] sm:$0xff] %v14699_v17  ;;  %v10131_v11 = vcombine.low %v14684_v25, %v14699_v17 }
 0x9b3   :  { %8831 = vrot.lane.b32.xlu1 %v14102_v51, %s10661_s27  ;;  %10081 = vrot.lane.b32.xlu0 %v18350_v3, %s10658_s24  ;;  %v14721_v51 = vrot.slane %v10099_v40, %v18037_v61 }
 0x9b4   :  { %v14724_v26 = vrot.slane %v10131_v11, %v18037_v61 }
 0x9b5   :  { %v14709_v39 = vpop.permute.xlu1 %10079  ;;  %v14716_v12 = vpop.permute.xlu0 %6636  ;;  %v10163_v25 = vcombine.low %v14721_v51, %v14712_v57 }
 0x9b6   :  { %18351 = vst [vmem:[#allocation192_spill] sm:$0xff] %v14709_v39  ;;  %v10147_v47 = vcombine.low %v14695_v63, %v14709_v39  ;;  %18352 = vst [vmem:[#allocation193_spill] sm:$0xff] %v14716_v12  ;;  %v18361_v39 = vld [vmem:[#allocation55_spill] sm:$0xff] }
 0x9b7   :  { %8839 = vrot.lane.b32.xlu1 %v14110_v28, %s10661_s27  ;;  %8835 = vrot.lane.b32.xlu0 %v14106_v6, %s10661_s27  ;;  %v14751_v6 = vrot.slane %v10163_v25, %v18038_v34 }
 0x9b8   :  { %v14727_v15 = vrot.slane %v10147_v47, %v18037_v61 }
 0x9b9   :  { %v14731_v20 = vpop.permute.xlu1 %6640  ;;  %v14737_v17 = vpop.permute.xlu0 %6644  ;;  %18358 = vst [vmem:[#allocation199_spill] sm:$0xff] %v14751_v6  ;;  %v18381_v6 = vld [vmem:[#allocation58_spill] sm:$0xff] }
 0x9ba   :  { %18353 = vst [vmem:[#allocation194_spill] sm:$0xff] %v14731_v20  ;;  %v10195_v28 = vcombine.low %v14724_v26, %v14727_v15  ;;  %18354 = vst [vmem:[#allocation195_spill] sm:$0xff] %v14737_v17  ;;  %v6684_v25 = vcombine.low %v14716_v12, %v14737_v17 }
 0x9bb   :  { %8847 = vrot.lane.b32.xlu1 %v14084_v35, %s10661_s27  ;;  %8843 = vrot.lane.b32.xlu0 %v14114_v16, %s10661_s27 }
 0x9bc   :  { %v14744_v47 = vrot.slane %v10195_v28, %v18038_v34  ;;  %v14785_v12 = vrot.slane %v6684_v25, %v18037_v61 }
 0x9bd   :  { %v14746_v11 = vpop.permute.xlu1 %6648  ;;  %v14748_v40 = vpop.permute.xlu0 %6652 }
 0x9be   :  { %18355 = vst [vmem:[#allocation196_spill] sm:$0xff] %v14744_v47  ;;  %18356 = vst [vmem:[#allocation197_spill] sm:$0xff] %v14746_v11  ;;  %v6700_v28 = vcombine.low %v14731_v20, %v14746_v11 }
 0x9bf   :  { %18357 = vst [vmem:[#allocation198_spill] sm:$0xff] %v14748_v40  ;;  %8855 = vrot.lane.b32.xlu1 %v14092_v27, %s10661_s27  ;;  %8851 = vrot.lane.b32.xlu0 %v14088_v54, %s10661_s27  ;;  %18365 = vst [vmem:[#allocation204_spill] sm:$0xff] %v14785_v12 }
 0x9c0   :  { %v14776_v54 = vrot.slane %v6700_v28, %v18037_v61  ;;  %v18368_v28 = vld [vmem:[#allocation70_spill] sm:$0xff] }
 0x9c1   :  { %v14759_v16 = vpop.permute.xlu1 %6656  ;;  %v14763_v63 = vpop.permute.xlu0 %6660 }
 0x9c2   :  { %18359 = vst [vmem:[#allocation200_spill] sm:$0xff] %v14759_v16  ;;  %18360 = vst [vmem:[#allocation201_spill] sm:$0xff] %v14763_v63  ;;  %v6716_v27 = vcombine.low %v14748_v40, %v14763_v63  ;;  %v4907_v40 = vcombine.high %v14226_v48, %v14262_v32  ;;  %v18370_v48 = vld [vmem:[#allocation73_spill] sm:$0xff] }
 0x9c3   :  { %6638 = vrot.lane.b32.xlu1 %v18361_v39, %s10661_s27  ;;  %8859 = vrot.lane.b32.xlu0 %v14096_v29, %s10661_s27  ;;  %18363 = vst [vmem:[#allocation203_spill] sm:$0xff] %v14776_v54  ;;  %v18364_v39 = vld [vmem:[#allocation79_spill] sm:$0xff] }
 0x9c4   :  { %v14788_v17 = vrot.slane %v6716_v27, %v18037_v61  ;;  %v4875_v27 = vcombine.high %v14168_v36, %v14194_v5  ;;  %v4955_v36 = vcombine.high %v14294_v9, %v14283_v13  ;;  %v18382_v9 = vld [vmem:[#allocation123_spill] sm:$0xff] }
 0x9c5   :  { %v14773_v35 = vpop.permute.xlu1 %6664  ;;  %v14780_v11 = vpop.permute.xlu0 %9744 }
 0x9c6   :  { %18362 = vst [vmem:[#allocation202_spill] sm:$0xff] %v14773_v35  ;;  %v6732_v20 = vcombine.low %v14759_v16, %v14773_v35  ;;  %18366 = vst [vmem:[#allocation205_spill] sm:$0xff] %v14788_v17  ;;  %v18372_v35 = vld [vmem:[#allocation124_spill] sm:$0xff] }
 0x9c7   :  { %6646 = vrot.lane.b32.xlu1 %v18364_v39, %s10661_s27  ;;  %6642 = vrot.lane.b32.xlu0 %v18368_v28, %s10661_s27  ;;  %v6748_v39 = vcombine.low %v14785_v12, %v14776_v54  ;;  %v18369_v28 = vld [vmem:[#allocation77_spill] sm:$0xff] }
 0x9c8   :  { %v14791_v29 = vrot.slane %v6732_v20, %v18037_v61  ;;  %v4891_v20 = vcombine.high %v14214_v62, %v14240_v59  ;;  %v18373_v12 = vld [vmem:[#allocation121_spill] sm:$0xff] }
 0x9c9   :  { %v14797_v63 = vpop.permute.xlu1 %9748  ;;  %v14803_v16 = vpop.permute.xlu0 %9752  ;;  %v4859_v54 = vcombine.high %v18373_v12, %v18372_v35  ;;  %v14826_v59 = vrot.slane %v6748_v39, %v18038_v34  ;;  %v18376_v35 = vld [vmem:[#allocation69_spill] sm:$0xff]  ;;  %v18377_v12 = vld [vmem:[#allocation76_spill] sm:$0xff] }
 0x9ca   :  { %18367 = vst [vmem:[#allocation206_spill] sm:$0xff] %v14791_v29  ;;  %v6780_v25 = vcombine.low %v14788_v17, %v14791_v29  ;;  %v4921_v17 = vrot.slane %v4907_v40, %v18037_v61 }
 0x9cb   :  { %6654 = vrot.lane.b32.xlu1 %v18369_v28, %s10661_s27  ;;  %6650 = vrot.lane.b32.xlu0 %v18370_v48, %s10661_s27  ;;  %18375 = vst [vmem:[#allocation121_spill] sm:$0xff] %v14826_v59  ;;  %v4889_v48 = vrot.slane %v4875_v27, %v18037_v61  ;;  %v4905_v28 = vrot.slane %v4891_v20, %v18037_v61  ;;  %v18379_v20 = vld [vmem:[#allocation64_spill] sm:$0xff] }
 0x9cc   :  { %v14814_v32 = vrot.slane %v6780_v25, %v18038_v34  ;;  %v4923_v25 = vcombine.high %v14291_v49, %v14272_v37  ;;  %v4873_v13 = vrot.slane %v4859_v54, %v18037_v61  ;;  %v4969_v27 = vrot.slane %v4955_v36, %v18038_v34 }
 0x9cd   :  { %v14821_v5 = vpop.permute.xlu1 %9756  ;;  %v14823_v62 = vpop.permute.xlu0 %9760  ;;  %v4970_v39 = vcombine.low %v4905_v28, %v4921_v17  ;;  %v5182_v59 = vcombine.high %v18382_v9, %v18381_v6  ;;  %v4971_v54 = vcombine.high %v4905_v28, %v4921_v17  ;;  %v6094_v36 = vcombine.low %v14490_v18, %v14514_v60  ;;  %v18385_v18 = vld [vmem:[#allocation72_spill] sm:$0xff] }
 0x9ce   :  { %18371 = vst [vmem:[#allocation207_spill] sm:$0xff] %v14814_v32  ;;  %18374 = vst [vmem:[#allocation124_spill] sm:$0xff] %v14823_v62  ;;  %v4938_v37 = vcombine.low %v4873_v13, %v4889_v48  ;;  %v4937_v49 = vrot.slane %v4923_v25, %v18038_v34  ;;  %v9808_v6 = vcombine.low %v14797_v63, %v14821_v5 }
 0x9cf   :  { %6662 = vrot.lane.b32.xlu1 %v18376_v35, %s10661_s27  ;;  %6658 = vrot.lane.b32.xlu0 %v18377_v12, %s10661_s27  ;;  %v18380_v12 = vld [vmem:[#allocation57_spill] sm:$0xff]  ;;  %v4978_v25 = vrot.slane %v4970_v39, %v18038_v34 }
 0x9d0   :  { %v5166_v35 = vcombine.high %v18380_v12, %v18379_v20  ;;  %v4988_v47 = vcombine.low %v4937_v49, %v4969_v27  ;;  %v6110_v12 = vcombine.low %v14530_v52, %v14569_v10  ;;  %v4939_v20 = vcombine.high %v4873_v13, %v4889_v48  ;;  %v18386_v52 = vld [vmem:[#allocation29_spill] sm:$0xff]  ;;  %v18387_v10 = vld [vmem:[#allocation75_spill] sm:$0xff] }
 0x9d1   :  { %v14839_v40 = vpop.permute.xlu1 %9764  ;;  %v14842_v29 = vpop.permute.xlu0 %9768  ;;  %v5198_v60 = vcombine.high %v18387_v10, %v18386_v52  ;;  %v4989_v13 = vcombine.high %v4937_v49, %v4969_v27  ;;  %v4985_v52 = vrot.slane %v4971_v54, %v18038_v34  ;;  %v14893_v10 = vrot.slane %v6094_v36, %v18037_v61 }
 0x9d2   :  { %18378 = vst [vmem:[#allocation208_spill] sm:$0xff] %v14842_v29  ;;  %v9824_v17 = vcombine.low %v14823_v62, %v14842_v29  ;;  %v6078_v62 = vcombine.low %v14478_v55, %v14502_v30  ;;  %v9792_v29 = vcombine.low %v14780_v11, %v14803_v16  ;;  %v14907_v55 = vrot.slane %v5182_v59, %v18037_v61  ;;  %v18393_v59 = vld [vmem:[#allocation129_spill] sm:$0xff] }
 0x9d3   :  { %9746 = vrot.lane.b32.xlu1 %v18328_v31, %s10661_s27  ;;  %6666 = vrot.lane.b32.xlu0 %v18329_v14, %s10661_s27  ;;  %v4987_v31 = vcombine.high %v14325_v58, %v14315_v1  ;;  %v18384_v14 = vld [vmem:[#allocation127_spill] sm:$0xff]  ;;  %v4946_v58 = vrot.slane %v4938_v37, %v18038_v34  ;;  %18389 = vst [vmem:[#allocation58_spill] sm:$0xff] %v14893_v10 }
 0x9d4   :  { %v5214_v1 = vcombine.high %v18385_v18, %v18384_v14  ;;  %v14896_v37 = vrot.slane %v6110_v12, %v18037_v61  ;;  %v4953_v49 = vrot.slane %v4939_v20, %v18038_v34  ;;  %v14913_v54 = vrot.slane %v6078_v62, %v18037_v61 }
 0x9d5   :  { %v14855_v32 = vpop.permute.xlu1 %9772  ;;  %v14868_v9 = vpop.permute.xlu0 %6058  ;;  %v14916_v36 = vrot.slane %v9792_v29, %v18037_v61  ;;  %v5212_v29 = vrot.slane %v5198_v60, %v18037_v61 }
 0x9d6   :  { %v9840_v28 = vcombine.low %v14839_v40, %v14855_v32  ;;  %18383 = vst [vmem:[#allocation64_spill] sm:$0xff] %v14868_v9  ;;  %v6126_v39 = vcombine.low %v14550_v56, %v14868_v9  ;;  %18390 = vst [vmem:[#allocation123_spill] sm:$0xff] %v14896_v37  ;;  %v5228_v27 = vrot.slane %v5214_v1, %v18037_v61  ;;  %v18396_v9 = vld [vmem:[#allocation128_spill] sm:$0xff] }
 0x9d7   :  { %5067 = vrot.lane.b32.xlu1 %v4988_v47, %s10677_s30  ;;  %5063 = vrot.lane.b32.xlu0 %v4987_v31, %s10655_s21  ;;  %v4990_v47 = vcombine.low %v4946_v58, %v4978_v25  ;;  %v14902_v31 = vrot.slane %v9824_v17, %v18037_v61  ;;  %18392 = vst [vmem:[#allocation72_spill] sm:$0xff] %v14913_v54 }
 0x9d8   :  { %v14883_v48 = vrot.slane %v9840_v28, %v18037_v61  ;;  %v14887_v18 = vrot.slane %v6126_v39, %v18037_v61  ;;  %v14899_v28 = vrot.slane %v9808_v6, %v18037_v61  ;;  %v14924_v1 = vrot.slane %v5166_v35, %v18037_v61  ;;  %v18397_v35 = vld [vmem:[#allocation130_spill] sm:$0xff] }
 0x9d9   :  { %v14889_v14 = vpop.permute.xlu1 %9138  ;;  %v14904_v39 = vpop.permute.xlu0 %9142  ;;  %v5262_v17 = vcombine.high %v18393_v59, %v14280_v7  ;;  %v4992_v62 = vcombine.low %v4953_v49, %v4985_v52  ;;  %v5277_v59 = vcombine.low %v5212_v29, %v5228_v27 }
 0x9da   :  { %18388 = vst [vmem:[#allocation57_spill] sm:$0xff] %v14889_v14  ;;  %18391 = vst [vmem:[#allocation127_spill] sm:$0xff] %v14904_v39  ;;  %v9888_v12 = vcombine.low %v14902_v31, %v14883_v48  ;;  %v6174_v6 = vcombine.low %v14896_v37, %v14887_v18  ;;  %v9856_v30 = vcombine.low %v14916_v36, %v14899_v28 }
 0x9db   :  { %5075 = vrot.lane.b32.xlu1 %v4990_v47, %s10679_s10  ;;  %5071 = vrot.lane.b32.xlu0 %v4989_v13, %s10678_s2  ;;  %v6142_v47 = vcombine.low %v14913_v54, %v14893_v10  ;;  %v4991_v13 = vcombine.high %v4946_v58, %v4978_v25  ;;  %v5230_v37 = vcombine.high %v18397_v35, %v18396_v9 }
 0x9dc   :  { %v5245_v7 = vcombine.low %v14924_v1, %v14907_v55  ;;  %v14944_v60 = vrot.slane %v9888_v12, %v18038_v34  ;;  %v14947_v54 = vrot.slane %v6174_v6, %v18038_v34  ;;  %v5018_v58 = vcombine.low %v14360_v21, %v14376_v2 }
 0x9dd   :  { %v14928_v20 = vpop.permute.xlu1 %9146  ;;  %v14935_v56 = vpop.permute.xlu0 %9150  ;;  %v5294_v9 = vcombine.high %v14328_v44, %v14318_v19  ;;  %v5276_v35 = vrot.slane %v5262_v17, %v18038_v34  ;;  %v14963_v6 = vrot.slane %v9856_v30, %v18038_v34  ;;  %v14966_v21 = vrot.slane %v6142_v47, %v18038_v34  ;;  %v18406_v19 = vld [vmem:[#allocation143_spill] sm:$0xff] }
 0x9de   :  { %18394 = vst [vmem:[#allocation29_spill] sm:$0xff] %v14928_v20  ;;  %18395 = vst [vmem:[#allocation75_spill] sm:$0xff] %v14935_v56  ;;  %v9202_v12 = vcombine.low %v14904_v39, %v14935_v56  ;;  %v5246_v2 = vcombine.high %v14924_v1, %v14907_v55  ;;  %v5010_v44 = vcombine.low %v18406_v19, %v14368_v46  ;;  %v18407_v1 = vld [vmem:[#allocation139_spill] sm:$0xff] }
 0x9df   :  { %5083 = vrot.lane.b32.xlu1 %v4992_v62, %s10671_s22  ;;  %5079 = vrot.lane.b32.xlu0 %v4991_v13, %s10680_s11  ;;  %18398 = vst [vmem:[#allocation129_spill] sm:$0xff] %v14944_v60  ;;  %18399 = vst [vmem:[#allocation128_spill] sm:$0xff] %v14947_v54  ;;  %v4993_v62 = vcombine.high %v4953_v49, %v4985_v52  ;;  %v9186_v13 = vcombine.low %v14889_v14, %v14928_v20  ;;  %v18404_v52 = vld [vmem:[#allocation141_spill] sm:$0xff] }
 0x9e0   :  { %18402 = vst [vmem:[#allocation210_spill] sm:$0xff] %v14963_v6  ;;  %18403 = vst [vmem:[#allocation211_spill] sm:$0xff] %v14966_v21  ;;  %v18405_v49 = vld [vmem:[#allocation133_spill] sm:$0xff]  ;;  %v5244_v39 = vrot.slane %v5230_v37, %v18038_v34  ;;  %v5278_v56 = vcombine.high %v5212_v29, %v5228_v27  ;;  %v5285_v30 = vrot.slane %v5277_v59, %v18038_v34 }
 0x9e1   :  { %v14951_v25 = vpop.permute.xlu1 %9154  ;;  %v14960_v10 = vpop.permute.xlu0 %9158  ;;  %v5002_v17 = vcombine.low %v18405_v49, %v18404_v52  ;;  %v18408_v52 = vld [vmem:[#allocation131_spill] sm:$0xff]  ;;  %v5025_v19 = vrot.slane %v5018_v58, %v18037_v61  ;;  %v5253_v37 = vrot.slane %v5245_v7, %v18038_v34  ;;  %v14989_v27 = vrot.slane %v9186_v13, %v18037_v61 }
 0x9e2   :  { %18400 = vst [vmem:[#allocation130_spill] sm:$0xff] %v14951_v25  ;;  %18401 = vst [vmem:[#allocation209_spill] sm:$0xff] %v14960_v10  ;;  %v4994_v49 = vcombine.low %v18408_v52, %v18407_v1  ;;  %v14992_v29 = vrot.slane %v9202_v12, %v18037_v61  ;;  %v5295_v47 = vcombine.low %v5244_v39, %v5276_v35 }
 0x9e3   :  { %5370 = vrot.lane.b32.xlu1 %v5294_v9, %s10655_s21  ;;  %5087 = vrot.lane.b32.xlu0 %v4993_v62, %s10651_s17  ;;  %v5296_v9 = vcombine.high %v5244_v39, %v5276_v35  ;;  %v5009_v1 = vrot.slane %v5002_v17, %v18037_v61  ;;  %v5017_v58 = vrot.slane %v5010_v44, %v18037_v61  ;;  %v18411_v35 = vld [vmem:[#allocation145_spill] sm:$0xff] }
 0x9e4   :  { %v5298_v13 = vcombine.high %v5253_v37, %v5285_v30  ;;  %v5292_v12 = vrot.slane %v5278_v56, %v18038_v34  ;;  %v5001_v55 = vrot.slane %v4994_v49, %v18037_v61  ;;  %v5325_v17 = vcombine.low %v18411_v35, %v14378_v4  ;;  %v18415_v49 = vld [vmem:[#allocation136_spill] sm:$0xff] }
 0x9e5   :  { %v14985_v46 = vpop.permute.xlu1 %9162  ;;  %v14996_v62 = vpop.permute.xlu0 %9166  ;;  %v5042_v39 = vcombine.low %v5017_v58, %v5025_v19  ;;  %v5260_v20 = vrot.slane %v5246_v2, %v18038_v34  ;;  %v18417_v35 = vld [vmem:[#allocation140_spill] sm:$0xff] }
 0x9e6   :  { %18409 = vst [vmem:[#allocation141_spill] sm:$0xff] %v14985_v46  ;;  %v9218_v59 = vcombine.low %v14951_v25, %v14985_v46  ;;  %18410 = vst [vmem:[#allocation133_spill] sm:$0xff] %v14996_v62  ;;  %v9234_v52 = vcombine.low %v14960_v10, %v14996_v62  ;;  %v5026_v56 = vcombine.low %v5001_v55, %v5009_v1  ;;  %v18414_v10 = vld [vmem:[#allocation142_spill] sm:$0xff]  ;;  %v18416_v25 = vld [vmem:[#allocation144_spill] sm:$0xff] }
 0x9e7   :  { %5378 = vrot.lane.b32.xlu1 %v5296_v9, %s10678_s2  ;;  %5374 = vrot.lane.b32.xlu0 %v5295_v47, %s10677_s30  ;;  %v9250_v9 = vcombine.low %v14989_v27, %v14992_v29  ;;  %v5297_v47 = vcombine.low %v5253_v37, %v5285_v30  ;;  %v5309_v62 = vcombine.low %v18415_v49, %v18414_v10 }
 0x9e8   :  { %v15004_v7 = vrot.slane %v9218_v59, %v18037_v61  ;;  %v15012_v44 = vrot.slane %v9234_v52, %v18037_v61  ;;  %v5317_v4 = vcombine.low %v18416_v25, %v14370_v8  ;;  %v5300_v30 = vcombine.high %v5260_v20, %v5292_v12 }
 0x9e9   :  { %v15014_v14 = vpop.permute.xlu1 %4732  ;;  %v15018_v59 = vpop.permute.xlu0 %4736  ;;  %v5043_v37 = vcombine.high %v5017_v58, %v5025_v19  ;;  %v5050_v2 = vrot.slane %v5042_v39, %v18038_v34  ;;  %v5299_v49 = vcombine.low %v5260_v20, %v5292_v12  ;;  %v5316_v19 = vrot.slane %v5309_v62, %v18037_v61 }
 0x9ea   :  { %18412 = vst [vmem:[#allocation143_spill] sm:$0xff] %v15014_v14  ;;  %18413 = vst [vmem:[#allocation139_spill] sm:$0xff] %v15018_v59  ;;  %v9282_v52 = vcombine.low %v15004_v7, %v15012_v44  ;;  %v18418_v14 = vld [vmem:[#allocation132_spill] sm:$0xff]  ;;  %v5332_v59 = vrot.slane %v5325_v17, %v18037_v61  ;;  %v5324_v58 = vrot.slane %v5317_v4, %v18037_v61  ;;  %v18428_v17 = vld [vmem:[#allocation155_spill] sm:$0xff] }
 0x9eb   :  { %5386 = vrot.lane.b32.xlu1 %v5298_v13, %s10680_s11  ;;  %v5301_v46 = vcombine.low %v18418_v14, %v18417_v35  ;;  %5382 = vrot.lane.b32.xlu0 %v5297_v47, %s10679_s10  ;;  %v15041_v13 = vrot.slane %v9250_v9, %v18038_v34  ;;  %v5027_v14 = vcombine.high %v5001_v55, %v5009_v1  ;;  %v18426_v35 = vld [vmem:[#allocation149_spill] sm:$0xff] }
 0x9ec   :  { %v15036_v8 = vrot.slane %v9282_v52, %v18038_v34  ;;  %v5034_v47 = vrot.slane %v5026_v56, %v18038_v34  ;;  %v5057_v20 = vrot.slane %v5043_v37, %v18038_v34  ;;  %v5349_v12 = vcombine.low %v5324_v58, %v5332_v59  ;;  %v18425_v52 = vld [vmem:[#allocation153_spill] sm:$0xff] }
 0x9ed   :  { %v15033_v10 = vpop.permute.xlu1 %4740  ;;  %v15038_v25 = vpop.permute.xlu0 %4744  ;;  %18422 = vst [vmem:[#allocation136_spill] sm:$0xff] %v15041_v13  ;;  %v5308_v39 = vrot.slane %v5301_v46, %v18037_v61  ;;  %v5931_v55 = vcombine.low %v14426_v23, %v14442_v38  ;;  %v5041_v4 = vrot.slane %v5027_v14, %v18038_v34  ;;  %v5350_v37 = vcombine.high %v5324_v58, %v5332_v59  ;;  %v18429_v38 = vld [vmem:[#allocation151_spill] sm:$0xff] }
 0x9ee   :  { %18419 = vst [vmem:[#allocation131_spill] sm:$0xff] %v15033_v10  ;;  %18420 = vst [vmem:[#allocation145_spill] sm:$0xff] %v15036_v8  ;;  %v5058_v62 = vcombine.low %v5034_v47, %v5050_v2  ;;  %v5059_v56 = vcombine.high %v5034_v47, %v5050_v2  ;;  %v5357_v23 = vrot.slane %v5349_v12, %v18038_v34 }
 0x9ef   :  { %18421 = vst [vmem:[#allocation142_spill] sm:$0xff] %v15038_v25  ;;  %5394 = vrot.lane.b32.xlu1 %v5300_v30, %s10651_s17  ;;  %5390 = vrot.lane.b32.xlu0 %v5299_v49, %s10671_s22  ;;  %v5333_v46 = vcombine.low %v5308_v39, %v5316_v19  ;;  %v5915_v30 = vcombine.low %v18426_v35, %v18425_v52  ;;  %v18427_v49 = vld [vmem:[#allocation158_spill] sm:$0xff] }
 0x9f0   :  { %v5923_v25 = vcombine.low %v18428_v17, %v18427_v49  ;;  %v5938_v2 = vrot.slane %v5931_v55, %v18037_v61  ;;  %v5060_v47 = vcombine.low %v5041_v4, %v5057_v20  ;;  %v5061_v52 = vcombine.high %v5041_v4, %v5057_v20 }
 0x9f1   :  { %v15054_v1 = vpop.permute.xlu1 %4748  ;;  %v15056_v9 = vpop.permute.xlu0 %4752  ;;  %v5334_v35 = vcombine.high %v5308_v39, %v5316_v19  ;;  %v5341_v17 = vrot.slane %v5333_v46, %v18038_v34  ;;  %v5922_v59 = vrot.slane %v5915_v30, %v18037_v61  ;;  %v5364_v12 = vrot.slane %v5350_v37, %v18038_v34 }
 0x9f2   :  { %18423 = vst [vmem:[#allocation144_spill] sm:$0xff] %v15054_v1  ;;  %18424 = vst [vmem:[#allocation140_spill] sm:$0xff] %v15056_v9  ;;  %v18430_v1 = vld [vmem:[#allocation147_spill] sm:$0xff]  ;;  %v5930_v58 = vrot.slane %v5923_v25, %v18037_v61  ;;  %v5820_v49 = vcombine.high %v14546_v42, %v14583_v45  ;;  %v18440_v42 = vld [vmem:[#allocation60_spill] sm:$0xff] }
 0x9f3   :  { %5091 = vrot.lane.b32.xlu1 %v5058_v62, %s10681_s12  ;;  %5095 = vrot.lane.b32.xlu0 %v5059_v56, %s10682_s1  ;;  %v5907_v9 = vcombine.low %v18430_v1, %v18429_v38  ;;  %v5366_v56 = vcombine.high %v5341_v17, %v5357_v23  ;;  %v5365_v19 = vcombine.low %v5341_v17, %v5357_v23 }
 0x9f4   :  { %v5955_v1 = vcombine.low %v5930_v58, %v5938_v2  ;;  %v5348_v39 = vrot.slane %v5334_v35, %v18038_v34  ;;  %v5956_v25 = vcombine.high %v5930_v58, %v5938_v2  ;;  %v18438_v35 = vld [vmem:[#allocation166_spill] sm:$0xff]  ;;  %v5804_v2 = vcombine.high %v14528_v50, %v14564_v24 }
 0x9f5   :  { %v15069_v14 = vpop.permute.xlu1 %4756  ;;  %v15071_v10 = vpop.permute.xlu0 %4760  ;;  %v5914_v55 = vrot.slane %v5907_v9, %v18037_v61 }
 0x9f6   :  { %18431 = vst [vmem:[#allocation132_spill] sm:$0xff] %v15069_v14  ;;  %18432 = vst [vmem:[#allocation153_spill] sm:$0xff] %v15071_v10  ;;  %v5963_v46 = vrot.slane %v5955_v1, %v18038_v34  ;;  %v5368_v9 = vcombine.high %v5348_v39, %v5364_v12  ;;  %v5367_v38 = vcombine.low %v5348_v39, %v5364_v12  ;;  %v18441_v12 = vld [vmem:[#allocation56_spill] sm:$0xff] }
 0x9f7   :  { %5099 = vrot.lane.b32.xlu1 %v5060_v47, %s10683_s13  ;;  %5103 = vrot.lane.b32.xlu0 %v5061_v52, %s10684_s14  ;;  %v5939_v4 = vcombine.low %v5914_v55, %v5922_v59  ;;  %v5940_v23 = vcombine.high %v5914_v55, %v5922_v59  ;;  %v18437_v52 = vld [vmem:[#allocation169_spill] sm:$0xff]  ;;  %v5970_v58 = vrot.slane %v5956_v25, %v18038_v34  ;;  %v18464_v10 = vld [vmem:[#allocation36_spill] sm:$0xff] }
 0x9f8   :  { %v5788_v17 = vcombine.high %v18438_v35, %v18437_v52  ;;  %v5772_v59 = vcombine.high %v18441_v12, %v18440_v42  ;;  %v5834_v55 = vrot.slane %v5820_v49, %v18037_v61 }
 0x9f9   :  { %v15080_v62 = vpop.permute.xlu1 %4764  ;;  %v15082_v20 = vpop.permute.xlu0 %4768  ;;  %v5947_v47 = vrot.slane %v5939_v4, %v18038_v34  ;;  %v5954_v50 = vrot.slane %v5940_v23, %v18038_v34  ;;  %v18443_v4 = vld [vmem:[#allocation45_spill] sm:$0xff] }
 0x9fa   :  { %18433 = vst [vmem:[#allocation149_spill] sm:$0xff] %v15080_v62  ;;  %18434 = vst [vmem:[#allocation158_spill] sm:$0xff] %v15082_v20  ;;  %v5802_v24 = vrot.slane %v5788_v17, %v18037_v61  ;;  %v5836_v25 = vcombine.high %v18443_v4, %v14587_v53  ;;  %v5900_v17 = vcombine.high %v14625_v33, %v14618_v0  ;;  %v18461_v20 = vld [vmem:[#allocation85_spill] sm:$0xff] }
 0x9fb   :  { %5402 = vrot.lane.b32.xlu1 %v5366_v56, %s10682_s1  ;;  %5398 = vrot.lane.b32.xlu0 %v5365_v19, %s10681_s12  ;;  %v5972_v45 = vcombine.high %v5947_v47, %v5963_v46  ;;  %v5868_v56 = vcombine.high %v14599_v41, %v14602_v43  ;;  %v5971_v39 = vcombine.low %v5947_v47, %v5963_v46 }
 0x9fc   :  { %v5786_v41 = vrot.slane %v5772_v59, %v18037_v61  ;;  %v5973_v23 = vcombine.low %v5954_v50, %v5970_v58  ;;  %v5850_v53 = vrot.slane %v5836_v25, %v18038_v34 }
 0x9fd   :  { %v15088_v30 = vpop.permute.xlu1 %4772  ;;  %v15092_v37 = vpop.permute.xlu0 %5701  ;;  %v5882_v47 = vrot.slane %v5868_v56, %v18038_v34 }
 0x9fe   :  { %18435 = vst [vmem:[#allocation155_spill] sm:$0xff] %v15088_v30  ;;  %18436 = vst [vmem:[#allocation151_spill] sm:$0xff] %v15092_v37  ;;  %v5851_v52 = vcombine.low %v5786_v41, %v5802_v24  ;;  %v5852_v12 = vcombine.high %v5786_v41, %v5802_v24  ;;  %v18468_v37 = vld [vmem:[#allocation52_spill] sm:$0xff] }
 0x9ff   :  { %5410 = vrot.lane.b32.xlu1 %v5368_v9, %s10684_s14  ;;  %5406 = vrot.lane.b32.xlu0 %v5367_v38, %s10683_s13  ;;  %v5818_v9 = vrot.slane %v5804_v2, %v18037_v61  ;;  %v5974_v38 = vcombine.high %v5954_v50, %v5970_v58  ;;  %v5901_v42 = vcombine.low %v5850_v53, %v5882_v47 }
 0xa00   :  { %v5859_v59 = vrot.slane %v5851_v52, %v18038_v34  ;;  %v5866_v25 = vrot.slane %v5852_v12, %v18038_v34  ;;  %v18453_v52 = vld [vmem:[#allocation13_spill] sm:$0xff] }
 0xa01   :  { %v15102_v1 = vpop.permute.xlu1 %5697  ;;  %v15109_v19 = vpop.permute.xlu0 %5709  ;;  %v5883_v43 = vcombine.low %v5818_v9, %v5834_v55  ;;  %v5884_v2 = vcombine.high %v5818_v9, %v5834_v55 }
 0xa02   :  { %18439 = vst [vmem:[#allocation147_spill] sm:$0xff] %v15102_v1  ;;  %18442 = vst [vmem:[#allocation169_spill] sm:$0xff] %v15109_v19  ;;  %v18469_v1 = vld [vmem:[#allocation66_spill] sm:$0xff] }
 0xa03   :  { %6008 = vrot.lane.b32.xlu1 %v5972_v45, %s10682_s1  ;;  %6004 = vrot.lane.b32.xlu0 %v5971_v39, %s10681_s12  ;;  %v5891_v58 = vrot.slane %v5883_v43, %v18038_v34  ;;  %v5902_v39 = vcombine.high %v5850_v53, %v5882_v47  ;;  %v5898_v55 = vrot.slane %v5884_v2, %v18038_v34  ;;  %v18454_v2 = vld [vmem:[#allocation17_spill] sm:$0xff] }
 0xa05   :  { %v15118_v49 = vpop.permute.xlu1 %5705  ;;  %v15121_v46 = vpop.permute.xlu0 %5669  ;;  %v5903_v4 = vcombine.low %v5859_v59, %v5891_v58  ;;  %v5904_v24 = vcombine.high %v5859_v59, %v5891_v58  ;;  %v5905_v41 = vcombine.low %v5866_v25, %v5898_v55  ;;  %v18456_v59 = vld [vmem:[#allocation84_spill] sm:$0xff] }
 0xa06   :  { %18444 = vst [vmem:[#allocation166_spill] sm:$0xff] %v15118_v49  ;;  %18445 = vst [vmem:[#allocation60_spill] sm:$0xff] %v15121_v46  ;;  %v18465_v49 = vld [vmem:[#allocation30_spill] sm:$0xff] }
 0xa07   :  { %6016 = vrot.lane.b32.xlu1 %v5974_v38, %s10684_s14  ;;  %6012 = vrot.lane.b32.xlu0 %v5973_v23, %s10683_s13  ;;  %v5906_v23 = vcombine.high %v5866_v25, %v5898_v55  ;;  %v18458_v25 = vld [vmem:[#allocation53_spill] sm:$0xff] }
 0xa09   :  { %v15127_v35 = vpop.permute.xlu1 %5673  ;;  %v15131_v45 = vpop.permute.xlu0 %5677 }
 0xa0a   :  { %18446 = vst [vmem:[#allocation56_spill] sm:$0xff] %v15127_v35  ;;  %18447 = vst [vmem:[#allocation45_spill] sm:$0xff] %v15131_v45  ;;  %v18473_v45 = vld [vmem:[#allocation22_spill] sm:$0xff] }
 0xa0b   :  { %5976 = vrot.lane.b32.xlu1 %v5900_v17, %s10655_s21  ;;  %5980 = vrot.lane.b32.xlu0 %v5901_v42, %s10677_s30  ;;  %v18455_v42 = vld [vmem:[#allocation33_spill] sm:$0xff] }
 0xa0d   :  { %v15137_v56 = vpop.permute.xlu1 %5681  ;;  %v15139_v50 = vpop.permute.xlu0 %5685 }
 0xa0e   :  { %18448 = vst [vmem:[#allocation212_spill] sm:$0xff] %v15137_v56  ;;  %18449 = vst [vmem:[#allocation213_spill] sm:$0xff] %v15139_v50  ;;  %v18472_v56 = vld [vmem:[#allocation28_spill] sm:$0xff] }
 0xa0f   :  { %5984 = vrot.lane.b32.xlu1 %v5902_v39, %s10678_s2  ;;  %5988 = vrot.lane.b32.xlu0 %v5903_v4, %s10679_s10  ;;  %v18457_v39 = vld [vmem:[#allocation19_spill] sm:$0xff] }
 0xa11   :  { %v15145_v9 = vpop.permute.xlu1 %5689  ;;  %v15147_v38 = vpop.permute.xlu0 %5693 }
 0xa12   :  { %18450 = vst [vmem:[#allocation214_spill] sm:$0xff] %v15145_v9  ;;  %18451 = vst [vmem:[#allocation215_spill] sm:$0xff] %v15147_v38 }
 0xa13   :  { %5992 = vrot.lane.b32.xlu1 %v5904_v24, %s10680_s11  ;;  %5996 = vrot.lane.b32.xlu0 %v5905_v41, %s10671_s22 }
 0xa15   :  { %v15151_v43 = vpop.permute.xlu1 %10053  ;;  %v15153_v47 = vpop.permute.xlu0 %6973 }
 0xa16   :  { %18452 = vst [vmem:[#allocation216_spill] sm:$0xff] %v15151_v43 }
 0xa17   :  { %6000 = vrot.lane.b32.xlu1 %v5906_v23, %s10651_s17  ;;  %9750 = vrot.lane.b32.xlu0 %v18453_v52, %s10661_s27  ;;  %v18460_v23 = vld [vmem:[#allocation40_spill] sm:$0xff] }
 0xa19   :  { %v15158_v53 = vpop.permute.xlu1 %10061  ;;  %v15160_v17 = vpop.permute.xlu0 %10057 }
 0xa1b   :  { %9754 = vrot.lane.b32.xlu1 %v18454_v2, %s10661_s27  ;;  %9758 = vrot.lane.b32.xlu0 %v18455_v42, %s10661_s27  ;;  %v18477_v2 = vld [vmem:[#allocation67_spill] sm:$0xff] }
 0xa1d   :  { %v15166_v58 = vpop.permute.xlu1 %10069  ;;  %v15168_v12 = vpop.permute.xlu0 %10065 }
 0xa1f   :  { %9762 = vrot.lane.b32.xlu1 %v18456_v59, %s10661_s27  ;;  %9766 = vrot.lane.b32.xlu0 %v18457_v39, %s10661_s27  ;;  %v18478_v39 = vld [vmem:[#allocation100_spill] sm:$0xff] }
 0xa21   :  { %v15174_v4 = vpop.permute.xlu1 %10077  ;;  %v15176_v55 = vpop.permute.xlu0 %10073 }
 0xa23   :  { %9770 = vrot.lane.b32.xlu1 %v18458_v25, %s10661_s27  ;;  %9774 = vrot.lane.b32.xlu0 %v18350_v3, %s10661_s27 }
 0xa25   :  { %v15182_v24 = vpop.permute.xlu1 %8831  ;;  %v15184_v41 = vpop.permute.xlu0 %10081 }
 0xa26   :  { %18459 = vst [vmem:[#allocation217_spill] sm:$0xff] %v15182_v24 }
 0xa27   :  { %8225 = vrot.lane.b32.xlu1 %v18460_v23, %s10658_s24  ;;  %8229 = vrot.lane.b32.xlu0 %v18461_v20, %s10658_s24 }
 0xa29   :  { %v15190_v30 = vpop.permute.xlu1 %8839  ;;  %v15192_v62 = vpop.permute.xlu0 %8835 }
 0xa2a   :  { %18462 = vst [vmem:[#allocation40_spill] sm:$0xff] %v15190_v30  ;;  %18463 = vst [vmem:[#allocation85_spill] sm:$0xff] %v15192_v62  ;;  %v8879_v35 = vcombine.low %v15182_v24, %v15190_v30 }
 0xa2b   :  { %8233 = vrot.lane.b32.xlu1 %v18464_v10, %s10658_s24  ;;  %8237 = vrot.lane.b32.xlu0 %v18465_v49, %s10658_s24 }
 0xa2c   :  { %v15234_v24 = vrot.slane %v8879_v35, %v18037_v61  ;;  %v18485_v35 = vld [vmem:[#allocation108_spill] sm:$0xff] }
 0xa2d   :  { %v15198_v19 = vpop.permute.xlu1 %8847  ;;  %v15200_v14 = vpop.permute.xlu0 %8843 }
 0xa2e   :  { %18466 = vst [vmem:[#allocation36_spill] sm:$0xff] %v15198_v19  ;;  %18467 = vst [vmem:[#allocation30_spill] sm:$0xff] %v15200_v14  ;;  %v8895_v50 = vcombine.low %v15192_v62, %v15200_v14  ;;  %v18489_v62 = vld [vmem:[#allocation109_spill] sm:$0xff] }
 0xa2f   :  { %8241 = vrot.lane.b32.xlu1 %v18468_v37, %s10658_s24  ;;  %8245 = vrot.lane.b32.xlu0 %v18469_v1, %s10658_s24  ;;  %18479 = vst [vmem:[#allocation67_spill] sm:$0xff] %v15234_v24 }
 0xa30   :  { %v15225_v52 = vrot.slane %v8895_v50, %v18037_v61 }
 0xa31   :  { %v15206_v38 = vpop.permute.xlu1 %8855  ;;  %v15208_v9 = vpop.permute.xlu0 %8851 }
 0xa32   :  { %18470 = vst [vmem:[#allocation52_spill] sm:$0xff] %v15206_v38  ;;  %18471 = vst [vmem:[#allocation66_spill] sm:$0xff] %v15208_v9  ;;  %v8911_v46 = vcombine.low %v15198_v19, %v15206_v38  ;;  %v8943_v25 = vcombine.low %v15234_v24, %v15225_v52  ;;  %v18484_v19 = vld [vmem:[#allocation101_spill] sm:$0xff] }
 0xa33   :  { %8249 = vrot.lane.b32.xlu1 %v18472_v56, %s10658_s24  ;;  %8253 = vrot.lane.b32.xlu0 %v18473_v45, %s10658_s24  ;;  %18476 = vst [vmem:[#allocation218_spill] sm:$0xff] %v15225_v52 }
 0xa34   :  { %v15237_v30 = vrot.slane %v8911_v46, %v18037_v61  ;;  %v15264_v14 = vrot.slane %v8943_v25, %v18038_v34 }
 0xa35   :  { %v15220_v0 = vpop.permute.xlu1 %6638  ;;  %v15222_v33 = vpop.permute.xlu0 %8859 }
 0xa36   :  { %18474 = vst [vmem:[#allocation28_spill] sm:$0xff] %v15220_v0  ;;  %18475 = vst [vmem:[#allocation22_spill] sm:$0xff] %v15222_v33  ;;  %v8927_v42 = vcombine.low %v15208_v9, %v15222_v33  ;;  %v18491_v9 = vld [vmem:[#allocation104_spill] sm:$0xff]  ;;  %v18498_v0 = vld [vmem:[#allocation107_spill] sm:$0xff] }
 0xa37   :  { %6060 = vrot.lane.b32.xlu1 %v18477_v2, %s10658_s24  ;;  %9140 = vrot.lane.b32.xlu0 %v18478_v39, %s10658_s24  ;;  %18480 = vst [vmem:[#allocation219_spill] sm:$0xff] %v15237_v30  ;;  %18490 = vst [vmem:[#allocation226_spill] sm:$0xff] %v15264_v14 }
 0xa38   :  { %v15240_v3 = vrot.slane %v8927_v42, %v18037_v61 }
 0xa39   :  { %v15242_v50 = vpop.permute.xlu1 %6646  ;;  %v15244_v59 = vpop.permute.xlu0 %6642 }
 0xa3a   :  { %18481 = vst [vmem:[#allocation220_spill] sm:$0xff] %v15240_v3  ;;  %18482 = vst [vmem:[#allocation221_spill] sm:$0xff] %v15242_v50  ;;  %v8975_v2 = vcombine.low %v15237_v30, %v15240_v3  ;;  %v18495_v30 = vld [vmem:[#allocation106_spill] sm:$0xff] }
 0xa3b   :  { %18483 = vst [vmem:[#allocation222_spill] sm:$0xff] %v15244_v59  ;;  %9144 = vrot.lane.b32.xlu1 %v18484_v19, %s10658_s24  ;;  %9148 = vrot.lane.b32.xlu0 %v18485_v35, %s10658_s24 }
 0xa3c   :  { %v15257_v42 = vrot.slane %v8975_v2, %v18038_v34  ;;  %v18494_v2 = vld [vmem:[#allocation105_spill] sm:$0xff] }
 0xa3d   :  { %v15254_v46 = vpop.permute.xlu1 %6654  ;;  %v15259_v38 = vpop.permute.xlu0 %6650 }
 0xa3e   :  { %18486 = vst [vmem:[#allocation223_spill] sm:$0xff] %v15254_v46  ;;  %18487 = vst [vmem:[#allocation224_spill] sm:$0xff] %v15257_v42 }
 0xa3f   :  { %18488 = vst [vmem:[#allocation225_spill] sm:$0xff] %v15259_v38  ;;  %9152 = vrot.lane.b32.xlu1 %v18489_v62, %s10658_s24  ;;  %9156 = vrot.lane.b32.xlu0 %v18491_v9, %s10658_s24  ;;  %v18587_v38 = vld [vmem:[#allocation198_spill] sm:$0xff] }
 0xa41   :  { %v15268_v33 = vpop.permute.xlu1 %6662  ;;  %v15272_v52 = vpop.permute.xlu0 %6658 }
 0xa42   :  { %18492 = vst [vmem:[#allocation227_spill] sm:$0xff] %v15268_v33  ;;  %18493 = vst [vmem:[#allocation228_spill] sm:$0xff] %v15272_v52  ;;  %v18590_v52 = vld [vmem:[#allocation195_spill] sm:$0xff] }
 0xa43   :  { %9160 = vrot.lane.b32.xlu1 %v18494_v2, %s10658_s24  ;;  %9164 = vrot.lane.b32.xlu0 %v18495_v30, %s10658_s24 }
 0xa45   :  { %v15278_v3 = vpop.permute.xlu1 %9746  ;;  %v15280_v25 = vpop.permute.xlu0 %6666 }
 0xa46   :  { %18496 = vst [vmem:[#allocation229_spill] sm:$0xff] %v15278_v3  ;;  %18497 = vst [vmem:[#allocation230_spill] sm:$0xff] %v15280_v25  ;;  %v18591_v25 = vld [vmem:[#allocation193_spill] sm:$0xff] }
 0xa47   :  { %9168 = vrot.lane.b32.xlu1 %v18498_v0, %s10658_s24  ;;  %7918 = vrot.lane.b32.xlu0 %v18460_v23, %s10661_s27  ;;  %v6685_v14 = vcombine.high %v18591_v25, %v18590_v52 }
 0xa49   :  { %v15286_v50 = vpop.permute.xlu1 %5067  ;;  %v15288_v24 = vpop.permute.xlu0 %5063 }
 0xa4a   :  { %18499 = vst [vmem:[#allocation231_spill] sm:$0xff] %v15286_v50  ;;  %18500 = vst [vmem:[#allocation232_spill] sm:$0xff] %v15288_v24 }
 0xa4b   :  { %7922 = vrot.lane.b32.xlu1 %v18461_v20, %s10661_s27  ;;  %7926 = vrot.lane.b32.xlu0 %v18464_v10, %s10661_s27 }
 0xa4d   :  { %v15294_v46 = vpop.permute.xlu1 %5075  ;;  %v15296_v3 = vpop.permute.xlu0 %5071 }
 0xa4e   :  { %18501 = vst [vmem:[#allocation233_spill] sm:$0xff] %v15294_v46  ;;  %18502 = vst [vmem:[#allocation234_spill] sm:$0xff] %v15296_v3  ;;  %v18515_v46 = vld [vmem:[#allocation39_spill] sm:$0xff] }
 0xa4f   :  { %7930 = vrot.lane.b32.xlu1 %v18465_v49, %s10661_s27  ;;  %7934 = vrot.lane.b32.xlu0 %v18468_v37, %s10661_s27  ;;  %v18519_v3 = vld [vmem:[#allocation15_spill] sm:$0xff] }
 0xa51   :  { %v15302_v23 = vpop.permute.xlu1 %5083  ;;  %v15304_v50 = vpop.permute.xlu0 %5079 }
 0xa52   :  { %18503 = vst [vmem:[#allocation235_spill] sm:$0xff] %v15302_v23  ;;  %18504 = vst [vmem:[#allocation236_spill] sm:$0xff] %v15304_v50 }
 0xa53   :  { %7938 = vrot.lane.b32.xlu1 %v18469_v1, %s10661_s27  ;;  %7942 = vrot.lane.b32.xlu0 %v18472_v56, %s10661_s27 }
 0xa55   :  { %v15310_v10 = vpop.permute.xlu1 %5370  ;;  %v15312_v20 = vpop.permute.xlu0 %5087 }
 0xa56   :  { %18505 = vst [vmem:[#allocation237_spill] sm:$0xff] %v15310_v10  ;;  %18506 = vst [vmem:[#allocation238_spill] sm:$0xff] %v15312_v20 }
 0xa57   :  { %7946 = vrot.lane.b32.xlu1 %v18473_v45, %s10661_s27  ;;  %8833 = vrot.lane.b32.xlu0 %v18478_v39, %s10661_s27  ;;  %v18556_v39 = vld [vmem:[#allocation192_spill] sm:$0xff] }
 0xa59   :  { %v15318_v37 = vpop.permute.xlu1 %5378  ;;  %v15320_v49 = vpop.permute.xlu0 %5374 }
 0xa5a   :  { %18507 = vst [vmem:[#allocation239_spill] sm:$0xff] %v15318_v37  ;;  %18508 = vst [vmem:[#allocation240_spill] sm:$0xff] %v15320_v49  ;;  %v18523_v37 = vld [vmem:[#allocation23_spill] sm:$0xff] }
 0xa5b   :  { %8837 = vrot.lane.b32.xlu1 %v18484_v19, %s10661_s27  ;;  %8841 = vrot.lane.b32.xlu0 %v18485_v35, %s10661_s27  ;;  %v18527_v49 = vld [vmem:[#allocation31_spill] sm:$0xff]  ;;  %v18552_v19 = vld [vmem:[#allocation177_spill] sm:$0xff]  ;;  %v18557_v35 = vld [vmem:[#allocation190_spill] sm:$0xff] }
 0xa5d   :  { %v15326_v1 = vpop.permute.xlu1 %5386  ;;  %v15328_v56 = vpop.permute.xlu0 %5382 }
 0xa5e   :  { %18509 = vst [vmem:[#allocation241_spill] sm:$0xff] %v15326_v1  ;;  %18510 = vst [vmem:[#allocation242_spill] sm:$0xff] %v15328_v56 }
 0xa5f   :  { %8845 = vrot.lane.b32.xlu1 %v18489_v62, %s10661_s27  ;;  %8849 = vrot.lane.b32.xlu0 %v18491_v9, %s10661_s27 }
 0xa61   :  { %v15334_v45 = vpop.permute.xlu1 %5394  ;;  %v15336_v20 = vpop.permute.xlu0 %5390 }
 0xa62   :  { %18511 = vst [vmem:[#allocation243_spill] sm:$0xff] %v15334_v45  ;;  %18512 = vst [vmem:[#allocation244_spill] sm:$0xff] %v15336_v20  ;;  %v18518_v20 = vld [vmem:[#allocation34_spill] sm:$0xff] }
 0xa63   :  { %8853 = vrot.lane.b32.xlu1 %v18494_v2, %s10661_s27  ;;  %8857 = vrot.lane.b32.xlu0 %v18495_v30, %s10661_s27  ;;  %v18551_v30 = vld [vmem:[#allocation59_spill] sm:$0xff] }
 0xa65   :  { %v15342_v23 = vpop.permute.xlu1 %5091  ;;  %v15344_v50 = vpop.permute.xlu0 %5095 }
 0xa66   :  { %18513 = vst [vmem:[#allocation245_spill] sm:$0xff] %v15342_v23  ;;  %18514 = vst [vmem:[#allocation246_spill] sm:$0xff] %v15344_v50  ;;  %v18522_v50 = vld [vmem:[#allocation42_spill] sm:$0xff] }
 0xa67   :  { %8861 = vrot.lane.b32.xlu1 %v18498_v0, %s10661_s27  ;;  %8227 = vrot.lane.b32.xlu0 %v18515_v46, %s10658_s24 }
 0xa69   :  { %v15350_v1 = vpop.permute.xlu1 %5099  ;;  %v15352_v45 = vpop.permute.xlu0 %5103 }
 0xa6a   :  { %18516 = vst [vmem:[#allocation39_spill] sm:$0xff] %v15350_v1  ;;  %18517 = vst [vmem:[#allocation247_spill] sm:$0xff] %v15352_v45  ;;  %v18526_v45 = vld [vmem:[#allocation27_spill] sm:$0xff] }
 0xa6b   :  { %8231 = vrot.lane.b32.xlu1 %v18518_v20, %s10658_s24  ;;  %8235 = vrot.lane.b32.xlu0 %v18519_v3, %s10658_s24 }
 0xa6d   :  { %v15358_v56 = vpop.permute.xlu1 %5402  ;;  %v15360_v23 = vpop.permute.xlu0 %5398 }
 0xa6e   :  { %18520 = vst [vmem:[#allocation34_spill] sm:$0xff] %v15358_v56  ;;  %18521 = vst [vmem:[#allocation15_spill] sm:$0xff] %v15360_v23  ;;  %v18530_v23 = vld [vmem:[#allocation41_spill] sm:$0xff] }
 0xa6f   :  { %8239 = vrot.lane.b32.xlu1 %v18522_v50, %s10658_s24  ;;  %8243 = vrot.lane.b32.xlu0 %v18523_v37, %s10658_s24 }
 0xa71   :  { %v15366_v24 = vpop.permute.xlu1 %5410  ;;  %v15368_v1 = vpop.permute.xlu0 %5406 }
 0xa72   :  { %18524 = vst [vmem:[#allocation42_spill] sm:$0xff] %v15366_v24  ;;  %18525 = vst [vmem:[#allocation23_spill] sm:$0xff] %v15368_v1 }
 0xa73   :  { %8247 = vrot.lane.b32.xlu1 %v18526_v45, %s10658_s24  ;;  %8251 = vrot.lane.b32.xlu0 %v18527_v49, %s10658_s24 }
 0xa75   :  { %v15374_v10 = vpop.permute.xlu1 %6008  ;;  %v15376_v56 = vpop.permute.xlu0 %6004 }
 0xa76   :  { %18528 = vst [vmem:[#allocation27_spill] sm:$0xff] %v15374_v10  ;;  %18529 = vst [vmem:[#allocation31_spill] sm:$0xff] %v15376_v56 }
 0xa77   :  { %8255 = vrot.lane.b32.xlu1 %v18530_v23, %s10658_s24  ;;  %7920 = vrot.lane.b32.xlu0 %v18515_v46, %s10661_s27 }
 0xa79   :  { %v15382_v2 = vpop.permute.xlu1 %6016  ;;  %v15384_v24 = vpop.permute.xlu0 %6012 }
 0xa7a   :  { %18531 = vst [vmem:[#allocation41_spill] sm:$0xff] %v15382_v2  ;;  %18532 = vst [vmem:[#allocation248_spill] sm:$0xff] %v15384_v24  ;;  %v18536_v2 = vld [vmem:[#allocation183_spill] sm:$0xff]  ;;  %v18537_v24 = vld [vmem:[#allocation182_spill] sm:$0xff] }
 0xa7b   :  { %7924 = vrot.lane.b32.xlu1 %v18518_v20, %s10661_s27  ;;  %7928 = vrot.lane.b32.xlu0 %v18519_v3, %s10661_s27  ;;  %v7088_v56 = vcombine.high %v18537_v24, %v18536_v2  ;;  %v18539_v3 = vld [vmem:[#allocation179_spill] sm:$0xff]  ;;  %v18540_v20 = vld [vmem:[#allocation181_spill] sm:$0xff] }
 0xa7c   :  { %v18543_v24 = vld [vmem:[#allocation189_spill] sm:$0xff] }
 0xa7d   :  { %v15390_v1 = vpop.permute.xlu1 %5976  ;;  %v15392_v10 = vpop.permute.xlu0 %5980  ;;  %v7120_v2 = vcombine.high %v18543_v24, %v14680_v22  ;;  %v18563_v22 = vld [vmem:[#allocation121_spill] sm:$0xff] }
 0xa7e   :  { %18533 = vst [vmem:[#allocation249_spill] sm:$0xff] %v15390_v1  ;;  %18534 = vst [vmem:[#allocation250_spill] sm:$0xff] %v15392_v10  ;;  %v7056_v1 = vcombine.high %v18540_v20, %v18539_v3 }
 0xa7f   :  { %7932 = vrot.lane.b32.xlu1 %v18522_v50, %s10661_s27  ;;  %7936 = vrot.lane.b32.xlu0 %v18523_v37, %s10661_s27  ;;  %v10196_v50 = vcombine.high %v14724_v26, %v14727_v15  ;;  %v18544_v26 = vld [vmem:[#allocation178_spill] sm:$0xff]  ;;  %v18545_v15 = vld [vmem:[#allocation176_spill] sm:$0xff] }
 0xa80   :  { %v7040_v3 = vcombine.high %v18545_v15, %v18544_v26  ;;  %v18554_v26 = vld [vmem:[#allocation43_spill] sm:$0xff]  ;;  %v18555_v15 = vld [vmem:[#allocation10_spill] sm:$0xff] }
 0xa81   :  { %v15398_v46 = vpop.permute.xlu1 %5984  ;;  %v15402_v0 = vpop.permute.xlu0 %5988 }
 0xa82   :  { %18535 = vst [vmem:[#allocation251_spill] sm:$0xff] %v15398_v46  ;;  %18538 = vst [vmem:[#allocation183_spill] sm:$0xff] %v15402_v0  ;;  %v7102_v0 = vrot.slane %v7088_v56, %v18038_v34  ;;  %v10210_v56 = vrot.slane %v10196_v50, %v18038_v34  ;;  %v15444_v50 = vrot.slane %v7040_v3, %v18037_v61 }
 0xa83   :  { %7940 = vrot.lane.b32.xlu1 %v18526_v45, %s10661_s27  ;;  %7944 = vrot.lane.b32.xlu0 %v18527_v49, %s10661_s27  ;;  %v10164_v45 = vcombine.high %v14721_v51, %v14712_v57  ;;  %v7070_v49 = vrot.slane %v7056_v1, %v18038_v34  ;;  %v18550_v57 = vld [vmem:[#allocation173_spill] sm:$0xff] }
 0xa85   :  { %v15412_v37 = vpop.permute.xlu1 %5992  ;;  %v15414_v46 = vpop.permute.xlu0 %5996  ;;  %v7121_v51 = vcombine.low %v7070_v49, %v7102_v0  ;;  %v10178_v1 = vrot.slane %v10164_v45, %v18038_v34  ;;  %v18562_v45 = vld [vmem:[#allocation207_spill] sm:$0xff] }
 0xa86   :  { %18541 = vst [vmem:[#allocation182_spill] sm:$0xff] %v15412_v37  ;;  %18542 = vst [vmem:[#allocation179_spill] sm:$0xff] %v15414_v46  ;;  %v18547_v46 = vld [vmem:[#allocation196_spill] sm:$0xff]  ;;  %v18548_v37 = vld [vmem:[#allocation199_spill] sm:$0xff]  ;;  %v6813_v24 = vcombine.high %v18563_v22, %v18562_v45 }
 0xa87   :  { %7948 = vrot.lane.b32.xlu1 %v18530_v23, %s10661_s27  ;;  %7196 = vrot.lane.b32.xlu0 %v7120_v2, %s10655_s21  ;;  %v10228_v10 = vcombine.high %v18548_v37, %v18547_v46  ;;  %v7008_v23 = vcombine.high %v18551_v30, %v18550_v57  ;;  %v18553_v2 = vld [vmem:[#allocation174_spill] sm:$0xff]  ;;  %v10148_v46 = vcombine.high %v18557_v35, %v18556_v39  ;;  %v18566_v35 = vld [vmem:[#allocation191_spill] sm:$0xff]  ;;  %v18571_v22 = vld [vmem:[#allocation180_spill] sm:$0xff] }
 0xa88   :  { %v7024_v62 = vcombine.high %v18553_v2, %v18552_v19  ;;  %v10229_v30 = vcombine.low %v10178_v1, %v10210_v56  ;;  %v18559_v57 = vld [vmem:[#allocation206_spill] sm:$0xff]  ;;  %v18560_v19 = vld [vmem:[#allocation205_spill] sm:$0xff] }
 0xa89   :  { %v15427_v20 = vpop.permute.xlu1 %6000  ;;  %v15432_v9 = vpop.permute.xlu0 %9750  ;;  %v6781_v2 = vcombine.high %v18560_v19, %v18559_v57  ;;  %v18568_v19 = vld [vmem:[#allocation203_spill] sm:$0xff] }
 0xa8a   :  { %18546 = vst [vmem:[#allocation181_spill] sm:$0xff] %v15427_v20  ;;  %18549 = vst [vmem:[#allocation178_spill] sm:$0xff] %v15432_v9  ;;  %v6992_v20 = vcombine.high %v18555_v15, %v18554_v26  ;;  %v15457_v26 = vrot.slane %v7008_v23, %v18037_v61  ;;  %v15460_v3 = vrot.slane %v7024_v62, %v18037_v61  ;;  %v18565_v15 = vld [vmem:[#allocation184_spill] sm:$0xff]  ;;  %v18570_v23 = vld [vmem:[#allocation185_spill] sm:$0xff] }
 0xa8b   :  { %10304 = vrot.lane.b32.xlu1 %v10228_v10, %s10655_s21  ;;  %7200 = vrot.lane.b32.xlu0 %v7121_v51, %s10677_s30  ;;  %v18564_v51 = vld [vmem:[#allocation187_spill] sm:$0xff]  ;;  %v18567_v9 = vld [vmem:[#allocation188_spill] sm:$0xff]  ;;  %v10100_v33 = vcombine.high %v18571_v22, %v18570_v23 }
 0xa8c   :  { %v10116_v39 = vcombine.high %v18565_v15, %v18564_v51  ;;  %v15468_v57 = vrot.slane %v6992_v20, %v18037_v61  ;;  %v7103_v62 = vcombine.low %v15460_v3, %v15444_v50  ;;  %v15478_v51 = vrot.slane %v10148_v46, %v18037_v61 }
 0xa8d   :  { %v15448_v37 = vpop.permute.xlu1 %9754  ;;  %v15452_v10 = vpop.permute.xlu0 %9758  ;;  %v9889_v20 = vcombine.high %v14902_v31, %v14883_v48  ;;  %v15503_v31 = vrot.slane %v10100_v33, %v18037_v61 }
 0xa8e   :  { %18558 = vst [vmem:[#allocation176_spill] sm:$0xff] %v15448_v37  ;;  %18561 = vst [vmem:[#allocation173_spill] sm:$0xff] %v15452_v10  ;;  %v10132_v37 = vcombine.high %v18567_v9, %v18566_v35  ;;  %v18569_v10 = vld [vmem:[#allocation204_spill] sm:$0xff]  ;;  %v7071_v35 = vcombine.low %v15468_v57, %v15457_v26  ;;  %v15492_v22 = vrot.slane %v10116_v39, %v18037_v61 }
 0xa8f   :  { %10308 = vrot.lane.b32.xlu1 %v10229_v30, %s10677_s30  ;;  %v6749_v45 = vcombine.high %v18569_v10, %v18568_v19  ;;  %6889 = vrot.lane.b32.xlu0 %v6813_v24, %s10655_s21  ;;  %v7122_v30 = vcombine.high %v7070_v49, %v7102_v0  ;;  %v9921_v24 = vcombine.high %v14963_v6, %v14944_v60 }
 0xa90   :  { %v6795_v10 = vrot.slane %v6781_v2, %v18038_v34  ;;  %v15495_v46 = vrot.slane %v10132_v37, %v18037_v61  ;;  %v9857_v0 = vcombine.high %v14916_v36, %v14899_v28  ;;  %v10230_v39 = vcombine.high %v10178_v1, %v10210_v56 }
 0xa91   :  { %v15480_v9 = vpop.permute.xlu1 %9762  ;;  %v15484_v15 = vpop.permute.xlu0 %9766  ;;  %v6763_v48 = vrot.slane %v6749_v45, %v18038_v34  ;;  %v7111_v37 = vrot.slane %v7103_v62, %v18038_v34  ;;  %v9903_v28 = vrot.slane %v9889_v20, %v18038_v34  ;;  %v10179_v36 = vcombine.low %v15503_v31, %v15492_v22 }
 0xa92   :  { %18572 = vst [vmem:[#allocation59_spill] sm:$0xff] %v15480_v9  ;;  %18573 = vst [vmem:[#allocation177_spill] sm:$0xff] %v15484_v15  ;;  %v10211_v49 = vcombine.low %v15495_v46, %v15478_v51  ;;  %v7079_v33 = vrot.slane %v7071_v35, %v18038_v34  ;;  %v9871_v45 = vrot.slane %v9857_v0, %v18038_v34  ;;  %v18578_v35 = vld [vmem:[#allocation202_spill] sm:$0xff]  ;;  %v18584_v9 = vld [vmem:[#allocation197_spill] sm:$0xff] }
 0xa93   :  { %7204 = vrot.lane.b32.xlu1 %v7122_v30, %s10678_s2  ;;  %9997 = vrot.lane.b32.xlu0 %v9921_v24, %s10655_s21  ;;  %v6814_v23 = vcombine.low %v6763_v48, %v6795_v10  ;;  %v10187_v24 = vrot.slane %v10179_v36, %v18038_v34  ;;  %v18583_v15 = vld [vmem:[#allocation102_spill] sm:$0xff] }
 0xa94   :  { %v7123_v56 = vcombine.low %v7079_v33, %v7111_v37  ;;  %v15522_v1 = vrot.slane %v10211_v49, %v18038_v34  ;;  %v9922_v20 = vcombine.low %v9871_v45, %v9903_v28  ;;  %v18582_v49 = vld [vmem:[#allocation98_spill] sm:$0xff] }
 0xa95   :  { %v15507_v2 = vpop.permute.xlu1 %9770  ;;  %v15510_v19 = vpop.permute.xlu0 %9774 }
 0xa96   :  { %18574 = vst [vmem:[#allocation174_spill] sm:$0xff] %v15507_v2  ;;  %18575 = vst [vmem:[#allocation43_spill] sm:$0xff] %v15510_v19  ;;  %v10231_v0 = vcombine.low %v10187_v24, %v15522_v1  ;;  %v6506_v19 = vcombine.high %v18583_v15, %v18582_v49  ;;  %v18585_v2 = vld [vmem:[#allocation194_spill] sm:$0xff]  ;;  %v6815_v15 = vcombine.high %v6763_v48, %v6795_v10  ;;  %v18597_v48 = vld [vmem:[#allocation124_spill] sm:$0xff] }
 0xa97   :  { %10312 = vrot.lane.b32.xlu1 %v10230_v39, %s10678_s2  ;;  %6893 = vrot.lane.b32.xlu0 %v6814_v23, %s10677_s30  ;;  %v18579_v39 = vld [vmem:[#allocation200_spill] sm:$0xff]  ;;  %v6701_v59 = vcombine.high %v18585_v2, %v18584_v9  ;;  %v18593_v9 = vld [vmem:[#allocation91_spill] sm:$0xff]  ;;  %v18594_v2 = vld [vmem:[#allocation90_spill] sm:$0xff] }
 0xa98   :  { %v6733_v23 = vcombine.high %v18579_v39, %v18578_v35  ;;  %v18589_v35 = vld [vmem:[#allocation94_spill] sm:$0xff]  ;;  %v6474_v43 = vcombine.high %v18594_v2, %v18593_v9  ;;  %v9793_v9 = vcombine.high %v14780_v11, %v14803_v16  ;;  %v7072_v11 = vcombine.high %v15468_v57, %v15457_v26  ;;  %v18604_v57 = vld [vmem:[#allocation93_spill] sm:$0xff] }
 0xa99   :  { %v15519_v30 = vpop.permute.xlu1 %8225  ;;  %v15524_v62 = vpop.permute.xlu0 %8229 }
 0xa9a   :  { %18576 = vst [vmem:[#allocation10_spill] sm:$0xff] %v15519_v30  ;;  %18577 = vst [vmem:[#allocation192_spill] sm:$0xff] %v15524_v62  ;;  %v15549_v42 = vrot.slane %v6733_v23, %v18037_v61 }
 0xa9b   :  { %7208 = vrot.lane.b32.xlu1 %v7123_v56, %s10679_s10  ;;  %10001 = vrot.lane.b32.xlu0 %v9922_v20, %s10677_s30  ;;  %v18586_v56 = vld [vmem:[#allocation201_spill] sm:$0xff]  ;;  %v18588_v20 = vld [vmem:[#allocation95_spill] sm:$0xff] }
 0xa9c   :  { %v6717_v36 = vcombine.high %v18587_v38, %v18586_v56  ;;  %v6442_v39 = vcombine.high %v18589_v35, %v18588_v20  ;;  %v9841_v38 = vcombine.high %v14839_v40, %v14855_v32  ;;  %v15560_v56 = vrot.slane %v6701_v59, %v18037_v61  ;;  %v18596_v40 = vld [vmem:[#allocation208_spill] sm:$0xff]  ;;  %v18598_v59 = vld [vmem:[#allocation99_spill] sm:$0xff] }
 0xa9d   :  { %v15531_v60 = vpop.permute.xlu1 %8233  ;;  %v15534_v6 = vpop.permute.xlu0 %8237  ;;  %v9809_v32 = vcombine.high %v14797_v63, %v14821_v5  ;;  %v7104_v20 = vcombine.high %v15460_v3, %v15444_v50  ;;  %v15583_v35 = vrot.slane %v6685_v14, %v18037_v61  ;;  %v9923_v14 = vcombine.high %v9871_v45, %v9903_v28 }
 0xa9e   :  { %18580 = vst [vmem:[#allocation190_spill] sm:$0xff] %v15531_v60  ;;  %18581 = vst [vmem:[#allocation206_spill] sm:$0xff] %v15534_v6  ;;  %v15563_v52 = vrot.slane %v6717_v36, %v18037_v61  ;;  %v8273_v25 = vcombine.low %v15519_v30, %v15531_v60  ;;  %v8289_v10 = vcombine.low %v15524_v62, %v15534_v6  ;;  %v18615_v30 = vld [vmem:[#allocation38_spill] sm:$0xff] }
 0xa9f   :  { %10316 = vrot.lane.b32.xlu1 %v10231_v0, %s10679_s10  ;;  %6582 = vrot.lane.b32.xlu0 %v6506_v19, %s10655_s21  ;;  %v7124_v19 = vcombine.high %v7079_v33, %v7111_v37  ;;  %v9825_v37 = vcombine.high %v18597_v48, %v18596_v40  ;;  %v18599_v33 = vld [vmem:[#allocation103_spill] sm:$0xff]  ;;  %v15578_v36 = vrot.slane %v6442_v39, %v18038_v34  ;;  %v18616_v60 = vld [vmem:[#allocation82_spill] sm:$0xff] }
 0xaa0   :  { %v9614_v23 = vcombine.high %v18599_v33, %v18598_v59  ;;  %v6796_v63 = vcombine.low %v15563_v52, %v15549_v42  ;;  %v15595_v39 = vrot.slane %v9841_v38, %v18037_v61  ;;  %v6764_v2 = vcombine.low %v15583_v35, %v15560_v56 }
 0xaa1   :  { %v15551_v49 = vpop.permute.xlu1 %8241  ;;  %v15557_v0 = vpop.permute.xlu0 %8245  ;;  %v15615_v38 = vrot.slane %v9809_v32, %v18037_v61  ;;  %v15618_v28 = vrot.slane %v9825_v37, %v18037_v61  ;;  %v10232_v40 = vcombine.high %v10187_v24, %v15522_v1  ;;  %v18605_v32 = vld [vmem:[#allocation92_spill] sm:$0xff]  ;;  %v15634_v37 = vrot.slane %v9793_v9, %v18037_v61  ;;  %v18607_v9 = vld [vmem:[#allocation97_spill] sm:$0xff] }
 0xaa2   :  { %18592 = vst [vmem:[#allocation205_spill] sm:$0xff] %v15551_v49  ;;  %18595 = vst [vmem:[#allocation187_spill] sm:$0xff] %v15557_v0  ;;  %v6804_v26 = vrot.slane %v6796_v63, %v18038_v34  ;;  %v9582_v48 = vcombine.high %v18605_v32, %v18604_v57  ;;  %v6772_v63 = vrot.slane %v6764_v2, %v18038_v34  ;;  %v18608_v57 = vld [vmem:[#allocation96_spill] sm:$0xff] }
 0xaa3   :  { %6897 = vrot.lane.b32.xlu1 %v6815_v15, %s10678_s2  ;;  %7212 = vrot.lane.b32.xlu0 %v7124_v19, %s10680_s11  ;;  %v15590_v15 = vrot.slane %v6474_v43, %v18038_v34  ;;  %v15604_v19 = vrot.slane %v8273_v25, %v18037_v61  ;;  %v15607_v43 = vrot.slane %v8289_v10, %v18037_v61 }
 0xaa4   :  { %v9550_v32 = vcombine.high %v18608_v57, %v18607_v9  ;;  %v9872_v59 = vcombine.low %v15634_v37, %v15615_v38  ;;  %v10212_v33 = vcombine.high %v15495_v46, %v15478_v51  ;;  %v6816_v6 = vcombine.low %v6772_v63, %v6804_v26 }
 0xaa5   :  { %v15587_v5 = vpop.permute.xlu1 %8249  ;;  %v15599_v3 = vpop.permute.xlu0 %8253  ;;  %18602 = vst [vmem:[#allocation188_spill] sm:$0xff] %v15604_v19  ;;  %18603 = vst [vmem:[#allocation203_spill] sm:$0xff] %v15607_v43  ;;  %v8337_v1 = vcombine.low %v15604_v19, %v15607_v43  ;;  %v18621_v19 = vld [vmem:[#allocation83_spill] sm:$0xff]  ;;  %v18624_v43 = vld [vmem:[#allocation54_spill] sm:$0xff] }
 0xaa6   :  { %18600 = vst [vmem:[#allocation184_spill] sm:$0xff] %v15587_v5  ;;  %v8305_v50 = vcombine.low %v15551_v49, %v15587_v5  ;;  %18601 = vst [vmem:[#allocation191_spill] sm:$0xff] %v15599_v3  ;;  %v8321_v16 = vcombine.low %v15557_v0, %v15599_v3  ;;  %v15677_v51 = vrot.slane %v9550_v32, %v18038_v34  ;;  %v18617_v0 = vld [vmem:[#allocation18_spill] sm:$0xff] }
 0xaa7   :  { %9690 = vrot.lane.b32.xlu1 %v9614_v23, %s10655_s21  ;;  %10005 = vrot.lane.b32.xlu0 %v9923_v14, %s10678_s2  ;;  %v9904_v23 = vcombine.low %v15618_v28, %v15595_v39  ;;  %v6507_v14 = vcombine.low %v15578_v36, %v15590_v15  ;;  %v15680_v46 = vrot.slane %v8337_v1, %v18038_v34  ;;  %v18620_v49 = vld [vmem:[#allocation14_spill] sm:$0xff] }
 0xaa8   :  { %v15621_v45 = vrot.slane %v8305_v50, %v18037_v61  ;;  %v15625_v25 = vrot.slane %v8321_v16, %v18037_v61  ;;  %v15643_v16 = vrot.slane %v7104_v20, %v18038_v34  ;;  %v7086_v20 = vrot.slane %v7072_v11, %v18038_v34 }
 0xaa9   :  { %v15627_v10 = vpop.permute.xlu1 %6060  ;;  %v15638_v50 = vpop.permute.xlu0 %9140  ;;  %v10180_v11 = vcombine.high %v15503_v31, %v15492_v22  ;;  %18612 = vst [vmem:[#allocation200_spill] sm:$0xff] %v15680_v46  ;;  %v15691_v22 = vrot.slane %v10212_v33, %v18038_v34 }
 0xaaa   :  { %18606 = vst [vmem:[#allocation204_spill] sm:$0xff] %v15638_v50  ;;  %v8369_v24 = vcombine.low %v15621_v45, %v15625_v25  ;;  %v7125_v57 = vcombine.low %v7086_v20, %v15643_v16 }
 0xaab   :  { %10320 = vrot.lane.b32.xlu1 %v10232_v40, %s10680_s11  ;;  %6586 = vrot.lane.b32.xlu0 %v6507_v14, %s10677_s30  ;;  %v15662_v40 = vrot.slane %v9582_v48, %v18038_v34  ;;  %v15671_v14 = vrot.slane %v9904_v23, %v18038_v34  ;;  %v15684_v48 = vrot.slane %v9872_v59, %v18038_v34 }
 0xaac   :  { %v15665_v2 = vrot.slane %v8369_v24, %v18038_v34  ;;  %v15701_v59 = vrot.slane %v10180_v11, %v18038_v34  ;;  %v18618_v11 = vld [vmem:[#allocation26_spill] sm:$0xff] }
 0xaad   :  { %v15659_v62 = vpop.permute.xlu1 %9144  ;;  %v15667_v9 = vpop.permute.xlu0 %9148  ;;  %v9615_v23 = vcombine.low %v15677_v51, %v15662_v40  ;;  %v9924_v1 = vcombine.low %v15684_v48, %v15671_v14  ;;  %v6426_v3 = vcombine.high %v18618_v11, %v18617_v0  ;;  %v18626_v0 = vld [vmem:[#allocation68_spill] sm:$0xff] }
 0xaae   :  { %18609 = vst [vmem:[#allocation185_spill] sm:$0xff] %v15659_v62  ;;  %18610 = vst [vmem:[#allocation180_spill] sm:$0xff] %v15665_v2  ;;  %v10233_v33 = vcombine.low %v15701_v59, %v15691_v22  ;;  %v18627_v11 = vld [vmem:[#allocation24_spill] sm:$0xff]  ;;  %v18629_v62 = vld [vmem:[#allocation11_spill] sm:$0xff] }
 0xaaf   :  { %18611 = vst [vmem:[#allocation202_spill] sm:$0xff] %v15667_v9  ;;  %6901 = vrot.lane.b32.xlu1 %v6816_v6, %s10679_s10  ;;  %7216 = vrot.lane.b32.xlu0 %v7125_v57, %s10671_s22  ;;  %v6207_v6 = vcombine.high %v14966_v21, %v14947_v54  ;;  %v6508_v9 = vcombine.high %v15578_v36, %v15590_v15  ;;  %v18622_v54 = vld [vmem:[#allocation63_spill] sm:$0xff]  ;;  %v18631_v15 = vld [vmem:[#allocation8_spill] sm:$0xff] }
 0xab0   :  { %v6394_v21 = vcombine.high %v18622_v54, %v18621_v19  ;;  %v15739_v36 = vrot.slane %v6426_v3, %v18037_v61  ;;  %v18630_v54 = vld [vmem:[#allocation37_spill] sm:$0xff] }
 0xab1   :  { %v15686_v24 = vpop.permute.xlu1 %9152  ;;  %v15695_v31 = vpop.permute.xlu0 %9156  ;;  %v9534_v19 = vcombine.high %v18631_v15, %v18630_v54  ;;  %v18640_v15 = vld [vmem:[#allocation160_spill] sm:$0xff] }
 0xab2   :  { %18613 = vst [vmem:[#allocation197_spill] sm:$0xff] %v15695_v31 }
 0xab3   :  { %9694 = vrot.lane.b32.xlu1 %v9615_v23, %s10677_s30  ;;  %10009 = vrot.lane.b32.xlu0 %v9924_v1, %s10679_s10  ;;  %v6410_v23 = vcombine.high %v18616_v60, %v18615_v30  ;;  %v18619_v1 = vld [vmem:[#allocation35_spill] sm:$0xff]  ;;  %v6817_v30 = vcombine.high %v6772_v63, %v6804_v26  ;;  %v18632_v26 = vld [vmem:[#allocation165_spill] sm:$0xff] }
 0xab4   :  { %v6378_v5 = vcombine.high %v18620_v49, %v18619_v1  ;;  %v7151_v63 = vcombine.low %v18632_v26, %v15153_v47  ;;  %v18641_v26 = vld [vmem:[#allocation159_spill] sm:$0xff] }
 0xab5   :  { %v15704_v32 = vpop.permute.xlu1 %9160  ;;  %v15708_v57 = vpop.permute.xlu0 %9164  ;;  %v15736_v1 = vrot.slane %v6410_v23, %v18037_v61  ;;  %v18634_v23 = vld [vmem:[#allocation123_spill] sm:$0xff] }
 0xab6   :  { %18614 = vst [vmem:[#allocation194_spill] sm:$0xff] %v15708_v57  ;;  %v18628_v57 = vld [vmem:[#allocation9_spill] sm:$0xff] }
 0xab7   :  { %10324 = vrot.lane.b32.xlu1 %v10233_v33, %s10671_s22  ;;  %6283 = vrot.lane.b32.xlu0 %v6207_v6, %s10655_s21  ;;  %v18623_v33 = vld [vmem:[#allocation80_spill] sm:$0xff]  ;;  %v9502_v6 = vcombine.high %v18627_v11, %v18626_v0  ;;  %v9518_v49 = vcombine.high %v18629_v62, %v18628_v57  ;;  %v15753_v57 = vrot.slane %v6394_v21, %v18037_v61  ;;  %v18637_v21 = vld [vmem:[#allocation161_spill] sm:$0xff] }
 0xab8   :  { %v9486_v31 = vcombine.high %v18624_v43, %v18623_v33  ;;  %v15745_v43 = vrot.slane %v6378_v5, %v18037_v61  ;;  %v6175_v33 = vcombine.high %v18634_v23, %v14887_v18  ;;  %v9315_v5 = vcombine.high %v15041_v13, %v15036_v8  ;;  %v18638_v11 = vld [vmem:[#allocation164_spill] sm:$0xff]  ;;  %v18642_v8 = vld [vmem:[#allocation58_spill] sm:$0xff] }
 0xab9   :  { %v15720_v50 = vpop.permute.xlu1 %9168  ;;  %v15728_v60 = vpop.permute.xlu0 %7918  ;;  %v15765_v47 = vrot.slane %v9502_v6, %v18037_v61  ;;  %v15768_v0 = vrot.slane %v9518_v49, %v18037_v61  ;;  %v15776_v18 = vrot.slane %v9534_v19, %v18037_v61  ;;  %v7127_v23 = vcombine.low %v18641_v26, %v18640_v15  ;;  %v18643_v6 = vld [vmem:[#allocation72_spill] sm:$0xff] }
 0xaba   :  { %18625 = vst [vmem:[#allocation201_spill] sm:$0xff] %v15728_v60  ;;  %v15756_v3 = vrot.slane %v9486_v31, %v18037_v61  ;;  %v18639_v31 = vld [vmem:[#allocation162_spill] sm:$0xff]  ;;  %v6143_v13 = vcombine.high %v18643_v6, %v18642_v8  ;;  %v6489_v49 = vcombine.low %v15736_v1, %v15739_v36  ;;  %v9616_v19 = vcombine.high %v15677_v51, %v15662_v40 }
 0xabb   :  { %6590 = vrot.lane.b32.xlu1 %v6508_v9, %s10678_s2  ;;  %6905 = vrot.lane.b32.xlu0 %v6817_v30, %s10680_s11  ;;  %v7126_v9 = vcombine.high %v7086_v20, %v15643_v16  ;;  %v18636_v16 = vld [vmem:[#allocation163_spill] sm:$0xff]  ;;  %v7143_v54 = vcombine.low %v18639_v31, %v18638_v11  ;;  %v9925_v8 = vcombine.high %v15684_v48, %v15671_v14 }
 0xabc   :  { %v7135_v20 = vcombine.low %v18637_v21, %v18636_v16  ;;  %v6797_v16 = vcombine.high %v15563_v52, %v15549_v42  ;;  %v15788_v21 = vrot.slane %v7151_v63, %v18037_v61  ;;  %v6457_v31 = vcombine.low %v15745_v43, %v15753_v57 }
 0xabd   :  { %v15749_v62 = vpop.permute.xlu1 %7922  ;;  %v15760_v30 = vpop.permute.xlu0 %7926  ;;  %v15807_v52 = vrot.slane %v7143_v54, %v18037_v61  ;;  %v6765_v40 = vcombine.high %v15583_v35, %v15560_v56  ;;  %v9565_v14 = vcombine.low %v15756_v3, %v15765_v47  ;;  %v15815_v51 = vrot.slane %v7127_v23, %v18037_v61 }
 0xabe   :  { %18633 = vst [vmem:[#allocation198_spill] sm:$0xff] %v15749_v62  ;;  %18635 = vst [vmem:[#allocation95_spill] sm:$0xff] %v15760_v30  ;;  %v15804_v42 = vrot.slane %v7135_v20, %v18037_v61  ;;  %v15819_v48 = vrot.slane %v6143_v13, %v18038_v34  ;;  %v15822_v63 = vrot.slane %v6489_v49, %v18038_v34 }
 0xabf   :  { %7220 = vrot.lane.b32.xlu1 %v7126_v9, %s10651_s17  ;;  %9391 = vrot.lane.b32.xlu0 %v9315_v5, %s10655_s21  ;;  %v15799_v5 = vrot.slane %v6175_v33, %v18038_v34  ;;  %v9597_v33 = vcombine.low %v15768_v0, %v15776_v18  ;;  %v7175_v56 = vcombine.low %v15807_v52, %v15788_v21 }
 0xac0   :  { %v10259_v35 = vcombine.low %v15176_v55, %v15184_v41  ;;  %v10234_v54 = vcombine.high %v15701_v59, %v15691_v22  ;;  %v15835_v13 = vrot.slane %v6797_v16, %v18038_v34  ;;  %v9283_v15 = vcombine.high %v15004_v7, %v15012_v44 }
 0xac1   :  { %v15790_v9 = vpop.permute.xlu1 %7930  ;;  %v15794_v11 = vpop.permute.xlu0 %7934  ;;  %v6208_v6 = vcombine.low %v15819_v48, %v15799_v5  ;;  %v15846_v55 = vrot.slane %v6457_v31, %v18038_v34  ;;  %v7159_v41 = vcombine.low %v15815_v51, %v15804_v42  ;;  %v10243_v22 = vcombine.low %v15160_v17, %v15168_v12  ;;  %v18648_v12 = vld [vmem:[#allocation216_spill] sm:$0xff] }
 0xac2   :  { %18644 = vst [vmem:[#allocation94_spill] sm:$0xff] %v15790_v9  ;;  %18645 = vst [vmem:[#allocation195_spill] sm:$0xff] %v15794_v11  ;;  %v7982_v26 = vcombine.low %v15749_v62, %v15790_v9  ;;  %v10251_v7 = vcombine.low %v15166_v58, %v15174_v4  ;;  %v15856_v44 = vrot.slane %v6765_v40, %v18038_v34 }
 0xac3   :  { %9698 = vrot.lane.b32.xlu1 %v9616_v19, %s10678_s2  ;;  %10013 = vrot.lane.b32.xlu0 %v9925_v8, %s10680_s11  ;;  %v9251_v59 = vcombine.high %v14989_v27, %v14992_v29  ;;  %v7966_v49 = vcombine.low %v15728_v60, %v15760_v30  ;;  %v6509_v17 = vcombine.low %v15846_v55, %v15822_v63 }
 0xac4   :  { %v15868_v58 = vrot.slane %v7175_v56, %v18038_v34  ;;  %v10235_v4 = vcombine.low %v18648_v12, %v15158_v53  ;;  %v15873_v19 = vrot.slane %v10259_v35, %v18037_v61  ;;  %v6818_v29 = vcombine.low %v15856_v44, %v15835_v13 }
 0xac5   :  { %v15830_v20 = vpop.permute.xlu1 %7938  ;;  %v15841_v23 = vpop.permute.xlu0 %7942  ;;  %v9905_v8 = vcombine.high %v15618_v28, %v15595_v39  ;;  %v15882_v31 = vrot.slane %v7982_v26, %v18037_v61  ;;  %v15889_v53 = vrot.slane %v9283_v15, %v18038_v34  ;;  %v7167_v35 = vrot.slane %v7159_v41, %v18038_v34 }
 0xac6   :  { %18646 = vst [vmem:[#allocation193_spill] sm:$0xff] %v15830_v20  ;;  %18647 = vst [vmem:[#allocation91_spill] sm:$0xff] %v15841_v23  ;;  %v7998_v16 = vcombine.low %v15794_v11, %v15841_v23  ;;  %v15898_v39 = vrot.slane %v10251_v7, %v18037_v61  ;;  %v15902_v28 = vrot.slane %v7966_v49, %v18037_v61 }
 0xac7   :  { %10328 = vrot.lane.b32.xlu1 %v10234_v54, %s10651_s17  ;;  %6287 = vrot.lane.b32.xlu0 %v6208_v6, %s10677_s30  ;;  %v9873_v54 = vcombine.high %v15634_v37, %v15615_v38  ;;  %v15895_v6 = vrot.slane %v10243_v22, %v18037_v61  ;;  %v15912_v38 = vrot.slane %v9251_v59, %v18038_v34 }
 0xac8   :  { %v15905_v26 = vrot.slane %v7998_v16, %v18037_v61  ;;  %v15915_v37 = vrot.slane %v10235_v4, %v18037_v61  ;;  %v10283_v41 = vcombine.low %v15898_v39, %v15873_v19  ;;  %v7191_v7 = vcombine.low %v7167_v35, %v15868_v58 }
 0xac9   :  { %v15875_v27 = vpop.permute.xlu1 %7946  ;;  %v15886_v56 = vpop.permute.xlu0 %8833  ;;  %v15923_v49 = vrot.slane %v9597_v33, %v18038_v34  ;;  %v8030_v16 = vcombine.low %v15902_v28, %v15882_v31  ;;  %v9316_v12 = vcombine.low %v15912_v38, %v15889_v53  ;;  %v15934_v4 = vrot.slane %v9905_v8, %v18038_v34 }
 0xaca   :  { %18649 = vst [vmem:[#allocation90_spill] sm:$0xff] %v15875_v27  ;;  %v8014_v40 = vcombine.low %v15830_v20, %v15875_v27  ;;  %18650 = vst [vmem:[#allocation208_spill] sm:$0xff] %v15886_v56  ;;  %v15940_v33 = vrot.slane %v9565_v14, %v18038_v34  ;;  %v15950_v30 = vrot.slane %v10283_v41, %v18038_v34  ;;  %v18665_v27 = vld [vmem:[#allocation65_spill] sm:$0xff] }
 0xacb   :  { %6594 = vrot.lane.b32.xlu1 %v6509_v17, %s10679_s10  ;;  %6909 = vrot.lane.b32.xlu0 %v6818_v29, %s10671_s22  ;;  %v10267_v29 = vcombine.low %v15915_v37, %v15895_v6  ;;  %v7176_v62 = vcombine.high %v15807_v52, %v15788_v21  ;;  %v6510_v41 = vcombine.high %v15846_v55, %v15822_v63 }
 0xacc   :  { %v15908_v15 = vrot.slane %v8014_v40, %v18037_v61  ;;  %v15944_v40 = vrot.slane %v9873_v54, %v18038_v34  ;;  %v9617_v11 = vcombine.low %v15940_v33, %v15923_v49  ;;  %v6819_v52 = vcombine.high %v15856_v44, %v15835_v13 }
 0xacd   :  { %v15919_v22 = vpop.permute.xlu1 %8837  ;;  %v15929_v17 = vpop.permute.xlu0 %8841  ;;  %v15964_v54 = vrot.slane %v10267_v29, %v18038_v34  ;;  %v6209_v29 = vcombine.high %v15819_v48, %v15799_v5  ;;  %v7190_v9 = vrot.slane %v7176_v62, %v18038_v34  ;;  %v18654_v62 = vld [vmem:[#allocation64_spill] sm:$0xff] }
 0xace   :  { %v8062_v59 = vcombine.low %v15905_v26, %v15908_v15  ;;  %v9926_v14 = vcombine.low %v15944_v40, %v15934_v4 }
 0xacf   :  { %7224 = vrot.lane.b32.xlu1 %v7191_v7, %s10681_s12  ;;  %9395 = vrot.lane.b32.xlu0 %v9316_v12, %s10677_s30  ;;  %v15961_v12 = vrot.slane %v8030_v16, %v18038_v34  ;;  %v10299_v23 = vcombine.low %v15964_v54, %v15950_v30 }
 0xad0   :  { %v15947_v60 = vrot.slane %v8062_v59, %v18038_v34 }
 0xad1   :  { %v15952_v8 = vpop.permute.xlu1 %8845  ;;  %v15956_v7 = vpop.permute.xlu0 %8849 }
 0xad3   :  { %9702 = vrot.lane.b32.xlu1 %v9617_v11, %s10679_s10  ;;  %10017 = vrot.lane.b32.xlu0 %v9926_v14, %s10671_s22  ;;  %v7160_v11 = vcombine.high %v15815_v51, %v15804_v42  ;;  %v7192_v51 = vcombine.high %v7167_v35, %v15868_v58  ;;  %v18662_v35 = vld [vmem:[#allocation224_spill] sm:$0xff] }
 0xad5   :  { %v15970_v59 = vpop.permute.xlu1 %8853  ;;  %v15976_v16 = vpop.permute.xlu0 %8857  ;;  %v7174_v5 = vrot.slane %v7160_v11, %v18038_v34 }
 0xad7   :  { %10332 = vrot.lane.b32.xlu1 %v10299_v23, %s10681_s12  ;;  %6291 = vrot.lane.b32.xlu0 %v6209_v29, %s10678_s2  ;;  %v7193_v63 = vcombine.low %v7174_v5, %v7190_v9  ;;  %v18655_v23 = vld [vmem:[#allocation21_spill] sm:$0xff]  ;;  %v7194_v44 = vcombine.high %v7174_v5, %v7190_v9  ;;  %v18658_v29 = vld [vmem:[#allocation167_spill] sm:$0xff]  ;;  %v10284_v9 = vcombine.high %v15898_v39, %v15873_v19  ;;  %v18666_v5 = vld [vmem:[#allocation230_spill] sm:$0xff] }
 0xad8   :  { %v6127_v55 = vcombine.high %v18655_v23, %v18654_v62 }
 0xad9   :  { %v15984_v14 = vpop.permute.xlu1 %8861  ;;  %v15989_v21 = vpop.permute.xlu0 %8227 }
 0xada   :  { %18651 = vst [vmem:[#allocation124_spill] sm:$0xff] %v15989_v21  ;;  %v18660_v21 = vld [vmem:[#allocation171_spill] sm:$0xff] }
 0xadb   :  { %6598 = vrot.lane.b32.xlu1 %v6510_v41, %s10680_s11  ;;  %6913 = vrot.lane.b32.xlu0 %v6819_v52, %s10651_s17  ;;  %v18657_v41 = vld [vmem:[#allocation170_spill] sm:$0xff]  ;;  %v18659_v52 = vld [vmem:[#allocation87_spill] sm:$0xff] }
 0xadc   :  { %v6095_v11 = vcombine.high %v18658_v29, %v18657_v41  ;;  %v9317_v41 = vcombine.high %v15912_v38, %v15889_v53  ;;  %v18670_v29 = vld [vmem:[#allocation225_spill] sm:$0xff]  ;;  %v18672_v38 = vld [vmem:[#allocation227_spill] sm:$0xff] }
 0xadd   :  { %v15996_v42 = vpop.permute.xlu1 %8231  ;;  %v15999_v48 = vpop.permute.xlu0 %8235 }
 0xade   :  { %18652 = vst [vmem:[#allocation93_spill] sm:$0xff] %v15996_v42  ;;  %18653 = vst [vmem:[#allocation92_spill] sm:$0xff] %v15999_v48  ;;  %v6111_v42 = vcombine.high %v18660_v21, %v18659_v52  ;;  %v18663_v48 = vld [vmem:[#allocation226_spill] sm:$0xff]  ;;  %v18667_v21 = vld [vmem:[#allocation228_spill] sm:$0xff] }
 0xadf   :  { %7228 = vrot.lane.b32.xlu1 %v7192_v51, %s10682_s1  ;;  %7232 = vrot.lane.b32.xlu0 %v7193_v63, %s10683_s13  ;;  %v9008_v20 = vcombine.high %v18663_v48, %v18662_v35  ;;  %v18664_v51 = vld [vmem:[#allocation168_spill] sm:$0xff]  ;;  %v16019_v63 = vrot.slane %v6127_v55, %v18037_v61  ;;  %v6844_v62 = vcombine.low %v18667_v21, %v18666_v5  ;;  %v18671_v52 = vld [vmem:[#allocation222_spill] sm:$0xff] }
 0xae0   :  { %v6079_v56 = vcombine.high %v18665_v27, %v18664_v51  ;;  %v16031_v27 = vrot.slane %v6095_v11, %v18037_v61  ;;  %v10268_v55 = vcombine.high %v15915_v37, %v15895_v6  ;;  %v6828_v53 = vcombine.low %v18671_v52, %v18670_v29  ;;  %v18673_v11 = vld [vmem:[#allocation223_spill] sm:$0xff]  ;;  %v18674_v37 = vld [vmem:[#allocation141_spill] sm:$0xff]  ;;  %v18675_v5 = vld [vmem:[#allocation130_spill] sm:$0xff] }
 0xae1   :  { %v16005_v13 = vpop.permute.xlu1 %8239  ;;  %v16011_v58 = vpop.permute.xlu0 %8243  ;;  %v6836_v51 = vcombine.low %v18673_v11, %v18672_v38  ;;  %v18678_v29 = vld [vmem:[#allocation221_spill] sm:$0xff]  ;;  %v18679_v52 = vld [vmem:[#allocation28_spill] sm:$0xff]  ;;  %v6458_v11 = vcombine.high %v15745_v43, %v15753_v57 }
 0xae2   :  { %18656 = vst [vmem:[#allocation97_spill] sm:$0xff] %v16005_v13  ;;  %18661 = vst [vmem:[#allocation96_spill] sm:$0xff] %v16011_v58  ;;  %v16043_v39 = vrot.slane %v6079_v56, %v18037_v61  ;;  %v18677_v56 = vld [vmem:[#allocation209_spill] sm:$0xff]  ;;  %v10298_v58 = vrot.slane %v10284_v9, %v18038_v34  ;;  %v6820_v38 = vcombine.low %v18679_v52, %v18678_v29  ;;  %v18684_v29 = vld [vmem:[#allocation75_spill] sm:$0xff] }
 0xae3   :  { %7236 = vrot.lane.b32.xlu1 %v7194_v44, %s10684_s14  ;;  %9084 = vrot.lane.b32.xlu0 %v9008_v20, %s10655_s21  ;;  %v16034_v44 = vrot.slane %v6111_v42, %v18037_v61  ;;  %v9618_v20 = vcombine.high %v15940_v33, %v15923_v49  ;;  %v6490_v42 = vcombine.high %v15736_v1, %v15739_v36  ;;  %v18676_v33 = vld [vmem:[#allocation133_spill] sm:$0xff]  ;;  %v18685_v52 = vld [vmem:[#allocation127_spill] sm:$0xff] }
 0xae4   :  { %v9219_v49 = vcombine.high %v18675_v5, %v18674_v37  ;;  %v9235_v21 = vcombine.high %v18677_v56, %v18676_v33  ;;  %v9927_v36 = vcombine.high %v15944_v40, %v15934_v4  ;;  %v6158_v37 = vcombine.low %v16043_v39, %v16031_v27  ;;  %v18681_v9 = vld [vmem:[#allocation29_spill] sm:$0xff] }
 0xae5   :  { %v16026_v23 = vpop.permute.xlu1 %8247  ;;  %v16038_v19 = vpop.permute.xlu0 %8251  ;;  %v6190_v6 = vcombine.low %v16034_v44, %v16019_v63  ;;  %v18682_v5 = vld [vmem:[#allocation57_spill] sm:$0xff]  ;;  %v10282_v33 = vrot.slane %v10268_v55, %v18038_v34  ;;  %v16083_v4 = vrot.slane %v6828_v53, %v18037_v61  ;;  %v16086_v43 = vrot.slane %v6836_v51, %v18037_v61 }
 0xae6   :  { %18668 = vst [vmem:[#allocation38_spill] sm:$0xff] %v16026_v23  ;;  %18669 = vst [vmem:[#allocation82_spill] sm:$0xff] %v16038_v19  ;;  %v9203_v19 = vcombine.high %v18685_v52, %v18684_v29  ;;  %v16090_v57 = vrot.slane %v6490_v42, %v18038_v34  ;;  %v16093_v40 = vrot.slane %v9219_v49, %v18037_v61  ;;  %v18686_v42 = vld [vmem:[#allocation174_spill] sm:$0xff]  ;;  %v18688_v49 = vld [vmem:[#allocation43_spill] sm:$0xff] }
 0xae7   :  { %9399 = vrot.lane.b32.xlu1 %v9317_v41, %s10678_s2  ;;  %9706 = vrot.lane.b32.xlu0 %v9618_v20, %s10680_s11  ;;  %v16063_v41 = vrot.slane %v6844_v62, %v18037_v61  ;;  %v9187_v20 = vcombine.high %v18682_v5, %v18681_v9  ;;  %v10300_v62 = vcombine.high %v15964_v54, %v15950_v30  ;;  %v18689_v5 = vld [vmem:[#allocation177_spill] sm:$0xff]  ;;  %v18691_v52 = vld [vmem:[#allocation220_spill] sm:$0xff] }
 0xae8   :  { %v16096_v55 = vrot.slane %v9235_v21, %v18037_v61  ;;  %v10301_v30 = vcombine.low %v10282_v33, %v10298_v58  ;;  %v16100_v54 = vrot.slane %v6190_v6, %v18038_v34  ;;  %v16103_v53 = vrot.slane %v6820_v38, %v18037_v61  ;;  %v18692_v6 = vld [vmem:[#allocation219_spill] sm:$0xff] }
 0xae9   :  { %v16065_v1 = vpop.permute.xlu1 %8255  ;;  %v16076_v56 = vpop.permute.xlu0 %7920  ;;  %v6868_v51 = vcombine.low %v16086_v43, %v16063_v41  ;;  %v9952_v29 = vcombine.low %v18689_v5, %v18688_v49  ;;  %v10302_v38 = vcombine.high %v10282_v33, %v10298_v58  ;;  %v6166_v23 = vrot.slane %v6158_v37, %v18038_v34  ;;  %v18695_v49 = vld [vmem:[#allocation229_spill] sm:$0xff] }
 0xaea   :  { %18680 = vst [vmem:[#allocation18_spill] sm:$0xff] %v16065_v1  ;;  %18683 = vst [vmem:[#allocation26_spill] sm:$0xff] %v16076_v56  ;;  %v8976_v56 = vcombine.high %v18692_v6, %v18691_v52  ;;  %v16122_v1 = vrot.slane %v9203_v19, %v18037_v61  ;;  %v18698_v52 = vld [vmem:[#allocation218_spill] sm:$0xff]  ;;  %v18699_v6 = vld [vmem:[#allocation67_spill] sm:$0xff]  ;;  %v6472_v19 = vrot.slane %v6458_v11, %v18038_v34 }
 0xaeb   :  { %10021 = vrot.lane.b32.xlu1 %v9927_v36, %s10651_s17  ;;  %10336 = vrot.lane.b32.xlu0 %v10300_v62, %s10682_s1  ;;  %v18687_v36 = vld [vmem:[#allocation59_spill] sm:$0xff]  ;;  %v16114_v62 = vrot.slane %v9187_v20, %v18037_v61  ;;  %v18697_v20 = vld [vmem:[#allocation178_spill] sm:$0xff]  ;;  %v6210_v58 = vcombine.low %v6166_v23, %v16100_v54  ;;  %v9298_v37 = vcombine.low %v16093_v40, %v16096_v55 }
 0xaec   :  { %v9944_v9 = vcombine.low %v18687_v36, %v18686_v42  ;;  %v6852_v42 = vcombine.low %v16103_v53, %v16083_v4  ;;  %v18694_v36 = vld [vmem:[#allocation176_spill] sm:$0xff]  ;;  %v6876_v33 = vrot.slane %v6868_v51, %v18038_v34  ;;  %v9598_v11 = vcombine.high %v15768_v0, %v15776_v18 }
 0xaed   :  { %v16111_v21 = vpop.permute.xlu1 %7924  ;;  %v16118_v13 = vpop.permute.xlu0 %7928  ;;  %v9928_v5 = vcombine.low %v18695_v49, %v18694_v36  ;;  %v9266_v51 = vcombine.low %v16114_v62, %v16122_v1  ;;  %v9566_v0 = vcombine.high %v15756_v3, %v15765_v47 }
 0xaee   :  { %18690 = vst [vmem:[#allocation35_spill] sm:$0xff] %v16111_v21  ;;  %18693 = vst [vmem:[#allocation14_spill] sm:$0xff] %v16118_v13  ;;  %v18696_v21 = vld [vmem:[#allocation173_spill] sm:$0xff]  ;;  %v8944_v13 = vcombine.high %v18699_v6, %v18698_v52  ;;  %v16140_v36 = vrot.slane %v9944_v9, %v18037_v61  ;;  %v6860_v9 = vrot.slane %v6852_v42, %v18038_v34 }
 0xaef   :  { %v9936_v35 = vcombine.low %v18697_v20, %v18696_v21  ;;  %10340 = vrot.lane.b32.xlu1 %v10301_v30, %s10683_s13  ;;  %10344 = vrot.lane.b32.xlu0 %v10302_v38, %s10684_s14  ;;  %v16143_v21 = vrot.slane %v9952_v29, %v18037_v61  ;;  %v6511_v38 = vcombine.low %v6472_v19, %v16090_v57 }
 0xaf0   :  { %v16151_v20 = vrot.slane %v8976_v56, %v18038_v34  ;;  %v16159_v29 = vrot.slane %v9928_v5, %v18037_v61  ;;  %v8958_v56 = vrot.slane %v8944_v13, %v18038_v34  ;;  %v6884_v42 = vcombine.low %v6860_v9, %v6876_v33 }
 0xaf1   :  { %v16145_v30 = vpop.permute.xlu1 %7932  ;;  %v16147_v49 = vpop.permute.xlu0 %7936  ;;  %v16162_v52 = vrot.slane %v9936_v35, %v18037_v61  ;;  %v9976_v18 = vcombine.low %v16140_v36, %v16143_v21  ;;  %v9306_v5 = vrot.slane %v9298_v37, %v18038_v34  ;;  %v9274_v3 = vrot.slane %v9266_v51, %v18038_v34 }
 0xaf2   :  { %18700 = vst [vmem:[#allocation83_spill] sm:$0xff] %v16145_v30  ;;  %18701 = vst [vmem:[#allocation63_spill] sm:$0xff] %v16147_v49  ;;  %v9009_v35 = vcombine.low %v8958_v56, %v16151_v20  ;;  %v9580_v47 = vrot.slane %v9566_v0, %v18038_v34  ;;  %v6869_v51 = vcombine.high %v16086_v43, %v16063_v41 }
 0xaf3   :  { %6295 = vrot.lane.b32.xlu1 %v6210_v58, %s10679_s10  ;;  %6602 = vrot.lane.b32.xlu0 %v6511_v38, %s10671_s22  ;;  %v16178_v58 = vrot.slane %v9598_v11, %v18038_v34  ;;  %v9960_v13 = vcombine.low %v16159_v29, %v16162_v52  ;;  %v16187_v37 = vrot.slane %v9976_v18, %v18038_v34 }
 0xaf4   :  { %v6512_v41 = vcombine.high %v6472_v19, %v16090_v57  ;;  %v18708_v19 = vld [vmem:[#allocation122_spill] sm:$0xff] }
 0xaf5   :  { %v16171_v6 = vpop.permute.xlu1 %7940  ;;  %v16174_v49 = vpop.permute.xlu0 %7944  ;;  %v9619_v11 = vcombine.low %v9580_v47, %v16178_v58 }
 0xaf6   :  { %18702 = vst [vmem:[#allocation80_spill] sm:$0xff] %v16171_v6  ;;  %18703 = vst [vmem:[#allocation54_spill] sm:$0xff] %v16174_v49  ;;  %v9318_v49 = vcombine.low %v9274_v3, %v9306_v5  ;;  %v16195_v6 = vrot.slane %v9960_v13, %v18038_v34  ;;  %v6853_v13 = vcombine.high %v16103_v53, %v16083_v4 }
 0xaf7   :  { %6917 = vrot.lane.b32.xlu1 %v6884_v42, %s10681_s12  ;;  %9088 = vrot.lane.b32.xlu0 %v9009_v35, %s10677_s30  ;;  %v6211_v35 = vcombine.high %v6166_v23, %v16100_v54 }
 0xaf8   :  { %v9992_v18 = vcombine.low %v16195_v6, %v16187_v37  ;;  %v6867_v48 = vrot.slane %v6853_v13, %v18038_v34  ;;  %v18712_v13 = vld [vmem:[#allocation51_spill] sm:$0xff] }
 0xaf9   :  { %v16189_v38 = vpop.permute.xlu1 %7948  ;;  %v16191_v30 = vpop.permute.xlu0 %7196 }
 0xafa   :  { %18704 = vst [vmem:[#allocation68_spill] sm:$0xff] %v16189_v38  ;;  %v6885_v38 = vcombine.high %v6860_v9, %v6876_v33  ;;  %v18709_v33 = vld [vmem:[#allocation61_spill] sm:$0xff] }
 0xafb   :  { %9403 = vrot.lane.b32.xlu1 %v9318_v49, %s10679_s10  ;;  %9710 = vrot.lane.b32.xlu0 %v9619_v11, %s10671_s22  ;;  %v6883_v49 = vrot.slane %v6869_v51, %v18038_v34  ;;  %v8701_v9 = vcombine.high %v18709_v33, %v18708_v19  ;;  %v18710_v51 = vld [vmem:[#allocation69_spill] sm:$0xff]  ;;  %v18718_v19 = vld [vmem:[#allocation70_spill] sm:$0xff] }
 0xafd   :  { %v16201_v0 = vpop.permute.xlu1 %10304  ;;  %v16205_v42 = vpop.permute.xlu0 %7200  ;;  %v6886_v4 = vcombine.low %v6867_v48, %v6883_v49  ;;  %v6887_v53 = vcombine.high %v6867_v48, %v6883_v49  ;;  %v9010_v48 = vcombine.high %v8958_v56, %v16151_v20  ;;  %v18715_v49 = vld [vmem:[#allocation79_spill] sm:$0xff] }
 0xaff   :  { %10025 = vrot.lane.b32.xlu1 %v9992_v18, %s10681_s12  ;;  %6299 = vrot.lane.b32.xlu0 %v6211_v35, %s10680_s11  ;;  %v18711_v18 = vld [vmem:[#allocation77_spill] sm:$0xff] }
 0xb00   :  { %v6529_v35 = vcombine.low %v18711_v18, %v18710_v51  ;;  %v9961_v51 = vcombine.high %v16159_v29, %v16162_v52  ;;  %v18719_v18 = vld [vmem:[#allocation22_spill] sm:$0xff]  ;;  %v9620_v52 = vcombine.high %v9580_v47, %v16178_v58  ;;  %v18726_v58 = vld [vmem:[#allocation53_spill] sm:$0xff]  ;;  %v18727_v47 = vld [vmem:[#allocation84_spill] sm:$0xff] }
 0xb01   :  { %v16213_v11 = vpop.permute.xlu1 %10308  ;;  %v16216_v43 = vpop.permute.xlu0 %6889 }
 0xb02   :  { %18705 = vst [vmem:[#allocation24_spill] sm:$0xff] %v16216_v43  ;;  %v9977_v43 = vcombine.high %v16140_v36, %v16143_v21  ;;  %v16253_v20 = vrot.slane %v6529_v35, %v18037_v61 }
 0xb03   :  { %6606 = vrot.lane.b32.xlu1 %v6512_v41, %s10651_s17  ;;  %6921 = vrot.lane.b32.xlu0 %v6885_v38, %s10682_s1  ;;  %v18713_v38 = vld [vmem:[#allocation76_spill] sm:$0xff] }
 0xb04   :  { %v6537_v41 = vcombine.low %v18713_v38, %v18712_v13  ;;  %v18720_v13 = vld [vmem:[#allocation66_spill] sm:$0xff]  ;;  %v9319_v38 = vcombine.high %v9274_v3, %v9306_v5  ;;  %v18725_v5 = vld [vmem:[#allocation36_spill] sm:$0xff] }
 0xb05   :  { %v16221_v23 = vpop.permute.xlu1 %7204  ;;  %v16223_v54 = vpop.permute.xlu0 %9997  ;;  %v8928_v36 = vcombine.high %v18720_v13, %v18719_v18  ;;  %v18728_v18 = vld [vmem:[#allocation12_spill] sm:$0xff]  ;;  %v18729_v13 = vld [vmem:[#allocation19_spill] sm:$0xff] }
 0xb06   :  { %18706 = vst [vmem:[#allocation9_spill] sm:$0xff] %v16223_v54  ;;  %v16256_v56 = vrot.slane %v6537_v41, %v18037_v61 }
 0xb07   :  { %6925 = vrot.lane.b32.xlu1 %v6886_v4, %s10683_s13  ;;  %6929 = vrot.lane.b32.xlu0 %v6887_v53, %s10684_s14  ;;  %v18716_v4 = vld [vmem:[#allocation55_spill] sm:$0xff] }
 0xb08   :  { %v6513_v53 = vcombine.low %v18716_v4, %v18715_v49  ;;  %v18724_v4 = vld [vmem:[#allocation52_spill] sm:$0xff] }
 0xb09   :  { %v16227_v57 = vpop.permute.xlu1 %10312  ;;  %v16237_v54 = vpop.permute.xlu0 %6893  ;;  %v8912_v3 = vcombine.high %v18725_v5, %v18724_v4  ;;  %v16286_v4 = vrot.slane %v8928_v36, %v18037_v61 }
 0xb0a   :  { %18707 = vst [vmem:[#allocation11_spill] sm:$0xff] %v16227_v57  ;;  %18714 = vst [vmem:[#allocation37_spill] sm:$0xff] %v16237_v54  ;;  %v18717_v57 = vld [vmem:[#allocation73_spill] sm:$0xff]  ;;  %v16270_v35 = vrot.slane %v6513_v53, %v18037_v61 }
 0xb0b   :  { %8777 = vrot.lane.b32.xlu1 %v8701_v9, %s10655_s21  ;;  %v6521_v33 = vcombine.low %v18718_v19, %v18717_v57  ;;  %9092 = vrot.lane.b32.xlu0 %v9010_v48, %s10678_s2  ;;  %v6191_v57 = vcombine.high %v16034_v44, %v16019_v63  ;;  %v9991_v19 = vrot.slane %v9977_v43, %v18038_v34  ;;  %v18722_v9 = vld [vmem:[#allocation30_spill] sm:$0xff]  ;;  %v18723_v48 = vld [vmem:[#allocation85_spill] sm:$0xff] }
 0xb0c   :  { %v8896_v49 = vcombine.high %v18723_v48, %v18722_v9  ;;  %v6159_v63 = vcombine.high %v16043_v39, %v16031_v27  ;;  %v9975_v44 = vrot.slane %v9961_v51, %v18038_v34  ;;  %v9637_v43 = vcombine.low %v18727_v47, %v18726_v58  ;;  %v18731_v48 = vld [vmem:[#allocation217_spill] sm:$0xff]  ;;  %v18734_v58 = vld [vmem:[#allocation119_spill] sm:$0xff]  ;;  %v18735_v47 = vld [vmem:[#allocation118_spill] sm:$0xff] }
 0xb0d   :  { %v16250_v21 = vpop.permute.xlu1 %7208  ;;  %v16261_v29 = vpop.permute.xlu0 %10001  ;;  %v16273_v41 = vrot.slane %v6521_v33, %v18037_v61  ;;  %v9645_v9 = vcombine.low %v18729_v13, %v18728_v18  ;;  %v9993_v27 = vcombine.high %v16195_v6, %v16187_v37  ;;  %v6561_v39 = vcombine.low %v16253_v20, %v16256_v56  ;;  %v18736_v13 = vld [vmem:[#allocation17_spill] sm:$0xff] }
 0xb0e   :  { %18721 = vst [vmem:[#allocation8_spill] sm:$0xff] %v16261_v29  ;;  %v6205_v5 = vrot.slane %v6191_v57, %v18038_v34  ;;  %v8669_v18 = vcombine.high %v18735_v47, %v18734_v58  ;;  %v16305_v29 = vrot.slane %v8912_v3, %v18037_v61  ;;  %v18738_v37 = vld [vmem:[#allocation33_spill] sm:$0xff]  ;;  %v6173_v58 = vrot.slane %v6159_v63, %v18038_v34  ;;  %v18740_v47 = vld [vmem:[#allocation120_spill] sm:$0xff] }
 0xb0f   :  { %9407 = vrot.lane.b32.xlu1 %v9319_v38, %s10680_s11  ;;  %9714 = vrot.lane.b32.xlu0 %v9620_v52, %s10651_s17  ;;  %v18730_v38 = vld [vmem:[#allocation40_spill] sm:$0xff]  ;;  %v9994_v52 = vcombine.low %v9975_v44, %v9991_v19  ;;  %v6545_v6 = vcombine.low %v16270_v35, %v16273_v41  ;;  %v16320_v3 = vrot.slane %v9645_v9, %v18037_v61 }
 0xb10   :  { %v8880_v53 = vcombine.high %v18731_v48, %v18730_v38  ;;  %v18737_v38 = vld [vmem:[#allocation20_spill] sm:$0xff]  ;;  %v16302_v48 = vrot.slane %v8896_v49, %v18037_v61  ;;  %v16317_v49 = vrot.slane %v9637_v43, %v18037_v61  ;;  %v8991_v54 = vcombine.low %v16305_v29, %v16286_v4 }
 0xb11   :  { %v16288_v33 = vpop.permute.xlu1 %10316  ;;  %v16294_v51 = vpop.permute.xlu0 %6582  ;;  %v9621_v36 = vcombine.low %v18737_v38, %v18736_v13  ;;  %v18741_v13 = vld [vmem:[#allocation81_spill] sm:$0xff]  ;;  %v6569_v63 = vrot.slane %v6561_v39, %v18038_v34  ;;  %v6212_v43 = vcombine.low %v6173_v58, %v6205_v5  ;;  %v16335_v9 = vrot.slane %v8669_v18, %v18038_v34 }
 0xb12   :  { %18732 = vst [vmem:[#allocation165_spill] sm:$0xff] %v16288_v33  ;;  %18733 = vst [vmem:[#allocation123_spill] sm:$0xff] %v16294_v51  ;;  %v18739_v51 = vld [vmem:[#allocation13_spill] sm:$0xff]  ;;  %v8637_v38 = vcombine.high %v18741_v13, %v18740_v47  ;;  %v6553_v13 = vrot.slane %v6545_v6, %v18038_v34  ;;  %v9669_v6 = vcombine.low %v16317_v49, %v16320_v3 }
 0xb13   :  { %10029 = vrot.lane.b32.xlu1 %v9993_v27, %s10682_s1  ;;  %v9629_v57 = vcombine.low %v18739_v51, %v18738_v37  ;;  %10033 = vrot.lane.b32.xlu0 %v9994_v52, %s10683_s13  ;;  %v16323_v27 = vrot.slane %v8880_v53, %v18037_v61  ;;  %v9995_v52 = vcombine.high %v9975_v44, %v9991_v19 }
 0xb14   :  { %v9299_v37 = vcombine.high %v16093_v40, %v16096_v55  ;;  %v16342_v19 = vrot.slane %v9621_v36, %v18037_v61  ;;  %v9267_v40 = vcombine.high %v16114_v62, %v16122_v1  ;;  %v8651_v55 = vrot.slane %v8637_v38, %v18038_v34 }
 0xb15   :  { %v16327_v51 = vpop.permute.xlu1 %6897  ;;  %v16332_v47 = vpop.permute.xlu0 %7212  ;;  %v8959_v53 = vcombine.low %v16323_v27, %v16302_v48  ;;  %v16345_v44 = vrot.slane %v9629_v57, %v18037_v61  ;;  %v6577_v18 = vcombine.low %v6553_v13, %v6569_v63 }
 0xb16   :  { %18742 = vst [vmem:[#allocation163_spill] sm:$0xff] %v16327_v51  ;;  %v8702_v57 = vcombine.low %v8651_v55, %v16335_v9  ;;  %v16360_v51 = vrot.slane %v9299_v37, %v18038_v34 }
 0xb17   :  { %10037 = vrot.lane.b32.xlu1 %v9995_v52, %s10684_s14  ;;  %6303 = vrot.lane.b32.xlu0 %v6212_v43, %s10671_s22  ;;  %v8999_v52 = vrot.slane %v8991_v54, %v18038_v34  ;;  %v8967_v1 = vrot.slane %v8959_v53, %v18038_v34  ;;  %v9653_v62 = vcombine.low %v16342_v19, %v16345_v44 }
 0xb18   :  { %v16368_v54 = vrot.slane %v9267_v40, %v18038_v34  ;;  %v6562_v53 = vcombine.high %v16253_v20, %v16256_v56  ;;  %v6546_v40 = vcombine.high %v16270_v35, %v16273_v41  ;;  %v18750_v41 = vld [vmem:[#allocation156_spill] sm:$0xff] }
 0xb19   :  { %v16351_v39 = vpop.permute.xlu1 %9690  ;;  %v16356_v36 = vpop.permute.xlu0 %10005  ;;  %v9011_v43 = vcombine.low %v8967_v1, %v8999_v52 }
 0xb1a   :  { %18743 = vst [vmem:[#allocation161_spill] sm:$0xff] %v16351_v39  ;;  %18744 = vst [vmem:[#allocation164_spill] sm:$0xff] %v16356_v36  ;;  %v16373_v39 = vrot.slane %v9669_v6, %v18038_v34  ;;  %v6576_v33 = vrot.slane %v6562_v53, %v18038_v34  ;;  %v6560_v20 = vrot.slane %v6546_v40, %v18038_v34  ;;  %v18753_v40 = vld [vmem:[#allocation152_spill] sm:$0xff] }
 0xb1b   :  { %6610 = vrot.lane.b32.xlu1 %v6577_v18, %s10681_s12  ;;  %8781 = vrot.lane.b32.xlu0 %v8702_v57, %s10677_s30  ;;  %v9320_v18 = vcombine.low %v16368_v54, %v16360_v51  ;;  %v9661_v57 = vrot.slane %v9653_v62, %v18038_v34  ;;  %v6578_v62 = vcombine.high %v6553_v13, %v6569_v63  ;;  %v18754_v63 = vld [vmem:[#allocation148_spill] sm:$0xff] }
 0xb1c   :  { %v6579_v35 = vcombine.low %v6560_v20, %v6576_v33  ;;  %v6222_v13 = vcombine.low %v18754_v63, %v18753_v40  ;;  %v18764_v63 = vld [vmem:[#allocation116_spill] sm:$0xff] }
 0xb1d   :  { %v16370_v38 = vpop.permute.xlu1 %10320  ;;  %v16375_v37 = vpop.permute.xlu0 %6586  ;;  %v9685_v6 = vcombine.low %v9661_v57, %v16373_v39 }
 0xb1e   :  { %18745 = vst [vmem:[#allocation162_spill] sm:$0xff] %v16370_v38  ;;  %18746 = vst [vmem:[#allocation160_spill] sm:$0xff] %v16375_v37  ;;  %v6213_v38 = vcombine.high %v6173_v58, %v6205_v5  ;;  %v6238_v5 = vcombine.low %v18750_v41, %v15627_v10  ;;  %v18759_v10 = vld [vmem:[#allocation113_spill] sm:$0xff]  ;;  %v18760_v41 = vld [vmem:[#allocation111_spill] sm:$0xff] }
 0xb1f   :  { %9096 = vrot.lane.b32.xlu1 %v9011_v43, %s10679_s10  ;;  %9411 = vrot.lane.b32.xlu0 %v9320_v18, %s10671_s22  ;;  %v6580_v18 = vcombine.high %v6560_v20, %v6576_v33  ;;  %v9670_v33 = vcombine.high %v16317_v49, %v16320_v3  ;;  %v18761_v20 = vld [vmem:[#allocation150_spill] sm:$0xff]  ;;  %v16436_v49 = vrot.slane %v6222_v13, %v18037_v61 }
 0xb20   :  { %v16424_v40 = vrot.slane %v6238_v5, %v18037_v61  ;;  %v9654_v3 = vcombine.high %v16342_v19, %v16345_v44  ;;  %v9346_v5 = vcombine.low %v15704_v32, %v15720_v50  ;;  %v9321_v44 = vcombine.high %v16368_v54, %v16360_v51  ;;  %v18768_v32 = vld [vmem:[#allocation185_spill] sm:$0xff]  ;;  %v18769_v51 = vld [vmem:[#allocation194_spill] sm:$0xff] }
 0xb21   :  { %v16386_v36 = vpop.permute.xlu1 %6901  ;;  %v16389_v37 = vpop.permute.xlu0 %7216  ;;  %v9686_v13 = vcombine.high %v9661_v57, %v16373_v39  ;;  %v18770_v54 = vld [vmem:[#allocation197_spill] sm:$0xff]  ;;  %v18773_v57 = vld [vmem:[#allocation202_spill] sm:$0xff] }
 0xb22   :  { %18747 = vst [vmem:[#allocation159_spill] sm:$0xff] %v16386_v36 }
 0xb23   :  { %9718 = vrot.lane.b32.xlu1 %v9685_v6, %s10681_s12  ;;  %6307 = vrot.lane.b32.xlu0 %v6213_v38, %s10651_s17  ;;  %v8402_v38 = vcombine.high %v15680_v46, %v15665_v2  ;;  %v18755_v6 = vld [vmem:[#allocation157_spill] sm:$0xff]  ;;  %v18762_v2 = vld [vmem:[#allocation146_spill] sm:$0xff] }
 0xb24   :  { %v6214_v46 = vcombine.low %v18762_v2, %v18761_v20  ;;  %v9338_v20 = vcombine.low %v18770_v54, %v18769_v51 }
 0xb25   :  { %v16395_v56 = vpop.permute.xlu1 %9694  ;;  %v16397_v43 = vpop.permute.xlu0 %10009 }
 0xb26   :  { %18748 = vst [vmem:[#allocation58_spill] sm:$0xff] %v16395_v56  ;;  %18749 = vst [vmem:[#allocation72_spill] sm:$0xff] %v16397_v43  ;;  %v18756_v56 = vld [vmem:[#allocation154_spill] sm:$0xff] }
 0xb27   :  { %6614 = vrot.lane.b32.xlu1 %v6578_v62, %s10682_s1  ;;  %6618 = vrot.lane.b32.xlu0 %v6579_v35, %s10683_s13  ;;  %v6230_v43 = vcombine.low %v18756_v56, %v18755_v6  ;;  %v18757_v62 = vld [vmem:[#allocation112_spill] sm:$0xff]  ;;  %v18758_v35 = vld [vmem:[#allocation110_spill] sm:$0xff] }
 0xb28   :  { %v8605_v36 = vcombine.high %v18758_v35, %v18757_v62  ;;  %v18765_v6 = vld [vmem:[#allocation114_spill] sm:$0xff]  ;;  %v18766_v35 = vld [vmem:[#allocation117_spill] sm:$0xff] }
 0xb29   :  { %v16403_v58 = vpop.permute.xlu1 %10324  ;;  %v16405_v53 = vpop.permute.xlu0 %6283  ;;  %v8573_v62 = vcombine.high %v18765_v6, %v18764_v63  ;;  %v16439_v2 = vrot.slane %v6230_v43, %v18037_v61  ;;  %v18771_v63 = vld [vmem:[#allocation203_spill] sm:$0xff]  ;;  %v18772_v6 = vld [vmem:[#allocation188_spill] sm:$0xff] }
 0xb2a   :  { %18751 = vst [vmem:[#allocation216_spill] sm:$0xff] %v16403_v58  ;;  %18752 = vst [vmem:[#allocation64_spill] sm:$0xff] %v16405_v53  ;;  %v8621_v58 = vcombine.high %v18760_v41, %v18759_v10  ;;  %v18767_v10 = vld [vmem:[#allocation115_spill] sm:$0xff]  ;;  %v9012_v53 = vcombine.high %v8967_v1, %v8999_v52  ;;  %v9684_v52 = vrot.slane %v9670_v33, %v18038_v34 }
 0xb2b   :  { %6622 = vrot.lane.b32.xlu1 %v6580_v18, %s10684_s14  ;;  %8478 = vrot.lane.b32.xlu0 %v8402_v38, %s10655_s21  ;;  %v8703_v18 = vcombine.high %v8651_v55, %v16335_v9  ;;  %v8589_v41 = vcombine.high %v18767_v10, %v18766_v35  ;;  %v16445_v9 = vrot.slane %v8605_v36, %v18037_v61 }
 0xb2c   :  { %v16448_v55 = vrot.slane %v8621_v58, %v18037_v61  ;;  %v16453_v1 = vrot.slane %v6214_v46, %v18037_v61  ;;  %v6262_v43 = vcombine.low %v16439_v2, %v16424_v40  ;;  %v16464_v36 = vrot.slane %v8573_v62, %v18037_v61  ;;  %v18774_v62 = vld [vmem:[#allocation204_spill] sm:$0xff] }
 0xb2d   :  { %v16426_v56 = vpop.permute.xlu1 %6590  ;;  %v16433_v38 = vpop.permute.xlu0 %6905  ;;  %v16467_v58 = vrot.slane %v8589_v41, %v18037_v61  ;;  %v8370_v46 = vcombine.high %v15621_v45, %v15625_v25  ;;  %v9330_v33 = vcombine.low %v18768_v32, %v15686_v24  ;;  %v8338_v45 = vcombine.high %v18772_v6, %v18771_v63 }
 0xb2e   :  { %18763 = vst [vmem:[#allocation21_spill] sm:$0xff] %v16426_v56  ;;  %v6246_v50 = vcombine.low %v16453_v1, %v16436_v49  ;;  %v8684_v25 = vcombine.low %v16445_v9, %v16448_v55  ;;  %v6270_v39 = vrot.slane %v6262_v43, %v18038_v34  ;;  %v9322_v24 = vcombine.low %v18774_v62, %v18773_v57  ;;  %v18780_v56 = vld [vmem:[#allocation187_spill] sm:$0xff] }
 0xb2f   :  { %8785 = vrot.lane.b32.xlu1 %v8703_v18, %s10678_s2  ;;  %9100 = vrot.lane.b32.xlu0 %v9012_v53, %s10680_s11  ;;  %v9668_v18 = vrot.slane %v9654_v3, %v18038_v34  ;;  %v16491_v35 = vrot.slane %v9346_v5, %v18037_v61  ;;  %v8992_v3 = vcombine.high %v16305_v29, %v16286_v4 }
 0xb30   :  { %v16500_v32 = vrot.slane %v8370_v46, %v18038_v34  ;;  %v6254_v43 = vrot.slane %v6246_v50, %v18038_v34  ;;  %v16504_v51 = vrot.slane %v9330_v33, %v18037_v61  ;;  %v16507_v5 = vrot.slane %v9338_v20, %v18037_v61 }
 0xb31   :  { %v16459_v19 = vpop.permute.xlu1 %7220  ;;  %v16471_v53 = vpop.permute.xlu0 %9391  ;;  %v9687_v41 = vcombine.low %v9668_v18, %v9684_v52  ;;  %v8652_v54 = vcombine.low %v16464_v36, %v16467_v58  ;;  %v8960_v29 = vcombine.high %v16323_v27, %v16302_v48  ;;  %v8352_v4 = vrot.slane %v8338_v45, %v18038_v34 }
 0xb32   :  { %v9370_v46 = vcombine.low %v16507_v5, %v16491_v35  ;;  %v6278_v33 = vcombine.low %v6254_v43, %v6270_v39  ;;  %v16524_v20 = vrot.slane %v8684_v25, %v18038_v34  ;;  %v16530_v27 = vrot.slane %v8992_v3, %v18038_v34 }
 0xb33   :  { %9415 = vrot.lane.b32.xlu1 %v9321_v44, %s10651_s17  ;;  %9722 = vrot.lane.b32.xlu0 %v9686_v13, %s10682_s1  ;;  %v9688_v13 = vcombine.high %v9668_v18, %v9684_v52  ;;  %v16517_v52 = vrot.slane %v9322_v24, %v18037_v61  ;;  %v8403_v48 = vcombine.low %v8352_v4, %v16500_v32 }
 0xb34   :  { %v16536_v6 = vrot.slane %v8652_v54, %v18038_v34  ;;  %v16540_v45 = vrot.slane %v8960_v29, %v18038_v34  ;;  %v6263_v25 = vcombine.high %v16439_v2, %v16424_v40  ;;  %v16545_v57 = vrot.slane %v9370_v46, %v18038_v34 }
 0xb35   :  { %v16493_v10 = vpop.permute.xlu1 %9698  ;;  %v16497_v44 = vpop.permute.xlu0 %10013  ;;  %v9354_v63 = vcombine.low %v16517_v52, %v16504_v51 }
 0xb36   :  { %18775 = vst [vmem:[#allocation170_spill] sm:$0xff] %v16493_v10  ;;  %v8704_v24 = vcombine.low %v16536_v6, %v16524_v20  ;;  %v9013_v3 = vcombine.low %v16540_v45, %v16530_v27  ;;  %v6277_v40 = vrot.slane %v6263_v25, %v18038_v34 }
 0xb37   :  { %9726 = vrot.lane.b32.xlu1 %v9687_v41, %s10683_s13  ;;  %9730 = vrot.lane.b32.xlu0 %v9688_v13, %s10684_s14  ;;  %v6247_v13 = vcombine.high %v16453_v1, %v16436_v49  ;;  %v16558_v54 = vrot.slane %v9354_v63, %v18038_v34 }
 0xb39   :  { %v16521_v50 = vpop.permute.xlu1 %10328  ;;  %v16526_v18 = vpop.permute.xlu0 %6287  ;;  %v9386_v29 = vcombine.low %v16558_v54, %v16545_v57 }
 0xb3b   :  { %6311 = vrot.lane.b32.xlu1 %v6278_v33, %s10681_s12  ;;  %8482 = vrot.lane.b32.xlu0 %v8403_v48, %s10677_s30  ;;  %v6279_v33 = vcombine.high %v6254_v43, %v6270_v39  ;;  %v6261_v48 = vrot.slane %v6247_v13, %v18038_v34  ;;  %v8095_v13 = vcombine.high %v15961_v12, %v15947_v60 }
 0xb3d   :  { %v16547_v62 = vpop.permute.xlu1 %6594  ;;  %v16551_v41 = vpop.permute.xlu0 %6909  ;;  %v6280_v1 = vcombine.low %v6261_v48, %v6277_v40  ;;  %v6281_v25 = vcombine.high %v6261_v48, %v6277_v40  ;;  %v8685_v40 = vcombine.high %v16445_v9, %v16448_v55  ;;  %v18782_v48 = vld [vmem:[#allocation10_spill] sm:$0xff]  ;;  %v18789_v55 = vld [vmem:[#allocation199_spill] sm:$0xff] }
 0xb3e   :  { %18776 = vst [vmem:[#allocation167_spill] sm:$0xff] %v16547_v62  ;;  %v18779_v62 = vld [vmem:[#allocation191_spill] sm:$0xff] }
 0xb3f   :  { %8789 = vrot.lane.b32.xlu1 %v8704_v24, %s10679_s10  ;;  %9104 = vrot.lane.b32.xlu0 %v9013_v3, %s10671_s22  ;;  %v18777_v24 = vld [vmem:[#allocation184_spill] sm:$0xff]  ;;  %v18778_v3 = vld [vmem:[#allocation205_spill] sm:$0xff]  ;;  %v8322_v39 = vcombine.high %v18780_v56, %v18779_v62  ;;  %v9371_v56 = vcombine.high %v16507_v5, %v16491_v35  ;;  %v9355_v35 = vcombine.high %v16517_v52, %v16504_v51 }
 0xb40   :  { %v8306_v10 = vcombine.high %v18778_v3, %v18777_v24  ;;  %v18783_v24 = vld [vmem:[#allocation206_spill] sm:$0xff]  ;;  %v18784_v3 = vld [vmem:[#allocation192_spill] sm:$0xff]  ;;  %v18785_v5 = vld [vmem:[#allocation189_spill] sm:$0xff]  ;;  %v9014_v51 = vcombine.high %v16540_v45, %v16530_v27  ;;  %v9031_v27 = vcombine.low %v15956_v7, %v15976_v16 }
 0xb41   :  { %v16563_v2 = vpop.permute.xlu1 %7224  ;;  %v16567_v46 = vpop.permute.xlu0 %9395 }
 0xb43   :  { %9419 = vrot.lane.b32.xlu1 %v9386_v29, %s10681_s12  ;;  %6315 = vrot.lane.b32.xlu0 %v6279_v33, %s10682_s1  ;;  %v8705_v29 = vcombine.high %v16536_v6, %v16524_v20  ;;  %v18781_v33 = vld [vmem:[#allocation190_spill] sm:$0xff]  ;;  %v8290_v20 = vcombine.high %v18784_v3, %v18783_v24  ;;  %v16601_v6 = vrot.slane %v8306_v10, %v18037_v61 }
 0xb44   :  { %v9385_v24 = vrot.slane %v9371_v56, %v18038_v34 }
 0xb45   :  { %v16572_v49 = vpop.permute.xlu1 %9702  ;;  %v16574_v63 = vpop.permute.xlu0 %10017 }
 0xb47   :  { %6319 = vrot.lane.b32.xlu1 %v6280_v1, %s10683_s13  ;;  %6323 = vrot.lane.b32.xlu0 %v6281_v25, %s10684_s14  ;;  %v8274_v1 = vcombine.high %v18782_v48, %v18781_v33  ;;  %v8404_v25 = vcombine.high %v8352_v4, %v16500_v32  ;;  %v16604_v33 = vrot.slane %v8322_v39, %v18037_v61  ;;  %v18786_v32 = vld [vmem:[#allocation186_spill] sm:$0xff] }
 0xb48   :  { %v18787_v4 = vcombine.low %v18785_v5, %v18786_v32 }
 0xb49   :  { %v16582_v43 = vpop.permute.xlu1 %10332  ;;  %v16594_v62 = vpop.permute.xlu0 %6291  ;;  %v16623_v52 = vrot.slane %v8274_v1, %v18037_v61 }
 0xb4a   :  { %v7239_v48 = vsel %vm256_vm7, %v18787_v4, %v16191_v30  ;;  %v8063_v30 = vcombine.high %v15905_v26, %v15908_v15  ;;  %v8385_v26 = vcombine.low %v16601_v6, %v16604_v33  ;;  %v9369_v15 = vrot.slane %v9355_v35, %v18038_v34 }
 0xb4b   :  { %8171 = vrot.lane.b32.xlu1 %v8095_v13, %s10655_s21  ;;  %8486 = vrot.lane.b32.xlu0 %v8404_v25, %s10678_s2  ;;  %v9039_v13 = vcombine.low %v15970_v59, %v15984_v14  ;;  %v7240_v10 = vsel %vm4776_vm10, %v7239_v48, %v16205_v42  ;;  %v16633_v14 = vrot.slane %v8290_v20, %v18037_v61 }
 0xb4c   :  { %v7241_v25 = vsel %vm2032_vm1, %v7240_v10, %v16221_v23  ;;  %v9023_v42 = vcombine.low %v15919_v22, %v15952_v8  ;;  %v8031_v23 = vcombine.high %v15902_v28, %v15882_v31  ;;  %v18788_v22 = vld [vmem:[#allocation208_spill] sm:$0xff]  ;;  %v16662_v56 = vrot.slane %v8063_v30, %v18038_v34 }
 0xb4d   :  { %v16618_v39 = vpop.permute.xlu1 %6598  ;;  %v16630_v59 = vpop.permute.xlu0 %6913  ;;  %v7242_v45 = vsel %vm4779_vm11, %v7241_v25, %v16250_v21  ;;  %v9015_v8 = vcombine.low %v18788_v22, %v15929_v17  ;;  %v16653_v7 = vrot.slane %v9039_v13, %v18037_v61  ;;  %v8353_v17 = vcombine.low %v16623_v52, %v16633_v14  ;;  %v18792_v22 = vld [vmem:[#allocation11_spill] sm:$0xff] }
 0xb4e   :  { %v7243_v1 = vsel %vm4781_vm12, %v7242_v45, %v16332_v47  ;;  %v9388_v47 = vcombine.low %v9369_v15, %v9385_v24  ;;  %v16667_v3 = vrot.slane %v9023_v42, %v18037_v61  ;;  %v8653_v20 = vcombine.high %v16464_v36, %v16467_v58 }
 0xb4f   :  { %8793 = vrot.lane.b32.xlu1 %v8705_v29, %s10680_s11  ;;  %9108 = vrot.lane.b32.xlu0 %v9014_v51, %s10651_s17  ;;  %v7244_v16 = vsel %vm4783_vm13, %v7243_v1, %v16389_v37  ;;  %v9387_v29 = vcombine.high %v16558_v54, %v16545_v57  ;;  %v16670_v37 = vrot.slane %v9031_v27, %v18037_v61 }
 0xb50   :  { %v7245_v31 = vsel %vm248_vm8, %v7244_v16, %v16459_v19  ;;  %v16678_v54 = vrot.slane %v8031_v23, %v18038_v34  ;;  %v16683_v35 = vrot.slane %v9015_v8, %v18037_v61  ;;  %v9389_v32 = vcombine.high %v9369_v15, %v9385_v24 }
 0xb51   :  { %v7229_v21 = vpop.permute.xlu1 %7228  ;;  %v7233_v28 = vpop.permute.xlu0 %7232  ;;  %v7246_v57 = vsel %vm4786_vm14, %v7245_v31, %v16563_v2  ;;  %v9063_v5 = vcombine.low %v16670_v37, %v16653_v7  ;;  %v16688_v4 = vrot.slane %v8385_v26, %v18038_v34  ;;  %v16699_v36 = vrot.slane %v8685_v40, %v18038_v34  ;;  %v18790_v40 = vld [vmem:[#allocation196_spill] sm:$0xff] }
 0xb52   :  { %v7247_v19 = vsel %vm4788_vm15, %v7246_v57, %v7229_v21  ;;  %v8096_v13 = vcombine.low %v16678_v54, %v16662_v56  ;;  %v9047_v58 = vcombine.low %v16683_v35, %v16667_v3  ;;  %v8361_v24 = vrot.slane %v8353_v17, %v18038_v34  ;;  %v18794_v21 = vld [vmem:[#allocation162_spill] sm:$0xff]  ;;  %v18797_v57 = vld [vmem:[#allocation216_spill] sm:$0xff] }
 0xb53   :  { %9423 = vrot.lane.b32.xlu1 %v9387_v29, %s10682_s1  ;;  %9427 = vrot.lane.b32.xlu0 %v9388_v47, %s10683_s13  ;;  %v7248_v51 = vsel %vm4790_vm2, %v7247_v19, %v7233_v28  ;;  %v16708_v30 = vrot.slane %v8653_v20, %v18038_v34  ;;  %v16711_v9 = vrot.slane %v9063_v5, %v18038_v34  ;;  %v18796_v47 = vld [vmem:[#allocation193_spill] sm:$0xff]  ;;  %v18798_v5 = vld [vmem:[#allocation126_spill] sm:$0xff] }
 0xb54   :  { %v18791_v25 = vcombine.low %v18789_v55, %v18790_v40  ;;  %v8405_v45 = vcombine.low %v8361_v24, %v16688_v4  ;;  %v9055_v1 = vrot.slane %v9047_v58, %v18038_v34  ;;  %v18802_v40 = vld [vmem:[#allocation109_spill] sm:$0xff] }
 0xb55   :  { %v7237_v2 = vpop.permute.xlu1 %7236  ;;  %v16690_v48 = vpop.permute.xlu0 %9084  ;;  %v8706_v23 = vcombine.low %v16708_v30, %v16699_v36  ;;  %v8707_v55 = vcombine.high %v16708_v30, %v16699_v36  ;;  %v9064_v30 = vcombine.high %v16670_v37, %v16653_v7  ;;  %v8406_v7 = vcombine.high %v8361_v24, %v16688_v4 }
 0xb56   :  { %v7249_v10 = vsel %vm4792_vm0, %v7233_v28, %v7237_v2  ;;  %v10347_v42 = vsel %vm256_vm7, %v18791_v25, %v16201_v0  ;;  %v18793_v0 = vld [vmem:[#allocation165_spill] sm:$0xff]  ;;  %v9079_v31 = vcombine.low %v9055_v1, %v16711_v9  ;;  %v18795_v28 = vld [vmem:[#allocation90_spill] sm:$0xff]  ;;  %v9048_v37 = vcombine.high %v16683_v35, %v16667_v3 }
 0xb57   :  { %9431 = vrot.lane.b32.xlu1 %v9389_v32, %s10684_s14  ;;  %7272 = vmatprep.subr.mxu0 %v7249_v10  ;;  %v10348_v26 = vsel %vm4776_vm10, %v10347_v42, %v16213_v11  ;;  %v8015_v17 = vcombine.high %v18796_v47, %v18795_v28  ;;  %v18799_v2 = vld [vmem:[#allocation125_spill] sm:$0xff]  ;;  %v18801_v10 = vld [vmem:[#allocation100_spill] sm:$0xff]  ;;  %v9078_v35 = vrot.slane %v9064_v30, %v18038_v34 }
 0xb58   :  { %8175 = vrot.lane.b32.xlu0 %v8096_v13, %s10677_s30  ;;  %7273 = vmatpush1.msra.mxu0 %v7248_v51  ;;  %v10349_v8 = vsel %vm2032_vm1, %v10348_v26, %v18792_v22  ;;  %v7772_v32 = vcombine.high %v18799_v2, %v18798_v5  ;;  %v18800_v13 = vld [vmem:[#allocation108_spill] sm:$0xff]  ;;  %v18803_v25 = vld [vmem:[#allocation101_spill] sm:$0xff]  ;;  %v18806_v22 = vld [vmem:[#allocation94_spill] sm:$0xff] }
 0xb59   :  { %v16718_v27 = vpop.permute.xlu1 %9399  ;;  %v16723_v15 = vpop.permute.xlu0 %9706  ;;  %v10350_v16 = vsel %vm4779_vm11, %v10349_v8, %v18793_v0  ;;  %v8708_v58 = vcombine.low %v18801_v10, %v18800_v13  ;;  %v8716_v42 = vcombine.low %v18803_v25, %v18802_v40  ;;  %v18805_v26 = vld [vmem:[#allocation104_spill] sm:$0xff]  ;;  %v18807_v8 = vld [vmem:[#allocation198_spill] sm:$0xff]  ;;  %v18811_v28 = vld [vmem:[#allocation105_spill] sm:$0xff] }
 0xb5a   :  { %v10351_v11 = vsel %vm4781_vm12, %v10350_v16, %v18794_v21  ;;  %v7983_v0 = vcombine.high %v18807_v8, %v18806_v22  ;;  %v18808_v16 = vld [vmem:[#allocation91_spill] sm:$0xff]  ;;  %v18813_v10 = vld [vmem:[#allocation62_spill] sm:$0xff] }
 0xb5b   :  { %8490 = vrot.lane.b32.xlu1 %v8405_v45, %s10679_s10  ;;  %v10352_v19 = vsel %vm4783_vm13, %v10351_v11, %v18797_v57  ;;  %v18804_v45 = vld [vmem:[#allocation106_spill] sm:$0xff]  ;;  %v18809_v21 = vld [vmem:[#allocation195_spill] sm:$0xff] }
 0xb5c   :  { %8797 = vrot.lane.b32.xlu0 %v8706_v23, %s10671_s22  ;;  %v10353_v51 = vsel %vm248_vm8, %v10352_v19, %v16521_v50  ;;  %v8724_v23 = vcombine.low %v18805_v26, %v18804_v45  ;;  %v7999_v11 = vcombine.high %v18809_v21, %v18808_v16  ;;  %v8097_v19 = vcombine.high %v16678_v54, %v16662_v56  ;;  %v18812_v13 = vld [vmem:[#allocation71_spill] sm:$0xff]  ;;  %v18815_v45 = vld [vmem:[#allocation201_spill] sm:$0xff]  ;;  %v18818_v56 = vld [vmem:[#allocation128_spill] sm:$0xff] }
 0xb5d   :  { %v16736_v29 = vpop.permute.xlu1 %10021  ;;  %v10337_v20 = vpop.permute.xlu0 %10336  ;;  %v10354_v50 = vsel %vm4786_vm14, %v10353_v51, %v16582_v43  ;;  %v7708_v40 = vcombine.high %v18813_v10, %v18812_v13  ;;  %v18814_v25 = vld [vmem:[#allocation95_spill] sm:$0xff]  ;;  %v18821_v21 = vld [vmem:[#allocation74_spill] sm:$0xff]  ;;  %v16826_v13 = vrot.slane %v8716_v42, %v18037_v61  ;;  %v8386_v10 = vcombine.high %v16601_v6, %v16604_v33  ;;  %v18825_v33 = vld [vmem:[#allocation136_spill] sm:$0xff] }
 0xb5e   :  { %v10355_v47 = vsel %vm4788_vm15, %v10354_v50, %v10337_v20  ;;  %v7967_v43 = vcombine.high %v18815_v45, %v18814_v25  ;;  %v18816_v20 = vld [vmem:[#allocation64_spill] sm:$0xff]  ;;  %v18817_v22 = vld [vmem:[#allocation211_spill] sm:$0xff]  ;;  %v16794_v4 = vrot.slane %v7999_v11, %v18037_v61  ;;  %v18822_v45 = vld [vmem:[#allocation226_spill] sm:$0xff]  ;;  %v8354_v6 = vcombine.high %v16623_v52, %v16633_v14 }
 0xb5f   :  { %9112 = vrot.lane.b32.xlu1 %v9079_v31, %s10681_s12  ;;  %v18810_v31 = vld [vmem:[#allocation107_spill] sm:$0xff]  ;;  %v18819_v54 = vcombine.low %v18817_v22, %v18818_v56 }
 0xb60   :  { %7848 = vrot.lane.b32.xlu0 %v7772_v32, %s10655_s21  ;;  %v8732_v36 = vcombine.low %v18811_v28, %v18810_v31  ;;  %v16775_v32 = vrot.slane %v8015_v17, %v18037_v61  ;;  %v18820_v17 = vld [vmem:[#allocation44_spill] sm:$0xff]  ;;  %v16791_v31 = vrot.slane %v7983_v0, %v18037_v61  ;;  %v16809_v11 = vrot.slane %v7967_v43, %v18037_v61 }
 0xb61   :  { %v10341_v57 = vpop.permute.xlu1 %10340  ;;  %v10345_v26 = vpop.permute.xlu0 %10344  ;;  %v6326_v8 = vsel %vm256_vm7, %v18819_v54, %v18816_v20  ;;  %v7740_v50 = vcombine.high %v18821_v21, %v18820_v17  ;;  %v18823_v43 = vld [vmem:[#allocation224_spill] sm:$0xff] }
 0xb62   :  { %v10356_v51 = vsel %vm4790_vm2, %v10355_v47, %v10341_v57  ;;  %v10357_v16 = vsel %vm4792_vm0, %v10341_v57, %v10345_v26  ;;  %v6327_v3 = vsel %vm4776_vm10, %v6326_v8, %v16526_v18  ;;  %v16803_v47 = vrot.slane %v8724_v23, %v18037_v61 }
 0xb63   :  { %8179 = vrot.lane.b32.xlu1 %v8097_v19, %s10678_s2  ;;  %10372 = vmatprep.subr.mxu1 %v10357_v16  ;;  %v6328_v24 = vsel %vm2032_vm1, %v6327_v3, %v16594_v62  ;;  %v16806_v0 = vrot.slane %v8732_v36, %v18037_v61  ;;  %v8078_v18 = vcombine.low %v16794_v4, %v16775_v32 }
 0xb64   :  { %8494 = vrot.lane.b32.xlu0 %v8406_v7, %s10680_s11  ;;  %10373 = vmatpush1.msra.mxu1 %v10356_v51  ;;  %v9080_v62 = vcombine.high %v9055_v1, %v16711_v9  ;;  %v9062_v19 = vrot.slane %v9048_v37, %v18038_v34  ;;  %v8046_v23 = vcombine.low %v16809_v11, %v16791_v31 }
 0xb65   :  { %v6296_v28 = vpop.permute.xlu1 %6295  ;;  %v16814_v30 = vpop.permute.xlu0 %6602  ;;  %v16823_v36 = vrot.slane %v8708_v58, %v18037_v61  ;;  %v7722_v1 = vrot.slane %v7708_v40, %v18038_v34  ;;  %v18824_v51 = vcombine.low %v18822_v45, %v18823_v43  ;;  %v8086_v42 = vrot.slane %v8078_v18, %v18038_v34  ;;  %v18826_v40 = vld [vmem:[#allocation145_spill] sm:$0xff]  ;;  %v18834_v43 = vld [vmem:[#allocation207_spill] sm:$0xff] }
 0xb66   :  { %v6329_v57 = vsel %vm4779_vm11, %v6328_v24, %v6296_v28  ;;  %v9081_v9 = vcombine.low %v9062_v19, %v9078_v35  ;;  %v9082_v7 = vcombine.high %v9062_v19, %v9078_v35  ;;  %v8756_v37 = vcombine.low %v16803_v47, %v16806_v0  ;;  %v18828_v35 = vld [vmem:[#allocation25_spill] sm:$0xff]  ;;  %v18831_v19 = vld [vmem:[#allocation32_spill] sm:$0xff] }
 0xb67   :  { %8801 = vrot.lane.b32.xlu1 %v8707_v55, %s10651_s17  ;;  %v7754_v55 = vrot.slane %v7740_v50, %v18038_v34  ;;  %v9127_v26 = vsel %vm256_vm7, %v18824_v51, %v16690_v48  ;;  %v18827_v20 = vcombine.low %v18825_v33, %v18826_v40  ;;  %v8054_v54 = vrot.slane %v8046_v23, %v18038_v34  ;;  %v18829_v24 = vld [vmem:[#allocation49_spill] sm:$0xff] }
 0xb68   :  { %9116 = vrot.lane.b32.xlu0 %v9080_v62, %s10682_s1  ;;  %v8740_v52 = vcombine.low %v16823_v36, %v16826_v13  ;;  %v8400_v16 = vrot.slane %v8386_v10, %v18038_v34  ;;  %v8764_v50 = vrot.slane %v8756_v37, %v18038_v34  ;;  %v8368_v3 = vrot.slane %v8354_v6, %v18038_v34  ;;  %v18830_v62 = vld [vmem:[#allocation50_spill] sm:$0xff]  ;;  %v18833_v45 = vld [vmem:[#allocation121_spill] sm:$0xff] }
 0xb69   :  { %v6918_v25 = vpop.permute.xlu1 %6917  ;;  %v9089_v58 = vpop.permute.xlu0 %9088  ;;  %v9434_v22 = vsel %vm256_vm7, %v18827_v20, %v16471_v53  ;;  %v7773_v53 = vcombine.low %v7722_v1, %v7754_v55  ;;  %v10532_v28 = vcombine.low %v18829_v24, %v18828_v35  ;;  %v10534_v18 = vcombine.high %v18829_v24, %v18828_v35  ;;  %v18836_v37 = vld [vmem:[#allocation37_spill] sm:$0xff]  ;;  %v18837_v20 = vld [vmem:[#allocation163_spill] sm:$0xff]  ;;  %v18839_v24 = vld [vmem:[#allocation18_spill] sm:$0xff] }
 0xb6a   :  { %v16848_v56 = vsel %vm4776_vm10, %v9127_v26, %v9089_v58  ;;  %v9435_v48 = vsel %vm4776_vm10, %v9434_v22, %v16567_v46  ;;  %v8098_v46 = vcombine.low %v8054_v54, %v8086_v42  ;;  %v10536_v23 = vcombine.low %v18831_v19, %v18830_v62 }
 0xb6b   :  { %9120 = vrot.lane.b32.xlu1 %v9081_v9, %s10683_s13  ;;  %v9436_v14 = vsel %vm2032_vm1, %v9435_v48, %v16718_v27  ;;  %v8748_v27 = vrot.slane %v8740_v52, %v18038_v34  ;;  %v10538_v10 = vcombine.high %v18831_v19, %v18830_v62  ;;  %v18832_v9 = vld [vmem:[#allocation24_spill] sm:$0xff]  ;;  %v18835_v51 = vcombine.low %v18833_v45, %v18834_v43  ;;  %v18840_v62 = vld [vmem:[#allocation38_spill] sm:$0xff]  ;;  %v18841_v43 = vld [vmem:[#allocation97_spill] sm:$0xff] }
 0xb6c   :  { %9124 = vrot.lane.b32.xlu0 %v9082_v7, %s10684_s14  ;;  %v8407_v7 = vcombine.low %v8368_v3, %v8400_v16  ;;  %v8757_v52 = vcombine.high %v16803_v47, %v16806_v0  ;;  %v16905_v35 = vrot.slane %v10536_v23, %v18037_v61  ;;  %v8433_v47 = vcombine.low %v18840_v62, %v18839_v24 }
 0xb6d   :  { %v9404_v8 = vpop.permute.xlu1 %9403  ;;  %v16863_v21 = vpop.permute.xlu0 %9710  ;;  %v6932_v26 = vsel %vm256_vm7, %v18835_v51, %v18832_v9  ;;  %v8772_v40 = vcombine.low %v8748_v27, %v8764_v50  ;;  %v7774_v19 = vcombine.high %v7722_v1, %v7754_v55  ;;  %v8099_v45 = vcombine.high %v8054_v54, %v8086_v42  ;;  %v18845_v55 = vld [vmem:[#allocation92_spill] sm:$0xff] }
 0xb6e   :  { %v16861_v17 = vsel %vm4779_vm11, %v9436_v14, %v9404_v8  ;;  %v6933_v6 = vsel %vm4776_vm10, %v6932_v26, %v18836_v37  ;;  %v16896_v14 = vrot.slane %v10532_v28, %v18037_v61  ;;  %v18838_v8 = vld [vmem:[#allocation159_spill] sm:$0xff]  ;;  %v8741_v23 = vcombine.high %v16823_v36, %v16826_v13  ;;  %v18843_v26 = vld [vmem:[#allocation82_spill] sm:$0xff]  ;;  %v18846_v42 = vld [vmem:[#allocation124_spill] sm:$0xff] }
 0xb6f   :  { %7852 = vrot.lane.b32.xlu1 %v7773_v53, %s10677_s30  ;;  %v6934_v22 = vsel %vm2032_vm1, %v6933_v6, %v18837_v20  ;;  %v8409_v54 = vcombine.low %v18846_v42, %v18845_v55  ;;  %v16937_v6 = vrot.slane %v8433_v47, %v18037_v61  ;;  %v18855_v55 = vld [vmem:[#allocation68_spill] sm:$0xff] }
 0xb70   :  { %8183 = vrot.lane.b32.xlu0 %v8098_v46, %s10679_s10  ;;  %v6935_v53 = vsel %vm4779_vm11, %v6934_v22, %v18838_v8  ;;  %v16902_v46 = vrot.slane %v10534_v18, %v18037_v61  ;;  %v8755_v8 = vrot.slane %v8741_v23, %v18038_v34  ;;  %v18856_v42 = vld [vmem:[#allocation80_spill] sm:$0xff] }
 0xb71   :  { %v16883_v58 = vpop.permute.xlu1 %10025  ;;  %v6300_v33 = vpop.permute.xlu0 %6299  ;;  %v6936_v0 = vsel %vm4781_vm12, %v6935_v53, %v16433_v38 }
 0xb72   :  { %v16890_v48 = vsel %vm4781_vm12, %v6329_v57, %v6300_v33  ;;  %v16908_v57 = vrot.slane %v10538_v10, %v18037_v61  ;;  %v6937_v9 = vsel %vm4783_vm13, %v6936_v0, %v16551_v41  ;;  %v18842_v10 = vld [vmem:[#allocation93_spill] sm:$0xff]  ;;  %v8771_v41 = vrot.slane %v8757_v52, %v18038_v34 }
 0xb73   :  { %8498 = vrot.lane.b32.xlu1 %v8407_v7, %s10671_s22  ;;  %v8417_v51 = vcombine.low %v18842_v10, %v18841_v43  ;;  %v18844_v7 = vld [vmem:[#allocation96_spill] sm:$0xff]  ;;  %v6938_v38 = vsel %vm248_vm8, %v6937_v9, %v16630_v59  ;;  %v7723_v36 = vcombine.low %v16896_v14, %v16902_v46  ;;  %v8773_v52 = vcombine.high %v8748_v27, %v8764_v50  ;;  %v18847_v0 = vld [vmem:[#allocation61_spill] sm:$0xff] }
 0xb74   :  { %8805 = vrot.lane.b32.xlu0 %v8772_v40, %s10681_s12  ;;  %v8425_v37 = vcombine.low %v18844_v7, %v18843_v26  ;;  %v6939_v1 = vsel %vm4786_vm14, %v6938_v38, %v6918_v25  ;;  %v7755_v13 = vcombine.low %v16905_v35, %v16908_v57  ;;  %v8408_v25 = vcombine.high %v8368_v3, %v8400_v16  ;;  %v18850_v10 = vld [vmem:[#allocation9_spill] sm:$0xff] }
 0xb75   :  { %v16914_v28 = vpop.permute.xlu1 %6606  ;;  %v6922_v18 = vpop.permute.xlu0 %6921  ;;  %v8079_v40 = vcombine.high %v16794_v4, %v16775_v32  ;;  %v16945_v53 = vrot.slane %v8417_v51, %v18037_v61  ;;  %v8047_v16 = vcombine.high %v16809_v11, %v16791_v31  ;;  %v8774_v32 = vcombine.low %v8755_v8, %v8771_v41  ;;  %v18851_v51 = vld [vmem:[#allocation210_spill] sm:$0xff]  ;;  %v18852_v26 = vld [vmem:[#allocation129_spill] sm:$0xff] }
 0xb76   :  { %v6940_v59 = vsel %vm4788_vm15, %v6939_v1, %v6922_v18  ;;  %v8432_v24 = vrot.slane %v8425_v37, %v18037_v61  ;;  %v8416_v4 = vrot.slane %v8409_v54, %v18037_v61  ;;  %v7731_v27 = vrot.slane %v7723_v36, %v18038_v34 }
 0xb77   :  { %7856 = vrot.lane.b32.xlu1 %v7774_v19, %s10678_s2  ;;  %v7763_v47 = vrot.slane %v7755_v13, %v18038_v34  ;;  %v18848_v19 = vld [vmem:[#allocation122_spill] sm:$0xff]  ;;  %v8775_v11 = vcombine.high %v8755_v8, %v8771_v41  ;;  %v18853_v7 = vcombine.low %v18851_v51, %v18852_v26  ;;  %v8061_v38 = vrot.slane %v8047_v16, %v18038_v34  ;;  %v18854_v41 = vld [vmem:[#allocation8_spill] sm:$0xff]  ;;  %v18860_v16 = vld [vmem:[#allocation35_spill] sm:$0xff] }
 0xb78   :  { %8187 = vrot.lane.b32.xlu0 %v8099_v45, %s10680_s11  ;;  %v8457_v50 = vcombine.low %v8432_v24, %v16937_v6  ;;  %v18849_v9 = vcombine.low %v18847_v0, %v18848_v19  ;;  %v8093_v45 = vrot.slane %v8079_v40, %v18038_v34  ;;  %v8441_v23 = vcombine.low %v8416_v4, %v16945_v53 }
 0xb79   :  { %v6926_v33 = vpop.permute.xlu1 %6925  ;;  %v6930_v22 = vpop.permute.xlu0 %6929  ;;  %v10040_v37 = vsel %vm256_vm7, %v18853_v7, %v18850_v10  ;;  %v8126_v54 = vcombine.low %v18856_v42, %v18855_v55  ;;  %v8458_v19 = vcombine.high %v8432_v24, %v16937_v6  ;;  %v18864_v10 = vld [vmem:[#allocation26_spill] sm:$0xff] }
 0xb7a   :  { %v6941_v20 = vsel %vm4790_vm2, %v6940_v59, %v6926_v33  ;;  %v6942_v62 = vsel %vm4792_vm0, %v6926_v33, %v6930_v22  ;;  %v8465_v1 = vrot.slane %v8457_v50, %v18038_v34  ;;  %v10041_v36 = vsel %vm4776_vm10, %v10040_v37, %v18854_v41  ;;  %v18857_v59 = vld [vmem:[#allocation164_spill] sm:$0xff]  ;;  %v18861_v50 = vld [vmem:[#allocation54_spill] sm:$0xff] }
 0xb7b   :  { %8502 = vrot.lane.b32.xlu1 %v8408_v25, %s10651_s17  ;;  %7274 = vmatprep.subr.mxu0 %v6942_v62  ;;  %v10042_v33 = vsel %vm2032_vm1, %v10041_v36, %v18857_v59  ;;  %v8449_v22 = vrot.slane %v8441_v23, %v18038_v34  ;;  %v18859_v62 = vld [vmem:[#allocation83_spill] sm:$0xff]  ;;  %v18863_v23 = vld [vmem:[#allocation14_spill] sm:$0xff]  ;;  %v8133_v26 = vrot.slane %v8126_v54, %v18037_v61 }
 0xb7c   :  { %8809 = vrot.lane.b32.xlu0 %v8773_v52, %s10682_s1  ;;  %7275 = vmatpush1.msra.mxu0 %v6941_v20  ;;  %v8100_v20 = vcombine.low %v8061_v38, %v8093_v45  ;;  %v18858_v52 = vld [vmem:[#allocation72_spill] sm:$0xff]  ;;  %v8102_v51 = vcombine.low %v18864_v10, %v18863_v23  ;;  %v7776_v41 = vcombine.high %v7731_v27, %v7763_v47 }
 0xb7d   :  { %v8778_v3 = vpop.permute.xlu1 %8777  ;;  %v9093_v31 = vpop.permute.xlu0 %9092  ;;  %v10043_v8 = vsel %vm4779_vm11, %v10042_v33, %v18858_v52  ;;  %v8474_v55 = vcombine.high %v8449_v22, %v8465_v1 }
 0xb7e   :  { %v16961_v18 = vsel %vm256_vm7, %v18849_v9, %v8778_v3  ;;  %v16967_v43 = vsel %vm2032_vm1, %v16848_v56, %v9093_v31  ;;  %v7775_v56 = vcombine.low %v7731_v27, %v7763_v47  ;;  %v18862_v3 = vld [vmem:[#allocation63_spill] sm:$0xff] }
 0xb7f   :  { %8813 = vrot.lane.b32.xlu1 %v8774_v32, %s10683_s13  ;;  %v8110_v32 = vcombine.low %v18860_v16, %v18859_v62  ;;  %v8118_v0 = vcombine.low %v18862_v3, %v18861_v50 }
 0xb80   :  { %8817 = vrot.lane.b32.xlu0 %v8775_v11, %s10684_s14  ;;  %v8473_v11 = vcombine.low %v8449_v22, %v8465_v1  ;;  %v18868_v1 = vld [vmem:[#allocation88_spill] sm:$0xff] }
 0xb81   :  { %v9408_v13 = vpop.permute.xlu1 %9407  ;;  %v16988_v40 = vpop.permute.xlu0 %9714  ;;  %v8125_v24 = vrot.slane %v8118_v0, %v18037_v61 }
 0xb82   :  { %v16986_v25 = vsel %vm4781_vm12, %v16861_v17, %v9408_v13  ;;  %v10044_v17 = vsel %vm4781_vm12, %v10043_v8, %v16497_v44  ;;  %v8442_v44 = vcombine.high %v8416_v4, %v16945_v53  ;;  %v8472_v13 = vrot.slane %v8458_v19, %v18038_v34 }
 0xb83   :  { %7860 = vrot.lane.b32.xlu1 %v7775_v56, %s10679_s10  ;;  %v10045_v9 = vsel %vm4783_vm13, %v10044_v17, %v16574_v63  ;;  %v8117_v63 = vrot.slane %v8110_v32, %v18037_v61  ;;  %v8101_v56 = vcombine.high %v8061_v38, %v8093_v45  ;;  %v7724_v53 = vcombine.high %v16896_v14, %v16902_v46  ;;  %v18865_v45 = vld [vmem:[#allocation89_spill] sm:$0xff]  ;;  %v18866_v14 = vld [vmem:[#allocation16_spill] sm:$0xff] }
 0xb84   :  { %8191 = vrot.lane.b32.xlu0 %v8100_v20, %s10671_s22  ;;  %v10046_v7 = vsel %vm248_vm8, %v10045_v9, %v16736_v29  ;;  %v8109_v4 = vrot.slane %v8102_v51, %v18037_v61  ;;  %v8150_v27 = vcombine.low %v8125_v24, %v8133_v26  ;;  %v8456_v54 = vrot.slane %v8442_v44, %v18038_v34  ;;  %v18870_v44 = vld [vmem:[#allocation102_spill] sm:$0xff] }
 0xb85   :  { %v10030_v31 = vpop.permute.xlu1 %10029  ;;  %v10034_v37 = vpop.permute.xlu0 %10033  ;;  %v10047_v6 = vsel %vm4786_vm14, %v10046_v7, %v16883_v58  ;;  %v7756_v58 = vcombine.high %v16905_v35, %v16908_v57  ;;  %v10539_v46 = vcombine.low %v18866_v14, %v18865_v45  ;;  %v10540_v35 = vcombine.high %v18866_v14, %v18865_v45  ;;  %v18867_v57 = vld [vmem:[#allocation86_spill] sm:$0xff] }
 0xb86   :  { %v10048_v36 = vsel %vm4788_vm15, %v10047_v6, %v10030_v31  ;;  %v8134_v38 = vcombine.low %v8109_v4, %v8117_v63  ;;  %v10541_v33 = vcombine.low %v18868_v1, %v18867_v57  ;;  %v8475_v22 = vcombine.low %v8456_v54, %v8472_v13  ;;  %v18871_v6 = vld [vmem:[#allocation98_spill] sm:$0xff] }
 0xb87   :  { %8506 = vrot.lane.b32.xlu1 %v8473_v11, %s10681_s12  ;;  %v10049_v59 = vsel %vm4790_vm2, %v10048_v36, %v10034_v37  ;;  %v7738_v52 = vrot.slane %v7724_v53, %v18038_v34  ;;  %v7770_v8 = vrot.slane %v7756_v58, %v18038_v34  ;;  %v10542_v62 = vcombine.high %v18868_v1, %v18867_v57 }
 0xb88   :  { %7864 = vrot.lane.b32.xlu0 %v7776_v41, %s10680_s11  ;;  %v8158_v16 = vrot.slane %v8150_v27, %v18038_v34  ;;  %v8476_v50 = vcombine.high %v8456_v54, %v8472_v13  ;;  %v8142_v0 = vrot.slane %v8134_v38, %v18038_v34  ;;  %v7786_v17 = vrot.slane %v10539_v46, %v18037_v61  ;;  %v18869_v41 = vld [vmem:[#allocation123_spill] sm:$0xff]  ;;  %v18873_v13 = vld [vmem:[#allocation160_spill] sm:$0xff] }
 0xb89   :  { %v10038_v29 = vpop.permute.xlu1 %10037  ;;  %v17023_v47 = vpop.permute.xlu0 %6303  ;;  %v7794_v19 = vrot.slane %v10540_v35, %v18037_v61  ;;  %v8151_v9 = vcombine.high %v8125_v24, %v8133_v26  ;;  %v7777_v11 = vcombine.low %v7738_v52, %v7770_v8  ;;  %v7802_v23 = vrot.slane %v10541_v33, %v18037_v61 }
 0xb8a   :  { %v10050_v42 = vsel %vm4792_vm0, %v10034_v37, %v10038_v29  ;;  %v7810_v10 = vrot.slane %v10542_v62, %v18037_v61  ;;  %v8166_v7 = vcombine.low %v8142_v0, %v8158_v16  ;;  %v8135_v37 = vcombine.high %v8109_v4, %v8117_v63  ;;  %v18874_v63 = vld [vmem:[#allocation21_spill] sm:$0xff] }
 0xb8b   :  { %8195 = vrot.lane.b32.xlu1 %v8101_v56, %s10651_s17  ;;  %10374 = vmatprep.subr.mxu1 %v10050_v42  ;;  %v18872_v26 = vcombine.low %v18870_v44, %v18871_v6  ;;  %v7778_v36 = vcombine.high %v7738_v52, %v7770_v8  ;;  %v8165_v61 = vrot.slane %v8151_v9, %v18038_v34  ;;  %v18875_v42 = vld [vmem:[#allocation167_spill] sm:$0xff]  ;;  %v18883_v44 = vld [vmem:[#allocation58_spill] sm:$0xff] }
 0xb8c   :  { %8510 = vrot.lane.b32.xlu0 %v8474_v55, %s10682_s1  ;;  %10375 = vmatpush1.msra.mxu1 %v10049_v59  ;;  %v7811_v56 = vcombine.low %v7786_v17, %v7794_v19  ;;  %v7827_v53 = vcombine.low %v7802_v23, %v7810_v10  ;;  %v8167_v27 = vcombine.high %v8142_v0, %v8158_v16 }
 0xb8d   :  { %v6611_v20 = vpop.permute.xlu1 %6610  ;;  %v8782_v32 = vpop.permute.xlu0 %8781  ;;  %v6625_v24 = vsel %vm256_vm7, %v18872_v26, %v18869_v41  ;;  %v8149_v55 = vrot.slane %v8135_v37, %v18038_v34  ;;  %v7812_v45 = vcombine.high %v7786_v17, %v7794_v19  ;;  %v7828_v14 = vcombine.high %v7802_v23, %v7810_v10  ;;  %v18876_v19 = vld [vmem:[#allocation200_spill] sm:$0xff]  ;;  %v18880_v23 = vld [vmem:[#allocation103_spill] sm:$0xff] }
 0xb8e   :  { %v17043_v3 = vsel %vm4776_vm10, %v16961_v18, %v8782_v32  ;;  %v7819_v57 = vrot.slane %v7811_v56, %v18038_v34  ;;  %v7835_v1 = vrot.slane %v7827_v53, %v18038_v34  ;;  %v50_v56 = vld [vmem:[%s17392_s6] sm:$0xff] }
 0xb8f   :  { %8514 = vrot.lane.b32.xlu1 %v8475_v22, %s10683_s13  ;;  %v8168_v35 = vcombine.low %v8149_v55, %v8165_v61  ;;  %v8169_v52 = vcombine.high %v8149_v55, %v8165_v61  ;;  %v7826_v16 = vrot.slane %v7812_v45, %v18038_v34  ;;  %v7842_v32 = vrot.slane %v7828_v14, %v18038_v34  ;;  %v18881_v34 = vld [vmem:[#allocation99_spill] sm:$0xff]  ;;  %v18884_v61 = vld [vmem:[#allocation170_spill] sm:$0xff]  ;;  %v18885_v55 = vld [vmem:[#allocation249_spill] sm:$0xff] }
 0xb90   :  { %8518 = vrot.lane.b32.xlu0 %v8476_v50, %s10684_s14  ;;  %v7843_v62 = vcombine.low %v7819_v57, %v7835_v1  ;;  %v7844_v0 = vcombine.high %v7819_v57, %v7835_v1  ;;  %v18882_v10 = vcombine.low %v18880_v23, %v18881_v34  ;;  %v18891_v57 = vld [vmem:[#allocation48_spill] sm:$0xff]  ;;  %v18901_v23 = vld [vmem:[#allocation46_spill] sm:$0xff] }
 0xb91   :  { %v9097_v31 = vpop.permute.xlu1 %9096  ;;  %v17056_v51 = vpop.permute.xlu0 %9411  ;;  %v7845_v41 = vcombine.low %v7826_v16, %v7842_v32 }
 0xb92   :  { %v17054_v18 = vsel %vm4779_vm11, %v16967_v43, %v9097_v31  ;;  %v6626_v43 = vsel %vm4776_vm10, %v6625_v24, %v18873_v13 }
 0xb93   :  { %7868 = vrot.lane.b32.xlu1 %v7777_v11, %s10671_s22  ;;  %v6627_v58 = vsel %vm2032_vm1, %v6626_v43, %v18874_v63  ;;  %v18879_v11 = vld [vmem:[#allocation161_spill] sm:$0xff] }
 0xb94   :  { %8199 = vrot.lane.b32.xlu0 %v8166_v7, %s10681_s12  ;;  %v6628_v54 = vsel %vm4779_vm11, %v6627_v58, %v18875_v42  ;;  %v9733_v7 = vsel %vm256_vm7, %v18882_v10, %v18879_v11  ;;  %v18886_v42 = vld [vmem:[#allocation175_spill] sm:$0xff] }
 0xb95   :  { %v9719_v29 = vpop.permute.xlu1 %9718  ;;  %v17070_v4 = vpop.permute.xlu0 %6307  ;;  %v6629_v59 = vsel %vm4781_vm12, %v6628_v54, %v16618_v39  ;;  %v9734_v6 = vsel %vm4776_vm10, %v9733_v7, %v18883_v44  ;;  %v18887_v54 = vld [vmem:[#allocation172_spill] sm:$0xff]  ;;  %v18900_v11 = vld [vmem:[#allocation47_spill] sm:$0xff]  ;;  %v18903_v7 = vld [vmem:[#allocation237_spill] sm:$0xff] }
 0xb96   :  { %v6630_v46 = vsel %vm4783_vm13, %v6629_v59, %v16814_v30  ;;  %v9735_v13 = vsel %vm2032_vm1, %v9734_v6, %v18884_v61  ;;  %v18888_v59 = vcombine.low %v18886_v42, %v18887_v54  ;;  %v18902_v34 = vcombine.low %v18900_v11, %v18901_v23  ;;  %v18914_v54 = vld [vmem:[#allocation139_spill] sm:$0xff] }
 0xb97   :  { %7872 = vrot.lane.b32.xlu1 %v7778_v36, %s10651_s17  ;;  %v6631_v33 = vsel %vm248_vm8, %v6630_v46, %v16914_v28  ;;  %v7846_v36 = vcombine.high %v7826_v16, %v7842_v32  ;;  %v9736_v43 = vsel %vm4779_vm11, %v9735_v13, %v16572_v49  ;;  %v18896_v32 = vld [vmem:[#allocation45_spill] sm:$0xff]  ;;  %v18908_v13 = vld [vmem:[#allocation240_spill] sm:$0xff] }
 0xb98   :  { %8203 = vrot.lane.b32.xlu0 %v8167_v27, %s10682_s1  ;;  %v6632_v39 = vsel %vm4786_vm14, %v6631_v33, %v6611_v20  ;;  %v18877_v20 = vld [vmem:[#allocation180_spill] sm:$0xff]  ;;  %v6019_v45 = vsel %vm256_vm7, %v18888_v59, %v18885_v55 }
 0xb99   :  { %v6615_v38 = vpop.permute.xlu1 %6614  ;;  %v6619_v22 = vpop.permute.xlu0 %6618  ;;  %v18878_v9 = vcombine.low %v18876_v19, %v18877_v20  ;;  %v18893_v33 = vld [vmem:[#allocation56_spill] sm:$0xff]  ;;  %v18898_v19 = vld [vmem:[#allocation183_spill] sm:$0xff] }
 0xb9a   :  { %v6633_v8 = vsel %vm4788_vm15, %v6632_v39, %v6615_v38 }
 0xb9b   :  { %8207 = vrot.lane.b32.xlu1 %v8168_v35, %s10683_s13  ;;  %v6634_v17 = vsel %vm4790_vm2, %v6633_v8, %v6619_v22  ;;  %v18890_v35 = vld [vmem:[#allocation78_spill] sm:$0xff]  ;;  %v18895_v8 = vld [vmem:[#allocation251_spill] sm:$0xff] }
 0xb9c   :  { %8211 = vrot.lane.b32.xlu0 %v8169_v52, %s10684_s14  ;;  %v18892_v1 = vcombine.low %v18890_v35, %v18891_v57  ;;  %v18894_v52 = vld [vmem:[#allocation250_spill] sm:$0xff]  ;;  %v18918_v35 = vld [vmem:[#allocation239_spill] sm:$0xff] }
 0xb9d   :  { %v6623_v30 = vpop.permute.xlu1 %6622  ;;  %v8479_v50 = vpop.permute.xlu0 %8478  ;;  %v6020_v39 = vsel %vm4776_vm10, %v6019_v45, %v18894_v52  ;;  %v18915_v45 = vld [vmem:[#allocation214_spill] sm:$0xff] }
 0xb9e   :  { %v6635_v28 = vsel %vm4792_vm0, %v6619_v22, %v6623_v30  ;;  %v8521_v31 = vsel %vm256_vm7, %v18878_v9, %v8479_v50  ;;  %v6021_v30 = vsel %vm2032_vm1, %v6020_v39, %v18895_v8  ;;  %v18899_v9 = vld [vmem:[#allocation143_spill] sm:$0xff]  ;;  %v18921_v52 = vld [vmem:[#allocation242_spill] sm:$0xff]  ;;  %v6331_v8 = vsel %vm4783_vm13, %v16890_v48, %v17023_v47  ;;  %v18927_v47 = vld [vmem:[#allocation241_spill] sm:$0xff] }
 0xb9f   :  { %7876 = vrot.lane.b32.xlu1 %v7843_v62, %s10681_s12  ;;  %7276 = vmatprep.subr.mxu0 %v6635_v28  ;;  %v18897_v28 = vld [vmem:[#allocation212_spill] sm:$0xff]  ;;  %v6022_v20 = vsel %vm4779_vm11, %v6021_v30, %v18898_v19  ;;  %v4775_v10 = vsel %vm256_vm7, %v18902_v34, %v18899_v9  ;;  %v18924_v19 = vld [vmem:[#allocation142_spill] sm:$0xff]  ;;  %v18925_v9 = vld [vmem:[#allocation31_spill] sm:$0xff] }
 0xba0   :  { %7880 = vrot.lane.b32.xlu0 %v7844_v0, %s10682_s1  ;;  %7277 = vmatpush1.msra.mxu0 %v6634_v17  ;;  %v4777_v59 = vsel %vm4776_vm10, %v4775_v10, %v18914_v54  ;;  %v18926_v34 = vld [vmem:[#allocation144_spill] sm:$0xff] }
 0xba1   :  { %v8786_v37 = vpop.permute.xlu1 %8785  ;;  %v17110_v24 = vpop.permute.xlu0 %9100 }
 0xba2   :  { %v17108_v26 = vsel %vm2032_vm1, %v17043_v3, %v8786_v37  ;;  %v9737_v3 = vsel %vm4781_vm12, %v9736_v43, %v16723_v15  ;;  %v18904_v37 = vld [vmem:[#allocation138_spill] sm:$0xff] }
 0xba3   :  { %7884 = vrot.lane.b32.xlu1 %v7845_v41, %s10683_s13  ;;  %v9738_v63 = vsel %vm4783_vm13, %v9737_v3, %v16863_v21  ;;  %v18889_v21 = vld [vmem:[#allocation60_spill] sm:$0xff]  ;;  %v18905_v41 = vld [vmem:[#allocation135_spill] sm:$0xff]  ;;  %v18909_v3 = vld [vmem:[#allocation213_spill] sm:$0xff] }
 0xba4   :  { %7888 = vrot.lane.b32.xlu0 %v7846_v36, %s10684_s14  ;;  %v9739_v27 = vsel %vm248_vm8, %v9738_v63, %v16988_v40  ;;  %v5712_v40 = vsel %vm256_vm7, %v18892_v1, %v18889_v21  ;;  %v18906_v44 = vcombine.low %v18904_v37, %v18905_v41  ;;  %v18919_v1 = vld [vmem:[#allocation181_spill] sm:$0xff]  ;;  %v18928_v41 = vld [vmem:[#allocation147_spill] sm:$0xff] }
 0xba5   :  { %v17123_v53 = vpop.permute.xlu1 %9415  ;;  %v9723_v58 = vpop.permute.xlu0 %9722  ;;  %v9740_v49 = vsel %vm4786_vm14, %v9739_v27, %v9719_v29  ;;  %v5713_v22 = vsel %vm4776_vm10, %v5712_v40, %v18893_v33  ;;  %v18911_v27 = vld [vmem:[#allocation137_spill] sm:$0xff]  ;;  %v18920_v33 = vld [vmem:[#allocation231_spill] sm:$0xff] }
 0xba6   :  { %v9741_v15 = vsel %vm4788_vm15, %v9740_v49, %v9723_v58  ;;  %v5714_v50 = vsel %vm2032_vm1, %v5713_v22, %v18896_v32  ;;  %v5413_v6 = vsel %vm256_vm7, %v18906_v44, %v18903_v7  ;;  %v18910_v58 = vld [vmem:[#allocation232_spill] sm:$0xff]  ;;  %v18912_v49 = vld [vmem:[#allocation134_spill] sm:$0xff]  ;;  %v18929_v44 = vld [vmem:[#allocation233_spill] sm:$0xff] }
 0xba7   :  { %7252 = vperm.xlu1 %10588, %v50_v56   ;;  %v5715_v17 = vsel %vm4779_vm11, %v5714_v50, %v18897_v28  ;;  %v5414_v43 = vsel %vm4776_vm10, %v5413_v6, %v18908_v13  ;;  %v18913_v55 = vcombine.low %v18911_v27, %v18912_v49  ;;  %v18923_v50 = vld [vmem:[#allocation234_spill] sm:$0xff]  ;;  %v18933_v49 = vld [vmem:[#allocation140_spill] sm:$0xff] }
 0xba8   :  { %v5716_v63 = vsel %vm4781_vm12, %v5715_v17, %v18909_v3  ;;  %v5415_v57 = vsel %vm2032_vm1, %v5414_v43, %v18918_v35  ;;  %v6332_v17 = vsel %vm248_vm8, %v6331_v8, %v17070_v4  ;;  %v18931_v43 = vld [vmem:[#allocation236_spill] sm:$0xff] }
 0xba9   :  { %v9727_v14 = vpop.permute.xlu1 %9726  ;;  %v9731_v38 = vpop.permute.xlu0 %9730  ;;  %v5106_v42 = vsel %vm256_vm7, %v18913_v55, %v18910_v58  ;;  %v5416_v39 = vsel %vm4779_vm11, %v5415_v57, %v18921_v52  ;;  %v18932_v58 = vld [vmem:[#allocation27_spill] sm:$0xff] }
 0xbaa   :  { %v9742_v46 = vsel %vm4790_vm2, %v9741_v15, %v9727_v14  ;;  %v9743_v29 = vsel %vm4792_vm0, %v9727_v14, %v9731_v38  ;;  %v5717_v15 = vsel %vm4783_vm13, %v5716_v63, %v18915_v45  ;;  %v18916_v14 = vld [vmem:[#allocation179_spill] sm:$0xff]  ;;  %v5107_v22 = vsel %vm4776_vm10, %v5106_v42, %v18920_v33  ;;  %v18935_v45 = vld [vmem:[#allocation41_spill] sm:$0xff] }
 0xbab   :  { %10376 = vmatprep.subr.mxu1 %v9743_v29  ;;  %v18917_v38 = vld [vmem:[#allocation131_spill] sm:$0xff]  ;;  %v5108_v28 = vsel %vm2032_vm1, %v5107_v22, %v18923_v50  ;;  %v5417_v10 = vsel %vm4781_vm12, %v5416_v39, %v18927_v47  ;;  %v18941_v39 = vld [vmem:[#allocation132_spill] sm:$0xff]  ;;  %v18944_v50 = vld [vmem:[#allocation166_spill] sm:$0xff] }
 0xbac   :  { %10377 = vmatpush1.msra.mxu1 %v9742_v46  ;;  %v4778_v21 = vsel %vm2032_vm1, %v4777_v59, %v18917_v38  ;;  %v5109_v6 = vsel %vm4779_vm11, %v5108_v28, %v18929_v44  ;;  %v18934_v42 = vld [vmem:[#allocation243_spill] sm:$0xff] }
 0xbad   :  { %v6312_v62 = vpop.permute.xlu1 %6311  ;;  %v8483_v16 = vpop.permute.xlu0 %8482  ;;  %v5110_v3 = vsel %vm4781_vm12, %v5109_v6, %v18931_v43  ;;  %v18939_v57 = vld [vmem:[#allocation15_spill] sm:$0xff] }
 0xbae   :  { %v17152_v0 = vsel %vm4776_vm10, %v8521_v31, %v8483_v16  ;;  %v18907_v31 = vld [vmem:[#allocation182_spill] sm:$0xff]  ;;  %v18922_v16 = vld [vmem:[#allocation215_spill] sm:$0xff]  ;;  %v6333_v23 = vsel %vm4786_vm14, %v6332_v17, %v6312_v62 }
 0xbaf   :  { %v6023_v36 = vsel %vm4781_vm12, %v6022_v20, %v18907_v31  ;;  %v5718_v32 = vsel %vm248_vm8, %v5717_v15, %v18922_v16  ;;  %v4780_v20 = vsel %vm4779_vm11, %v4778_v21, %v18924_v19  ;;  %v18930_v31 = vld [vmem:[#allocation244_spill] sm:$0xff]  ;;  %v18938_v21 = vld [vmem:[#allocation235_spill] sm:$0xff]  ;;  %v18946_v19 = vld [vmem:[#allocation34_spill] sm:$0xff] }
 0xbb0   :  { %v6024_v46 = vsel %vm4783_vm13, %v6023_v36, %v18916_v14  ;;  %v4782_v48 = vsel %vm4781_vm12, %v4780_v20, %v18926_v34  ;;  %v5719_v4 = vsel %vm4786_vm14, %v5718_v32, %v18928_v41  ;;  %v5418_v36 = vsel %vm4783_vm13, %v5417_v10, %v18930_v31  ;;  %v18936_v15 = vld [vmem:[#allocation248_spill] sm:$0xff]  ;;  %v18943_v32 = vld [vmem:[#allocation169_spill] sm:$0xff]  ;;  %v18952_v6 = vld [vmem:[#allocation247_spill] sm:$0xff] }
 0xbb1   :  { %v17170_v61 = vpop.permute.xlu1 %8789  ;;  %v17174_v56 = vpop.permute.xlu0 %9104  ;;  %v6025_v40 = vsel %vm248_vm8, %v6024_v46, %v18919_v1  ;;  %v4784_v55 = vsel %vm4783_vm13, %v4782_v48, %v18933_v49  ;;  %v5419_v54 = vsel %vm248_vm8, %v5418_v36, %v18934_v42  ;;  %v6029_v14 = vsel %vm4792_vm0, %v18936_v15, %v18935_v45  ;;  %v18937_v46 = vld [vmem:[#allocation151_spill] sm:$0xff]  ;;  %v18949_v48 = vld [vmem:[#allocation153_spill] sm:$0xff] }
 0xbb2   :  { %v6026_v11 = vsel %vm4786_vm14, %v6025_v40, %v18925_v9  ;;  %v5720_v38 = vsel %vm4788_vm15, %v5719_v4, %v18937_v46  ;;  %v5111_v35 = vsel %vm4783_vm13, %v5110_v3, %v18938_v21  ;;  %v5420_v1 = vsel %vm4786_vm14, %v5419_v54, %v18939_v57  ;;  %v18951_v4 = vld [vmem:[#allocation246_spill] sm:$0xff]  ;;  %v18953_v31 = vld [vmem:[#allocation39_spill] sm:$0xff] }
 0xbb3   :  { %v6027_v27 = vsel %vm4788_vm15, %v6026_v11, %v18932_v58  ;;  %v18940_v40 = vcombine.low %v15961_v12, %v15947_v60  ;;  %v4785_v8 = vsel %vm248_vm8, %v4784_v55, %v18941_v39  ;;  %v5722_v60 = vsel %vm4792_vm0, %v18944_v50, %v18943_v32  ;;  %v18945_v12 = vld [vmem:[#allocation245_spill] sm:$0xff]  ;;  %v18947_v11 = vld [vmem:[#allocation42_spill] sm:$0xff]  ;;  %v18954_v3 = vld [vmem:[#allocation155_spill] sm:$0xff] }
 0xbb4   :  { %v6028_v52 = vsel %vm4790_vm2, %v6027_v27, %v18936_v15  ;;  %v5721_v17 = vsel %vm4790_vm2, %v5720_v38, %v18944_v50  ;;  %v5421_v20 = vsel %vm4788_vm15, %v5420_v1, %v18946_v19  ;;  %v4787_v47 = vsel %vm4786_vm14, %v4785_v8, %v18949_v48  ;;  %v17293_v27 = vld [vmem:[%s17391_s5] sm:$0xff] }
 0xbb5   :  { %v17195_v29 = vpop.permute.xlu1 %9419  ;;  %v6316_v30 = vpop.permute.xlu0 %6315  ;;  %v5116_v36 = vsel %vm4792_vm0, %v18953_v31, %v18952_v6 }
 0xbb6   :  { %v6334_v7 = vsel %vm4788_vm15, %v6333_v23, %v6316_v30  ;;  %v18942_v30 = vld [vmem:[#allocation238_spill] sm:$0xff]  ;;  %v18948_v23 = vld [vmem:[#allocation23_spill] sm:$0xff] }
 0xbb7   :  { %v5112_v16 = vsel %vm248_vm8, %v5111_v35, %v18942_v30  ;;  %v5423_v34 = vsel %vm4792_vm0, %v18948_v23, %v18947_v11  ;;  %v9131_v35 = vsel %vm4781_vm12, %v17054_v18, %v17110_v24 }
 0xbb8   :  { %v5113_v28 = vsel %vm4786_vm14, %v5112_v16, %v18945_v12  ;;  %v9132_v1 = vsel %vm4783_vm13, %v9131_v35, %v17174_v56 }
 0xbb9   :  { %v6320_v37 = vpop.permute.xlu1 %6319  ;;  %v6324_v13 = vpop.permute.xlu0 %6323  ;;  %v5114_v44 = vsel %vm4788_vm15, %v5113_v28, %v18951_v4 }
 0xbba   :  { %v6335_v62 = vsel %vm4790_vm2, %v6334_v7, %v6320_v37  ;;  %v6336_v63 = vsel %vm4792_vm0, %v6320_v37, %v6324_v13  ;;  %v5422_v7 = vsel %vm4790_vm2, %v5421_v20, %v18948_v23  ;;  %v18950_v37 = vld [vmem:[#allocation149_spill] sm:$0xff]  ;;  %v9439_v13 = vsel %vm4783_vm13, %v16986_v25, %v17056_v51 }
 0xbbb   :  { %7278 = vmatprep.subr.mxu0 %v6336_v63  ;;  %v4789_v41 = vsel %vm4788_vm15, %v4787_v47, %v18950_v37  ;;  %v18955_v63 = vld [vmem:[#allocation158_spill] sm:$0xff]  ;;  %v9440_v49 = vsel %vm248_vm8, %v9439_v13, %v17123_v53 }
 0xbbc   :  { %7279 = vmatpush1.msra.mxu0 %v6335_v62  ;;  %v5115_v62 = vsel %vm4790_vm2, %v5114_v44, %v18953_v31  ;;  %v4793_v58 = vsel %vm4792_vm0, %v18955_v63, %v18954_v3  ;;  %v4791_v42 = vsel %vm4790_vm2, %v4789_v41, %v18955_v63  ;;  %v9441_v25 = vsel %vm4786_vm14, %v9440_v49, %v17195_v29 }
 0xbbd   :  { %v8172_v59 = vpop.permute.xlu1 %8171  ;;  %7280 = vmatprep.subr.mxu0 %v6029_v14  ;;  %v17251_v22 = vpop.permute.xlu0 %8486 }
 0xbbe   :  { %v17249_v33 = vsel %vm256_vm7, %v18940_v40, %v8172_v59  ;;  %7281 = vmatpush1.msra.mxu0 %v6028_v52  ;;  %v8523_v44 = vsel %vm2032_vm1, %v17152_v0, %v17251_v22 }
 0xbbf   :  { %7282 = vmatprep.subr.mxu0 %v5722_v60 }
 0xbc0   :  { %7283 = vmatpush1.msra.mxu0 %v5721_v17  ;;  %v8823_v17 = vsel %vm4779_vm11, %v17108_v26, %v17170_v61 }
 0xbc1   :  { %v8794_v9 = vpop.permute.xlu1 %8793  ;;  %7284 = vmatprep.subr.mxu0 %v5423_v34  ;;  %v9109_v10 = vpop.permute.xlu0 %9108 }
 0xbc2   :  { %7285 = vmatpush1.msra.mxu0 %v5422_v7  ;;  %v9133_v52 = vsel %vm248_vm8, %v9132_v1, %v9109_v10  ;;  %v8824_v19 = vsel %vm4781_vm12, %v8823_v17, %v8794_v9 }
 0xbc3   :  { %7286 = vmatprep.subr.mxu0 %v5116_v36 }
 0xbc4   :  { %7287 = vmatpush1.msra.mxu0 %v5115_v62 }
 0xbc5   :  { %v9424_v43 = vpop.permute.xlu1 %9423  ;;  %7288 = vmatprep.subr.mxu0 %v4793_v58  ;;  %v9428_v55 = vpop.permute.xlu0 %9427 }
 0xbc6   :  { %7289 = vmatpush1.msra.mxu0 %v4791_v42  ;;  %v9442_v51 = vsel %vm4788_vm15, %v9441_v25, %v9424_v43 }
 0xbc7   :  { %10530 = vmatmul.mubr.msk.f32.vlgmr.msra.gmra.mxu0 %vm4783_vm13, %v17293_v27  ;;  %v9443_v53 = vsel %vm4790_vm2, %v9442_v51, %v9428_v55 }
 0xbc9   :  { %v9432_v54 = vpop.permute.xlu1 %9431 }
 0xbca   :  { %v17304_v59 = vpop.permute.xlu0 %8175  ;;  %v9444_v45 = vsel %vm4792_vm0, %v9428_v55, %v9432_v54 }
 0xbcb   :  { %10378 = vmatprep.subr.mxu1 %v9444_v45  ;;  %v8215_v42 = vsel %vm4776_vm10, %v17249_v33, %v17304_v59 }
 0xbcc   :  { %10379 = vmatpush1.msra.mxu1 %v9443_v53 }
 0xbcd   :  { %v8491_v15 = vpop.permute.xlu1 %8490 }
 0xbce   :  { %v8798_v14 = vpop.permute.xlu0 %8797  ;;  %v8524_v6 = vsel %vm4779_vm11, %v8523_v44, %v8491_v15 }
 0xbcf   :  { %v8825_v11 = vsel %vm4783_vm13, %v8824_v19, %v8798_v14 }
 0xbd1   :  { %v9113_v46 = vpop.permute.xlu1 %9112 }
 0xbd2   :  { %v17308_v38 = vpop.permute.xlu0 %7848  ;;  %v9134_v39 = vsel %vm4786_vm14, %v9133_v52, %v9113_v46  ;;  %v18956_v46 = vcombine.low %v18799_v2, %v18798_v5 }
 0xbd5   :  { %v8180_v29 = vpop.permute.xlu1 %8179 }
 0xbd6   :  { %v8495_v21 = vpop.permute.xlu0 %8494  ;;  %v8216_v51 = vsel %vm2032_vm1, %v8215_v42, %v8180_v29 }
 0xbd7   :  { %v8525_v31 = vsel %vm4781_vm12, %v8524_v6, %v8495_v21  ;;  %v7891_v21 = vsel %vm256_vm7, %v18956_v46, %v17308_v38 }
 0xbd9   :  { %v8802_v57 = vpop.permute.xlu1 %8801 }
 0xbda   :  { %v9117_v40 = vpop.permute.xlu0 %9116  ;;  %v8826_v34 = vsel %vm248_vm8, %v8825_v11, %v8802_v57 }
 0xbdb   :  { %v9135_v8 = vsel %vm4788_vm15, %v9134_v39, %v9117_v40 }
 0xbdd   :  { %v9121_v30 = vpop.permute.xlu1 %9120 }
 0xbde   :  { %v9136_v16 = vsel %vm4790_vm2, %v9135_v8, %v9121_v30  ;;  %v9125_v32 = vpop.permute.xlu0 %9124 }
 0xbdf   :  { %v9137_v50 = vsel %vm4792_vm0, %v9121_v30, %v9125_v32 }
 0xbe0   :  { %10380 = vmatprep.subr.mxu1 %v9137_v50 }
 0xbe1   :  { %10381 = vmatpush1.msra.mxu1 %v9136_v16  ;;  %v7853_v18 = vpop.permute.xlu1 %7852 }
 0xbe2   :  { %v8184_v24 = vpop.permute.xlu0 %8183  ;;  %v7892_v33 = vsel %vm4776_vm10, %v7891_v21, %v7853_v18 }
 0xbe3   :  { %v8217_v54 = vsel %vm4779_vm11, %v8216_v51, %v8184_v24 }
 0xbe5   :  { %v8499_v60 = vpop.permute.xlu1 %8498 }
 0xbe6   :  { %v8806_v12 = vpop.permute.xlu0 %8805  ;;  %v8526_v62 = vsel %vm4783_vm13, %v8525_v31, %v8499_v60 }
 0xbe7   :  { %v8827_v48 = vsel %vm4786_vm14, %v8826_v34, %v8806_v12 }
 0xbe9   :  { %v7857_v56 = vpop.permute.xlu1 %7856 }
 0xbea   :  { %v8188_v28 = vpop.permute.xlu0 %8187  ;;  %v7893_v29 = vsel %vm2032_vm1, %v7892_v33, %v7857_v56  ;;  %vm10429_vm1 = vcmask 130048  }
 0xbeb   :  { %v8218_v45 = vsel %vm4781_vm12, %v8217_v54, %v8188_v28 }
 0xbed   :  { %v8503_v20 = vpop.permute.xlu1 %8502 }
 0xbee   :  { %v8810_v23 = vpop.permute.xlu0 %8809  ;;  %v8527_v43 = vsel %vm248_vm8, %v8526_v62, %v8503_v20 }
 0xbef   :  { %v8828_v47 = vsel %vm4788_vm15, %v8827_v48, %v8810_v23 }
 0xbf1   :  { %v8814_v10 = vpop.permute.xlu1 %8813 }
 0xbf2   :  { %v8829_v7 = vsel %vm4790_vm2, %v8828_v47, %v8814_v10  ;;  %v8818_v37 = vpop.permute.xlu0 %8817 }
 0xbf3   :  { %v8830_v41 = vsel %vm4792_vm0, %v8814_v10, %v8818_v37 }
 0xbf4   :  { %10382 = vmatprep.subr.mxu1 %v8830_v41 }
 0xbf5   :  { %10383 = vmatpush1.msra.mxu1 %v8829_v7  ;;  %v7861_v26 = vpop.permute.xlu1 %7860 }
 0xbf6   :  { %v8192_v61 = vpop.permute.xlu0 %8191  ;;  %v7894_v40 = vsel %vm4779_vm11, %v7893_v29, %v7861_v26 }
 0xbf7   :  { %v8219_v15 = vsel %vm4783_vm13, %v8218_v45, %v8192_v61  ;;  %v10465_v45 = vld [vmem:[%s17394_s8] sm:$0xff] }
 0xbf9   :  { %v8507_v9 = vpop.permute.xlu1 %8506 }
 0xbfa   :  { %v7865_v4 = vpop.permute.xlu0 %7864  ;;  %v8528_v3 = vsel %vm4786_vm14, %v8527_v43, %v8507_v9 }
 0xbfb   :  { %v7895_v5 = vsel %vm4781_vm12, %v7894_v40, %v7865_v4 }
 0xbfd   :  { %v8196_v36 = vpop.permute.xlu1 %8195 }
 0xbfe   :  { %v8511_v13 = vpop.permute.xlu0 %8510  ;;  %v8220_v35 = vsel %vm248_vm8, %v8219_v15, %v8196_v36 }
 0xbff   :  { %v8529_v63 = vsel %vm4788_vm15, %v8528_v3, %v8511_v13 }
 0xc01   :  { %v8515_v58 = vpop.permute.xlu1 %8514 }
 0xc02   :  { %v8530_v49 = vsel %vm4790_vm2, %v8529_v63, %v8515_v58  ;;  %v8519_v55 = vpop.permute.xlu0 %8518 }
 0xc03   :  { %v8531_v0 = vsel %vm4792_vm0, %v8515_v58, %v8519_v55 }
 0xc04   :  { %10384 = vmatprep.subr.mxu1 %v8531_v0 }
 0xc05   :  { %10385 = vmatpush1.msra.mxu1 %v8530_v49  ;;  %v7869_v22 = vpop.permute.xlu1 %7868 }
 0xc06   :  { %v8200_v25 = vpop.permute.xlu0 %8199  ;;  %v7896_v38 = vsel %vm4783_vm13, %v7895_v5, %v7869_v22 }
 0xc07   :  { %v8221_v59 = vsel %vm4786_vm14, %v8220_v35, %v8200_v25  ;;  %v10461_v25 = vld [vmem:[%s17393_s7] sm:$0xff]  ;;  %s10619_s7 = scalar_lea.vmem %s10501_s16, 512 }
 0xc08   :  { %p10620_p5 = scmp.ne.s32.totalorder %s10501_s16, %s10619_s7  ;;  %p10625_p7 = scmp.lt.s32.totalorder %s10619_s7, %s10619_s7 }
 0xc09   :  { %v7873_v53 = vpop.permute.xlu1 %7872 }
 0xc0a   :  { %v8204_v14 = vpop.permute.xlu0 %8203  ;;  %v7897_v8 = vsel %vm248_vm8, %v7896_v38, %v7873_v53  ;;  %p10626_p8 = por %p10625_p7, %p10624_p6 }
 0xc0b   :  { %v8222_v57 = vsel %vm4788_vm15, %v8221_v59, %v8204_v14 }
 0xc0c   :  { %p10627_p9 = pnand %p10626_p8, %p10620_p5 }
 0xc0d   :  { %v8208_v1 = vpop.permute.xlu1 %8207 }
 0xc0e   :  { %v8223_v52 = vsel %vm4790_vm2, %v8222_v57, %v8208_v1  ;;  %v8212_v39 = vpop.permute.xlu0 %8211 }
 0xc0f   :  { %v8224_v2 = vsel %vm4792_vm0, %v8208_v1, %v8212_v39 }
 0xc10   :  { %10386 = vmatprep.subr.mxu1 %v8224_v2 }
 0xc11   :  { %10387 = vmatpush1.msra.mxu1 %v8223_v52  ;;  %v7877_v30 = vpop.permute.xlu1 %7876 }
 0xc12   :  { %v7898_v16 = vsel %vm4786_vm14, %v7897_v8, %v7877_v30  ;;  %v7881_v32 = vpop.permute.xlu0 %7880 }
 0xc13   :  { %v7899_v50 = vsel %vm4788_vm15, %v7898_v16, %v7881_v32 }
 0xc15   :  { %v7885_v18 = vpop.permute.xlu1 %7884 }
 0xc16   :  { %v7900_v24 = vsel %vm4790_vm2, %v7899_v50, %v7885_v18  ;;  %v7889_v60 = vpop.permute.xlu0 %7888 }
 0xc17   :  { %v7901_v12 = vsel %vm4792_vm0, %v7885_v18, %v7889_v60 }
 0xc18   :  { %10388 = vmatprep.subr.mxu1 %v7901_v12 }
 0xc19   :  { %10389 = vmatpush1.msra.mxu1 %v7900_v24 }
 0xc1a   :  { %10543 = vmatmul.mubr.msk.f32.vlgmr.msra.gmra.mxu1 %vm4783_vm13, %v17293_v27 }
 0xc22   :  { %v7253_v28 = vpop.permute.xlu1 %7252 }
 0xc87   :  { %v7324_v56 = vpop.f32.mrf.mxu0 }
 0xc88   :  { %v7325_v20 = vadd.f32 %v7324_v56, %v7253_v28 }
 0xc89   :  { %v7326_v17 = vpop.f32.mrf.mxu0 }
 0xc8a   :  { %v7327_v19 = vadd.f32 %v7326_v17, %v7253_v28 }
 0xc8c   :  { %v10430_v11 = vsel %vm10429_vm1, %v7327_v19, 0.0 }
 0xc8d   :  { %v10431_v23 = vadd.f32 %v10430_v11, %v7325_v20 }
 0xc8f   :  { %10432 = vadd.xlane.f32.xlu0 %v10431_v23 }
 0xcda   :  { %v10424_v34 = vpop.f32.mrf.mxu1 }
 0xcdb   :  { %v10425_v10 = vadd.f32 %v10424_v34, %v7253_v28 }
 0xcdc   :  { %v10426_v48 = vpop.f32.mrf.mxu1 }
 0xcdd   :  { %v10427_v47 = vadd.f32 %v10426_v48, %v7253_v28 }
 0xcdf   :  { %v10435_v7 = vsel %vm10429_vm1, %v10427_v47, 0.0 }
 0xce0   :  { %v10436_v37 = vadd.f32 %v10435_v7, %v10425_v10 }
 0xce2   :  { %10437 = vadd.xlane.f32.xlu1 %v10436_v37 }
 0xd18   :  { %v10433_v41 = vpop.xlane.xlu0 %10432 }
 0xd6b   :  { %v10438_v27 = vpop.xlane.xlu1 %10437 }
 0xd6c   :  { %v10439_v26 = vadd.f32 %v10438_v27, %v10433_v41 }
 0xd6e   :  { %v10441_v61 = vmul.f32 0.0034722222, %v10439_v26 }
 0xd70   :  { %v10442_v9 = vsub.f32 %v7325_v20, %v10441_v61  ;;  %v10443_v4 = vsub.f32 %v7327_v19, %v10441_v61  ;;  %v10452_v44 = vsub.f32 %v10427_v47, %v10441_v61  ;;  %v10451_v6 = vsub.f32 %v10425_v10, %v10441_v61 }
 0xd72   :  { %v10444_v31 = vmul.f32 %v10442_v9, %v10442_v9  ;;  %v10445_v36 = vmul.f32 %v10443_v4, %v10443_v4  ;;  %v10454_v62 = vmul.f32 %v10452_v44, %v10452_v44  ;;  %v10453_v3 = vmul.f32 %v10451_v6, %v10451_v6 }
 0xd74   :  { %v10446_v13 = vsel %vm10429_vm1, %v10445_v36, 0.0  ;;  %v10455_v63 = vsel %vm10429_vm1, %v10454_v62, 0.0 }
 0xd75   :  { %v10447_v43 = vadd.f32 %v10446_v13, %v10444_v31  ;;  %v10456_v58 = vadd.f32 %v10455_v63, %v10453_v3 }
 0xd77   :  { %10448 = vadd.xlane.f32.xlu0 %v10447_v43 }
 0xd7b   :  { %10457 = vadd.xlane.f32.xlu0 %v10456_v58 }
 0xe00   :  { %v10449_v49 = vpop.xlane.xlu0 %10448 }
 0xe04   :  { %v10458_v55 = vpop.xlane.xlu0 %10457 }
 0xe05   :  { %v10459_v0 = vadd.f32 %v10458_v55, %v10449_v49 }
 0xe07   :  { %v10460_v22 = vmul.f32 0.0034722222, %v10459_v0 }
 0xe09   :  { %v10462_v42 = vadd.f32 1e-05, %v10460_v22 }
 0xe0b   :  { %10592 = vrsqrt.f32 %v10462_v42 }
 0xe18   :  { %v10593_v51 = vpop.eup %10592 }
 0xe19   :  { %v10464_v54 = vmul.f32 %v10593_v51, %v10461_v25 }
 0xe1b   :  { %10470 = vperm.xlu1 %10588, %v10464_v54   ;;  %v10466_v53 = vmul.f32 %v10464_v54, %v10441_v61 }
 0xe1d   :  { %v10467_v15 = vsub.f32 %v10465_v45, %v10466_v53 }
 0xe1f   :  { %10477 = vperm.xlu0 %10589, %v10467_v15  }
 0xe96   :  { %v10471_v14 = vpop.permute.xlu1 %10470 }
 0xe97   :  { %v10473_v46 = vmul.f32 %v10471_v14, %v7325_v20  ;;  %v10474_v21 = vmul.f32 %v10471_v14, %v7327_v19  ;;  %v10486_v35 = vmul.f32 %v10471_v14, %v10425_v10  ;;  %v10487_v33 = vmul.f32 %v10471_v14, %v10427_v47 }
 0xe9a   :  { %v10478_v59 = vpop.permute.xlu0 %10477 }
 0xe9b   :  { %v10480_v29 = vadd.f32 %v10478_v59, %v10473_v46  ;;  %v10481_v57 = vadd.f32 %v10478_v59, %v10474_v21  ;;  %v10488_v1 = vadd.f32 %v10486_v35, %v10478_v59  ;;  %v10489_v40 = vadd.f32 %v10487_v33, %v10478_v59 }
 0xe9d   :  { %v10482_v52 = vmax.f32 %v10480_v29, 0.0  ;;  %v10483_v39 = vmax.f32 %v10481_v57, 0.0  ;;  %v10490_v5 = vmax.f32 %v10488_v1, 0.0  ;;  %v10491_v2 = vmax.f32 %v10489_v40, 0.0 }
 0xe9f   :  { %10484 = vst [vmem:[#allocation5] sm:$0xff] %v10482_v52  ;;  %10485 = vst.msk [vmem:[#allocation5 + $0x8] sm:$0xff] %vm10429_vm1, %v10483_v39 }
 0xea0   :  { %10493 = vst [vmem:[#allocation5 + $0x10] sm:$0xff] %v10490_v5  ;;  %10494 = vst.msk [vmem:[#allocation5 + $0x18] sm:$0xff] %vm10429_vm1, %v10491_v2 }
 0xea1   :  { %10630 = shalt.err (!%p10627_p9)
}
 0xea2   :  { %s10686_s8 = smov 256  }
 0xea3   :  { %10506 = dma.vmem_to_hbm [thread:$0]  %s10501_s16, 512, %s17395_s9, [#allocation4], %s10686_s8, %s10686_s8, %s10664_s3  }
 0xea4   :  { %10641 = dma.done.wait [#allocation4], 512  }
 0xea5   :  { %10642 = vsyncadd [#allocation4], 4294966784 }
 0xea6   :  { %10510 = vsyncpa [#allocation3], 1 }
 0xea7   :  { %10511 = vsyncpa [#allocation4], 1 }

</bundles_post_ra>
